<compile_context>
chip_gen: v7x
topology: tpu7x:2x2x1
jax: 0.10.0
libtpu: 0.0.40
codegen_flags: <defaults>
</compile_context>

<pallas_src>
import functools

import jax
import jax.numpy as jnp
from jax.experimental import pallas as pl
from jax.experimental.pallas import tpu as pltpu


def _vmem():
    return pl.BlockSpec(memory_space=pltpu.MemorySpace.VMEM)


# ---------------------------------------------------------------------------
# Pallas kernel: fused  out = relu?(A @ B + bias)   (bf16 MXU, f32 accumulate)
# ---------------------------------------------------------------------------
def _mm_kernel(a_ref, b_ref, bias_ref, o_ref, *, relu):
    acc = jnp.dot(a_ref[...], b_ref[...], preferred_element_type=jnp.float32)
    acc = acc + bias_ref[...]
    if relu:
        acc = jnp.maximum(acc, 0.0)
    o_ref[...] = acc.astype(o_ref.dtype)


def matmul_bias_act(a, b, bias, *, relu=False, out_dtype=jnp.bfloat16):
    """a: (M,K), b: (K,N) -> (M,N) out_dtype.  bias is broadcastable to (M,N)
    ((1,N) row bias or (M,1) column bias).  Single full-extent VMEM block:
    these matmuls are tiny, so grids/pipelining only add per-step overhead."""
    if a.dtype != jnp.bfloat16:
        a = a.astype(jnp.bfloat16)
    if b.dtype != jnp.bfloat16:
        b = b.astype(jnp.bfloat16)
    M, K = a.shape
    K2, N = b.shape
    assert K == K2
    bias = bias.astype(jnp.float32)
    if bias.ndim == 1:
        bias = bias.reshape(1, -1)
    cost = pl.CostEstimate(
        flops=2 * M * K * N,
        transcendentals=0,
        bytes_accessed=(M * K + K * N) * 2 + M * N * 4,
    )
    return pl.pallas_call(
        functools.partial(_mm_kernel, relu=relu),
        out_shape=jax.ShapeDtypeStruct((M, N), out_dtype),
        in_specs=[_vmem(), _vmem(), _vmem()],
        out_specs=_vmem(),
        cost_estimate=cost,
    )(a, b, bias)


# ---------------------------------------------------------------------------
# Pallas kernel: fused  encoder-head -> split(mu, logvar) -> rsample -> dec FC1/FC2
# (conv4+Flatten+Linear were folded into one linear "head" weight at pack time)
# ---------------------------------------------------------------------------
def _fc_chain_kernel(h_ref, wh_ref, bh_ref, eps_ref, w1_ref, b1_ref,
                     w2_ref, b2_ref, mu_ref, std_ref, d_ref, *, zdim):
    y = jnp.dot(h_ref[...], wh_ref[...],
                preferred_element_type=jnp.float32) + bh_ref[...]
    mu = y[:, :zdim]
    logvar = y[:, zdim:]
    std = jnp.exp(0.5 * logvar)
    z = mu + std * eps_ref[...]
    d1 = jnp.dot(z.astype(jnp.bfloat16), w1_ref[...],
                 preferred_element_type=jnp.float32) + b1_ref[...]
    d1 = jnp.maximum(d1, 0.0)
    d2 = jnp.dot(d1.astype(jnp.bfloat16), w2_ref[...],
                 preferred_element_type=jnp.float32) + b2_ref[...]
    d2 = jnp.maximum(d2, 0.0)
    mu_ref[...] = mu
    std_ref[...] = std
    d_ref[...] = d2.astype(d_ref.dtype)


def fc_chain(h, eps, p, zdim):
    n = h.shape[0]
    return pl.pallas_call(
        functools.partial(_fc_chain_kernel, zdim=zdim),
        out_shape=(
            jax.ShapeDtypeStruct((n, zdim), jnp.float32),    # mu
            jax.ShapeDtypeStruct((n, zdim), jnp.float32),    # std
            jax.ShapeDtypeStruct((n, 1024), jnp.bfloat16),   # decoder FC2 out
        ),
        in_specs=[_vmem() for _ in range(8)],
        out_specs=(_vmem(), _vmem(), _vmem()),
    )(h, p["e_wh"], p["e_bh"], eps, p["d_wfc1"], p["d_bfc1"],
      p["d_wfc2"], p["d_bfc2"])


# ---------------------------------------------------------------------------
# Conv / ConvTranspose lowered to NHWC im2col + fused Pallas matmul
# ---------------------------------------------------------------------------
def conv2d_nhwc(x, bmat, bias, stride, relu, out_dtype=jnp.bfloat16):
    """x: (N,H,W,C) bf16 -> (N,OH,OW,OC).  4x4 kernel, valid padding."""
    N, H, W, C = x.shape
    OC = bmat.shape[1]
    OH = (H - 4) // stride + 1
    OW = (W - 4) // stride + 1
    cols = [x[:, i:i + stride * OH:stride, j:j + stride * OW:stride, :]
            for i in range(4) for j in range(4)]
    a = jnp.stack(cols, axis=3).reshape(N * OH * OW, 16 * C)   # rows (n,oh,ow)
    out = matmul_bias_act(a, bmat, bias, relu=relu, out_dtype=out_dtype)
    return out.reshape(N, OH, OW, OC)


def conv_transpose2d_nhwc(x, bmat, bias4, relu, out_dtype=jnp.bfloat16):
    """x: (N,H,W,C) bf16 -> (N,2H,2W,OC).  ConvTranspose2d(k=4,s=2,p=1) via the
    sub-pixel decomposition: one 3x3 stride-1 im2col matmul producing all four
    output-parity classes at once."""
    N, H, W, C = x.shape
    OC = bmat.shape[1] // 4
    xp = jnp.pad(x, ((0, 0), (1, 1), (1, 1), (0, 0)))
    cols = [xp[:, i:i + H, j:j + W, :] for i in range(3) for j in range(3)]
    a = jnp.stack(cols, axis=3).reshape(N * H * W, 9 * C)
    out = matmul_bias_act(a, bmat, bias4, relu=relu, out_dtype=out_dtype)
    out = out.reshape(N, H, W, 2, 2, OC).transpose(0, 1, 3, 2, 4, 5)
    return out.reshape(N, 2 * H, 2 * W, OC)


def conv_transpose2d_final_nchw(x, bmat_t, bias_col):
    """Last ConvTranspose layer computed as the TRANSPOSED product so the
    Pallas output is lane-dense: (4*OC, N*H*W) instead of (N*H*W, 4*OC) with
    only 4 valid lanes per row.  Returns NCHW (N, OC, 2H, 2W) in f32."""
    N, H, W, C = x.shape
    OC = bmat_t.shape[0] // 4
    xp = jnp.pad(x, ((0, 0), (1, 1), (1, 1), (0, 0)))
    cols = [xp[:, i:i + H, j:j + W, :] for i in range(3) for j in range(3)]
    a_t = jnp.stack(cols, axis=0)                        # (9, N, H, W, C)
    a_t = a_t.transpose(0, 4, 1, 2, 3).reshape(9 * C, N * H * W)
    out_t = matmul_bias_act(bmat_t, a_t, bias_col, relu=False,
                            out_dtype=jnp.float32)       # (4*OC, N*H*W)
    out = out_t.reshape(2, 2, OC, N, H, W).transpose(3, 2, 4, 0, 5, 1)
    return out.reshape(N, OC, 2 * H, 2 * W)


# ---------------------------------------------------------------------------
# Parameter construction (PyTorch-style layouts) + one-time packing
# ---------------------------------------------------------------------------
def init_params(key, in_channels=1, zdim=10):
    ks = jax.random.split(key, 16)

    def conv_w(k, oc, ic, kh, kw):
        return jax.random.normal(k, (oc, ic, kh, kw), jnp.float32) / jnp.sqrt(ic * kh * kw)

    def convt_w(k, ic, oc, kh, kw):
        return jax.random.normal(k, (ic, oc, kh, kw), jnp.float32) / jnp.sqrt(ic * kh * kw)

    def lin_w(k, fin, fout):
        return jax.random.normal(k, (fin, fout), jnp.float32) / jnp.sqrt(fin)

    p = {}
    # encoder
    p["e_w1"], p["e_b1"] = conv_w(ks[0], 32, in_channels, 4, 4), jnp.zeros((32,), jnp.float32)
    p["e_w2"], p["e_b2"] = conv_w(ks[1], 64, 32, 4, 4), jnp.zeros((64,), jnp.float32)
    p["e_w3"], p["e_b3"] = conv_w(ks[2], 64, 64, 4, 4), jnp.zeros((64,), jnp.float32)
    p["e_w4"], p["e_b4"] = conv_w(ks[3], 64, 64, 4, 4), jnp.zeros((64,), jnp.float32)
    p["e_wfc"], p["e_bfc"] = lin_w(ks[4], 256, 2 * zdim), jnp.zeros((2 * zdim,), jnp.float32)
    # decoder
    p["d_wfc1"], p["d_bfc1"] = lin_w(ks[5], zdim, 256), jnp.zeros((256,), jnp.float32)
    p["d_wfc2"], p["d_bfc2"] = lin_w(ks[6], 256, 4 * 4 * 64), jnp.zeros((4 * 4 * 64,), jnp.float32)
    p["d_w1"], p["d_b1"] = convt_w(ks[7], 64, 32, 4, 4), jnp.zeros((32,), jnp.float32)
    p["d_w2"], p["d_b2"] = convt_w(ks[8], 32, 32, 4, 4), jnp.zeros((32,), jnp.float32)
    p["d_w3"], p["d_b3"] = convt_w(ks[9], 32, 32, 4, 4), jnp.zeros((32,), jnp.float32)
    p["d_w4"], p["d_b4"] = convt_w(ks[10], 32, in_channels, 4, 4), jnp.zeros((in_channels,), jnp.float32)
    return p


def _pack_conv(w):
    # Conv2d weight (OC, C, KH, KW) -> matmul B of shape (KH*KW*C, OC),
    # row order (kh, kw, c) matching the NHWC im2col patch order.
    OC, C, KH, KW = w.shape
    return w.transpose(2, 3, 1, 0).reshape(KH * KW * C, OC).astype(jnp.bfloat16)


def _pack_convt(w, b):
    # ConvTranspose2d weight (C_in, OC, 4, 4), stride 2, padding 1 -> one matmul
    # B of shape (9*C, 4*OC).  Output row parity pr uses kernel rows {3,1}
    # (pr=0) / {2,0} (pr=1) at 3x3-window offsets {0,1} / {1,2}; same for cols.
    C, OC, KH, KW = w.shape
    kmap = {0: ((0, 3), (1, 1)), 1: ((1, 2), (2, 0))}
    B = jnp.zeros((3, 3, C, 2, 2, OC), jnp.float32)
    for pr in (0, 1):
        for di, kh in kmap[pr]:
            for pc in (0, 1):
                for dj, kw in kmap[pc]:
                    B = B.at[di, dj, :, pr, pc, :].set(w[:, :, kh, kw])
    return (B.reshape(9 * C, 4 * OC).astype(jnp.bfloat16),
            jnp.tile(b, 4).astype(jnp.float32))


def _pack_encoder_head(w4, b4, wfc, bfc, zdim):
    # Conv2d(64,64,4,2) (no ReLU after it) -> Flatten -> Linear(256, 2*zdim)
    # is a single linear map on the NHWC-flattened (6,6,64) conv3 activation.
    #   Wh[(h,w,c), k] = sum_{oh,ow,oc} W4[oc,c,h-2oh,w-2ow] * Wfc[(oc,oh,ow), k]
    OC, C, KH, KW = w4.shape
    k2 = 2 * zdim
    wfc_r = wfc.reshape(OC, 2, 2, k2)                      # (oc, oh, ow, k)
    wh = jnp.zeros((6, 6, C, k2), jnp.float32)
    for oh in range(2):
        for ow in range(2):
            t = jnp.einsum('ocab,ok->abck', w4, wfc_r[:, oh, ow, :])
            wh = wh.at[2 * oh:2 * oh + 4, 2 * ow:2 * ow + 4].add(t)
    bh = bfc + jnp.einsum('oyxk,o->k', wfc_r, b4)
    return (wh.reshape(36 * C, k2).astype(jnp.bfloat16),
            bh.reshape(1, k2).astype(jnp.float32))


def pack_params(p, zdim=10):
    q = {}
    # encoder convs 1-3
    for i in (1, 2, 3):
        q[f"e_m{i}"] = _pack_conv(p[f"e_w{i}"])
        q[f"e_b{i}"] = p[f"e_b{i}"].reshape(1, -1).astype(jnp.float32)
    # conv4 + Flatten + Linear folded into one head weight (mu/logvar merged)
    q["e_wh"], q["e_bh"] = _pack_encoder_head(p["e_w4"], p["e_b4"],
                                              p["e_wfc"], p["e_bfc"], zdim)
    # decoder deconvs 1-3 (normal orientation)
    for i in (1, 2, 3):
        m, bt = _pack_convt(p[f"d_w{i}"], p[f"d_b{i}"])
        q[f"d_m{i}"] = m
        q[f"d_b{i}"] = bt.reshape(1, -1)
    # decoder deconv 4: transposed pack -> lane-dense (4*OC, N*H*W) output
    m4, bt4 = _pack_convt(p["d_w4"], p["d_b4"])
    q["d_m4t"] = m4.T                                      # (4*OC, 9*C)
    q["d_b4c"] = bt4.reshape(-1, 1)                        # per-row bias
    # decoder FCs (FC2 columns re-indexed NCHW(64,4,4) -> NHWC(4,4,64))
    q["d_wfc1"] = p["d_wfc1"].astype(jnp.bfloat16)
    q["d_bfc1"] = p["d_bfc1"].reshape(1, 256).astype(jnp.float32)
    wfc2 = p["d_wfc2"].reshape(256, 64, 4, 4).transpose(0, 2, 3, 1).reshape(256, 1024)
    q["d_wfc2"] = wfc2.astype(jnp.bfloat16)
    q["d_bfc2"] = (p["d_bfc2"].reshape(64, 4, 4).transpose(1, 2, 0)
                   .reshape(1, 1024).astype(jnp.float32))
    return q


# ---------------------------------------------------------------------------
# VAE forward (matches PyTorch VAE.forward semantics; NHWC internally)
# ---------------------------------------------------------------------------
def vae_forward(params, x, eps, zdim=10):
    N = x.shape[0]
    h = jnp.transpose(x, (0, 2, 3, 1)).astype(jnp.bfloat16)   # NCHW -> NHWC, once
    h = conv2d_nhwc(h, params["e_m1"], params["e_b1"], 2, relu=True)
    h = conv2d_nhwc(h, params["e_m2"], params["e_b2"], 2, relu=True)
    h = conv2d_nhwc(h, params["e_m3"], params["e_b3"], 2, relu=True)
    h = h.reshape(N, -1)                            # (N, 6*6*64) NHWC flatten
    # fused: encoder head (conv4+FC folded) -> mu/logvar -> z = mu + std*eps
    #        -> decoder FC1 -> FC2
    mu, std, d = fc_chain(h, eps, params, zdim)
    d = d.reshape(N, 4, 4, 64)                      # NHWC unflatten (cols pre-permuted)
    d = conv_transpose2d_nhwc(d, params["d_m1"], params["d_b1"], relu=True)
    d = conv_transpose2d_nhwc(d, params["d_m2"], params["d_b2"], relu=True)
    d = conv_transpose2d_nhwc(d, params["d_m3"], params["d_b3"], relu=True)
    recon = conv_transpose2d_final_nchw(d, params["d_m4t"], params["d_b4c"])
    # TODO(synk): torch.distributions.Normal has no Pallas/JAX object equivalent;
    # we return (mu, std), which fully parameterizes q (rsample uses caller eps).
    return recon, (mu, std)


if __name__ == "__main__":
    key = jax.random.PRNGKey(0)
    kp, kx, ke = jax.random.split(key, 3)
    zdim = 10
    raw = init_params(kp, in_channels=1, zdim=zdim)
    params = pack_params(raw, zdim=zdim)

    # Encoder arithmetic (4x conv k=4 s=2 -> Flatten==256) implies 1x64x64 input.
    x = jax.random.normal(kx, (2, 1, 64, 64), jnp.float32)
    eps = jax.random.normal(ke, (2, zdim), jnp.float32)    # rsample noise

    fwd = jax.jit(lambda p, xx, ee: vae_forward(p, xx, ee, zdim=zdim))
    recon, (mu, std) = fwd(params, x, eps)
    jax.block_until_ready(recon)
    jax.block_until_ready(mu)
    jax.block_until_ready(std)

    assert recon.shape == (2, 1, 64, 64)
    assert mu.shape == (2, zdim) and std.shape == (2, zdim)
    assert bool(jnp.isfinite(recon).all()) and bool(jnp.isfinite(std).all())
    print("KERNEL_OK")
</pallas_src>

<mosaic_0001>
module attributes {stable_mosaic.version = 11 : i64} {
  func.func @_mm_kernel(%arg0: memref<1922x16xbf16, #tpu.memory_space<vmem>>, %arg1: memref<16x32xbf16, #tpu.memory_space<vmem>>, %arg2: memref<1x32xf32, #tpu.memory_space<vmem>>, %arg3: memref<1922x32xbf16, #tpu.memory_space<vmem>>) attributes {dimension_semantics = [], scalar_prefetch = 0 : i64, scratch_operands = 0 : i64, tpu.core_type = #tpu.core_type<tc>} {
    %c0 = arith.constant 0 : index
    %c0_0 = arith.constant 0 : index
    %0 = vector.load %arg0[%c0, %c0_0] : memref<1922x16xbf16, #tpu.memory_space<vmem>>, vector<1922x16xbf16>
    %c0_1 = arith.constant 0 : index
    %c0_2 = arith.constant 0 : index
    %1 = vector.load %arg1[%c0_1, %c0_2] : memref<16x32xbf16, #tpu.memory_space<vmem>>, vector<16x32xbf16>
    %cst = arith.constant dense<0.000000e+00> : vector<1922x32xf32>
    %2 = tpu.matmul %0, %1, %cst {dimension_numbers = #tpu.dot_dimension_numbers<[1], [0], [0], [1], [0, 0, 1, 1], [], []>} : vector<1922x16xbf16>, vector<16x32xbf16>, vector<1922x32xf32> -> vector<1922x32xf32>
    %c0_3 = arith.constant 0 : index
    %c0_4 = arith.constant 0 : index
    %3 = vector.load %arg2[%c0_3, %c0_4] : memref<1x32xf32, #tpu.memory_space<vmem>>, vector<1x32xf32>
    %4 = vector.broadcast %3 : vector<1x32xf32> to vector<1922x32xf32>
    %5 = arith.addf %2, %4 : vector<1922x32xf32>
    %cst_5 = arith.constant 0.000000e+00 : f32
    %6 = vector.broadcast %cst_5 : f32 to vector<1922x32xf32>
    %7 = arith.maximumf %5, %6 : vector<1922x32xf32>
    %8 = arith.truncf %7 : vector<1922x32xf32> to vector<1922x32xbf16>
    %c0_6 = arith.constant 0 : index
    %c0_7 = arith.constant 0 : index
    %9 = vector.load %arg3[%c0_6, %c0_7] : memref<1922x32xbf16, #tpu.memory_space<vmem>>, vector<1922x32xbf16>
    tpu.vector_store %arg3[%c0_6, %c0_7], %8 {strides = array<i32>} : memref<1922x32xbf16, #tpu.memory_space<vmem>>, vector<1922x32xbf16>,
    return
  }
}

module attributes {stable_mosaic.version = 11 : i64} {
  func.func @_mm_kernel(%arg0: memref<392x512xbf16, #tpu.memory_space<vmem>>, %arg1: memref<512x64xbf16, #tpu.memory_space<vmem>>, %arg2: memref<1x64xf32, #tpu.memory_space<vmem>>, %arg3: memref<392x64xbf16, #tpu.memory_space<vmem>>) attributes {dimension_semantics = [], scalar_prefetch = 0 : i64, scratch_operands = 0 : i64, tpu.core_type = #tpu.core_type<tc>} {
    %c0 = arith.constant 0 : index
    %c0_0 = arith.constant 0 : index
    %0 = vector.load %arg0[%c0, %c0_0] : memref<392x512xbf16, #tpu.memory_space<vmem>>, vector<392x512xbf16>
    %c0_1 = arith.constant 0 : index
    %c0_2 = arith.constant 0 : index
    %1 = vector.load %arg1[%c0_1, %c0_2] : memref<512x64xbf16, #tpu.memory_space<vmem>>, vector<512x64xbf16>
    %cst = arith.constant dense<0.000000e+00> : vector<392x64xf32>
    %2 = tpu.matmul %0, %1, %cst {dimension_numbers = #tpu.dot_dimension_numbers<[1], [0], [0], [1], [0, 0, 1, 1], [], []>} : vector<392x512xbf16>, vector<512x64xbf16>, vector<392x64xf32> -> vector<392x64xf32>
    %c0_3 = arith.constant 0 : index
    %c0_4 = arith.constant 0 : index
    %3 = vector.load %arg2[%c0_3, %c0_4] : memref<1x64xf32, #tpu.memory_space<vmem>>, vector<1x64xf32>
    %4 = vector.broadcast %3 : vector<1x64xf32> to vector<392x64xf32>
    %5 = arith.addf %2, %4 : vector<392x64xf32>
    %cst_5 = arith.constant 0.000000e+00 : f32
    %6 = vector.broadcast %cst_5 : f32 to vector<392x64xf32>
    %7 = arith.maximumf %5, %6 : vector<392x64xf32>
    %8 = arith.truncf %7 : vector<392x64xf32> to vector<392x64xbf16>
    %c0_6 = arith.constant 0 : index
    %c0_7 = arith.constant 0 : index
    %9 = vector.load %arg3[%c0_6, %c0_7] : memref<392x64xbf16, #tpu.memory_space<vmem>>, vector<392x64xbf16>
    tpu.vector_store %arg3[%c0_6, %c0_7], %8 {strides = array<i32>} : memref<392x64xbf16, #tpu.memory_space<vmem>>, vector<392x64xbf16>,
    return
  }
}

module attributes {stable_mosaic.version = 11 : i64} {
  func.func @_mm_kernel(%arg0: memref<72x1024xbf16, #tpu.memory_space<vmem>>, %arg1: memref<1024x64xbf16, #tpu.memory_space<vmem>>, %arg2: memref<1x64xf32, #tpu.memory_space<vmem>>, %arg3: memref<72x64xbf16, #tpu.memory_space<vmem>>) attributes {dimension_semantics = [], scalar_prefetch = 0 : i64, scratch_operands = 0 : i64, tpu.core_type = #tpu.core_type<tc>} {
    %c0 = arith.constant 0 : index
    %c0_0 = arith.constant 0 : index
    %0 = vector.load %arg0[%c0, %c0_0] : memref<72x1024xbf16, #tpu.memory_space<vmem>>, vector<72x1024xbf16>
    %c0_1 = arith.constant 0 : index
    %c0_2 = arith.constant 0 : index
    %1 = vector.load %arg1[%c0_1, %c0_2] : memref<1024x64xbf16, #tpu.memory_space<vmem>>, vector<1024x64xbf16>
    %cst = arith.constant dense<0.000000e+00> : vector<72x64xf32>
    %2 = tpu.matmul %0, %1, %cst {dimension_numbers = #tpu.dot_dimension_numbers<[1], [0], [0], [1], [0, 0, 1, 1], [], []>} : vector<72x1024xbf16>, vector<1024x64xbf16>, vector<72x64xf32> -> vector<72x64xf32>
    %c0_3 = arith.constant 0 : index
    %c0_4 = arith.constant 0 : index
    %3 = vector.load %arg2[%c0_3, %c0_4] : memref<1x64xf32, #tpu.memory_space<vmem>>, vector<1x64xf32>
    %4 = vector.broadcast %3 : vector<1x64xf32> to vector<72x64xf32>
    %5 = arith.addf %2, %4 : vector<72x64xf32>
    %cst_5 = arith.constant 0.000000e+00 : f32
    %6 = vector.broadcast %cst_5 : f32 to vector<72x64xf32>
    %7 = arith.maximumf %5, %6 : vector<72x64xf32>
    %8 = arith.truncf %7 : vector<72x64xf32> to vector<72x64xbf16>
    %c0_6 = arith.constant 0 : index
    %c0_7 = arith.constant 0 : index
    %9 = vector.load %arg3[%c0_6, %c0_7] : memref<72x64xbf16, #tpu.memory_space<vmem>>, vector<72x64xbf16>
    tpu.vector_store %arg3[%c0_6, %c0_7], %8 {strides = array<i32>} : memref<72x64xbf16, #tpu.memory_space<vmem>>, vector<72x64xbf16>,
    return
  }
}

module attributes {stable_mosaic.version = 11 : i64} {
  func.func @_fc_chain_kernel(%arg0: memref<2x2304xbf16, #tpu.memory_space<vmem>>, %arg1: memref<2304x20xbf16, #tpu.memory_space<vmem>>, %arg2: memref<1x20xf32, #tpu.memory_space<vmem>>, %arg3: memref<2x10xf32, #tpu.memory_space<vmem>>, %arg4: memref<10x256xbf16, #tpu.memory_space<vmem>>, %arg5: memref<1x256xf32, #tpu.memory_space<vmem>>, %arg6: memref<256x1024xbf16, #tpu.memory_space<vmem>>, %arg7: memref<1x1024xf32, #tpu.memory_space<vmem>>, %arg8: memref<2x10xf32, #tpu.memory_space<vmem>>, %arg9: memref<2x10xf32, #tpu.memory_space<vmem>>, %arg10: memref<2x1024xbf16, #tpu.memory_space<vmem>>) attributes {dimension_semantics = [], scalar_prefetch = 0 : i64, scratch_operands = 0 : i64, tpu.core_type = #tpu.core_type<tc>} {
    %c0 = arith.constant 0 : index
    %c0_0 = arith.constant 0 : index
    %0 = vector.load %arg0[%c0, %c0_0] : memref<2x2304xbf16, #tpu.memory_space<vmem>>, vector<2x2304xbf16>
    %c0_1 = arith.constant 0 : index
    %c0_2 = arith.constant 0 : index
    %1 = vector.load %arg1[%c0_1, %c0_2] : memref<2304x20xbf16, #tpu.memory_space<vmem>>, vector<2304x20xbf16>
    %cst = arith.constant dense<0.000000e+00> : vector<2x20xf32>
    %2 = tpu.matmul %0, %1, %cst {dimension_numbers = #tpu.dot_dimension_numbers<[1], [0], [0], [1], [0, 0, 1, 1], [], []>} : vector<2x2304xbf16>, vector<2304x20xbf16>, vector<2x20xf32> -> vector<2x20xf32>
    %c0_3 = arith.constant 0 : index
    %c0_4 = arith.constant 0 : index
    %3 = vector.load %arg2[%c0_3, %c0_4] : memref<1x20xf32, #tpu.memory_space<vmem>>, vector<1x20xf32>
    %4 = vector.broadcast %3 : vector<1x20xf32> to vector<2x20xf32>
    %5 = arith.addf %2, %4 : vector<2x20xf32>
    %6 = vector.extract_strided_slice %5 {offsets = [0, 0], sizes = [2, 10], strides = [1, 1]} : vector<2x20xf32> to vector<2x10xf32>
    %7 = vector.extract_strided_slice %5 {offsets = [0, 10], sizes = [2, 10], strides = [1, 1]} : vector<2x20xf32> to vector<2x10xf32>
    %cst_5 = arith.constant 5.000000e-01 : f32
    %8 = vector.broadcast %cst_5 : f32 to vector<2x10xf32>
    %9 = arith.mulf %8, %7 : vector<2x10xf32>
    %10 = math.exp %9 : vector<2x10xf32>
    %c0_6 = arith.constant 0 : index
    %c0_7 = arith.constant 0 : index
    %11 = vector.load %arg3[%c0_6, %c0_7] : memref<2x10xf32, #tpu.memory_space<vmem>>, vector<2x10xf32>
    %12 = arith.mulf %10, %11 : vector<2x10xf32>
    %13 = arith.addf %6, %12 : vector<2x10xf32>
    %14 = arith.truncf %13 : vector<2x10xf32> to vector<2x10xbf16>
    %c0_8 = arith.constant 0 : index
    %c0_9 = arith.constant 0 : index
    %15 = vector.load %arg4[%c0_8, %c0_9] : memref<10x256xbf16, #tpu.memory_space<vmem>>, vector<10x256xbf16>
    %cst_10 = arith.constant dense<0.000000e+00> : vector<2x256xf32>
    %16 = tpu.matmul %14, %15, %cst_10 {dimension_numbers = #tpu.dot_dimension_numbers<[1], [0], [0], [1], [0, 0, 1, 1], [], []>} : vector<2x10xbf16>, vector<10x256xbf16>, vector<2x256xf32> -> vector<2x256xf32>
    %c0_11 = arith.constant 0 : index
    %c0_12 = arith.constant 0 : index
    %17 = vector.load %arg5[%c0_11, %c0_12] : memref<1x256xf32, #tpu.memory_space<vmem>>, vector<1x256xf32>
    %18 = vector.broadcast %17 : vector<1x256xf32> to vector<2x256xf32>
    %19 = arith.addf %16, %18 : vector<2x256xf32>
    %cst_13 = arith.constant 0.000000e+00 : f32
    %20 = vector.broadcast %cst_13 : f32 to vector<2x256xf32>
    %21 = arith.maximumf %19, %20 : vector<2x256xf32>
    %22 = arith.truncf %21 : vector<2x256xf32> to vector<2x256xbf16>
    %c0_14 = arith.constant 0 : index
    %c0_15 = arith.constant 0 : index
    %23 = vector.load %arg6[%c0_14, %c0_15] : memref<256x1024xbf16, #tpu.memory_space<vmem>>, vector<256x1024xbf16>
    %cst_16 = arith.constant dense<0.000000e+00> : vector<2x1024xf32>
    %24 = tpu.matmul %22, %23, %cst_16 {dimension_numbers = #tpu.dot_dimension_numbers<[1], [0], [0], [1], [0, 0, 1, 1], [], []>} : vector<2x256xbf16>, vector<256x1024xbf16>, vector<2x1024xf32> -> vector<2x1024xf32>
    %c0_17 = arith.constant 0 : index
    %c0_18 = arith.constant 0 : index
    %25 = vector.load %arg7[%c0_17, %c0_18] : memref<1x1024xf32, #tpu.memory_space<vmem>>, vector<1x1024xf32>
    %26 = vector.broadcast %25 : vector<1x1024xf32> to vector<2x1024xf32>
    %27 = arith.addf %24, %26 : vector<2x1024xf32>
    %cst_19 = arith.constant 0.000000e+00 : f32
    %28 = vector.broadcast %cst_19 : f32 to vector<2x1024xf32>
    %29 = arith.maximumf %27, %28 : vector<2x1024xf32>
    %c0_20 = arith.constant 0 : index
    %c0_21 = arith.constant 0 : index
    %30 = vector.load %arg8[%c0_20, %c0_21] : memref<2x10xf32, #tpu.memory_space<vmem>>, vector<2x10xf32>
    tpu.vector_store %arg8[%c0_20, %c0_21], %6 {strides = array<i32>} : memref<2x10xf32, #tpu.memory_space<vmem>>, vector<2x10xf32>,
    %c0_22 = arith.constant 0 : index
    %c0_23 = arith.constant 0 : index
    %31 = vector.load %arg9[%c0_22, %c0_23] : memref<2x10xf32, #tpu.memory_space<vmem>>, vector<2x10xf32>
    tpu.vector_store %arg9[%c0_22, %c0_23], %10 {strides = array<i32>} : memref<2x10xf32, #tpu.memory_space<vmem>>, vector<2x10xf32>,
    %32 = arith.truncf %29 : vector<2x1024xf32> to vector<2x1024xbf16>
    %c0_24 = arith.constant 0 : index
    %c0_25 = arith.constant 0 : index
    %33 = vector.load %arg10[%c0_24, %c0_25] : memref<2x1024xbf16, #tpu.memory_space<vmem>>, vector<2x1024xbf16>
    tpu.vector_store %arg10[%c0_24, %c0_25], %32 {strides = array<i32>} : memref<2x1024xbf16, #tpu.memory_space<vmem>>, vector<2x1024xbf16>,
    return
  }
}

module attributes {stable_mosaic.version = 11 : i64} {
  func.func @_mm_kernel(%arg0: memref<32x576xbf16, #tpu.memory_space<vmem>>, %arg1: memref<576x128xbf16, #tpu.memory_space<vmem>>, %arg2: memref<1x128xf32, #tpu.memory_space<vmem>>, %arg3: memref<32x128xbf16, #tpu.memory_space<vmem>>) attributes {dimension_semantics = [], scalar_prefetch = 0 : i64, scratch_operands = 0 : i64, tpu.core_type = #tpu.core_type<tc>} {
    %c0 = arith.constant 0 : index
    %c0_0 = arith.constant 0 : index
    %0 = vector.load %arg0[%c0, %c0_0] : memref<32x576xbf16, #tpu.memory_space<vmem>>, vector<32x576xbf16>
    %c0_1 = arith.constant 0 : index
    %c0_2 = arith.constant 0 : index
    %1 = vector.load %arg1[%c0_1, %c0_2] : memref<576x128xbf16, #tpu.memory_space<vmem>>, vector<576x128xbf16>
    %cst = arith.constant dense<0.000000e+00> : vector<32x128xf32>
    %2 = tpu.matmul %0, %1, %cst {dimension_numbers = #tpu.dot_dimension_numbers<[1], [0], [0], [1], [0, 0, 1, 1], [], []>} : vector<32x576xbf16>, vector<576x128xbf16>, vector<32x128xf32> -> vector<32x128xf32>
    %c0_3 = arith.constant 0 : index
    %c0_4 = arith.constant 0 : index
    %3 = vector.load %arg2[%c0_3, %c0_4] : memref<1x128xf32, #tpu.memory_space<vmem>>, vector<1x128xf32>
    %4 = vector.broadcast %3 : vector<1x128xf32> to vector<32x128xf32>
    %5 = arith.addf %2, %4 : vector<32x128xf32>
    %cst_5 = arith.constant 0.000000e+00 : f32
    %6 = vector.broadcast %cst_5 : f32 to vector<32x128xf32>
    %7 = arith.maximumf %5, %6 : vector<32x128xf32>
    %8 = arith.truncf %7 : vector<32x128xf32> to vector<32x128xbf16>
    %c0_6 = arith.constant 0 : index
    %c0_7 = arith.constant 0 : index
    %9 = vector.load %arg3[%c0_6, %c0_7] : memref<32x128xbf16, #tpu.memory_space<vmem>>, vector<32x128xbf16>
    tpu.vector_store %arg3[%c0_6, %c0_7], %8 {strides = array<i32>} : memref<32x128xbf16, #tpu.memory_space<vmem>>, vector<32x128xbf16>,
    return
  }
}

module attributes {stable_mosaic.version = 11 : i64} {
  func.func @_mm_kernel(%arg0: memref<128x288xbf16, #tpu.memory_space<vmem>>, %arg1: memref<288x128xbf16, #tpu.memory_space<vmem>>, %arg2: memref<1x128xf32, #tpu.memory_space<vmem>>, %arg3: memref<128x128xbf16, #tpu.memory_space<vmem>>) attributes {dimension_semantics = [], scalar_prefetch = 0 : i64, scratch_operands = 0 : i64, tpu.core_type = #tpu.core_type<tc>} {
    %c0 = arith.constant 0 : index
    %c0_0 = arith.constant 0 : index
    %0 = vector.load %arg0[%c0, %c0_0] : memref<128x288xbf16, #tpu.memory_space<vmem>>, vector<128x288xbf16>
    %c0_1 = arith.constant 0 : index
    %c0_2 = arith.constant 0 : index
    %1 = vector.load %arg1[%c0_1, %c0_2] : memref<288x128xbf16, #tpu.memory_space<vmem>>, vector<288x128xbf16>
    %cst = arith.constant dense<0.000000e+00> : vector<128x128xf32>
    %2 = tpu.matmul %0, %1, %cst {dimension_numbers = #tpu.dot_dimension_numbers<[1], [0], [0], [1], [0, 0, 1, 1], [], []>} : vector<128x288xbf16>, vector<288x128xbf16>, vector<128x128xf32> -> vector<128x128xf32>
    %c0_3 = arith.constant 0 : index
    %c0_4 = arith.constant 0 : index
    %3 = vector.load %arg2[%c0_3, %c0_4] : memref<1x128xf32, #tpu.memory_space<vmem>>, vector<1x128xf32>
    %4 = vector.broadcast %3 : vector<1x128xf32> to vector<128x128xf32>
    %5 = arith.addf %2, %4 : vector<128x128xf32>
    %cst_5 = arith.constant 0.000000e+00 : f32
    %6 = vector.broadcast %cst_5 : f32 to vector<128x128xf32>
    %7 = arith.maximumf %5, %6 : vector<128x128xf32>
    %8 = arith.truncf %7 : vector<128x128xf32> to vector<128x128xbf16>
    %c0_6 = arith.constant 0 : index
    %c0_7 = arith.constant 0 : index
    %9 = vector.load %arg3[%c0_6, %c0_7] : memref<128x128xbf16, #tpu.memory_space<vmem>>, vector<128x128xbf16>
    tpu.vector_store %arg3[%c0_6, %c0_7], %8 {strides = array<i32>} : memref<128x128xbf16, #tpu.memory_space<vmem>>, vector<128x128xbf16>,
    return
  }
}

module attributes {stable_mosaic.version = 11 : i64} {
  func.func @_mm_kernel(%arg0: memref<512x288xbf16, #tpu.memory_space<vmem>>, %arg1: memref<288x128xbf16, #tpu.memory_space<vmem>>, %arg2: memref<1x128xf32, #tpu.memory_space<vmem>>, %arg3: memref<512x128xbf16, #tpu.memory_space<vmem>>) attributes {dimension_semantics = [], scalar_prefetch = 0 : i64, scratch_operands = 0 : i64, tpu.core_type = #tpu.core_type<tc>} {
    %c0 = arith.constant 0 : index
    %c0_0 = arith.constant 0 : index
    %0 = vector.load %arg0[%c0, %c0_0] : memref<512x288xbf16, #tpu.memory_space<vmem>>, vector<512x288xbf16>
    %c0_1 = arith.constant 0 : index
    %c0_2 = arith.constant 0 : index
    %1 = vector.load %arg1[%c0_1, %c0_2] : memref<288x128xbf16, #tpu.memory_space<vmem>>, vector<288x128xbf16>
    %cst = arith.constant dense<0.000000e+00> : vector<512x128xf32>
    %2 = tpu.matmul %0, %1, %cst {dimension_numbers = #tpu.dot_dimension_numbers<[1], [0], [0], [1], [0, 0, 1, 1], [], []>} : vector<512x288xbf16>, vector<288x128xbf16>, vector<512x128xf32> -> vector<512x128xf32>
    %c0_3 = arith.constant 0 : index
    %c0_4 = arith.constant 0 : index
    %3 = vector.load %arg2[%c0_3, %c0_4] : memref<1x128xf32, #tpu.memory_space<vmem>>, vector<1x128xf32>
    %4 = vector.broadcast %3 : vector<1x128xf32> to vector<512x128xf32>
    %5 = arith.addf %2, %4 : vector<512x128xf32>
    %cst_5 = arith.constant 0.000000e+00 : f32
    %6 = vector.broadcast %cst_5 : f32 to vector<512x128xf32>
    %7 = arith.maximumf %5, %6 : vector<512x128xf32>
    %8 = arith.truncf %7 : vector<512x128xf32> to vector<512x128xbf16>
    %c0_6 = arith.constant 0 : index
    %c0_7 = arith.constant 0 : index
    %9 = vector.load %arg3[%c0_6, %c0_7] : memref<512x128xbf16, #tpu.memory_space<vmem>>, vector<512x128xbf16>
    tpu.vector_store %arg3[%c0_6, %c0_7], %8 {strides = array<i32>} : memref<512x128xbf16, #tpu.memory_space<vmem>>, vector<512x128xbf16>,
    return
  }
}

module attributes {stable_mosaic.version = 11 : i64} {
  func.func @_mm_kernel(%arg0: memref<4x288xbf16, #tpu.memory_space<vmem>>, %arg1: memref<288x2048xbf16, #tpu.memory_space<vmem>>, %arg2: memref<4x1xf32, #tpu.memory_space<vmem>>, %arg3: memref<4x2048xf32, #tpu.memory_space<vmem>>) attributes {dimension_semantics = [], scalar_prefetch = 0 : i64, scratch_operands = 0 : i64, tpu.core_type = #tpu.core_type<tc>} {
    %c0 = arith.constant 0 : index
    %c0_0 = arith.constant 0 : index
    %0 = vector.load %arg0[%c0, %c0_0] : memref<4x288xbf16, #tpu.memory_space<vmem>>, vector<4x288xbf16>
    %c0_1 = arith.constant 0 : index
    %c0_2 = arith.constant 0 : index
    %1 = vector.load %arg1[%c0_1, %c0_2] : memref<288x2048xbf16, #tpu.memory_space<vmem>>, vector<288x2048xbf16>
    %cst = arith.constant dense<0.000000e+00> : vector<4x2048xf32>
    %2 = tpu.matmul %0, %1, %cst {dimension_numbers = #tpu.dot_dimension_numbers<[1], [0], [0], [1], [0, 0, 1, 1], [], []>} : vector<4x288xbf16>, vector<288x2048xbf16>, vector<4x2048xf32> -> vector<4x2048xf32>
    %c0_3 = arith.constant 0 : index
    %c0_4 = arith.constant 0 : index
    %3 = vector.load %arg2[%c0_3, %c0_4] : memref<4x1xf32, #tpu.memory_space<vmem>>, vector<4x1xf32>
    %4 = vector.broadcast %3 : vector<4x1xf32> to vector<4x2048xf32>
    %5 = arith.addf %2, %4 : vector<4x2048xf32>
    %c0_5 = arith.constant 0 : index
    %c0_6 = arith.constant 0 : index
    %6 = vector.load %arg3[%c0_5, %c0_6] : memref<4x2048xf32, #tpu.memory_space<vmem>>, vector<4x2048xf32>
    tpu.vector_store %arg3[%c0_5, %c0_6], %5 {strides = array<i32>} : memref<4x2048xf32, #tpu.memory_space<vmem>>, vector<4x2048xf32>,
    return
  }
}

</mosaic_0001>

<bundles_post_ra>
// kernel: _lambda_.8
= control target key start
LH: loop header
LB: loop body
LE: loop exit
PB: predicated region body
PF: predicated region fallthrough
CT: control target
= control target key end

     0   :  { %8 = vsyncpa [#allocation3], 0  ;;  %s7224_s0 = inlined_call_operand.vmem [shape: bf16[1922,16], index: 0, kind: input, shape index: {}]   ;;  %s7225_s1 = inlined_call_operand.hbm [shape: bf16[16,32], index: 1, kind: input, shape index: {}]   ;;  %s7226_s2 = inlined_call_operand.hbm [shape: f32[1,32], index: 2, kind: input, shape index: {}]   ;;  %s7227_s3 = inlined_call_operand.vmem [shape: bf16[1922,32], index: 3, kind: output, shape index: {}]  }
   0x1   :  { %9 = vsyncpa [#allocation5], 0  ;;  %s5234_s12 = smov [#allocation2]   ;;  %s5186_s16 = scalar_lea.hbm %s7225_s1, 128 }
   0x2   :  { %s17_s13 = sshll.u32 %s5234_s12, 4  ;;  %p5187_p0 = scmp.ne.s32.totalorder %s7225_s1, %s5186_s16  ;;  %s18_s13 = int_to_ptr.vmem [resolvable:$true] %s17_s13 }
   0x3   :  { %p5190_p1 = scmp.lt.u32.totalorder %s5186_s16, %s7225_s1 }
   0x5   :  { %p5192_p2 = pnand %p5190_p1, %p5187_p0 }
   0x7   :  { %5195 = shalt.err (!%p5192_p2)
}
   0x8   :  { %s5196_s21 = scalar_lea.vmem %s18_s13, 128  ;;  %p5201_p4 = scmp.lt.s32.totalorder %s18_s13, %s18_s13 }
   0x9   :  { %p5197_p3 = scmp.ne.s32.totalorder %s18_s13, %s5196_s21  ;;  %p5202_p5 = scmp.lt.s32.totalorder %s5196_s21, %s5196_s21 }
   0xb   :  { %p5203_p6 = por %p5202_p5, %p5201_p4 }
   0xd   :  { %p5204_p7 = pnand %p5203_p6, %p5197_p3 }
   0xf   :  { %5207 = shalt.err (!%p5204_p7)
}
  0x10   :  { %s5235_s22 = smov 64   ;;  %s5236_s23 = smov 4  }
  0x11   :  { %23 = dma.hbm_to_vmem [thread:$0]  %s7225_s1, 128, %s18_s13, [#allocation3], %s5235_s22, %s5235_s22, %s5236_s23  }
  0x12   :  { %s5237_s26 = smov [#allocation4]   ;;  %s5208_s30 = scalar_lea.hbm %s7226_s2, 16 }
  0x13   :  { %s30_s27 = sshll.u32 %s5237_s26, 4  ;;  %p5209_p8 = scmp.ne.s32.totalorder %s7226_s2, %s5208_s30  ;;  %s31_s27 = int_to_ptr.vmem [resolvable:$true] %s30_s27 }
  0x14   :  { %p5212_p9 = scmp.lt.u32.totalorder %s5208_s30, %s7226_s2 }
  0x16   :  { %p5214_p10 = pnand %p5212_p9, %p5209_p8 }
  0x18   :  { %5217 = shalt.err (!%p5214_p10)
}
  0x19   :  { %s5218_s8 = scalar_lea.vmem %s31_s27, 16  ;;  %s5222_s1 = scalar_lea.vmem %s31_s27, 32 }
  0x1a   :  { %p5219_p11 = scmp.ne.s32.totalorder %s31_s27, %s5218_s8  ;;  %p5223_p12 = scmp.lt.s32.totalorder %s31_s27, %s31_s27 }
  0x1b   :  { %p5224_p13 = scmp.lt.s32.totalorder %s5222_s1, %s5218_s8 }
  0x1d   :  { %p5225_p0 = por %p5224_p13, %p5223_p12 }
  0x1f   :  { %p5226_p1 = pnand %p5225_p0, %p5219_p11 }
  0x21   :  { %5229 = shalt.err (!%p5226_p1)
}
  0x22   :  { %33 = dma.hbm_to_vmem [thread:$0]  %s7226_s2, 16, %s31_s27, [#allocation5]  }
  0x23   :  { %5230 = dma.done.wait [#allocation3], 128  }
  0x24   :  { %5231 = vsyncadd [#allocation3], 4294967168 }
  0x25   :  { %5232 = dma.done.wait [#allocation5], 16  }
  0x26   :  { %5233 = vsyncadd [#allocation5], 4294967280  ;;  %v5238_v0 = vmov 0.0   ;;  %vm5239_vm0 = vmmov 0   ;;  %v5061_v1 = vld [vmem:[#allocation2] sm:$0xff]   ;;  %vm900_vm1 = vcmask 130048  }
  0x27   :  { %4567 = vmatprep.subr.bf16.mxu0 %v5238_v0  ;;  %4569 = vmatprep.mubr.msk.bf16.mxu0 %vm5239_vm0, %v5238_v0  ;;  %v5062_v2 = vld [vmem:[%s7224_s0] sm:$0xff]   ;;  %v5063_v3 = vld [vmem:[%s7224_s0 + $0x1e8] sm:$0xff]   ;;  %v5065_v5 = vld [vmem:[%s7224_s0 + $0x1f0] sm:$0xff]   ;;  %vm3470_vm2 = vcmask 257024   ;;  %vm3711_vm3 = vcmask 253952  }
  0x28   :  { %5053 = vmatprep.subr.bf16.mxu1 %v5238_v0  ;;  %4813 = vmatprep.mubr.msk.bf16.mxu1 %vm5239_vm0, %v5238_v0  ;;  %v5064_v4 = vld [vmem:[%s7224_s0 + $0x8] sm:$0xff]   ;;  %v5066_v6 = vld [vmem:[%s7224_s0 + $0x10] sm:$0xff]   ;;  %v5067_v7 = vld [vmem:[%s7224_s0 + $0x1f8] sm:$0xff]  }
  0x29   :  { %4568 = vmatpush3.bf16.msra.mxu0 %v5061_v1  ;;  %5054 = vmatpush3.bf16.msra.mxu1 %v5061_v1  ;;  %v5068_v8 = vld [vmem:[%s7224_s0 + $0x18] sm:$0xff]   ;;  %v5069_v9 = vld [vmem:[%s7224_s0 + $0x200] sm:$0xff]   ;;  %v5071_v11 = vld [vmem:[%s7224_s0 + $0x208] sm:$0xff]  }
  0x2a   :  { %v5070_v10 = vld [vmem:[%s7224_s0 + $0x20] sm:$0xff]   ;;  %v5072_v12 = vld [vmem:[%s7224_s0 + $0x28] sm:$0xff]   ;;  %v5073_v13 = vld [vmem:[%s7224_s0 + $0x210] sm:$0xff]  }
  0x2b   :  { %v5074_v14 = vld [vmem:[%s7224_s0 + $0x30] sm:$0xff]   ;;  %v5075_v15 = vld [vmem:[%s7224_s0 + $0x218] sm:$0xff]   ;;  %v5077_v17 = vld [vmem:[%s7224_s0 + $0x220] sm:$0xff]  }
  0x2c   :  { %4570 = vmatmul.mubr.msk.bf16.vlgmr.msra.gmra.mrb[0].mxu0 %vm900_vm1, %v5062_v2  ;;  %4814 = vmatmul.mubr.msk.bf16.vlgmr.msra.gmra.mrb[0].mxu1 %vm900_vm1, %v5063_v3  ;;  %v5076_v16 = vld [vmem:[%s7224_s0 + $0x38] sm:$0xff]   ;;  %v5078_v18 = vld [vmem:[%s7224_s0 + $0x40] sm:$0xff]   ;;  %v5079_v19 = vld [vmem:[%s7224_s0 + $0x228] sm:$0xff]  }
  0x2d   :  { %4573 = vmatprep.mubr.msk.bf16.mxu0 %vm5239_vm0, %v5238_v0  ;;  %4817 = vmatprep.mubr.msk.bf16.mxu1 %vm5239_vm0, %v5238_v0  ;;  %v5080_v20 = vld [vmem:[%s7224_s0 + $0x48] sm:$0xff]   ;;  %v5081_v21 = vld [vmem:[%s7224_s0 + $0x230] sm:$0xff]   ;;  %v5083_v23 = vld [vmem:[%s7224_s0 + $0x238] sm:$0xff]  }
  0x2e   :  { %v5082_v22 = vld [vmem:[%s7224_s0 + $0x50] sm:$0xff]   ;;  %v5084_v24 = vld [vmem:[%s7224_s0 + $0x58] sm:$0xff]   ;;  %v5085_v25 = vld [vmem:[%s7224_s0 + $0x240] sm:$0xff]  }
  0x2f   :  { %v5086_v26 = vld [vmem:[%s7224_s0 + $0x60] sm:$0xff]   ;;  %v5087_v27 = vld [vmem:[%s7224_s0 + $0x248] sm:$0xff]   ;;  %v5089_v29 = vld [vmem:[%s7224_s0 + $0x250] sm:$0xff]  }
  0x30   :  { %v5088_v28 = vld [vmem:[%s7224_s0 + $0x68] sm:$0xff]   ;;  %v5090_v30 = vld [vmem:[%s7224_s0 + $0x70] sm:$0xff]   ;;  %v5091_v31 = vld [vmem:[%s7224_s0 + $0x258] sm:$0xff]  }
  0x31   :  { %v5092_v32 = vld [vmem:[%s7224_s0 + $0x78] sm:$0xff]   ;;  %v5093_v33 = vld [vmem:[%s7224_s0 + $0x260] sm:$0xff]   ;;  %v5095_v35 = vld [vmem:[%s7224_s0 + $0x268] sm:$0xff]  }
  0x32   :  { %v5094_v34 = vld [vmem:[%s7224_s0 + $0x80] sm:$0xff]   ;;  %v5096_v36 = vld [vmem:[%s7224_s0 + $0x88] sm:$0xff]   ;;  %v5097_v37 = vld [vmem:[%s7224_s0 + $0x270] sm:$0xff]  }
  0x33   :  { %v5098_v38 = vld [vmem:[%s7224_s0 + $0x90] sm:$0xff]   ;;  %v5099_v39 = vld [vmem:[%s7224_s0 + $0x278] sm:$0xff]   ;;  %v5101_v41 = vld [vmem:[%s7224_s0 + $0x280] sm:$0xff]  }
  0x34   :  { %4574 = vmatmul.mubr.msk.bf16.gmra.mrb[4].mxu0 %vm900_vm1, %v5064_v4  ;;  %4818 = vmatmul.mubr.msk.bf16.gmra.mrb[4].mxu1 %vm900_vm1, %v5065_v5  ;;  %v5100_v40 = vld [vmem:[%s7224_s0 + $0x98] sm:$0xff]   ;;  %v5102_v42 = vld [vmem:[%s7224_s0 + $0xa0] sm:$0xff]   ;;  %v5103_v43 = vld [vmem:[%s7224_s0 + $0x288] sm:$0xff]  }
  0x35   :  { %4577 = vmatprep.mubr.msk.bf16.mxu0 %vm5239_vm0, %v5238_v0  ;;  %4821 = vmatprep.mubr.msk.bf16.mxu1 %vm5239_vm0, %v5238_v0  ;;  %v5104_v44 = vld [vmem:[%s7224_s0 + $0xa8] sm:$0xff]   ;;  %v5105_v45 = vld [vmem:[%s7224_s0 + $0x290] sm:$0xff]   ;;  %v5107_v47 = vld [vmem:[%s7224_s0 + $0x298] sm:$0xff]  }
  0x36   :  { %v5106_v46 = vld [vmem:[%s7224_s0 + $0xb0] sm:$0xff]   ;;  %v5108_v48 = vld [vmem:[%s7224_s0 + $0xb8] sm:$0xff]   ;;  %v5109_v49 = vld [vmem:[%s7224_s0 + $0x2a0] sm:$0xff]  }
  0x37   :  { %v5110_v50 = vld [vmem:[%s7224_s0 + $0xc0] sm:$0xff]   ;;  %v5111_v51 = vld [vmem:[%s7224_s0 + $0x2a8] sm:$0xff]   ;;  %v5113_v53 = vld [vmem:[%s7224_s0 + $0x2b0] sm:$0xff]  }
  0x38   :  { %v5112_v52 = vld [vmem:[%s7224_s0 + $0xc8] sm:$0xff]   ;;  %v5114_v54 = vld [vmem:[%s7224_s0 + $0xd0] sm:$0xff]   ;;  %v5115_v55 = vld [vmem:[%s7224_s0 + $0x2b8] sm:$0xff]  }
  0x39   :  { %v5610_v56 = vld [vmem:[#allocation4] ss:$0 sm:$0xff]  ;;  %v5116_v61 = vld [vmem:[%s7224_s0 + $0xd8] sm:$0xff]   ;;  %v5117_v1 = vld [vmem:[%s7224_s0 + $0x2c0] sm:$0xff]  }
  0x3c   :  { %4578 = vmatmul.mubr.msk.bf16.gmra.mrb[8].mxu0 %vm900_vm1, %v5066_v6  ;;  %4822 = vmatmul.mubr.msk.bf16.gmra.mrb[8].mxu1 %vm900_vm1, %v5067_v7 }
  0x3d   :  { %4581 = vmatprep.mubr.msk.bf16.mxu0 %vm5239_vm0, %v5238_v0  ;;  %4825 = vmatprep.mubr.msk.bf16.mxu1 %vm5239_vm0, %v5238_v0 }
  0x44   :  { %4582 = vmatmul.mubr.msk.bf16.gmra.mrb[12].mxu0 %vm900_vm1, %v5068_v8  ;;  %4826 = vmatmul.mubr.msk.bf16.gmra.mrb[12].mxu1 %vm900_vm1, %v5069_v9 }
  0x45   :  { %4585 = vmatprep.mubr.msk.bf16.mxu0 %vm5239_vm0, %v5238_v0  ;;  %4829 = vmatprep.mubr.msk.bf16.mxu1 %vm5239_vm0, %v5238_v0 }
  0x4c   :  { %4586 = vmatmul.mubr.msk.bf16.gmra.mrb[16].mxu0 %vm900_vm1, %v5070_v10  ;;  %4830 = vmatmul.mubr.msk.bf16.gmra.mrb[16].mxu1 %vm900_vm1, %v5071_v11 }
  0x4d   :  { %4589 = vmatprep.mubr.msk.bf16.mxu0 %vm5239_vm0, %v5238_v0  ;;  %4833 = vmatprep.mubr.msk.bf16.mxu1 %vm5239_vm0, %v5238_v0 }
  0x54   :  { %4590 = vmatmul.mubr.msk.bf16.gmra.mrb[20].mxu0 %vm900_vm1, %v5072_v12  ;;  %4834 = vmatmul.mubr.msk.bf16.gmra.mrb[20].mxu1 %vm900_vm1, %v5073_v13 }
  0x55   :  { %4593 = vmatprep.mubr.msk.bf16.mxu0 %vm5239_vm0, %v5238_v0  ;;  %4837 = vmatprep.mubr.msk.bf16.mxu1 %vm5239_vm0, %v5238_v0 }
  0x5c   :  { %4594 = vmatmul.mubr.msk.bf16.gmra.mrb[24].mxu0 %vm900_vm1, %v5074_v14  ;;  %4838 = vmatmul.mubr.msk.bf16.gmra.mrb[24].mxu1 %vm900_vm1, %v5075_v15 }
  0x5d   :  { %4597 = vmatprep.mubr.msk.bf16.mxu0 %vm5239_vm0, %v5238_v0  ;;  %4841 = vmatprep.mubr.msk.bf16.mxu1 %vm5239_vm0, %v5238_v0 }
  0x64   :  { %4598 = vmatmul.mubr.msk.bf16.gmra.mrb[28].mxu0 %vm900_vm1, %v5076_v16  ;;  %4842 = vmatmul.mubr.msk.bf16.gmra.mrb[28].mxu1 %vm900_vm1, %v5077_v17 }
  0x65   :  { %4601 = vmatprep.mubr.msk.bf16.mxu0 %vm5239_vm0, %v5238_v0  ;;  %4845 = vmatprep.mubr.msk.bf16.mxu1 %vm5239_vm0, %v5238_v0 }
  0x6c   :  { %4602 = vmatmul.mubr.msk.bf16.gmra.mrb[32].mxu0 %vm900_vm1, %v5078_v18  ;;  %4846 = vmatmul.mubr.msk.bf16.gmra.mrb[32].mxu1 %vm900_vm1, %v5079_v19 }
  0x6d   :  { %4605 = vmatprep.mubr.msk.bf16.mxu0 %vm5239_vm0, %v5238_v0  ;;  %4849 = vmatprep.mubr.msk.bf16.mxu1 %vm5239_vm0, %v5238_v0 }
  0x74   :  { %4606 = vmatmul.mubr.msk.bf16.gmra.mrb[36].mxu0 %vm900_vm1, %v5080_v20  ;;  %4850 = vmatmul.mubr.msk.bf16.gmra.mrb[36].mxu1 %vm900_vm1, %v5081_v21  ;;  %v5118_v20 = vld [vmem:[%s7224_s0 + $0xe0] sm:$0xff]  }
  0x75   :  { %4609 = vmatprep.mubr.msk.bf16.mxu0 %vm5239_vm0, %v5238_v0  ;;  %4853 = vmatprep.mubr.msk.bf16.mxu1 %vm5239_vm0, %v5238_v0 }
  0x7c   :  { %4610 = vmatmul.mubr.msk.bf16.gmra.mrb[40].mxu0 %vm900_vm1, %v5082_v22  ;;  %4854 = vmatmul.mubr.msk.bf16.gmra.mrb[40].mxu1 %vm900_vm1, %v5083_v23  ;;  %v5119_v23 = vld [vmem:[%s7224_s0 + $0x2c8] sm:$0xff]  }
  0x7d   :  { %4613 = vmatprep.mubr.msk.bf16.mxu0 %vm5239_vm0, %v5238_v0  ;;  %4857 = vmatprep.mubr.msk.bf16.mxu1 %vm5239_vm0, %v5238_v0 }
  0x84   :  { %4614 = vmatmul.mubr.msk.bf16.gmra.mrb[44].mxu0 %vm900_vm1, %v5084_v24  ;;  %4858 = vmatmul.mubr.msk.bf16.gmra.mrb[44].mxu1 %vm900_vm1, %v5085_v25 }
  0x85   :  { %4617 = vmatprep.mubr.msk.bf16.mxu0 %vm5239_vm0, %v5238_v0  ;;  %4861 = vmatprep.mubr.msk.bf16.mxu1 %vm5239_vm0, %v5238_v0 }
  0x8c   :  { %4618 = vmatmul.mubr.msk.bf16.gmra.mrb[48].mxu0 %vm900_vm1, %v5086_v26  ;;  %4862 = vmatmul.mubr.msk.bf16.gmra.mrb[48].mxu1 %vm900_vm1, %v5087_v27 }
  0x8d   :  { %4621 = vmatprep.mubr.msk.bf16.mxu0 %vm5239_vm0, %v5238_v0  ;;  %4865 = vmatprep.mubr.msk.bf16.mxu1 %vm5239_vm0, %v5238_v0 }
  0x94   :  { %4622 = vmatmul.mubr.msk.bf16.gmra.mrb[52].mxu0 %vm900_vm1, %v5088_v28  ;;  %4866 = vmatmul.mubr.msk.bf16.gmra.mrb[52].mxu1 %vm900_vm1, %v5089_v29 }
  0x95   :  { %4625 = vmatprep.mubr.msk.bf16.mxu0 %vm5239_vm0, %v5238_v0  ;;  %4869 = vmatprep.mubr.msk.bf16.mxu1 %vm5239_vm0, %v5238_v0 }
  0x9c   :  { %4626 = vmatmul.mubr.msk.bf16.gmra.mrb[56].mxu0 %vm900_vm1, %v5090_v30  ;;  %4870 = vmatmul.mubr.msk.bf16.gmra.mrb[56].mxu1 %vm900_vm1, %v5091_v31 }
  0x9d   :  { %4629 = vmatprep.mubr.msk.bf16.mxu0 %vm5239_vm0, %v5238_v0  ;;  %4873 = vmatprep.mubr.msk.bf16.mxu1 %vm5239_vm0, %v5238_v0 }
  0xa4   :  { %4630 = vmatmul.mubr.msk.bf16.gmra.mrb[60].mxu0 %vm900_vm1, %v5092_v32  ;;  %4874 = vmatmul.mubr.msk.bf16.gmra.mrb[60].mxu1 %vm900_vm1, %v5093_v33 }
  0xa5   :  { %4633 = vmatprep.mubr.msk.bf16.mxu0 %vm5239_vm0, %v5238_v0  ;;  %4877 = vmatprep.mubr.msk.bf16.mxu1 %vm5239_vm0, %v5238_v0 }
  0xac   :  { %4634 = vmatmul.mubr.msk.bf16.gmra.mrb[64].mxu0 %vm900_vm1, %v5094_v34  ;;  %4878 = vmatmul.mubr.msk.bf16.gmra.mrb[64].mxu1 %vm900_vm1, %v5095_v35 }
  0xad   :  { %4637 = vmatprep.mubr.msk.bf16.mxu0 %vm5239_vm0, %v5238_v0  ;;  %4881 = vmatprep.mubr.msk.bf16.mxu1 %vm5239_vm0, %v5238_v0 }
  0xb4   :  { %4638 = vmatmul.mubr.msk.bf16.gmra.mrb[68].mxu0 %vm900_vm1, %v5096_v36  ;;  %4882 = vmatmul.mubr.msk.bf16.gmra.mrb[68].mxu1 %vm900_vm1, %v5097_v37 }
  0xb5   :  { %4641 = vmatprep.mubr.msk.bf16.mxu0 %vm5239_vm0, %v5238_v0  ;;  %4885 = vmatprep.mubr.msk.bf16.mxu1 %vm5239_vm0, %v5238_v0 }
  0xbc   :  { %4642 = vmatmul.mubr.msk.bf16.gmra.mrb[72].mxu0 %vm900_vm1, %v5098_v38  ;;  %4886 = vmatmul.mubr.msk.bf16.gmra.mrb[72].mxu1 %vm900_vm1, %v5099_v39 }
  0xbd   :  { %4645 = vmatprep.mubr.msk.bf16.mxu0 %vm5239_vm0, %v5238_v0  ;;  %4889 = vmatprep.mubr.msk.bf16.mxu1 %vm5239_vm0, %v5238_v0 }
  0xc4   :  { %4646 = vmatmul.mubr.msk.bf16.gmra.mrb[76].mxu0 %vm900_vm1, %v5100_v40  ;;  %4890 = vmatmul.mubr.msk.bf16.gmra.mrb[76].mxu1 %vm900_vm1, %v5101_v41 }
  0xc5   :  { %4649 = vmatprep.mubr.msk.bf16.mxu0 %vm5239_vm0, %v5238_v0  ;;  %4893 = vmatprep.mubr.msk.bf16.mxu1 %vm5239_vm0, %v5238_v0 }
  0xcc   :  { %4650 = vmatmul.mubr.msk.bf16.gmra.mrb[80].mxu0 %vm900_vm1, %v5102_v42  ;;  %4894 = vmatmul.mubr.msk.bf16.gmra.mrb[80].mxu1 %vm900_vm1, %v5103_v43  ;;  %v5120_v42 = vld [vmem:[%s7224_s0 + $0xe8] sm:$0xff]  }
  0xcd   :  { %4653 = vmatprep.mubr.msk.bf16.mxu0 %vm5239_vm0, %v5238_v0  ;;  %4897 = vmatprep.mubr.msk.bf16.mxu1 %vm5239_vm0, %v5238_v0 }
  0xd4   :  { %4654 = vmatmul.mubr.msk.bf16.gmra.mrb[84].mxu0 %vm900_vm1, %v5104_v44  ;;  %4898 = vmatmul.mubr.msk.bf16.gmra.mrb[84].mxu1 %vm900_vm1, %v5105_v45  ;;  %v5121_v45 = vld [vmem:[%s7224_s0 + $0x2d0] sm:$0xff]  }
  0xd5   :  { %4657 = vmatprep.mubr.msk.bf16.mxu0 %vm5239_vm0, %v5238_v0  ;;  %4901 = vmatprep.mubr.msk.bf16.mxu1 %vm5239_vm0, %v5238_v0 }
  0xdc   :  { %4658 = vmatmul.mubr.msk.bf16.gmra.mrb[88].mxu0 %vm900_vm1, %v5106_v46  ;;  %4902 = vmatmul.mubr.msk.bf16.gmra.mrb[88].mxu1 %vm900_vm1, %v5107_v47 }
  0xdd   :  { %4661 = vmatprep.mubr.msk.bf16.mxu0 %vm5239_vm0, %v5238_v0  ;;  %4905 = vmatprep.mubr.msk.bf16.mxu1 %vm5239_vm0, %v5238_v0 }
  0xe4   :  { %4662 = vmatmul.mubr.msk.bf16.gmra.mrb[92].mxu0 %vm900_vm1, %v5108_v48  ;;  %4906 = vmatmul.mubr.msk.bf16.gmra.mrb[92].mxu1 %vm900_vm1, %v5109_v49 }
  0xe5   :  { %4665 = vmatprep.mubr.msk.bf16.mxu0 %vm5239_vm0, %v5238_v0  ;;  %4909 = vmatprep.mubr.msk.bf16.mxu1 %vm5239_vm0, %v5238_v0 }
  0xec   :  { %4666 = vmatmul.mubr.msk.bf16.gmra.mrb[96].mxu0 %vm900_vm1, %v5110_v50  ;;  %4910 = vmatmul.mubr.msk.bf16.gmra.mrb[96].mxu1 %vm900_vm1, %v5111_v51 }
  0xed   :  { %4669 = vmatprep.mubr.msk.bf16.mxu0 %vm5239_vm0, %v5238_v0  ;;  %4913 = vmatprep.mubr.msk.bf16.mxu1 %vm5239_vm0, %v5238_v0 }
  0xf4   :  { %4670 = vmatmul.mubr.msk.bf16.gmra.mrb[100].mxu0 %vm900_vm1, %v5112_v52  ;;  %4914 = vmatmul.mubr.msk.bf16.gmra.mrb[100].mxu1 %vm900_vm1, %v5113_v53 }
  0xf5   :  { %4673 = vmatprep.mubr.msk.bf16.mxu0 %vm5239_vm0, %v5238_v0  ;;  %4917 = vmatprep.mubr.msk.bf16.mxu1 %vm5239_vm0, %v5238_v0 }
  0xfc   :  { %4674 = vmatmul.mubr.msk.bf16.gmra.mrb[104].mxu0 %vm900_vm1, %v5114_v54  ;;  %4918 = vmatmul.mubr.msk.bf16.gmra.mrb[104].mxu1 %vm900_vm1, %v5115_v55 }
  0xfd   :  { %4677 = vmatprep.mubr.msk.bf16.mxu0 %vm5239_vm0, %v5238_v0  ;;  %4921 = vmatprep.mubr.msk.bf16.mxu1 %vm5239_vm0, %v5238_v0 }
  0xff   :  { %v1298_v57 = vpop.f32.mrb[0].mxu0  ;;  %v1786_v58 = vpop.f32.mrb[0].mxu1 }
 0x100   :  { %v1299_v59 = vadd.f32 %v5610_v56, %v1298_v57  ;;  %v4571_v60 = vpop.f32.mrb[1].mxu0  ;;  %v1787_v62 = vadd.f32 %v5610_v56, %v1786_v58  ;;  %v4815_v63 = vpop.f32.mrb[1].mxu1 }
 0x101   :  { %v1301_v2 = vpop.f32.mrb[2].mxu0  ;;  %v1789_v3 = vpop.f32.mrb[2].mxu1 }
 0x102   :  { %v2264_v4 = vmax.f32 %v1299_v59, 0.0  ;;  %v1302_v5 = vadd.f32 %v5610_v56, %v1301_v2  ;;  %v4572_v6 = vpop.f32.mrb[3].mxu0  ;;  %v2386_v7 = vmax.f32 %v1787_v62, 0.0  ;;  %v1790_v8 = vadd.f32 %v5610_v56, %v1789_v3  ;;  %v4816_v9 = vpop.f32.mrb[3].mxu1  ;;  %v5122_v2 = vld [vmem:[%s7224_s0 + $0xf0] sm:$0xff]  }
 0x104   :  { %v4204_v10 = vpack.c.bf16 %v2264_v4, %v2264_v4  ;;  %v2265_v11 = vmax.f32 %v1302_v5, 0.0  ;;  %4678 = vmatmul.mubr.msk.bf16.gmra.mrb[108].mxu0 %vm900_vm1, %v5116_v61  ;;  %v4326_v12 = vpack.c.bf16 %v2386_v7, %v2386_v7  ;;  %v2387_v13 = vmax.f32 %v1790_v8, 0.0  ;;  %4922 = vmatmul.mubr.msk.bf16.gmra.mrb[108].mxu1 %vm900_vm1, %v5117_v1  ;;  %v5123_v5 = vld [vmem:[%s7224_s0 + $0x2d8] sm:$0xff]  }
 0x105   :  { %4681 = vmatprep.mubr.msk.bf16.mxu0 %vm5239_vm0, %v5238_v0  ;;  %4925 = vmatprep.mubr.msk.bf16.mxu1 %vm5239_vm0, %v5238_v0 }
 0x106   :  { %3471 = vst.msk [vmem:[%s7227_s3] sm:$0xf] %vm3470_vm2, %v4204_v10  ;;  %v4205_v14 = vpack.c.bf16 %v2265_v11, %v2265_v11  ;;  %3593 = vst.msk [vmem:[%s7227_s3 + $0x1e8] sm:$0xf] %vm3470_vm2, %v4326_v12  ;;  %v4327_v15 = vpack.c.bf16 %v2387_v13, %v2387_v13 }
 0x107   :  { %v1306_v16 = vpop.f32.mrb[4].mxu0  ;;  %v1794_v17 = vpop.f32.mrb[4].mxu1 }
 0x108   :  { %3472 = vst.msk [vmem:[%s7227_s3 + $0x4] sm:$0xf] %vm3470_vm2, %v4205_v14  ;;  %v1307_v18 = vadd.f32 %v5610_v56, %v1306_v16  ;;  %v4575_v19 = vpop.f32.mrb[5].mxu0  ;;  %3594 = vst.msk [vmem:[%s7227_s3 + $0x1ec] sm:$0xf] %vm3470_vm2, %v4327_v15  ;;  %v1795_v21 = vadd.f32 %v5610_v56, %v1794_v17  ;;  %v4819_v22 = vpop.f32.mrb[5].mxu1 }
 0x109   :  { %v1309_v24 = vpop.f32.mrb[6].mxu0  ;;  %v1797_v25 = vpop.f32.mrb[6].mxu1 }
 0x10a   :  { %v2266_v26 = vmax.f32 %v1307_v18, 0.0  ;;  %v1310_v27 = vadd.f32 %v5610_v56, %v1309_v24  ;;  %v4576_v28 = vpop.f32.mrb[7].mxu0  ;;  %v2388_v29 = vmax.f32 %v1795_v21, 0.0  ;;  %v1798_v30 = vadd.f32 %v5610_v56, %v1797_v25  ;;  %v4820_v31 = vpop.f32.mrb[7].mxu1  ;;  %v5124_v24 = vld [vmem:[%s7224_s0 + $0xf8] sm:$0xff]  }
 0x10c   :  { %v4206_v32 = vpack.c.bf16 %v2266_v26, %v2266_v26  ;;  %v2267_v33 = vmax.f32 %v1310_v27, 0.0  ;;  %4682 = vmatmul.mubr.msk.bf16.gmra.mrb[112].mxu0 %vm900_vm1, %v5118_v20  ;;  %v4328_v34 = vpack.c.bf16 %v2388_v29, %v2388_v29  ;;  %v2389_v35 = vmax.f32 %v1798_v30, 0.0  ;;  %4926 = vmatmul.mubr.msk.bf16.gmra.mrb[112].mxu1 %vm900_vm1, %v5119_v23  ;;  %v5125_v27 = vld [vmem:[%s7224_s0 + $0x2e0] sm:$0xff]  }
 0x10d   :  { %4685 = vmatprep.mubr.msk.bf16.mxu0 %vm5239_vm0, %v5238_v0  ;;  %4929 = vmatprep.mubr.msk.bf16.mxu1 %vm5239_vm0, %v5238_v0 }
 0x10e   :  { %3473 = vst.msk [vmem:[%s7227_s3 + $0x8] sm:$0xf] %vm3470_vm2, %v4206_v32  ;;  %v4207_v36 = vpack.c.bf16 %v2267_v33, %v2267_v33  ;;  %3595 = vst.msk [vmem:[%s7227_s3 + $0x1f0] sm:$0xf] %vm3470_vm2, %v4328_v34  ;;  %v4329_v37 = vpack.c.bf16 %v2389_v35, %v2389_v35 }
 0x10f   :  { %v1314_v38 = vpop.f32.mrb[8].mxu0  ;;  %v1802_v39 = vpop.f32.mrb[8].mxu1 }
 0x110   :  { %3474 = vst.msk [vmem:[%s7227_s3 + $0xc] sm:$0xf] %vm3470_vm2, %v4207_v36  ;;  %v1315_v40 = vadd.f32 %v5610_v56, %v1314_v38  ;;  %v4579_v41 = vpop.f32.mrb[9].mxu0  ;;  %3596 = vst.msk [vmem:[%s7227_s3 + $0x1f4] sm:$0xf] %vm3470_vm2, %v4329_v37  ;;  %v1803_v43 = vadd.f32 %v5610_v56, %v1802_v39  ;;  %v4823_v44 = vpop.f32.mrb[9].mxu1 }
 0x111   :  { %v1317_v46 = vpop.f32.mrb[10].mxu0  ;;  %v1805_v47 = vpop.f32.mrb[10].mxu1 }
 0x112   :  { %v2268_v48 = vmax.f32 %v1315_v40, 0.0  ;;  %v1318_v49 = vadd.f32 %v5610_v56, %v1317_v46  ;;  %v4580_v50 = vpop.f32.mrb[11].mxu0  ;;  %v2390_v51 = vmax.f32 %v1803_v43, 0.0  ;;  %v1806_v52 = vadd.f32 %v5610_v56, %v1805_v47  ;;  %v4824_v53 = vpop.f32.mrb[11].mxu1  ;;  %v5126_v46 = vld [vmem:[%s7224_s0 + $0x100] sm:$0xff]  }
 0x114   :  { %v4208_v54 = vpack.c.bf16 %v2268_v48, %v2268_v48  ;;  %v2269_v55 = vmax.f32 %v1318_v49, 0.0  ;;  %4686 = vmatmul.mubr.msk.bf16.gmra.mrb[116].mxu0 %vm900_vm1, %v5120_v42  ;;  %v4330_v57 = vpack.c.bf16 %v2390_v51, %v2390_v51  ;;  %v2391_v58 = vmax.f32 %v1806_v52, 0.0  ;;  %4930 = vmatmul.mubr.msk.bf16.gmra.mrb[116].mxu1 %vm900_vm1, %v5121_v45  ;;  %v5127_v49 = vld [vmem:[%s7224_s0 + $0x2e8] sm:$0xff]  }
 0x115   :  { %4689 = vmatprep.mubr.msk.bf16.mxu0 %vm5239_vm0, %v5238_v0  ;;  %4933 = vmatprep.mubr.msk.bf16.mxu1 %vm5239_vm0, %v5238_v0 }
 0x116   :  { %3475 = vst.msk [vmem:[%s7227_s3 + $0x10] sm:$0xf] %vm3470_vm2, %v4208_v54  ;;  %v4209_v59 = vpack.c.bf16 %v2269_v55, %v2269_v55  ;;  %3597 = vst.msk [vmem:[%s7227_s3 + $0x1f8] sm:$0xf] %vm3470_vm2, %v4330_v57  ;;  %v4331_v60 = vpack.c.bf16 %v2391_v58, %v2391_v58 }
 0x117   :  { %v1322_v61 = vpop.f32.mrb[12].mxu0  ;;  %v1810_v62 = vpop.f32.mrb[12].mxu1 }
 0x118   :  { %3476 = vst.msk [vmem:[%s7227_s3 + $0x14] sm:$0xf] %vm3470_vm2, %v4209_v59  ;;  %v1323_v63 = vadd.f32 %v5610_v56, %v1322_v61  ;;  %v4583_v1 = vpop.f32.mrb[13].mxu0  ;;  %3598 = vst.msk [vmem:[%s7227_s3 + $0x1fc] sm:$0xf] %vm3470_vm2, %v4331_v60  ;;  %v1811_v3 = vadd.f32 %v5610_v56, %v1810_v62  ;;  %v4827_v4 = vpop.f32.mrb[13].mxu1 }
 0x119   :  { %v1325_v6 = vpop.f32.mrb[14].mxu0  ;;  %v1813_v7 = vpop.f32.mrb[14].mxu1 }
 0x11a   :  { %v2270_v8 = vmax.f32 %v1323_v63, 0.0  ;;  %v1326_v9 = vadd.f32 %v5610_v56, %v1325_v6  ;;  %v4584_v10 = vpop.f32.mrb[15].mxu0  ;;  %v2392_v11 = vmax.f32 %v1811_v3, 0.0  ;;  %v1814_v12 = vadd.f32 %v5610_v56, %v1813_v7  ;;  %v4828_v13 = vpop.f32.mrb[15].mxu1  ;;  %v5128_v6 = vld [vmem:[%s7224_s0 + $0x108] sm:$0xff]  }
 0x11c   :  { %v4210_v14 = vpack.c.bf16 %v2270_v8, %v2270_v8  ;;  %v2271_v15 = vmax.f32 %v1326_v9, 0.0  ;;  %4690 = vmatmul.mubr.msk.bf16.gmra.mrb[120].mxu0 %vm900_vm1, %v5122_v2  ;;  %v4332_v16 = vpack.c.bf16 %v2392_v11, %v2392_v11  ;;  %v2393_v17 = vmax.f32 %v1814_v12, 0.0  ;;  %4934 = vmatmul.mubr.msk.bf16.gmra.mrb[120].mxu1 %vm900_vm1, %v5123_v5  ;;  %v5129_v9 = vld [vmem:[%s7224_s0 + $0x2f0] sm:$0xff]  }
 0x11d   :  { %4693 = vmatprep.mubr.msk.bf16.mxu0 %vm5239_vm0, %v5238_v0  ;;  %4937 = vmatprep.mubr.msk.bf16.mxu1 %vm5239_vm0, %v5238_v0 }
 0x11e   :  { %3477 = vst.msk [vmem:[%s7227_s3 + $0x18] sm:$0xf] %vm3470_vm2, %v4210_v14  ;;  %v4211_v18 = vpack.c.bf16 %v2271_v15, %v2271_v15  ;;  %3599 = vst.msk [vmem:[%s7227_s3 + $0x200] sm:$0xf] %vm3470_vm2, %v4332_v16  ;;  %v4333_v19 = vpack.c.bf16 %v2393_v17, %v2393_v17 }
 0x11f   :  { %v1330_v20 = vpop.f32.mrb[16].mxu0  ;;  %v1818_v21 = vpop.f32.mrb[16].mxu1 }
 0x120   :  { %3478 = vst.msk [vmem:[%s7227_s3 + $0x1c] sm:$0xf] %vm3470_vm2, %v4211_v18  ;;  %v1331_v22 = vadd.f32 %v5610_v56, %v1330_v20  ;;  %v4587_v23 = vpop.f32.mrb[17].mxu0  ;;  %3600 = vst.msk [vmem:[%s7227_s3 + $0x204] sm:$0xf] %vm3470_vm2, %v4333_v19  ;;  %v1819_v25 = vadd.f32 %v5610_v56, %v1818_v21  ;;  %v4831_v26 = vpop.f32.mrb[17].mxu1 }
 0x121   :  { %v1333_v28 = vpop.f32.mrb[18].mxu0  ;;  %v1821_v29 = vpop.f32.mrb[18].mxu1 }
 0x122   :  { %v2272_v30 = vmax.f32 %v1331_v22, 0.0  ;;  %v1334_v31 = vadd.f32 %v5610_v56, %v1333_v28  ;;  %v4588_v32 = vpop.f32.mrb[19].mxu0  ;;  %v2394_v33 = vmax.f32 %v1819_v25, 0.0  ;;  %v1822_v34 = vadd.f32 %v5610_v56, %v1821_v29  ;;  %v4832_v35 = vpop.f32.mrb[19].mxu1  ;;  %v5130_v28 = vld [vmem:[%s7224_s0 + $0x110] sm:$0xff]  }
 0x124   :  { %v4212_v36 = vpack.c.bf16 %v2272_v30, %v2272_v30  ;;  %v2273_v37 = vmax.f32 %v1334_v31, 0.0  ;;  %4694 = vmatmul.mubr.msk.bf16.gmra.mrb[124].mxu0 %vm900_vm1, %v5124_v24  ;;  %v4334_v38 = vpack.c.bf16 %v2394_v33, %v2394_v33  ;;  %v2395_v39 = vmax.f32 %v1822_v34, 0.0  ;;  %4938 = vmatmul.mubr.msk.bf16.gmra.mrb[124].mxu1 %vm900_vm1, %v5125_v27  ;;  %v5131_v31 = vld [vmem:[%s7224_s0 + $0x2f8] sm:$0xff]  }
 0x125   :  { %4697 = vmatprep.mubr.msk.bf16.mxu0 %vm5239_vm0, %v5238_v0  ;;  %4941 = vmatprep.mubr.msk.bf16.mxu1 %vm5239_vm0, %v5238_v0 }
 0x126   :  { %3479 = vst.msk [vmem:[%s7227_s3 + $0x20] sm:$0xf] %vm3470_vm2, %v4212_v36  ;;  %v4213_v40 = vpack.c.bf16 %v2273_v37, %v2273_v37  ;;  %3601 = vst.msk [vmem:[%s7227_s3 + $0x208] sm:$0xf] %vm3470_vm2, %v4334_v38  ;;  %v4335_v41 = vpack.c.bf16 %v2395_v39, %v2395_v39 }
 0x127   :  { %v1338_v42 = vpop.f32.mrb[20].mxu0  ;;  %v1826_v43 = vpop.f32.mrb[20].mxu1 }
 0x128   :  { %3480 = vst.msk [vmem:[%s7227_s3 + $0x24] sm:$0xf] %vm3470_vm2, %v4213_v40  ;;  %v1339_v44 = vadd.f32 %v5610_v56, %v1338_v42  ;;  %v4591_v45 = vpop.f32.mrb[21].mxu0  ;;  %3602 = vst.msk [vmem:[%s7227_s3 + $0x20c] sm:$0xf] %vm3470_vm2, %v4335_v41  ;;  %v1827_v47 = vadd.f32 %v5610_v56, %v1826_v43  ;;  %v4835_v48 = vpop.f32.mrb[21].mxu1 }
 0x129   :  { %v1341_v50 = vpop.f32.mrb[22].mxu0  ;;  %v1829_v51 = vpop.f32.mrb[22].mxu1 }
 0x12a   :  { %v2274_v52 = vmax.f32 %v1339_v44, 0.0  ;;  %v1342_v53 = vadd.f32 %v5610_v56, %v1341_v50  ;;  %v4592_v54 = vpop.f32.mrb[23].mxu0  ;;  %v2396_v55 = vmax.f32 %v1827_v47, 0.0  ;;  %v1830_v57 = vadd.f32 %v5610_v56, %v1829_v51  ;;  %v4836_v58 = vpop.f32.mrb[23].mxu1  ;;  %v5132_v50 = vld [vmem:[%s7224_s0 + $0x118] sm:$0xff]  }
 0x12c   :  { %v4214_v59 = vpack.c.bf16 %v2274_v52, %v2274_v52  ;;  %v2275_v60 = vmax.f32 %v1342_v53, 0.0  ;;  %4698 = vmatmul.mubr.msk.bf16.gmra.mrb[128].mxu0 %vm900_vm1, %v5126_v46  ;;  %v4336_v61 = vpack.c.bf16 %v2396_v55, %v2396_v55  ;;  %v2397_v62 = vmax.f32 %v1830_v57, 0.0  ;;  %4942 = vmatmul.mubr.msk.bf16.gmra.mrb[128].mxu1 %vm900_vm1, %v5127_v49  ;;  %v5133_v53 = vld [vmem:[%s7224_s0 + $0x300] sm:$0xff]  }
 0x12d   :  { %4701 = vmatprep.mubr.msk.bf16.mxu0 %vm5239_vm0, %v5238_v0  ;;  %4945 = vmatprep.mubr.msk.bf16.mxu1 %vm5239_vm0, %v5238_v0 }
 0x12e   :  { %3481 = vst.msk [vmem:[%s7227_s3 + $0x28] sm:$0xf] %vm3470_vm2, %v4214_v59  ;;  %v4215_v63 = vpack.c.bf16 %v2275_v60, %v2275_v60  ;;  %3603 = vst.msk [vmem:[%s7227_s3 + $0x210] sm:$0xf] %vm3470_vm2, %v4336_v61  ;;  %v4337_v1 = vpack.c.bf16 %v2397_v62, %v2397_v62 }
 0x12f   :  { %v1346_v2 = vpop.f32.mrb[24].mxu0  ;;  %v1834_v3 = vpop.f32.mrb[24].mxu1 }
 0x130   :  { %3482 = vst.msk [vmem:[%s7227_s3 + $0x2c] sm:$0xf] %vm3470_vm2, %v4215_v63  ;;  %v1347_v4 = vadd.f32 %v5610_v56, %v1346_v2  ;;  %v4595_v5 = vpop.f32.mrb[25].mxu0  ;;  %3604 = vst.msk [vmem:[%s7227_s3 + $0x214] sm:$0xf] %vm3470_vm2, %v4337_v1  ;;  %v1835_v7 = vadd.f32 %v5610_v56, %v1834_v3  ;;  %v4839_v8 = vpop.f32.mrb[25].mxu1 }
 0x131   :  { %v1349_v10 = vpop.f32.mrb[26].mxu0  ;;  %v1837_v11 = vpop.f32.mrb[26].mxu1 }
 0x132   :  { %v2276_v12 = vmax.f32 %v1347_v4, 0.0  ;;  %v1350_v13 = vadd.f32 %v5610_v56, %v1349_v10  ;;  %v4596_v14 = vpop.f32.mrb[27].mxu0  ;;  %v2398_v15 = vmax.f32 %v1835_v7, 0.0  ;;  %v1838_v16 = vadd.f32 %v5610_v56, %v1837_v11  ;;  %v4840_v17 = vpop.f32.mrb[27].mxu1  ;;  %v5134_v10 = vld [vmem:[%s7224_s0 + $0x120] sm:$0xff]  }
 0x134   :  { %v4216_v18 = vpack.c.bf16 %v2276_v12, %v2276_v12  ;;  %v2277_v19 = vmax.f32 %v1350_v13, 0.0  ;;  %4702 = vmatmul.mubr.msk.bf16.gmra.mrb[132].mxu0 %vm900_vm1, %v5128_v6  ;;  %v4338_v20 = vpack.c.bf16 %v2398_v15, %v2398_v15  ;;  %v2399_v21 = vmax.f32 %v1838_v16, 0.0  ;;  %4946 = vmatmul.mubr.msk.bf16.gmra.mrb[132].mxu1 %vm900_vm1, %v5129_v9  ;;  %v5135_v13 = vld [vmem:[%s7224_s0 + $0x308] sm:$0xff]  }
 0x135   :  { %4705 = vmatprep.mubr.msk.bf16.mxu0 %vm5239_vm0, %v5238_v0  ;;  %4949 = vmatprep.mubr.msk.bf16.mxu1 %vm5239_vm0, %v5238_v0 }
 0x136   :  { %3483 = vst.msk [vmem:[%s7227_s3 + $0x30] sm:$0xf] %vm3470_vm2, %v4216_v18  ;;  %v4217_v22 = vpack.c.bf16 %v2277_v19, %v2277_v19  ;;  %3605 = vst.msk [vmem:[%s7227_s3 + $0x218] sm:$0xf] %vm3470_vm2, %v4338_v20  ;;  %v4339_v23 = vpack.c.bf16 %v2399_v21, %v2399_v21 }
 0x137   :  { %v1354_v24 = vpop.f32.mrb[28].mxu0  ;;  %v1842_v25 = vpop.f32.mrb[28].mxu1 }
 0x138   :  { %3484 = vst.msk [vmem:[%s7227_s3 + $0x34] sm:$0xf] %vm3470_vm2, %v4217_v22  ;;  %v1355_v26 = vadd.f32 %v5610_v56, %v1354_v24  ;;  %v4599_v27 = vpop.f32.mrb[29].mxu0  ;;  %3606 = vst.msk [vmem:[%s7227_s3 + $0x21c] sm:$0xf] %vm3470_vm2, %v4339_v23  ;;  %v1843_v29 = vadd.f32 %v5610_v56, %v1842_v25  ;;  %v4843_v30 = vpop.f32.mrb[29].mxu1 }
 0x139   :  { %v1357_v32 = vpop.f32.mrb[30].mxu0  ;;  %v1845_v33 = vpop.f32.mrb[30].mxu1 }
 0x13a   :  { %v2278_v34 = vmax.f32 %v1355_v26, 0.0  ;;  %v1358_v35 = vadd.f32 %v5610_v56, %v1357_v32  ;;  %v4600_v36 = vpop.f32.mrb[31].mxu0  ;;  %v2400_v37 = vmax.f32 %v1843_v29, 0.0  ;;  %v1846_v38 = vadd.f32 %v5610_v56, %v1845_v33  ;;  %v4844_v39 = vpop.f32.mrb[31].mxu1  ;;  %v5136_v32 = vld [vmem:[%s7224_s0 + $0x128] sm:$0xff]  }
 0x13c   :  { %v4218_v40 = vpack.c.bf16 %v2278_v34, %v2278_v34  ;;  %v2279_v41 = vmax.f32 %v1358_v35, 0.0  ;;  %4706 = vmatmul.mubr.msk.bf16.gmra.mrb[136].mxu0 %vm900_vm1, %v5130_v28  ;;  %v4340_v42 = vpack.c.bf16 %v2400_v37, %v2400_v37  ;;  %v2401_v43 = vmax.f32 %v1846_v38, 0.0  ;;  %4950 = vmatmul.mubr.msk.bf16.gmra.mrb[136].mxu1 %vm900_vm1, %v5131_v31  ;;  %v5137_v35 = vld [vmem:[%s7224_s0 + $0x310] sm:$0xff]  }
 0x13d   :  { %4709 = vmatprep.mubr.msk.bf16.mxu0 %vm5239_vm0, %v5238_v0  ;;  %4953 = vmatprep.mubr.msk.bf16.mxu1 %vm5239_vm0, %v5238_v0 }
 0x13e   :  { %3485 = vst.msk [vmem:[%s7227_s3 + $0x38] sm:$0xf] %vm3470_vm2, %v4218_v40  ;;  %v4219_v44 = vpack.c.bf16 %v2279_v41, %v2279_v41  ;;  %3607 = vst.msk [vmem:[%s7227_s3 + $0x220] sm:$0xf] %vm3470_vm2, %v4340_v42  ;;  %v4341_v45 = vpack.c.bf16 %v2401_v43, %v2401_v43 }
 0x13f   :  { %v1362_v46 = vpop.f32.mrb[32].mxu0  ;;  %v1850_v47 = vpop.f32.mrb[32].mxu1 }
 0x140   :  { %3486 = vst.msk [vmem:[%s7227_s3 + $0x3c] sm:$0xf] %vm3470_vm2, %v4219_v44  ;;  %v1363_v48 = vadd.f32 %v5610_v56, %v1362_v46  ;;  %v4603_v49 = vpop.f32.mrb[33].mxu0  ;;  %3608 = vst.msk [vmem:[%s7227_s3 + $0x224] sm:$0xf] %vm3470_vm2, %v4341_v45  ;;  %v1851_v51 = vadd.f32 %v5610_v56, %v1850_v47  ;;  %v4847_v52 = vpop.f32.mrb[33].mxu1 }
 0x141   :  { %v1365_v54 = vpop.f32.mrb[34].mxu0  ;;  %v1853_v55 = vpop.f32.mrb[34].mxu1 }
 0x142   :  { %v2280_v57 = vmax.f32 %v1363_v48, 0.0  ;;  %v1366_v58 = vadd.f32 %v5610_v56, %v1365_v54  ;;  %v4604_v59 = vpop.f32.mrb[35].mxu0  ;;  %v2402_v60 = vmax.f32 %v1851_v51, 0.0  ;;  %v1854_v61 = vadd.f32 %v5610_v56, %v1853_v55  ;;  %v4848_v62 = vpop.f32.mrb[35].mxu1  ;;  %v5138_v54 = vld [vmem:[%s7224_s0 + $0x130] sm:$0xff]  }
 0x144   :  { %v4220_v63 = vpack.c.bf16 %v2280_v57, %v2280_v57  ;;  %v2281_v1 = vmax.f32 %v1366_v58, 0.0  ;;  %4710 = vmatmul.mubr.msk.bf16.gmra.mrb[140].mxu0 %vm900_vm1, %v5132_v50  ;;  %v4342_v2 = vpack.c.bf16 %v2402_v60, %v2402_v60  ;;  %v2403_v3 = vmax.f32 %v1854_v61, 0.0  ;;  %4954 = vmatmul.mubr.msk.bf16.gmra.mrb[140].mxu1 %vm900_vm1, %v5133_v53  ;;  %v5139_v58 = vld [vmem:[%s7224_s0 + $0x318] sm:$0xff]  }
 0x145   :  { %4713 = vmatprep.mubr.msk.bf16.mxu0 %vm5239_vm0, %v5238_v0  ;;  %4957 = vmatprep.mubr.msk.bf16.mxu1 %vm5239_vm0, %v5238_v0 }
 0x146   :  { %3487 = vst.msk [vmem:[%s7227_s3 + $0x40] sm:$0xf] %vm3470_vm2, %v4220_v63  ;;  %v4221_v4 = vpack.c.bf16 %v2281_v1, %v2281_v1  ;;  %3609 = vst.msk [vmem:[%s7227_s3 + $0x228] sm:$0xf] %vm3470_vm2, %v4342_v2  ;;  %v4343_v5 = vpack.c.bf16 %v2403_v3, %v2403_v3 }
 0x147   :  { %v1370_v6 = vpop.f32.mrb[36].mxu0  ;;  %v1858_v7 = vpop.f32.mrb[36].mxu1 }
 0x148   :  { %3488 = vst.msk [vmem:[%s7227_s3 + $0x44] sm:$0xf] %vm3470_vm2, %v4221_v4  ;;  %v1371_v8 = vadd.f32 %v5610_v56, %v1370_v6  ;;  %v4607_v9 = vpop.f32.mrb[37].mxu0  ;;  %3610 = vst.msk [vmem:[%s7227_s3 + $0x22c] sm:$0xf] %vm3470_vm2, %v4343_v5  ;;  %v1859_v11 = vadd.f32 %v5610_v56, %v1858_v7  ;;  %v4851_v12 = vpop.f32.mrb[37].mxu1 }
 0x149   :  { %v1373_v14 = vpop.f32.mrb[38].mxu0  ;;  %v1861_v15 = vpop.f32.mrb[38].mxu1 }
 0x14a   :  { %v2282_v16 = vmax.f32 %v1371_v8, 0.0  ;;  %v1374_v17 = vadd.f32 %v5610_v56, %v1373_v14  ;;  %v4608_v18 = vpop.f32.mrb[39].mxu0  ;;  %v2404_v19 = vmax.f32 %v1859_v11, 0.0  ;;  %v1862_v20 = vadd.f32 %v5610_v56, %v1861_v15  ;;  %v4852_v21 = vpop.f32.mrb[39].mxu1  ;;  %v5140_v14 = vld [vmem:[%s7224_s0 + $0x138] sm:$0xff]  }
 0x14c   :  { %v4222_v22 = vpack.c.bf16 %v2282_v16, %v2282_v16  ;;  %v2283_v23 = vmax.f32 %v1374_v17, 0.0  ;;  %4714 = vmatmul.mubr.msk.bf16.gmra.mrb[144].mxu0 %vm900_vm1, %v5134_v10  ;;  %v4344_v24 = vpack.c.bf16 %v2404_v19, %v2404_v19  ;;  %v2405_v25 = vmax.f32 %v1862_v20, 0.0  ;;  %4958 = vmatmul.mubr.msk.bf16.gmra.mrb[144].mxu1 %vm900_vm1, %v5135_v13  ;;  %v5141_v17 = vld [vmem:[%s7224_s0 + $0x320] sm:$0xff]  }
 0x14d   :  { %4717 = vmatprep.mubr.msk.bf16.mxu0 %vm5239_vm0, %v5238_v0  ;;  %4961 = vmatprep.mubr.msk.bf16.mxu1 %vm5239_vm0, %v5238_v0 }
 0x14e   :  { %3489 = vst.msk [vmem:[%s7227_s3 + $0x48] sm:$0xf] %vm3470_vm2, %v4222_v22  ;;  %v4223_v26 = vpack.c.bf16 %v2283_v23, %v2283_v23  ;;  %3611 = vst.msk [vmem:[%s7227_s3 + $0x230] sm:$0xf] %vm3470_vm2, %v4344_v24  ;;  %v4345_v27 = vpack.c.bf16 %v2405_v25, %v2405_v25 }
 0x14f   :  { %v1378_v28 = vpop.f32.mrb[40].mxu0  ;;  %v1866_v29 = vpop.f32.mrb[40].mxu1 }
 0x150   :  { %3490 = vst.msk [vmem:[%s7227_s3 + $0x4c] sm:$0xf] %vm3470_vm2, %v4223_v26  ;;  %v1379_v30 = vadd.f32 %v5610_v56, %v1378_v28  ;;  %v4611_v31 = vpop.f32.mrb[41].mxu0  ;;  %3612 = vst.msk [vmem:[%s7227_s3 + $0x234] sm:$0xf] %vm3470_vm2, %v4345_v27  ;;  %v1867_v33 = vadd.f32 %v5610_v56, %v1866_v29  ;;  %v4855_v34 = vpop.f32.mrb[41].mxu1 }
 0x151   :  { %v1381_v36 = vpop.f32.mrb[42].mxu0  ;;  %v1869_v37 = vpop.f32.mrb[42].mxu1 }
 0x152   :  { %v2284_v38 = vmax.f32 %v1379_v30, 0.0  ;;  %v1382_v39 = vadd.f32 %v5610_v56, %v1381_v36  ;;  %v4612_v40 = vpop.f32.mrb[43].mxu0  ;;  %v2406_v41 = vmax.f32 %v1867_v33, 0.0  ;;  %v1870_v42 = vadd.f32 %v5610_v56, %v1869_v37  ;;  %v4856_v43 = vpop.f32.mrb[43].mxu1  ;;  %v5142_v36 = vld [vmem:[%s7224_s0 + $0x140] sm:$0xff]  }
 0x154   :  { %v4224_v44 = vpack.c.bf16 %v2284_v38, %v2284_v38  ;;  %v2285_v45 = vmax.f32 %v1382_v39, 0.0  ;;  %4718 = vmatmul.mubr.msk.bf16.gmra.mrb[148].mxu0 %vm900_vm1, %v5136_v32  ;;  %v4346_v46 = vpack.c.bf16 %v2406_v41, %v2406_v41  ;;  %v2407_v47 = vmax.f32 %v1870_v42, 0.0  ;;  %4962 = vmatmul.mubr.msk.bf16.gmra.mrb[148].mxu1 %vm900_vm1, %v5137_v35  ;;  %v5143_v39 = vld [vmem:[%s7224_s0 + $0x328] sm:$0xff]  }
 0x155   :  { %4721 = vmatprep.mubr.msk.bf16.mxu0 %vm5239_vm0, %v5238_v0  ;;  %4965 = vmatprep.mubr.msk.bf16.mxu1 %vm5239_vm0, %v5238_v0 }
 0x156   :  { %3491 = vst.msk [vmem:[%s7227_s3 + $0x50] sm:$0xf] %vm3470_vm2, %v4224_v44  ;;  %v4225_v48 = vpack.c.bf16 %v2285_v45, %v2285_v45  ;;  %3613 = vst.msk [vmem:[%s7227_s3 + $0x238] sm:$0xf] %vm3470_vm2, %v4346_v46  ;;  %v4347_v49 = vpack.c.bf16 %v2407_v47, %v2407_v47 }
 0x157   :  { %v1386_v50 = vpop.f32.mrb[44].mxu0  ;;  %v1874_v51 = vpop.f32.mrb[44].mxu1 }
 0x158   :  { %3492 = vst.msk [vmem:[%s7227_s3 + $0x54] sm:$0xf] %vm3470_vm2, %v4225_v48  ;;  %v1387_v52 = vadd.f32 %v5610_v56, %v1386_v50  ;;  %v4615_v53 = vpop.f32.mrb[45].mxu0  ;;  %3614 = vst.msk [vmem:[%s7227_s3 + $0x23c] sm:$0xf] %vm3470_vm2, %v4347_v49  ;;  %v1875_v55 = vadd.f32 %v5610_v56, %v1874_v51  ;;  %v4859_v57 = vpop.f32.mrb[45].mxu1 }
 0x159   :  { %v1389_v59 = vpop.f32.mrb[46].mxu0  ;;  %v1877_v60 = vpop.f32.mrb[46].mxu1 }
 0x15a   :  { %v2286_v61 = vmax.f32 %v1387_v52, 0.0  ;;  %v1390_v62 = vadd.f32 %v5610_v56, %v1389_v59  ;;  %v4616_v63 = vpop.f32.mrb[47].mxu0  ;;  %v2408_v1 = vmax.f32 %v1875_v55, 0.0  ;;  %v1878_v2 = vadd.f32 %v5610_v56, %v1877_v60  ;;  %v4860_v3 = vpop.f32.mrb[47].mxu1  ;;  %v5144_v59 = vld [vmem:[%s7224_s0 + $0x148] sm:$0xff]  }
 0x15c   :  { %v4226_v4 = vpack.c.bf16 %v2286_v61, %v2286_v61  ;;  %v2287_v5 = vmax.f32 %v1390_v62, 0.0  ;;  %4722 = vmatmul.mubr.msk.bf16.gmra.mrb[152].mxu0 %vm900_vm1, %v5138_v54  ;;  %v4348_v6 = vpack.c.bf16 %v2408_v1, %v2408_v1  ;;  %v2409_v7 = vmax.f32 %v1878_v2, 0.0  ;;  %4966 = vmatmul.mubr.msk.bf16.gmra.mrb[152].mxu1 %vm900_vm1, %v5139_v58  ;;  %v5145_v62 = vld [vmem:[%s7224_s0 + $0x330] sm:$0xff]  }
 0x15d   :  { %4725 = vmatprep.mubr.msk.bf16.mxu0 %vm5239_vm0, %v5238_v0  ;;  %4969 = vmatprep.mubr.msk.bf16.mxu1 %vm5239_vm0, %v5238_v0 }
 0x15e   :  { %3493 = vst.msk [vmem:[%s7227_s3 + $0x58] sm:$0xf] %vm3470_vm2, %v4226_v4  ;;  %v4227_v8 = vpack.c.bf16 %v2287_v5, %v2287_v5  ;;  %3615 = vst.msk [vmem:[%s7227_s3 + $0x240] sm:$0xf] %vm3470_vm2, %v4348_v6  ;;  %v4349_v9 = vpack.c.bf16 %v2409_v7, %v2409_v7 }
 0x15f   :  { %v1394_v10 = vpop.f32.mrb[48].mxu0  ;;  %v1882_v11 = vpop.f32.mrb[48].mxu1 }
 0x160   :  { %3494 = vst.msk [vmem:[%s7227_s3 + $0x5c] sm:$0xf] %vm3470_vm2, %v4227_v8  ;;  %v1395_v12 = vadd.f32 %v5610_v56, %v1394_v10  ;;  %v4619_v13 = vpop.f32.mrb[49].mxu0  ;;  %3616 = vst.msk [vmem:[%s7227_s3 + $0x244] sm:$0xf] %vm3470_vm2, %v4349_v9  ;;  %v1883_v15 = vadd.f32 %v5610_v56, %v1882_v11  ;;  %v4863_v16 = vpop.f32.mrb[49].mxu1 }
 0x161   :  { %v1397_v18 = vpop.f32.mrb[50].mxu0  ;;  %v1885_v19 = vpop.f32.mrb[50].mxu1 }
 0x162   :  { %v2288_v20 = vmax.f32 %v1395_v12, 0.0  ;;  %v1398_v21 = vadd.f32 %v5610_v56, %v1397_v18  ;;  %v4620_v22 = vpop.f32.mrb[51].mxu0  ;;  %v2410_v23 = vmax.f32 %v1883_v15, 0.0  ;;  %v1886_v24 = vadd.f32 %v5610_v56, %v1885_v19  ;;  %v4864_v25 = vpop.f32.mrb[51].mxu1  ;;  %v5146_v18 = vld [vmem:[%s7224_s0 + $0x150] sm:$0xff]  }
 0x164   :  { %v4228_v26 = vpack.c.bf16 %v2288_v20, %v2288_v20  ;;  %v2289_v27 = vmax.f32 %v1398_v21, 0.0  ;;  %4726 = vmatmul.mubr.msk.bf16.gmra.mrb[156].mxu0 %vm900_vm1, %v5140_v14  ;;  %v4350_v28 = vpack.c.bf16 %v2410_v23, %v2410_v23  ;;  %v2411_v29 = vmax.f32 %v1886_v24, 0.0  ;;  %4970 = vmatmul.mubr.msk.bf16.gmra.mrb[156].mxu1 %vm900_vm1, %v5141_v17  ;;  %v5147_v21 = vld [vmem:[%s7224_s0 + $0x338] sm:$0xff]  }
 0x165   :  { %4729 = vmatprep.mubr.msk.bf16.mxu0 %vm5239_vm0, %v5238_v0  ;;  %4973 = vmatprep.mubr.msk.bf16.mxu1 %vm5239_vm0, %v5238_v0 }
 0x166   :  { %3495 = vst.msk [vmem:[%s7227_s3 + $0x60] sm:$0xf] %vm3470_vm2, %v4228_v26  ;;  %v4229_v30 = vpack.c.bf16 %v2289_v27, %v2289_v27  ;;  %3617 = vst.msk [vmem:[%s7227_s3 + $0x248] sm:$0xf] %vm3470_vm2, %v4350_v28  ;;  %v4351_v31 = vpack.c.bf16 %v2411_v29, %v2411_v29 }
 0x167   :  { %v1402_v32 = vpop.f32.mrb[52].mxu0  ;;  %v1890_v33 = vpop.f32.mrb[52].mxu1 }
 0x168   :  { %3496 = vst.msk [vmem:[%s7227_s3 + $0x64] sm:$0xf] %vm3470_vm2, %v4229_v30  ;;  %v1403_v34 = vadd.f32 %v5610_v56, %v1402_v32  ;;  %v4623_v35 = vpop.f32.mrb[53].mxu0  ;;  %3618 = vst.msk [vmem:[%s7227_s3 + $0x24c] sm:$0xf] %vm3470_vm2, %v4351_v31  ;;  %v1891_v37 = vadd.f32 %v5610_v56, %v1890_v33  ;;  %v4867_v38 = vpop.f32.mrb[53].mxu1 }
 0x169   :  { %v1405_v40 = vpop.f32.mrb[54].mxu0  ;;  %v1893_v41 = vpop.f32.mrb[54].mxu1 }
 0x16a   :  { %v2290_v42 = vmax.f32 %v1403_v34, 0.0  ;;  %v1406_v43 = vadd.f32 %v5610_v56, %v1405_v40  ;;  %v4624_v44 = vpop.f32.mrb[55].mxu0  ;;  %v2412_v45 = vmax.f32 %v1891_v37, 0.0  ;;  %v1894_v46 = vadd.f32 %v5610_v56, %v1893_v41  ;;  %v4868_v47 = vpop.f32.mrb[55].mxu1  ;;  %v5148_v40 = vld [vmem:[%s7224_s0 + $0x158] sm:$0xff]  }
 0x16c   :  { %v4230_v48 = vpack.c.bf16 %v2290_v42, %v2290_v42  ;;  %v2291_v49 = vmax.f32 %v1406_v43, 0.0  ;;  %4730 = vmatmul.mubr.msk.bf16.gmra.mrb[160].mxu0 %vm900_vm1, %v5142_v36  ;;  %v4352_v50 = vpack.c.bf16 %v2412_v45, %v2412_v45  ;;  %v2413_v51 = vmax.f32 %v1894_v46, 0.0  ;;  %4974 = vmatmul.mubr.msk.bf16.gmra.mrb[160].mxu1 %vm900_vm1, %v5143_v39  ;;  %v5149_v43 = vld [vmem:[%s7224_s0 + $0x340] sm:$0xff]  }
 0x16d   :  { %4733 = vmatprep.mubr.msk.bf16.mxu0 %vm5239_vm0, %v5238_v0  ;;  %4977 = vmatprep.mubr.msk.bf16.mxu1 %vm5239_vm0, %v5238_v0 }
 0x16e   :  { %3497 = vst.msk [vmem:[%s7227_s3 + $0x68] sm:$0xf] %vm3470_vm2, %v4230_v48  ;;  %v4231_v52 = vpack.c.bf16 %v2291_v49, %v2291_v49  ;;  %3619 = vst.msk [vmem:[%s7227_s3 + $0x250] sm:$0xf] %vm3470_vm2, %v4352_v50  ;;  %v4353_v53 = vpack.c.bf16 %v2413_v51, %v2413_v51 }
 0x16f   :  { %v1410_v54 = vpop.f32.mrb[56].mxu0  ;;  %v1898_v55 = vpop.f32.mrb[56].mxu1 }
 0x170   :  { %3498 = vst.msk [vmem:[%s7227_s3 + $0x6c] sm:$0xf] %vm3470_vm2, %v4231_v52  ;;  %v1411_v57 = vadd.f32 %v5610_v56, %v1410_v54  ;;  %v4627_v58 = vpop.f32.mrb[57].mxu0  ;;  %3620 = vst.msk [vmem:[%s7227_s3 + $0x254] sm:$0xf] %vm3470_vm2, %v4353_v53  ;;  %v1899_v60 = vadd.f32 %v5610_v56, %v1898_v55  ;;  %v4871_v61 = vpop.f32.mrb[57].mxu1 }
 0x171   :  { %v1413_v63 = vpop.f32.mrb[58].mxu0  ;;  %v1901_v1 = vpop.f32.mrb[58].mxu1 }
 0x172   :  { %v2292_v2 = vmax.f32 %v1411_v57, 0.0  ;;  %v1414_v3 = vadd.f32 %v5610_v56, %v1413_v63  ;;  %v4628_v4 = vpop.f32.mrb[59].mxu0  ;;  %v2414_v5 = vmax.f32 %v1899_v60, 0.0  ;;  %v1902_v6 = vadd.f32 %v5610_v56, %v1901_v1  ;;  %v4872_v7 = vpop.f32.mrb[59].mxu1  ;;  %v6156_v60 = vld [vmem:[#allocation4] ss:$0 sm:$0xff] }
 0x173   :  { %v5150_v63 = vld [vmem:[%s7224_s0 + $0x160] sm:$0xff]  }
 0x174   :  { %v4232_v8 = vpack.c.bf16 %v2292_v2, %v2292_v2  ;;  %v2293_v9 = vmax.f32 %v1414_v3, 0.0  ;;  %4734 = vmatmul.mubr.msk.bf16.gmra.mrb[164].mxu0 %vm900_vm1, %v5144_v59  ;;  %v4354_v10 = vpack.c.bf16 %v2414_v5, %v2414_v5  ;;  %v2415_v11 = vmax.f32 %v1902_v6, 0.0  ;;  %4978 = vmatmul.mubr.msk.bf16.gmra.mrb[164].mxu1 %vm900_vm1, %v5145_v62  ;;  %v5151_v3 = vld [vmem:[%s7224_s0 + $0x348] sm:$0xff]  }
 0x175   :  { %4737 = vmatprep.mubr.msk.bf16.mxu0 %vm5239_vm0, %v5238_v0  ;;  %4981 = vmatprep.mubr.msk.bf16.mxu1 %vm5239_vm0, %v5238_v0 }
 0x176   :  { %3499 = vst.msk [vmem:[%s7227_s3 + $0x70] sm:$0xf] %vm3470_vm2, %v4232_v8  ;;  %v4233_v12 = vpack.c.bf16 %v2293_v9, %v2293_v9  ;;  %3621 = vst.msk [vmem:[%s7227_s3 + $0x258] sm:$0xf] %vm3470_vm2, %v4354_v10  ;;  %v4355_v13 = vpack.c.bf16 %v2415_v11, %v2415_v11 }
 0x177   :  { %v1418_v14 = vpop.f32.mrb[60].mxu0  ;;  %v1906_v15 = vpop.f32.mrb[60].mxu1 }
 0x178   :  { %3500 = vst.msk [vmem:[%s7227_s3 + $0x74] sm:$0xf] %vm3470_vm2, %v4233_v12  ;;  %v1419_v16 = vadd.f32 %v5610_v56, %v1418_v14  ;;  %v4631_v17 = vpop.f32.mrb[61].mxu0  ;;  %3622 = vst.msk [vmem:[%s7227_s3 + $0x25c] sm:$0xf] %vm3470_vm2, %v4355_v13  ;;  %v1907_v19 = vadd.f32 %v5610_v56, %v1906_v15  ;;  %v4875_v20 = vpop.f32.mrb[61].mxu1 }
 0x179   :  { %v1421_v22 = vpop.f32.mrb[62].mxu0  ;;  %v1909_v23 = vpop.f32.mrb[62].mxu1 }
 0x17a   :  { %v2294_v24 = vmax.f32 %v1419_v16, 0.0  ;;  %v1422_v25 = vadd.f32 %v5610_v56, %v1421_v22  ;;  %v4632_v26 = vpop.f32.mrb[63].mxu0  ;;  %v2416_v27 = vmax.f32 %v1907_v19, 0.0  ;;  %v1910_v28 = vadd.f32 %v5610_v56, %v1909_v23  ;;  %v4876_v29 = vpop.f32.mrb[63].mxu1  ;;  %v5152_v22 = vld [vmem:[%s7224_s0 + $0x168] sm:$0xff]  }
 0x17c   :  { %v4234_v30 = vpack.c.bf16 %v2294_v24, %v2294_v24  ;;  %v2295_v31 = vmax.f32 %v1422_v25, 0.0  ;;  %4738 = vmatmul.mubr.msk.bf16.gmra.mrb[168].mxu0 %vm900_vm1, %v5146_v18  ;;  %v4356_v32 = vpack.c.bf16 %v2416_v27, %v2416_v27  ;;  %v2417_v33 = vmax.f32 %v1910_v28, 0.0  ;;  %4982 = vmatmul.mubr.msk.bf16.gmra.mrb[168].mxu1 %vm900_vm1, %v5147_v21  ;;  %v5153_v25 = vld [vmem:[%s7224_s0 + $0x350] sm:$0xff]  }
 0x17d   :  { %4741 = vmatprep.mubr.msk.bf16.mxu0 %vm5239_vm0, %v5238_v0  ;;  %4985 = vmatprep.mubr.msk.bf16.mxu1 %vm5239_vm0, %v5238_v0 }
 0x17e   :  { %3501 = vst.msk [vmem:[%s7227_s3 + $0x78] sm:$0xf] %vm3470_vm2, %v4234_v30  ;;  %v4235_v34 = vpack.c.bf16 %v2295_v31, %v2295_v31  ;;  %3623 = vst.msk [vmem:[%s7227_s3 + $0x260] sm:$0xf] %vm3470_vm2, %v4356_v32  ;;  %v4357_v35 = vpack.c.bf16 %v2417_v33, %v2417_v33 }
 0x17f   :  { %v1426_v36 = vpop.f32.mrb[64].mxu0  ;;  %v1914_v37 = vpop.f32.mrb[64].mxu1 }
 0x180   :  { %3502 = vst.msk [vmem:[%s7227_s3 + $0x7c] sm:$0xf] %vm3470_vm2, %v4235_v34  ;;  %v1427_v38 = vadd.f32 %v5610_v56, %v1426_v36  ;;  %v4635_v39 = vpop.f32.mrb[65].mxu0  ;;  %3624 = vst.msk [vmem:[%s7227_s3 + $0x264] sm:$0xf] %vm3470_vm2, %v4357_v35  ;;  %v1915_v41 = vadd.f32 %v5610_v56, %v1914_v37  ;;  %v4879_v42 = vpop.f32.mrb[65].mxu1 }
 0x181   :  { %v1429_v44 = vpop.f32.mrb[66].mxu0  ;;  %v1917_v45 = vpop.f32.mrb[66].mxu1 }
 0x182   :  { %v2296_v46 = vmax.f32 %v1427_v38, 0.0  ;;  %v1430_v47 = vadd.f32 %v5610_v56, %v1429_v44  ;;  %v4636_v48 = vpop.f32.mrb[67].mxu0  ;;  %v2418_v49 = vmax.f32 %v1915_v41, 0.0  ;;  %v1918_v50 = vadd.f32 %v5610_v56, %v1917_v45  ;;  %v4880_v51 = vpop.f32.mrb[67].mxu1  ;;  %v5154_v44 = vld [vmem:[%s7224_s0 + $0x170] sm:$0xff]  }
 0x184   :  { %v4236_v52 = vpack.c.bf16 %v2296_v46, %v2296_v46  ;;  %v2297_v53 = vmax.f32 %v1430_v47, 0.0  ;;  %4742 = vmatmul.mubr.msk.bf16.gmra.mrb[172].mxu0 %vm900_vm1, %v5148_v40  ;;  %v4358_v54 = vpack.c.bf16 %v2418_v49, %v2418_v49  ;;  %v2419_v55 = vmax.f32 %v1918_v50, 0.0  ;;  %4986 = vmatmul.mubr.msk.bf16.gmra.mrb[172].mxu1 %vm900_vm1, %v5149_v43  ;;  %v5155_v47 = vld [vmem:[%s7224_s0 + $0x358] sm:$0xff]  }
 0x185   :  { %4745 = vmatprep.mubr.msk.bf16.mxu0 %vm5239_vm0, %v5238_v0  ;;  %4989 = vmatprep.mubr.msk.bf16.mxu1 %vm5239_vm0, %v5238_v0 }
 0x186   :  { %3503 = vst.msk [vmem:[%s7227_s3 + $0x80] sm:$0xf] %vm3470_vm2, %v4236_v52  ;;  %v4237_v56 = vpack.c.bf16 %v2297_v53, %v2297_v53  ;;  %3625 = vst.msk [vmem:[%s7227_s3 + $0x268] sm:$0xf] %vm3470_vm2, %v4358_v54  ;;  %v4359_v57 = vpack.c.bf16 %v2419_v55, %v2419_v55 }
 0x187   :  { %v1434_v58 = vpop.f32.mrb[68].mxu0  ;;  %v1922_v59 = vpop.f32.mrb[68].mxu1 }
 0x188   :  { %3504 = vst.msk [vmem:[%s7227_s3 + $0x84] sm:$0xf] %vm3470_vm2, %v4237_v56  ;;  %v1435_v61 = vadd.f32 %v6156_v60, %v1434_v58  ;;  %v4639_v62 = vpop.f32.mrb[69].mxu0  ;;  %3626 = vst.msk [vmem:[%s7227_s3 + $0x26c] sm:$0xf] %vm3470_vm2, %v4359_v57  ;;  %v1923_v1 = vadd.f32 %v6156_v60, %v1922_v59  ;;  %v4883_v2 = vpop.f32.mrb[69].mxu1 }
 0x189   :  { %v1437_v4 = vpop.f32.mrb[70].mxu0  ;;  %v1925_v5 = vpop.f32.mrb[70].mxu1 }
 0x18a   :  { %v2298_v6 = vmax.f32 %v1435_v61, 0.0  ;;  %v1438_v7 = vadd.f32 %v6156_v60, %v1437_v4  ;;  %v4640_v8 = vpop.f32.mrb[71].mxu0  ;;  %v2420_v9 = vmax.f32 %v1923_v1, 0.0  ;;  %v1926_v10 = vadd.f32 %v6156_v60, %v1925_v5  ;;  %v4884_v11 = vpop.f32.mrb[71].mxu1  ;;  %v5156_v4 = vld [vmem:[%s7224_s0 + $0x178] sm:$0xff]  }
 0x18c   :  { %v4238_v12 = vpack.c.bf16 %v2298_v6, %v2298_v6  ;;  %v2299_v13 = vmax.f32 %v1438_v7, 0.0  ;;  %4746 = vmatmul.mubr.msk.bf16.gmra.mrb[176].mxu0 %vm900_vm1, %v5150_v63  ;;  %v4360_v14 = vpack.c.bf16 %v2420_v9, %v2420_v9  ;;  %v2421_v15 = vmax.f32 %v1926_v10, 0.0  ;;  %4990 = vmatmul.mubr.msk.bf16.gmra.mrb[176].mxu1 %vm900_vm1, %v5151_v3  ;;  %v5157_v7 = vld [vmem:[%s7224_s0 + $0x360] sm:$0xff]  }
 0x18d   :  { %4749 = vmatprep.mubr.msk.bf16.mxu0 %vm5239_vm0, %v5238_v0  ;;  %4993 = vmatprep.mubr.msk.bf16.mxu1 %vm5239_vm0, %v5238_v0 }
 0x18e   :  { %3505 = vst.msk [vmem:[%s7227_s3 + $0x88] sm:$0xf] %vm3470_vm2, %v4238_v12  ;;  %v4239_v16 = vpack.c.bf16 %v2299_v13, %v2299_v13  ;;  %3627 = vst.msk [vmem:[%s7227_s3 + $0x270] sm:$0xf] %vm3470_vm2, %v4360_v14  ;;  %v4361_v17 = vpack.c.bf16 %v2421_v15, %v2421_v15 }
 0x18f   :  { %v1442_v18 = vpop.f32.mrb[72].mxu0  ;;  %v1930_v19 = vpop.f32.mrb[72].mxu1 }
 0x190   :  { %3506 = vst.msk [vmem:[%s7227_s3 + $0x8c] sm:$0xf] %vm3470_vm2, %v4239_v16  ;;  %v1443_v20 = vadd.f32 %v6156_v60, %v1442_v18  ;;  %v4643_v21 = vpop.f32.mrb[73].mxu0  ;;  %3628 = vst.msk [vmem:[%s7227_s3 + $0x274] sm:$0xf] %vm3470_vm2, %v4361_v17  ;;  %v1931_v23 = vadd.f32 %v6156_v60, %v1930_v19  ;;  %v4887_v24 = vpop.f32.mrb[73].mxu1 }
 0x191   :  { %v1445_v26 = vpop.f32.mrb[74].mxu0  ;;  %v1933_v27 = vpop.f32.mrb[74].mxu1 }
 0x192   :  { %v2300_v28 = vmax.f32 %v1443_v20, 0.0  ;;  %v1446_v29 = vadd.f32 %v6156_v60, %v1445_v26  ;;  %v4644_v30 = vpop.f32.mrb[75].mxu0  ;;  %v2422_v31 = vmax.f32 %v1931_v23, 0.0  ;;  %v1934_v32 = vadd.f32 %v6156_v60, %v1933_v27  ;;  %v4888_v33 = vpop.f32.mrb[75].mxu1  ;;  %v5158_v26 = vld [vmem:[%s7224_s0 + $0x180] sm:$0xff]  }
 0x194   :  { %v4240_v34 = vpack.c.bf16 %v2300_v28, %v2300_v28  ;;  %v2301_v35 = vmax.f32 %v1446_v29, 0.0  ;;  %4750 = vmatmul.mubr.msk.bf16.gmra.mrb[180].mxu0 %vm900_vm1, %v5152_v22  ;;  %v4362_v36 = vpack.c.bf16 %v2422_v31, %v2422_v31  ;;  %v2423_v37 = vmax.f32 %v1934_v32, 0.0  ;;  %4994 = vmatmul.mubr.msk.bf16.gmra.mrb[180].mxu1 %vm900_vm1, %v5153_v25  ;;  %v5159_v29 = vld [vmem:[%s7224_s0 + $0x368] sm:$0xff]  }
 0x195   :  { %4753 = vmatprep.mubr.msk.bf16.mxu0 %vm5239_vm0, %v5238_v0  ;;  %4997 = vmatprep.mubr.msk.bf16.mxu1 %vm5239_vm0, %v5238_v0 }
 0x196   :  { %3507 = vst.msk [vmem:[%s7227_s3 + $0x90] sm:$0xf] %vm3470_vm2, %v4240_v34  ;;  %v4241_v38 = vpack.c.bf16 %v2301_v35, %v2301_v35  ;;  %3629 = vst.msk [vmem:[%s7227_s3 + $0x278] sm:$0xf] %vm3470_vm2, %v4362_v36  ;;  %v4363_v39 = vpack.c.bf16 %v2423_v37, %v2423_v37 }
 0x197   :  { %v1450_v40 = vpop.f32.mrb[76].mxu0  ;;  %v1938_v41 = vpop.f32.mrb[76].mxu1 }
 0x198   :  { %3508 = vst.msk [vmem:[%s7227_s3 + $0x94] sm:$0xf] %vm3470_vm2, %v4241_v38  ;;  %v1451_v42 = vadd.f32 %v6156_v60, %v1450_v40  ;;  %v4647_v43 = vpop.f32.mrb[77].mxu0  ;;  %3630 = vst.msk [vmem:[%s7227_s3 + $0x27c] sm:$0xf] %vm3470_vm2, %v4363_v39  ;;  %v1939_v45 = vadd.f32 %v6156_v60, %v1938_v41  ;;  %v4891_v46 = vpop.f32.mrb[77].mxu1 }
 0x199   :  { %v1453_v48 = vpop.f32.mrb[78].mxu0  ;;  %v1941_v49 = vpop.f32.mrb[78].mxu1 }
 0x19a   :  { %v2302_v50 = vmax.f32 %v1451_v42, 0.0  ;;  %v1454_v51 = vadd.f32 %v6156_v60, %v1453_v48  ;;  %v4648_v52 = vpop.f32.mrb[79].mxu0  ;;  %v2424_v53 = vmax.f32 %v1939_v45, 0.0  ;;  %v1942_v54 = vadd.f32 %v6156_v60, %v1941_v49  ;;  %v4892_v55 = vpop.f32.mrb[79].mxu1  ;;  %v5160_v48 = vld [vmem:[%s7224_s0 + $0x188] sm:$0xff]  }
 0x19c   :  { %v4242_v56 = vpack.c.bf16 %v2302_v50, %v2302_v50  ;;  %v2303_v57 = vmax.f32 %v1454_v51, 0.0  ;;  %4754 = vmatmul.mubr.msk.bf16.gmra.mrb[184].mxu0 %vm900_vm1, %v5154_v44  ;;  %v4364_v58 = vpack.c.bf16 %v2424_v53, %v2424_v53  ;;  %v2425_v59 = vmax.f32 %v1942_v54, 0.0  ;;  %4998 = vmatmul.mubr.msk.bf16.gmra.mrb[184].mxu1 %vm900_vm1, %v5155_v47  ;;  %v5161_v51 = vld [vmem:[%s7224_s0 + $0x370] sm:$0xff]  }
 0x19d   :  { %4757 = vmatprep.mubr.msk.bf16.mxu0 %vm5239_vm0, %v5238_v0  ;;  %5001 = vmatprep.mubr.msk.bf16.mxu1 %vm5239_vm0, %v5238_v0 }
 0x19e   :  { %3509 = vst.msk [vmem:[%s7227_s3 + $0x98] sm:$0xf] %vm3470_vm2, %v4242_v56  ;;  %v4243_v61 = vpack.c.bf16 %v2303_v57, %v2303_v57  ;;  %3631 = vst.msk [vmem:[%s7227_s3 + $0x280] sm:$0xf] %vm3470_vm2, %v4364_v58  ;;  %v4365_v62 = vpack.c.bf16 %v2425_v59, %v2425_v59 }
 0x19f   :  { %v1458_v63 = vpop.f32.mrb[80].mxu0  ;;  %v1946_v1 = vpop.f32.mrb[80].mxu1 }
 0x1a0   :  { %3510 = vst.msk [vmem:[%s7227_s3 + $0x9c] sm:$0xf] %vm3470_vm2, %v4243_v61  ;;  %v1459_v2 = vadd.f32 %v6156_v60, %v1458_v63  ;;  %v4651_v3 = vpop.f32.mrb[81].mxu0  ;;  %3632 = vst.msk [vmem:[%s7227_s3 + $0x284] sm:$0xf] %vm3470_vm2, %v4365_v62  ;;  %v1947_v5 = vadd.f32 %v6156_v60, %v1946_v1  ;;  %v4895_v6 = vpop.f32.mrb[81].mxu1 }
 0x1a1   :  { %v1461_v8 = vpop.f32.mrb[82].mxu0  ;;  %v1949_v9 = vpop.f32.mrb[82].mxu1 }
 0x1a2   :  { %v2304_v10 = vmax.f32 %v1459_v2, 0.0  ;;  %v1462_v11 = vadd.f32 %v6156_v60, %v1461_v8  ;;  %v4652_v12 = vpop.f32.mrb[83].mxu0  ;;  %v2426_v13 = vmax.f32 %v1947_v5, 0.0  ;;  %v1950_v14 = vadd.f32 %v6156_v60, %v1949_v9  ;;  %v4896_v15 = vpop.f32.mrb[83].mxu1  ;;  %v5162_v8 = vld [vmem:[%s7224_s0 + $0x190] sm:$0xff]  }
 0x1a4   :  { %v4244_v16 = vpack.c.bf16 %v2304_v10, %v2304_v10  ;;  %v2305_v17 = vmax.f32 %v1462_v11, 0.0  ;;  %4758 = vmatmul.mubr.msk.bf16.gmra.mrb[188].mxu0 %vm900_vm1, %v5156_v4  ;;  %v4366_v18 = vpack.c.bf16 %v2426_v13, %v2426_v13  ;;  %v2427_v19 = vmax.f32 %v1950_v14, 0.0  ;;  %5002 = vmatmul.mubr.msk.bf16.gmra.mrb[188].mxu1 %vm900_vm1, %v5157_v7  ;;  %v5163_v11 = vld [vmem:[%s7224_s0 + $0x378] sm:$0xff]  }
 0x1a5   :  { %4761 = vmatprep.mubr.msk.bf16.mxu0 %vm5239_vm0, %v5238_v0  ;;  %5005 = vmatprep.mubr.msk.bf16.mxu1 %vm5239_vm0, %v5238_v0 }
 0x1a6   :  { %3511 = vst.msk [vmem:[%s7227_s3 + $0xa0] sm:$0xf] %vm3470_vm2, %v4244_v16  ;;  %v4245_v20 = vpack.c.bf16 %v2305_v17, %v2305_v17  ;;  %3633 = vst.msk [vmem:[%s7227_s3 + $0x288] sm:$0xf] %vm3470_vm2, %v4366_v18  ;;  %v4367_v21 = vpack.c.bf16 %v2427_v19, %v2427_v19 }
 0x1a7   :  { %v1466_v22 = vpop.f32.mrb[84].mxu0  ;;  %v1954_v23 = vpop.f32.mrb[84].mxu1 }
 0x1a8   :  { %3512 = vst.msk [vmem:[%s7227_s3 + $0xa4] sm:$0xf] %vm3470_vm2, %v4245_v20  ;;  %v1467_v24 = vadd.f32 %v6156_v60, %v1466_v22  ;;  %v4655_v25 = vpop.f32.mrb[85].mxu0  ;;  %3634 = vst.msk [vmem:[%s7227_s3 + $0x28c] sm:$0xf] %vm3470_vm2, %v4367_v21  ;;  %v1955_v27 = vadd.f32 %v6156_v60, %v1954_v23  ;;  %v4899_v28 = vpop.f32.mrb[85].mxu1 }
 0x1a9   :  { %v1469_v30 = vpop.f32.mrb[86].mxu0  ;;  %v1957_v31 = vpop.f32.mrb[86].mxu1 }
 0x1aa   :  { %v2306_v32 = vmax.f32 %v1467_v24, 0.0  ;;  %v1470_v33 = vadd.f32 %v6156_v60, %v1469_v30  ;;  %v4656_v34 = vpop.f32.mrb[87].mxu0  ;;  %v2428_v35 = vmax.f32 %v1955_v27, 0.0  ;;  %v1958_v36 = vadd.f32 %v6156_v60, %v1957_v31  ;;  %v4900_v37 = vpop.f32.mrb[87].mxu1  ;;  %v5164_v30 = vld [vmem:[%s7224_s0 + $0x198] sm:$0xff]  }
 0x1ac   :  { %v4246_v38 = vpack.c.bf16 %v2306_v32, %v2306_v32  ;;  %v2307_v39 = vmax.f32 %v1470_v33, 0.0  ;;  %4762 = vmatmul.mubr.msk.bf16.gmra.mrb[192].mxu0 %vm900_vm1, %v5158_v26  ;;  %v4368_v40 = vpack.c.bf16 %v2428_v35, %v2428_v35  ;;  %v2429_v41 = vmax.f32 %v1958_v36, 0.0  ;;  %5006 = vmatmul.mubr.msk.bf16.gmra.mrb[192].mxu1 %vm900_vm1, %v5159_v29  ;;  %v5165_v33 = vld [vmem:[%s7224_s0 + $0x380] sm:$0xff]  }
 0x1ad   :  { %4765 = vmatprep.mubr.msk.bf16.mxu0 %vm5239_vm0, %v5238_v0  ;;  %5009 = vmatprep.mubr.msk.bf16.mxu1 %vm5239_vm0, %v5238_v0 }
 0x1ae   :  { %3513 = vst.msk [vmem:[%s7227_s3 + $0xa8] sm:$0xf] %vm3470_vm2, %v4246_v38  ;;  %v4247_v42 = vpack.c.bf16 %v2307_v39, %v2307_v39  ;;  %3635 = vst.msk [vmem:[%s7227_s3 + $0x290] sm:$0xf] %vm3470_vm2, %v4368_v40  ;;  %v4369_v43 = vpack.c.bf16 %v2429_v41, %v2429_v41 }
 0x1af   :  { %v1474_v44 = vpop.f32.mrb[88].mxu0  ;;  %v1962_v45 = vpop.f32.mrb[88].mxu1 }
 0x1b0   :  { %3514 = vst.msk [vmem:[%s7227_s3 + $0xac] sm:$0xf] %vm3470_vm2, %v4247_v42  ;;  %v1475_v46 = vadd.f32 %v6156_v60, %v1474_v44  ;;  %v4659_v47 = vpop.f32.mrb[89].mxu0  ;;  %3636 = vst.msk [vmem:[%s7227_s3 + $0x294] sm:$0xf] %vm3470_vm2, %v4369_v43  ;;  %v1963_v49 = vadd.f32 %v6156_v60, %v1962_v45  ;;  %v4903_v50 = vpop.f32.mrb[89].mxu1 }
 0x1b1   :  { %v1477_v52 = vpop.f32.mrb[90].mxu0  ;;  %v1965_v53 = vpop.f32.mrb[90].mxu1 }
 0x1b2   :  { %v2308_v54 = vmax.f32 %v1475_v46, 0.0  ;;  %v1478_v55 = vadd.f32 %v6156_v60, %v1477_v52  ;;  %v4660_v56 = vpop.f32.mrb[91].mxu0  ;;  %v2430_v57 = vmax.f32 %v1963_v49, 0.0  ;;  %v1966_v58 = vadd.f32 %v6156_v60, %v1965_v53  ;;  %v4904_v59 = vpop.f32.mrb[91].mxu1  ;;  %v5166_v52 = vld [vmem:[%s7224_s0 + $0x1a0] sm:$0xff]  }
 0x1b4   :  { %v4248_v61 = vpack.c.bf16 %v2308_v54, %v2308_v54  ;;  %v2309_v62 = vmax.f32 %v1478_v55, 0.0  ;;  %4766 = vmatmul.mubr.msk.bf16.gmra.mrb[196].mxu0 %vm900_vm1, %v5160_v48  ;;  %v4370_v63 = vpack.c.bf16 %v2430_v57, %v2430_v57  ;;  %v2431_v1 = vmax.f32 %v1966_v58, 0.0  ;;  %5010 = vmatmul.mubr.msk.bf16.gmra.mrb[196].mxu1 %vm900_vm1, %v5161_v51  ;;  %v5167_v55 = vld [vmem:[%s7224_s0 + $0x388] sm:$0xff]  }
 0x1b5   :  { %4769 = vmatprep.mubr.msk.bf16.mxu0 %vm5239_vm0, %v5238_v0  ;;  %5013 = vmatprep.mubr.msk.bf16.mxu1 %vm5239_vm0, %v5238_v0 }
 0x1b6   :  { %3515 = vst.msk [vmem:[%s7227_s3 + $0xb0] sm:$0xf] %vm3470_vm2, %v4248_v61  ;;  %v4249_v2 = vpack.c.bf16 %v2309_v62, %v2309_v62  ;;  %3637 = vst.msk [vmem:[%s7227_s3 + $0x298] sm:$0xf] %vm3470_vm2, %v4370_v63  ;;  %v4371_v3 = vpack.c.bf16 %v2431_v1, %v2431_v1 }
 0x1b7   :  { %v1482_v4 = vpop.f32.mrb[92].mxu0  ;;  %v1970_v5 = vpop.f32.mrb[92].mxu1 }
 0x1b8   :  { %3516 = vst.msk [vmem:[%s7227_s3 + $0xb4] sm:$0xf] %vm3470_vm2, %v4249_v2  ;;  %v1483_v6 = vadd.f32 %v6156_v60, %v1482_v4  ;;  %v4663_v7 = vpop.f32.mrb[93].mxu0  ;;  %3638 = vst.msk [vmem:[%s7227_s3 + $0x29c] sm:$0xf] %vm3470_vm2, %v4371_v3  ;;  %v1971_v9 = vadd.f32 %v6156_v60, %v1970_v5  ;;  %v4907_v10 = vpop.f32.mrb[93].mxu1 }
 0x1b9   :  { %v1485_v12 = vpop.f32.mrb[94].mxu0  ;;  %v1973_v13 = vpop.f32.mrb[94].mxu1 }
 0x1ba   :  { %v2310_v14 = vmax.f32 %v1483_v6, 0.0  ;;  %v1486_v15 = vadd.f32 %v6156_v60, %v1485_v12  ;;  %v4664_v16 = vpop.f32.mrb[95].mxu0  ;;  %v2432_v17 = vmax.f32 %v1971_v9, 0.0  ;;  %v1974_v18 = vadd.f32 %v6156_v60, %v1973_v13  ;;  %v4908_v19 = vpop.f32.mrb[95].mxu1  ;;  %v5168_v12 = vld [vmem:[%s7224_s0 + $0x1a8] sm:$0xff]  }
 0x1bc   :  { %v4250_v20 = vpack.c.bf16 %v2310_v14, %v2310_v14  ;;  %v2311_v21 = vmax.f32 %v1486_v15, 0.0  ;;  %4770 = vmatmul.mubr.msk.bf16.gmra.mrb[200].mxu0 %vm900_vm1, %v5162_v8  ;;  %v4372_v22 = vpack.c.bf16 %v2432_v17, %v2432_v17  ;;  %v2433_v23 = vmax.f32 %v1974_v18, 0.0  ;;  %5014 = vmatmul.mubr.msk.bf16.gmra.mrb[200].mxu1 %vm900_vm1, %v5163_v11  ;;  %v5169_v15 = vld [vmem:[%s7224_s0 + $0x390] sm:$0xff]  }
 0x1bd   :  { %4773 = vmatprep.mubr.msk.bf16.mxu0 %vm5239_vm0, %v5238_v0  ;;  %5017 = vmatprep.mubr.msk.bf16.mxu1 %vm5239_vm0, %v5238_v0 }
 0x1be   :  { %3517 = vst.msk [vmem:[%s7227_s3 + $0xb8] sm:$0xf] %vm3470_vm2, %v4250_v20  ;;  %v4251_v24 = vpack.c.bf16 %v2311_v21, %v2311_v21  ;;  %3639 = vst.msk [vmem:[%s7227_s3 + $0x2a0] sm:$0xf] %vm3470_vm2, %v4372_v22  ;;  %v4373_v25 = vpack.c.bf16 %v2433_v23, %v2433_v23 }
 0x1bf   :  { %v1490_v26 = vpop.f32.mrb[96].mxu0  ;;  %v1978_v27 = vpop.f32.mrb[96].mxu1 }
 0x1c0   :  { %3518 = vst.msk [vmem:[%s7227_s3 + $0xbc] sm:$0xf] %vm3470_vm2, %v4251_v24  ;;  %v1491_v28 = vadd.f32 %v6156_v60, %v1490_v26  ;;  %v4667_v29 = vpop.f32.mrb[97].mxu0  ;;  %3640 = vst.msk [vmem:[%s7227_s3 + $0x2a4] sm:$0xf] %vm3470_vm2, %v4373_v25  ;;  %v1979_v31 = vadd.f32 %v6156_v60, %v1978_v27  ;;  %v4911_v32 = vpop.f32.mrb[97].mxu1 }
 0x1c1   :  { %v1493_v34 = vpop.f32.mrb[98].mxu0  ;;  %v1981_v35 = vpop.f32.mrb[98].mxu1 }
 0x1c2   :  { %v2312_v36 = vmax.f32 %v1491_v28, 0.0  ;;  %v1494_v37 = vadd.f32 %v6156_v60, %v1493_v34  ;;  %v4668_v38 = vpop.f32.mrb[99].mxu0  ;;  %v2434_v39 = vmax.f32 %v1979_v31, 0.0  ;;  %v1982_v40 = vadd.f32 %v6156_v60, %v1981_v35  ;;  %v4912_v41 = vpop.f32.mrb[99].mxu1  ;;  %v5170_v34 = vld [vmem:[%s7224_s0 + $0x1b0] sm:$0xff]  }
 0x1c4   :  { %v4252_v42 = vpack.c.bf16 %v2312_v36, %v2312_v36  ;;  %v2313_v43 = vmax.f32 %v1494_v37, 0.0  ;;  %4774 = vmatmul.mubr.msk.bf16.gmra.mrb[204].mxu0 %vm900_vm1, %v5164_v30  ;;  %v4374_v44 = vpack.c.bf16 %v2434_v39, %v2434_v39  ;;  %v2435_v45 = vmax.f32 %v1982_v40, 0.0  ;;  %5018 = vmatmul.mubr.msk.bf16.gmra.mrb[204].mxu1 %vm900_vm1, %v5165_v33  ;;  %v5171_v37 = vld [vmem:[%s7224_s0 + $0x398] sm:$0xff]  }
 0x1c5   :  { %4777 = vmatprep.mubr.msk.bf16.mxu0 %vm5239_vm0, %v5238_v0  ;;  %5021 = vmatprep.mubr.msk.bf16.mxu1 %vm5239_vm0, %v5238_v0 }
 0x1c6   :  { %3519 = vst.msk [vmem:[%s7227_s3 + $0xc0] sm:$0xf] %vm3470_vm2, %v4252_v42  ;;  %v4253_v46 = vpack.c.bf16 %v2313_v43, %v2313_v43  ;;  %3641 = vst.msk [vmem:[%s7227_s3 + $0x2a8] sm:$0xf] %vm3470_vm2, %v4374_v44  ;;  %v4375_v47 = vpack.c.bf16 %v2435_v45, %v2435_v45 }
 0x1c7   :  { %v1498_v48 = vpop.f32.mrb[100].mxu0  ;;  %v1986_v49 = vpop.f32.mrb[100].mxu1 }
 0x1c8   :  { %3520 = vst.msk [vmem:[%s7227_s3 + $0xc4] sm:$0xf] %vm3470_vm2, %v4253_v46  ;;  %v1499_v50 = vadd.f32 %v6156_v60, %v1498_v48  ;;  %v4671_v51 = vpop.f32.mrb[101].mxu0  ;;  %3642 = vst.msk [vmem:[%s7227_s3 + $0x2ac] sm:$0xf] %vm3470_vm2, %v4375_v47  ;;  %v1987_v53 = vadd.f32 %v6156_v60, %v1986_v49  ;;  %v4915_v54 = vpop.f32.mrb[101].mxu1 }
 0x1c9   :  { %v1501_v56 = vpop.f32.mrb[102].mxu0  ;;  %v1989_v57 = vpop.f32.mrb[102].mxu1 }
 0x1ca   :  { %v2314_v58 = vmax.f32 %v1499_v50, 0.0  ;;  %v1502_v59 = vadd.f32 %v6156_v60, %v1501_v56  ;;  %v4672_v61 = vpop.f32.mrb[103].mxu0  ;;  %v2436_v62 = vmax.f32 %v1987_v53, 0.0  ;;  %v1990_v63 = vadd.f32 %v6156_v60, %v1989_v57  ;;  %v4916_v1 = vpop.f32.mrb[103].mxu1  ;;  %v5172_v56 = vld [vmem:[%s7224_s0 + $0x1b8] sm:$0xff]  }
 0x1cc   :  { %v4254_v2 = vpack.c.bf16 %v2314_v58, %v2314_v58  ;;  %v2315_v3 = vmax.f32 %v1502_v59, 0.0  ;;  %4778 = vmatmul.mubr.msk.bf16.gmra.mrb[208].mxu0 %vm900_vm1, %v5166_v52  ;;  %v4376_v4 = vpack.c.bf16 %v2436_v62, %v2436_v62  ;;  %v2437_v5 = vmax.f32 %v1990_v63, 0.0  ;;  %5022 = vmatmul.mubr.msk.bf16.gmra.mrb[208].mxu1 %vm900_vm1, %v5167_v55  ;;  %v5173_v59 = vld [vmem:[%s7224_s0 + $0x3a0] sm:$0xff]  }
 0x1cd   :  { %4781 = vmatprep.mubr.msk.bf16.mxu0 %vm5239_vm0, %v5238_v0  ;;  %5025 = vmatprep.mubr.msk.bf16.mxu1 %vm5239_vm0, %v5238_v0 }
 0x1ce   :  { %3521 = vst.msk [vmem:[%s7227_s3 + $0xc8] sm:$0xf] %vm3470_vm2, %v4254_v2  ;;  %v4255_v6 = vpack.c.bf16 %v2315_v3, %v2315_v3  ;;  %3643 = vst.msk [vmem:[%s7227_s3 + $0x2b0] sm:$0xf] %vm3470_vm2, %v4376_v4  ;;  %v4377_v7 = vpack.c.bf16 %v2437_v5, %v2437_v5 }
 0x1cf   :  { %v1506_v8 = vpop.f32.mrb[104].mxu0  ;;  %v1994_v9 = vpop.f32.mrb[104].mxu1 }
 0x1d0   :  { %3522 = vst.msk [vmem:[%s7227_s3 + $0xcc] sm:$0xf] %vm3470_vm2, %v4255_v6  ;;  %v1507_v10 = vadd.f32 %v6156_v60, %v1506_v8  ;;  %v4675_v11 = vpop.f32.mrb[105].mxu0  ;;  %3644 = vst.msk [vmem:[%s7227_s3 + $0x2b4] sm:$0xf] %vm3470_vm2, %v4377_v7  ;;  %v1995_v13 = vadd.f32 %v6156_v60, %v1994_v9  ;;  %v4919_v14 = vpop.f32.mrb[105].mxu1 }
 0x1d1   :  { %v1509_v16 = vpop.f32.mrb[106].mxu0  ;;  %v1997_v17 = vpop.f32.mrb[106].mxu1 }
 0x1d2   :  { %v2316_v18 = vmax.f32 %v1507_v10, 0.0  ;;  %v1510_v19 = vadd.f32 %v6156_v60, %v1509_v16  ;;  %v4676_v20 = vpop.f32.mrb[107].mxu0  ;;  %v2438_v21 = vmax.f32 %v1995_v13, 0.0  ;;  %v1998_v22 = vadd.f32 %v6156_v60, %v1997_v17  ;;  %v4920_v23 = vpop.f32.mrb[107].mxu1  ;;  %v5174_v16 = vld [vmem:[%s7224_s0 + $0x1c0] sm:$0xff]  }
 0x1d4   :  { %v4256_v24 = vpack.c.bf16 %v2316_v18, %v2316_v18  ;;  %v2317_v25 = vmax.f32 %v1510_v19, 0.0  ;;  %4782 = vmatmul.mubr.msk.bf16.gmra.mrb[212].mxu0 %vm900_vm1, %v5168_v12  ;;  %v4378_v26 = vpack.c.bf16 %v2438_v21, %v2438_v21  ;;  %v2439_v27 = vmax.f32 %v1998_v22, 0.0  ;;  %5026 = vmatmul.mubr.msk.bf16.gmra.mrb[212].mxu1 %vm900_vm1, %v5169_v15  ;;  %v5175_v19 = vld [vmem:[%s7224_s0 + $0x3a8] sm:$0xff]  }
 0x1d5   :  { %4785 = vmatprep.mubr.msk.bf16.mxu0 %vm5239_vm0, %v5238_v0  ;;  %5029 = vmatprep.mubr.msk.bf16.mxu1 %vm5239_vm0, %v5238_v0 }
 0x1d6   :  { %3523 = vst.msk [vmem:[%s7227_s3 + $0xd0] sm:$0xf] %vm3470_vm2, %v4256_v24  ;;  %v4257_v28 = vpack.c.bf16 %v2317_v25, %v2317_v25  ;;  %3645 = vst.msk [vmem:[%s7227_s3 + $0x2b8] sm:$0xf] %vm3470_vm2, %v4378_v26  ;;  %v4379_v29 = vpack.c.bf16 %v2439_v27, %v2439_v27 }
 0x1d7   :  { %v1514_v30 = vpop.f32.mrb[108].mxu0  ;;  %v2002_v31 = vpop.f32.mrb[108].mxu1 }
 0x1d8   :  { %3524 = vst.msk [vmem:[%s7227_s3 + $0xd4] sm:$0xf] %vm3470_vm2, %v4257_v28  ;;  %v1515_v32 = vadd.f32 %v6156_v60, %v1514_v30  ;;  %v4679_v33 = vpop.f32.mrb[109].mxu0  ;;  %3646 = vst.msk [vmem:[%s7227_s3 + $0x2bc] sm:$0xf] %vm3470_vm2, %v4379_v29  ;;  %v2003_v35 = vadd.f32 %v6156_v60, %v2002_v31  ;;  %v4923_v36 = vpop.f32.mrb[109].mxu1 }
 0x1d9   :  { %v1517_v38 = vpop.f32.mrb[110].mxu0  ;;  %v2005_v39 = vpop.f32.mrb[110].mxu1 }
 0x1da   :  { %v2318_v40 = vmax.f32 %v1515_v32, 0.0  ;;  %v1518_v41 = vadd.f32 %v6156_v60, %v1517_v38  ;;  %v4680_v42 = vpop.f32.mrb[111].mxu0  ;;  %v2440_v43 = vmax.f32 %v2003_v35, 0.0  ;;  %v2006_v44 = vadd.f32 %v6156_v60, %v2005_v39  ;;  %v4924_v45 = vpop.f32.mrb[111].mxu1  ;;  %v5176_v38 = vld [vmem:[%s7224_s0 + $0x1c8] sm:$0xff]  }
 0x1dc   :  { %v4258_v46 = vpack.c.bf16 %v2318_v40, %v2318_v40  ;;  %v2319_v47 = vmax.f32 %v1518_v41, 0.0  ;;  %4786 = vmatmul.mubr.msk.bf16.gmra.mrb[216].mxu0 %vm900_vm1, %v5170_v34  ;;  %v4380_v48 = vpack.c.bf16 %v2440_v43, %v2440_v43  ;;  %v2441_v49 = vmax.f32 %v2006_v44, 0.0  ;;  %5030 = vmatmul.mubr.msk.bf16.gmra.mrb[216].mxu1 %vm900_vm1, %v5171_v37  ;;  %v5177_v41 = vld [vmem:[%s7224_s0 + $0x3b0] sm:$0xff]  }
 0x1dd   :  { %4789 = vmatprep.mubr.msk.bf16.mxu0 %vm5239_vm0, %v5238_v0  ;;  %5033 = vmatprep.mubr.msk.bf16.mxu1 %vm5239_vm0, %v5238_v0 }
 0x1de   :  { %3525 = vst.msk [vmem:[%s7227_s3 + $0xd8] sm:$0xf] %vm3470_vm2, %v4258_v46  ;;  %v4259_v50 = vpack.c.bf16 %v2319_v47, %v2319_v47  ;;  %3647 = vst.msk [vmem:[%s7227_s3 + $0x2c0] sm:$0xf] %vm3470_vm2, %v4380_v48  ;;  %v4381_v51 = vpack.c.bf16 %v2441_v49, %v2441_v49 }
 0x1df   :  { %v1522_v52 = vpop.f32.mrb[112].mxu0  ;;  %v2010_v53 = vpop.f32.mrb[112].mxu1 }
 0x1e0   :  { %3526 = vst.msk [vmem:[%s7227_s3 + $0xdc] sm:$0xf] %vm3470_vm2, %v4259_v50  ;;  %v1523_v54 = vadd.f32 %v6156_v60, %v1522_v52  ;;  %v4683_v55 = vpop.f32.mrb[113].mxu0  ;;  %3648 = vst.msk [vmem:[%s7227_s3 + $0x2c4] sm:$0xf] %vm3470_vm2, %v4381_v51  ;;  %v2011_v57 = vadd.f32 %v6156_v60, %v2010_v53  ;;  %v4927_v58 = vpop.f32.mrb[113].mxu1 }
 0x1e1   :  { %v1525_v61 = vpop.f32.mrb[114].mxu0  ;;  %v2013_v62 = vpop.f32.mrb[114].mxu1 }
 0x1e2   :  { %v2320_v63 = vmax.f32 %v1523_v54, 0.0  ;;  %v1526_v1 = vadd.f32 %v6156_v60, %v1525_v61  ;;  %v4684_v2 = vpop.f32.mrb[115].mxu0  ;;  %v2442_v3 = vmax.f32 %v2011_v57, 0.0  ;;  %v2014_v4 = vadd.f32 %v6156_v60, %v2013_v62  ;;  %v4928_v5 = vpop.f32.mrb[115].mxu1  ;;  %v5178_v61 = vld [vmem:[%s7224_s0 + $0x1d0] sm:$0xff]  }
 0x1e4   :  { %v4260_v6 = vpack.c.bf16 %v2320_v63, %v2320_v63  ;;  %v2321_v7 = vmax.f32 %v1526_v1, 0.0  ;;  %4790 = vmatmul.mubr.msk.bf16.gmra.mrb[220].mxu0 %vm900_vm1, %v5172_v56  ;;  %v4382_v8 = vpack.c.bf16 %v2442_v3, %v2442_v3  ;;  %v2443_v9 = vmax.f32 %v2014_v4, 0.0  ;;  %5034 = vmatmul.mubr.msk.bf16.gmra.mrb[220].mxu1 %vm900_vm1, %v5173_v59  ;;  %v5179_v1 = vld [vmem:[%s7224_s0 + $0x3b8] sm:$0xff]  }
 0x1e5   :  { %4793 = vmatprep.mubr.msk.bf16.mxu0 %vm5239_vm0, %v5238_v0  ;;  %5037 = vmatprep.mubr.msk.bf16.mxu1 %vm5239_vm0, %v5238_v0 }
 0x1e6   :  { %3527 = vst.msk [vmem:[%s7227_s3 + $0xe0] sm:$0xf] %vm3470_vm2, %v4260_v6  ;;  %v4261_v10 = vpack.c.bf16 %v2321_v7, %v2321_v7  ;;  %3649 = vst.msk [vmem:[%s7227_s3 + $0x2c8] sm:$0xf] %vm3470_vm2, %v4382_v8  ;;  %v4383_v11 = vpack.c.bf16 %v2443_v9, %v2443_v9 }
 0x1e7   :  { %v1530_v12 = vpop.f32.mrb[116].mxu0  ;;  %v2018_v13 = vpop.f32.mrb[116].mxu1 }
 0x1e8   :  { %3528 = vst.msk [vmem:[%s7227_s3 + $0xe4] sm:$0xf] %vm3470_vm2, %v4261_v10  ;;  %v1531_v14 = vadd.f32 %v6156_v60, %v1530_v12  ;;  %v4687_v15 = vpop.f32.mrb[117].mxu0  ;;  %3650 = vst.msk [vmem:[%s7227_s3 + $0x2cc] sm:$0xf] %vm3470_vm2, %v4383_v11  ;;  %v2019_v17 = vadd.f32 %v6156_v60, %v2018_v13  ;;  %v4931_v18 = vpop.f32.mrb[117].mxu1 }
 0x1e9   :  { %v1533_v20 = vpop.f32.mrb[118].mxu0  ;;  %v2021_v21 = vpop.f32.mrb[118].mxu1 }
 0x1ea   :  { %v2322_v22 = vmax.f32 %v1531_v14, 0.0  ;;  %v1534_v23 = vadd.f32 %v6156_v60, %v1533_v20  ;;  %v4688_v24 = vpop.f32.mrb[119].mxu0  ;;  %v2444_v25 = vmax.f32 %v2019_v17, 0.0  ;;  %v2022_v26 = vadd.f32 %v6156_v60, %v2021_v21  ;;  %v4932_v27 = vpop.f32.mrb[119].mxu1  ;;  %v5180_v20 = vld [vmem:[%s7224_s0 + $0x1d8] sm:$0xff]  }
 0x1ec   :  { %v4262_v28 = vpack.c.bf16 %v2322_v22, %v2322_v22  ;;  %v2323_v29 = vmax.f32 %v1534_v23, 0.0  ;;  %4794 = vmatmul.mubr.msk.bf16.gmra.mrb[224].mxu0 %vm900_vm1, %v5174_v16  ;;  %v4384_v30 = vpack.c.bf16 %v2444_v25, %v2444_v25  ;;  %v2445_v31 = vmax.f32 %v2022_v26, 0.0  ;;  %5038 = vmatmul.mubr.msk.bf16.gmra.mrb[224].mxu1 %vm900_vm1, %v5175_v19  ;;  %v5181_v23 = vld [vmem:[%s7224_s0 + $0x3c0] ss:$0 sps:$4 sm:$0x11]  }
 0x1ed   :  { %4797 = vmatprep.mubr.msk.bf16.mxu0 %vm5239_vm0, %v5238_v0  ;;  %5041 = vmatprep.mubr.msk.bf16.mxu1 %vm5239_vm0, %v5238_v0 }
 0x1ee   :  { %3529 = vst.msk [vmem:[%s7227_s3 + $0xe8] sm:$0xf] %vm3470_vm2, %v4262_v28  ;;  %v4263_v32 = vpack.c.bf16 %v2323_v29, %v2323_v29  ;;  %3651 = vst.msk [vmem:[%s7227_s3 + $0x2d0] sm:$0xf] %vm3470_vm2, %v4384_v30  ;;  %v4385_v33 = vpack.c.bf16 %v2445_v31, %v2445_v31 }
 0x1ef   :  { %v1538_v34 = vpop.f32.mrb[120].mxu0  ;;  %v2026_v35 = vpop.f32.mrb[120].mxu1 }
 0x1f0   :  { %3530 = vst.msk [vmem:[%s7227_s3 + $0xec] sm:$0xf] %vm3470_vm2, %v4263_v32  ;;  %v1539_v36 = vadd.f32 %v6156_v60, %v1538_v34  ;;  %v4691_v37 = vpop.f32.mrb[121].mxu0  ;;  %3652 = vst.msk [vmem:[%s7227_s3 + $0x2d4] sm:$0xf] %vm3470_vm2, %v4385_v33  ;;  %v2027_v39 = vadd.f32 %v6156_v60, %v2026_v35  ;;  %v4935_v40 = vpop.f32.mrb[121].mxu1 }
 0x1f1   :  { %v1541_v42 = vpop.f32.mrb[122].mxu0  ;;  %v2029_v43 = vpop.f32.mrb[122].mxu1 }
 0x1f2   :  { %v2324_v44 = vmax.f32 %v1539_v36, 0.0  ;;  %v1542_v45 = vadd.f32 %v6156_v60, %v1541_v42  ;;  %v4692_v46 = vpop.f32.mrb[123].mxu0  ;;  %v2446_v47 = vmax.f32 %v2027_v39, 0.0  ;;  %v2030_v48 = vadd.f32 %v6156_v60, %v2029_v43  ;;  %v4936_v49 = vpop.f32.mrb[123].mxu1 }
 0x1f4   :  { %v4264_v50 = vpack.c.bf16 %v2324_v44, %v2324_v44  ;;  %v2325_v51 = vmax.f32 %v1542_v45, 0.0  ;;  %4798 = vmatmul.mubr.msk.bf16.gmra.mrb[228].mxu0 %vm900_vm1, %v5176_v38  ;;  %v4386_v52 = vpack.c.bf16 %v2446_v47, %v2446_v47  ;;  %v2447_v53 = vmax.f32 %v2030_v48, 0.0  ;;  %5042 = vmatmul.mubr.msk.bf16.gmra.mrb[228].mxu1 %vm900_vm1, %v5177_v41  ;;  %v5182_v41 = vld [vmem:[%s7224_s0 + $0x1e0] sm:$0xff]  }
 0x1f5   :  { %4801 = vmatprep.mubr.msk.bf16.mxu0 %vm5239_vm0, %v5238_v0  ;;  %5045 = vmatprep.mubr.msk.bf16.mxu1 %vm5239_vm0, %v5238_v0 }
 0x1f6   :  { %3531 = vst.msk [vmem:[%s7227_s3 + $0xf0] sm:$0xf] %vm3470_vm2, %v4264_v50  ;;  %v4265_v54 = vpack.c.bf16 %v2325_v51, %v2325_v51  ;;  %3653 = vst.msk [vmem:[%s7227_s3 + $0x2d8] sm:$0xf] %vm3470_vm2, %v4386_v52  ;;  %v4387_v55 = vpack.c.bf16 %v2447_v53, %v2447_v53 }
 0x1f7   :  { %v1546_v56 = vpop.f32.mrb[124].mxu0  ;;  %v2034_v57 = vpop.f32.mrb[124].mxu1 }
 0x1f8   :  { %3532 = vst.msk [vmem:[%s7227_s3 + $0xf4] sm:$0xf] %vm3470_vm2, %v4265_v54  ;;  %v1547_v58 = vadd.f32 %v6156_v60, %v1546_v56  ;;  %v4695_v59 = vpop.f32.mrb[125].mxu0  ;;  %3654 = vst.msk [vmem:[%s7227_s3 + $0x2dc] sm:$0xf] %vm3470_vm2, %v4387_v55  ;;  %v2035_v62 = vadd.f32 %v6156_v60, %v2034_v57  ;;  %v4939_v63 = vpop.f32.mrb[125].mxu1 }
 0x1f9   :  { %v1549_v2 = vpop.f32.mrb[126].mxu0  ;;  %v2037_v3 = vpop.f32.mrb[126].mxu1 }
 0x1fa   :  { %v2326_v4 = vmax.f32 %v1547_v58, 0.0  ;;  %v1550_v5 = vadd.f32 %v6156_v60, %v1549_v2  ;;  %v4696_v6 = vpop.f32.mrb[127].mxu0  ;;  %v2448_v7 = vmax.f32 %v2035_v62, 0.0  ;;  %v2038_v8 = vadd.f32 %v6156_v60, %v2037_v3  ;;  %v4940_v9 = vpop.f32.mrb[127].mxu1 }
 0x1fc   :  { %v4266_v10 = vpack.c.bf16 %v2326_v4, %v2326_v4  ;;  %v2327_v11 = vmax.f32 %v1550_v5, 0.0  ;;  %4802 = vmatmul.mubr.msk.bf16.gmra.mrb[232].mxu0 %vm900_vm1, %v5178_v61  ;;  %v4388_v12 = vpack.c.bf16 %v2448_v7, %v2448_v7  ;;  %v2449_v13 = vmax.f32 %v2038_v8, 0.0  ;;  %5046 = vmatmul.mubr.msk.bf16.gmra.mrb[232].mxu1 %vm900_vm1, %v5179_v1  ;;  %v6698_v5 = vld [vmem:[#allocation4] ss:$0 sm:$0xff] }
 0x1fd   :  { %4805 = vmatprep.mubr.msk.bf16.mxu0 %vm5239_vm0, %v5238_v0  ;;  %5049 = vmatprep.mubr.msk.bf16.mxu1 %vm5239_vm0, %v5238_v0 }
 0x1fe   :  { %3533 = vst.msk [vmem:[%s7227_s3 + $0xf8] sm:$0xf] %vm3470_vm2, %v4266_v10  ;;  %v4267_v14 = vpack.c.bf16 %v2327_v11, %v2327_v11  ;;  %3655 = vst.msk [vmem:[%s7227_s3 + $0x2e0] sm:$0xf] %vm3470_vm2, %v4388_v12  ;;  %v4389_v15 = vpack.c.bf16 %v2449_v13, %v2449_v13 }
 0x1ff   :  { %v1554_v16 = vpop.f32.mrb[128].mxu0  ;;  %v2042_v17 = vpop.f32.mrb[128].mxu1 }
 0x200   :  { %3534 = vst.msk [vmem:[%s7227_s3 + $0xfc] sm:$0xf] %vm3470_vm2, %v4267_v14  ;;  %v1555_v18 = vadd.f32 %v6156_v60, %v1554_v16  ;;  %v4699_v19 = vpop.f32.mrb[129].mxu0  ;;  %3656 = vst.msk [vmem:[%s7227_s3 + $0x2e4] sm:$0xf] %vm3470_vm2, %v4389_v15  ;;  %v2043_v21 = vadd.f32 %v6156_v60, %v2042_v17  ;;  %v4943_v22 = vpop.f32.mrb[129].mxu1 }
 0x201   :  { %v1557_v24 = vpop.f32.mrb[130].mxu0  ;;  %v2045_v25 = vpop.f32.mrb[130].mxu1 }
 0x202   :  { %v2328_v26 = vmax.f32 %v1555_v18, 0.0  ;;  %v1558_v27 = vadd.f32 %v6156_v60, %v1557_v24  ;;  %v4700_v28 = vpop.f32.mrb[131].mxu0  ;;  %v2450_v29 = vmax.f32 %v2043_v21, 0.0  ;;  %v2046_v30 = vadd.f32 %v6156_v60, %v2045_v25  ;;  %v4944_v31 = vpop.f32.mrb[131].mxu1 }
 0x204   :  { %v4268_v32 = vpack.c.bf16 %v2328_v26, %v2328_v26  ;;  %v2329_v33 = vmax.f32 %v1558_v27, 0.0  ;;  %4806 = vmatmul.mubr.msk.bf16.gmra.mrb[236].mxu0 %vm900_vm1, %v5180_v20  ;;  %v4390_v34 = vpack.c.bf16 %v2450_v29, %v2450_v29  ;;  %v2451_v35 = vmax.f32 %v2046_v30, 0.0  ;;  %5050 = vmatmul.mubr.msk.bf16.gmra.mrb[236].mxu1 %vm900_vm1, %v5181_v23 }
 0x205   :  { %4809 = vmatprep.mubr.msk.bf16.mxu0 %vm5239_vm0, %v5238_v0 }
 0x206   :  { %3535 = vst.msk [vmem:[%s7227_s3 + $0x100] sm:$0xf] %vm3470_vm2, %v4268_v32  ;;  %v4269_v36 = vpack.c.bf16 %v2329_v33, %v2329_v33  ;;  %3657 = vst.msk [vmem:[%s7227_s3 + $0x2e8] sm:$0xf] %vm3470_vm2, %v4390_v34  ;;  %v4391_v37 = vpack.c.bf16 %v2451_v35, %v2451_v35 }
 0x207   :  { %v1562_v38 = vpop.f32.mrb[132].mxu0  ;;  %v2050_v39 = vpop.f32.mrb[132].mxu1 }
 0x208   :  { %3536 = vst.msk [vmem:[%s7227_s3 + $0x104] sm:$0xf] %vm3470_vm2, %v4269_v36  ;;  %v1563_v0 = vadd.f32 %v6156_v60, %v1562_v38  ;;  %v4703_v40 = vpop.f32.mrb[133].mxu0  ;;  %3658 = vst.msk [vmem:[%s7227_s3 + $0x2ec] sm:$0xf] %vm3470_vm2, %v4391_v37  ;;  %v2051_v42 = vadd.f32 %v6156_v60, %v2050_v39  ;;  %v4947_v43 = vpop.f32.mrb[133].mxu1 }
 0x209   :  { %v1565_v44 = vpop.f32.mrb[134].mxu0  ;;  %v2053_v45 = vpop.f32.mrb[134].mxu1 }
 0x20a   :  { %v2330_v46 = vmax.f32 %v1563_v0, 0.0  ;;  %v1566_v47 = vadd.f32 %v6156_v60, %v1565_v44  ;;  %v4704_v48 = vpop.f32.mrb[135].mxu0  ;;  %v2452_v49 = vmax.f32 %v2051_v42, 0.0  ;;  %v2054_v50 = vadd.f32 %v6156_v60, %v2053_v45  ;;  %v4948_v51 = vpop.f32.mrb[135].mxu1 }
 0x20c   :  { %v4270_v52 = vpack.c.bf16 %v2330_v46, %v2330_v46  ;;  %v2331_v53 = vmax.f32 %v1566_v47, 0.0  ;;  %4810 = vmatmul.mubr.msk.bf16.gmra.mrb[240].mxu0 %vm900_vm1, %v5182_v41  ;;  %v4392_v54 = vpack.c.bf16 %v2452_v49, %v2452_v49  ;;  %v2453_v55 = vmax.f32 %v2054_v50, 0.0 }
 0x20e   :  { %3537 = vst.msk [vmem:[%s7227_s3 + $0x108] sm:$0xf] %vm3470_vm2, %v4270_v52  ;;  %v4271_v56 = vpack.c.bf16 %v2331_v53, %v2331_v53  ;;  %3659 = vst.msk [vmem:[%s7227_s3 + $0x2f0] sm:$0xf] %vm3470_vm2, %v4392_v54  ;;  %v4393_v57 = vpack.c.bf16 %v2453_v55, %v2453_v55 }
 0x20f   :  { %v1570_v58 = vpop.f32.mrb[136].mxu0  ;;  %v2058_v59 = vpop.f32.mrb[136].mxu1 }
 0x210   :  { %3538 = vst.msk [vmem:[%s7227_s3 + $0x10c] sm:$0xf] %vm3470_vm2, %v4271_v56  ;;  %v1571_v61 = vadd.f32 %v6156_v60, %v1570_v58  ;;  %v4707_v62 = vpop.f32.mrb[137].mxu0  ;;  %3660 = vst.msk [vmem:[%s7227_s3 + $0x2f4] sm:$0xf] %vm3470_vm2, %v4393_v57  ;;  %v2059_v63 = vadd.f32 %v6156_v60, %v2058_v59  ;;  %v4951_v1 = vpop.f32.mrb[137].mxu1 }
 0x211   :  { %v1573_v2 = vpop.f32.mrb[138].mxu0  ;;  %v2061_v3 = vpop.f32.mrb[138].mxu1 }
 0x212   :  { %v2332_v4 = vmax.f32 %v1571_v61, 0.0  ;;  %v1574_v6 = vadd.f32 %v6698_v5, %v1573_v2  ;;  %v4708_v7 = vpop.f32.mrb[139].mxu0  ;;  %v2454_v8 = vmax.f32 %v2059_v63, 0.0  ;;  %v2062_v9 = vadd.f32 %v6698_v5, %v2061_v3  ;;  %v4952_v10 = vpop.f32.mrb[139].mxu1 }
 0x214   :  { %v4272_v11 = vpack.c.bf16 %v2332_v4, %v2332_v4  ;;  %v2333_v12 = vmax.f32 %v1574_v6, 0.0  ;;  %v4394_v13 = vpack.c.bf16 %v2454_v8, %v2454_v8  ;;  %v2455_v14 = vmax.f32 %v2062_v9, 0.0 }
 0x216   :  { %3539 = vst.msk [vmem:[%s7227_s3 + $0x110] sm:$0xf] %vm3470_vm2, %v4272_v11  ;;  %v4273_v60 = vpack.c.bf16 %v2333_v12, %v2333_v12  ;;  %3661 = vst.msk [vmem:[%s7227_s3 + $0x2f8] sm:$0xf] %vm3470_vm2, %v4394_v13  ;;  %v4395_v15 = vpack.c.bf16 %v2455_v14, %v2455_v14 }
 0x217   :  { %v1578_v16 = vpop.f32.mrb[140].mxu0  ;;  %v2066_v17 = vpop.f32.mrb[140].mxu1 }
 0x218   :  { %3540 = vst.msk [vmem:[%s7227_s3 + $0x114] sm:$0xf] %vm3470_vm2, %v4273_v60  ;;  %v1579_v18 = vadd.f32 %v6698_v5, %v1578_v16  ;;  %v4711_v19 = vpop.f32.mrb[141].mxu0  ;;  %3662 = vst.msk [vmem:[%s7227_s3 + $0x2fc] sm:$0xf] %vm3470_vm2, %v4395_v15  ;;  %v2067_v20 = vadd.f32 %v6698_v5, %v2066_v17  ;;  %v4955_v21 = vpop.f32.mrb[141].mxu1 }
 0x219   :  { %v1581_v22 = vpop.f32.mrb[142].mxu0  ;;  %v2069_v23 = vpop.f32.mrb[142].mxu1 }
 0x21a   :  { %v2334_v24 = vmax.f32 %v1579_v18, 0.0  ;;  %v1582_v25 = vadd.f32 %v6698_v5, %v1581_v22  ;;  %v4712_v26 = vpop.f32.mrb[143].mxu0  ;;  %v2456_v27 = vmax.f32 %v2067_v20, 0.0  ;;  %v2070_v28 = vadd.f32 %v6698_v5, %v2069_v23  ;;  %v4956_v29 = vpop.f32.mrb[143].mxu1 }
 0x21c   :  { %v4274_v30 = vpack.c.bf16 %v2334_v24, %v2334_v24  ;;  %v2335_v31 = vmax.f32 %v1582_v25, 0.0  ;;  %v4396_v32 = vpack.c.bf16 %v2456_v27, %v2456_v27  ;;  %v2457_v33 = vmax.f32 %v2070_v28, 0.0 }
 0x21e   :  { %3541 = vst.msk [vmem:[%s7227_s3 + $0x118] sm:$0xf] %vm3470_vm2, %v4274_v30  ;;  %v4275_v34 = vpack.c.bf16 %v2335_v31, %v2335_v31  ;;  %3663 = vst.msk [vmem:[%s7227_s3 + $0x300] sm:$0xf] %vm3470_vm2, %v4396_v32  ;;  %v4397_v35 = vpack.c.bf16 %v2457_v33, %v2457_v33 }
 0x21f   :  { %v1586_v36 = vpop.f32.mrb[144].mxu0  ;;  %v2074_v37 = vpop.f32.mrb[144].mxu1 }
 0x220   :  { %3542 = vst.msk [vmem:[%s7227_s3 + $0x11c] sm:$0xf] %vm3470_vm2, %v4275_v34  ;;  %v1587_v38 = vadd.f32 %v6698_v5, %v1586_v36  ;;  %v4715_v39 = vpop.f32.mrb[145].mxu0  ;;  %3664 = vst.msk [vmem:[%s7227_s3 + $0x304] sm:$0xf] %vm3470_vm2, %v4397_v35  ;;  %v2075_v0 = vadd.f32 %v6698_v5, %v2074_v37  ;;  %v4959_v40 = vpop.f32.mrb[145].mxu1 }
 0x221   :  { %v1589_v41 = vpop.f32.mrb[146].mxu0  ;;  %v2077_v42 = vpop.f32.mrb[146].mxu1 }
 0x222   :  { %v2336_v43 = vmax.f32 %v1587_v38, 0.0  ;;  %v1590_v44 = vadd.f32 %v6698_v5, %v1589_v41  ;;  %v4716_v45 = vpop.f32.mrb[147].mxu0  ;;  %v2458_v46 = vmax.f32 %v2075_v0, 0.0  ;;  %v2078_v47 = vadd.f32 %v6698_v5, %v2077_v42  ;;  %v4960_v48 = vpop.f32.mrb[147].mxu1 }
 0x224   :  { %v4276_v49 = vpack.c.bf16 %v2336_v43, %v2336_v43  ;;  %v2337_v50 = vmax.f32 %v1590_v44, 0.0  ;;  %v4398_v51 = vpack.c.bf16 %v2458_v46, %v2458_v46  ;;  %v2459_v52 = vmax.f32 %v2078_v47, 0.0 }
 0x226   :  { %3543 = vst.msk [vmem:[%s7227_s3 + $0x120] sm:$0xf] %vm3470_vm2, %v4276_v49  ;;  %v4277_v53 = vpack.c.bf16 %v2337_v50, %v2337_v50  ;;  %3665 = vst.msk [vmem:[%s7227_s3 + $0x308] sm:$0xf] %vm3470_vm2, %v4398_v51  ;;  %v4399_v54 = vpack.c.bf16 %v2459_v52, %v2459_v52 }
 0x227   :  { %v1594_v55 = vpop.f32.mrb[148].mxu0  ;;  %v2082_v56 = vpop.f32.mrb[148].mxu1 }
 0x228   :  { %3544 = vst.msk [vmem:[%s7227_s3 + $0x124] sm:$0xf] %vm3470_vm2, %v4277_v53  ;;  %v1595_v57 = vadd.f32 %v6698_v5, %v1594_v55  ;;  %v4719_v58 = vpop.f32.mrb[149].mxu0  ;;  %3666 = vst.msk [vmem:[%s7227_s3 + $0x30c] sm:$0xf] %vm3470_vm2, %v4399_v54  ;;  %v2083_v59 = vadd.f32 %v6698_v5, %v2082_v56  ;;  %v4963_v61 = vpop.f32.mrb[149].mxu1 }
 0x229   :  { %v1597_v62 = vpop.f32.mrb[150].mxu0  ;;  %v2085_v63 = vpop.f32.mrb[150].mxu1 }
 0x22a   :  { %v2338_v1 = vmax.f32 %v1595_v57, 0.0  ;;  %v1598_v2 = vadd.f32 %v6698_v5, %v1597_v62  ;;  %v4720_v3 = vpop.f32.mrb[151].mxu0  ;;  %v2460_v4 = vmax.f32 %v2083_v59, 0.0  ;;  %v2086_v6 = vadd.f32 %v6698_v5, %v2085_v63  ;;  %v4964_v7 = vpop.f32.mrb[151].mxu1 }
 0x22c   :  { %v4278_v8 = vpack.c.bf16 %v2338_v1, %v2338_v1  ;;  %v2339_v9 = vmax.f32 %v1598_v2, 0.0  ;;  %v4400_v10 = vpack.c.bf16 %v2460_v4, %v2460_v4  ;;  %v2461_v11 = vmax.f32 %v2086_v6, 0.0 }
 0x22e   :  { %3545 = vst.msk [vmem:[%s7227_s3 + $0x128] sm:$0xf] %vm3470_vm2, %v4278_v8  ;;  %v4279_v12 = vpack.c.bf16 %v2339_v9, %v2339_v9  ;;  %3667 = vst.msk [vmem:[%s7227_s3 + $0x310] sm:$0xf] %vm3470_vm2, %v4400_v10  ;;  %v4401_v13 = vpack.c.bf16 %v2461_v11, %v2461_v11 }
 0x22f   :  { %v1602_v14 = vpop.f32.mrb[152].mxu0  ;;  %v2090_v60 = vpop.f32.mrb[152].mxu1 }
 0x230   :  { %3546 = vst.msk [vmem:[%s7227_s3 + $0x12c] sm:$0xf] %vm3470_vm2, %v4279_v12  ;;  %v1603_v15 = vadd.f32 %v6698_v5, %v1602_v14  ;;  %v4723_v16 = vpop.f32.mrb[153].mxu0  ;;  %3668 = vst.msk [vmem:[%s7227_s3 + $0x314] sm:$0xf] %vm3470_vm2, %v4401_v13  ;;  %v2091_v17 = vadd.f32 %v6698_v5, %v2090_v60  ;;  %v4967_v18 = vpop.f32.mrb[153].mxu1 }
 0x231   :  { %v1605_v19 = vpop.f32.mrb[154].mxu0  ;;  %v2093_v20 = vpop.f32.mrb[154].mxu1 }
 0x232   :  { %v2340_v21 = vmax.f32 %v1603_v15, 0.0  ;;  %v1606_v22 = vadd.f32 %v6698_v5, %v1605_v19  ;;  %v4724_v23 = vpop.f32.mrb[155].mxu0  ;;  %v2462_v24 = vmax.f32 %v2091_v17, 0.0  ;;  %v2094_v25 = vadd.f32 %v6698_v5, %v2093_v20  ;;  %v4968_v26 = vpop.f32.mrb[155].mxu1 }
 0x234   :  { %v4280_v27 = vpack.c.bf16 %v2340_v21, %v2340_v21  ;;  %v2341_v28 = vmax.f32 %v1606_v22, 0.0  ;;  %v4402_v29 = vpack.c.bf16 %v2462_v24, %v2462_v24  ;;  %v2463_v30 = vmax.f32 %v2094_v25, 0.0 }
 0x236   :  { %3547 = vst.msk [vmem:[%s7227_s3 + $0x130] sm:$0xf] %vm3470_vm2, %v4280_v27  ;;  %v4281_v31 = vpack.c.bf16 %v2341_v28, %v2341_v28  ;;  %3669 = vst.msk [vmem:[%s7227_s3 + $0x318] sm:$0xf] %vm3470_vm2, %v4402_v29  ;;  %v4403_v32 = vpack.c.bf16 %v2463_v30, %v2463_v30 }
 0x237   :  { %v1610_v33 = vpop.f32.mrb[156].mxu0  ;;  %v2098_v34 = vpop.f32.mrb[156].mxu1 }
 0x238   :  { %3548 = vst.msk [vmem:[%s7227_s3 + $0x134] sm:$0xf] %vm3470_vm2, %v4281_v31  ;;  %v1611_v35 = vadd.f32 %v6698_v5, %v1610_v33  ;;  %v4727_v36 = vpop.f32.mrb[157].mxu0  ;;  %3670 = vst.msk [vmem:[%s7227_s3 + $0x31c] sm:$0xf] %vm3470_vm2, %v4403_v32  ;;  %v2099_v37 = vadd.f32 %v6698_v5, %v2098_v34  ;;  %v4971_v38 = vpop.f32.mrb[157].mxu1 }
 0x239   :  { %v1613_v39 = vpop.f32.mrb[158].mxu0  ;;  %v2101_v0 = vpop.f32.mrb[158].mxu1 }
 0x23a   :  { %v2342_v40 = vmax.f32 %v1611_v35, 0.0  ;;  %v1614_v41 = vadd.f32 %v6698_v5, %v1613_v39  ;;  %v4728_v42 = vpop.f32.mrb[159].mxu0  ;;  %v2464_v43 = vmax.f32 %v2099_v37, 0.0  ;;  %v2102_v44 = vadd.f32 %v6698_v5, %v2101_v0  ;;  %v4972_v45 = vpop.f32.mrb[159].mxu1 }
 0x23c   :  { %v4282_v46 = vpack.c.bf16 %v2342_v40, %v2342_v40  ;;  %v2343_v47 = vmax.f32 %v1614_v41, 0.0  ;;  %v4404_v48 = vpack.c.bf16 %v2464_v43, %v2464_v43  ;;  %v2465_v49 = vmax.f32 %v2102_v44, 0.0 }
 0x23e   :  { %3549 = vst.msk [vmem:[%s7227_s3 + $0x138] sm:$0xf] %vm3470_vm2, %v4282_v46  ;;  %v4283_v50 = vpack.c.bf16 %v2343_v47, %v2343_v47  ;;  %3671 = vst.msk [vmem:[%s7227_s3 + $0x320] sm:$0xf] %vm3470_vm2, %v4404_v48  ;;  %v4405_v51 = vpack.c.bf16 %v2465_v49, %v2465_v49 }
 0x23f   :  { %v1618_v52 = vpop.f32.mrb[160].mxu0  ;;  %v2106_v53 = vpop.f32.mrb[160].mxu1 }
 0x240   :  { %3550 = vst.msk [vmem:[%s7227_s3 + $0x13c] sm:$0xf] %vm3470_vm2, %v4283_v50  ;;  %v1619_v54 = vadd.f32 %v6698_v5, %v1618_v52  ;;  %v4731_v55 = vpop.f32.mrb[161].mxu0  ;;  %3672 = vst.msk [vmem:[%s7227_s3 + $0x324] sm:$0xf] %vm3470_vm2, %v4405_v51  ;;  %v2107_v56 = vadd.f32 %v6698_v5, %v2106_v53  ;;  %v4975_v57 = vpop.f32.mrb[161].mxu1 }
 0x241   :  { %v1621_v58 = vpop.f32.mrb[162].mxu0  ;;  %v2109_v59 = vpop.f32.mrb[162].mxu1 }
 0x242   :  { %v2344_v61 = vmax.f32 %v1619_v54, 0.0  ;;  %v1622_v62 = vadd.f32 %v6698_v5, %v1621_v58  ;;  %v4732_v63 = vpop.f32.mrb[163].mxu0  ;;  %v2466_v1 = vmax.f32 %v2107_v56, 0.0  ;;  %v2110_v2 = vadd.f32 %v6698_v5, %v2109_v59  ;;  %v4976_v3 = vpop.f32.mrb[163].mxu1 }
 0x244   :  { %v4284_v4 = vpack.c.bf16 %v2344_v61, %v2344_v61  ;;  %v2345_v6 = vmax.f32 %v1622_v62, 0.0  ;;  %v4406_v7 = vpack.c.bf16 %v2466_v1, %v2466_v1  ;;  %v2467_v8 = vmax.f32 %v2110_v2, 0.0 }
 0x246   :  { %3551 = vst.msk [vmem:[%s7227_s3 + $0x140] sm:$0xf] %vm3470_vm2, %v4284_v4  ;;  %v4285_v9 = vpack.c.bf16 %v2345_v6, %v2345_v6  ;;  %3673 = vst.msk [vmem:[%s7227_s3 + $0x328] sm:$0xf] %vm3470_vm2, %v4406_v7  ;;  %v4407_v10 = vpack.c.bf16 %v2467_v8, %v2467_v8 }
 0x247   :  { %v1626_v11 = vpop.f32.mrb[164].mxu0  ;;  %v2114_v12 = vpop.f32.mrb[164].mxu1 }
 0x248   :  { %3552 = vst.msk [vmem:[%s7227_s3 + $0x144] sm:$0xf] %vm3470_vm2, %v4285_v9  ;;  %v1627_v13 = vadd.f32 %v6698_v5, %v1626_v11  ;;  %v4735_v14 = vpop.f32.mrb[165].mxu0  ;;  %3674 = vst.msk [vmem:[%s7227_s3 + $0x32c] sm:$0xf] %vm3470_vm2, %v4407_v10  ;;  %v2115_v60 = vadd.f32 %v6698_v5, %v2114_v12  ;;  %v4979_v15 = vpop.f32.mrb[165].mxu1 }
 0x249   :  { %v1629_v16 = vpop.f32.mrb[166].mxu0  ;;  %v2117_v17 = vpop.f32.mrb[166].mxu1 }
 0x24a   :  { %v2346_v18 = vmax.f32 %v1627_v13, 0.0  ;;  %v1630_v19 = vadd.f32 %v6698_v5, %v1629_v16  ;;  %v4736_v20 = vpop.f32.mrb[167].mxu0  ;;  %v2468_v21 = vmax.f32 %v2115_v60, 0.0  ;;  %v2118_v22 = vadd.f32 %v6698_v5, %v2117_v17  ;;  %v4980_v23 = vpop.f32.mrb[167].mxu1 }
 0x24c   :  { %v4286_v24 = vpack.c.bf16 %v2346_v18, %v2346_v18  ;;  %v2347_v25 = vmax.f32 %v1630_v19, 0.0  ;;  %v4408_v26 = vpack.c.bf16 %v2468_v21, %v2468_v21  ;;  %v2469_v27 = vmax.f32 %v2118_v22, 0.0 }
 0x24e   :  { %3553 = vst.msk [vmem:[%s7227_s3 + $0x148] sm:$0xf] %vm3470_vm2, %v4286_v24  ;;  %v4287_v28 = vpack.c.bf16 %v2347_v25, %v2347_v25  ;;  %3675 = vst.msk [vmem:[%s7227_s3 + $0x330] sm:$0xf] %vm3470_vm2, %v4408_v26  ;;  %v4409_v29 = vpack.c.bf16 %v2469_v27, %v2469_v27 }
 0x24f   :  { %v1634_v30 = vpop.f32.mrb[168].mxu0  ;;  %v2122_v31 = vpop.f32.mrb[168].mxu1 }
 0x250   :  { %3554 = vst.msk [vmem:[%s7227_s3 + $0x14c] sm:$0xf] %vm3470_vm2, %v4287_v28  ;;  %v1635_v32 = vadd.f32 %v6698_v5, %v1634_v30  ;;  %v4739_v33 = vpop.f32.mrb[169].mxu0  ;;  %3676 = vst.msk [vmem:[%s7227_s3 + $0x334] sm:$0xf] %vm3470_vm2, %v4409_v29  ;;  %v2123_v34 = vadd.f32 %v6698_v5, %v2122_v31  ;;  %v4983_v35 = vpop.f32.mrb[169].mxu1 }
 0x251   :  { %v1637_v36 = vpop.f32.mrb[170].mxu0  ;;  %v2125_v37 = vpop.f32.mrb[170].mxu1 }
 0x252   :  { %v2348_v38 = vmax.f32 %v1635_v32, 0.0  ;;  %v1638_v39 = vadd.f32 %v6698_v5, %v1637_v36  ;;  %v4740_v0 = vpop.f32.mrb[171].mxu0  ;;  %v2470_v40 = vmax.f32 %v2123_v34, 0.0  ;;  %v2126_v41 = vadd.f32 %v6698_v5, %v2125_v37  ;;  %v4984_v42 = vpop.f32.mrb[171].mxu1 }
 0x254   :  { %v4288_v43 = vpack.c.bf16 %v2348_v38, %v2348_v38  ;;  %v2349_v44 = vmax.f32 %v1638_v39, 0.0  ;;  %v4410_v45 = vpack.c.bf16 %v2470_v40, %v2470_v40  ;;  %v2471_v46 = vmax.f32 %v2126_v41, 0.0 }
 0x256   :  { %3555 = vst.msk [vmem:[%s7227_s3 + $0x150] sm:$0xf] %vm3470_vm2, %v4288_v43  ;;  %v4289_v47 = vpack.c.bf16 %v2349_v44, %v2349_v44  ;;  %3677 = vst.msk [vmem:[%s7227_s3 + $0x338] sm:$0xf] %vm3470_vm2, %v4410_v45  ;;  %v4411_v48 = vpack.c.bf16 %v2471_v46, %v2471_v46 }
 0x257   :  { %v1642_v49 = vpop.f32.mrb[172].mxu0  ;;  %v2130_v50 = vpop.f32.mrb[172].mxu1 }
 0x258   :  { %3556 = vst.msk [vmem:[%s7227_s3 + $0x154] sm:$0xf] %vm3470_vm2, %v4289_v47  ;;  %v1643_v51 = vadd.f32 %v6698_v5, %v1642_v49  ;;  %v4743_v52 = vpop.f32.mrb[173].mxu0  ;;  %3678 = vst.msk [vmem:[%s7227_s3 + $0x33c] sm:$0xf] %vm3470_vm2, %v4411_v48  ;;  %v2131_v53 = vadd.f32 %v6698_v5, %v2130_v50  ;;  %v4987_v54 = vpop.f32.mrb[173].mxu1 }
 0x259   :  { %v1645_v55 = vpop.f32.mrb[174].mxu0  ;;  %v2133_v56 = vpop.f32.mrb[174].mxu1 }
 0x25a   :  { %v2350_v57 = vmax.f32 %v1643_v51, 0.0  ;;  %v1646_v58 = vadd.f32 %v6698_v5, %v1645_v55  ;;  %v4744_v59 = vpop.f32.mrb[175].mxu0  ;;  %v2472_v61 = vmax.f32 %v2131_v53, 0.0  ;;  %v2134_v62 = vadd.f32 %v6698_v5, %v2133_v56  ;;  %v4988_v63 = vpop.f32.mrb[175].mxu1 }
 0x25c   :  { %v4290_v1 = vpack.c.bf16 %v2350_v57, %v2350_v57  ;;  %v2351_v2 = vmax.f32 %v1646_v58, 0.0  ;;  %v4412_v3 = vpack.c.bf16 %v2472_v61, %v2472_v61  ;;  %v2473_v4 = vmax.f32 %v2134_v62, 0.0 }
 0x25e   :  { %3557 = vst.msk [vmem:[%s7227_s3 + $0x158] sm:$0xf] %vm3470_vm2, %v4290_v1  ;;  %v4291_v6 = vpack.c.bf16 %v2351_v2, %v2351_v2  ;;  %3679 = vst.msk [vmem:[%s7227_s3 + $0x340] sm:$0xf] %vm3470_vm2, %v4412_v3  ;;  %v4413_v7 = vpack.c.bf16 %v2473_v4, %v2473_v4 }
 0x25f   :  { %v1650_v8 = vpop.f32.mrb[176].mxu0  ;;  %v2138_v9 = vpop.f32.mrb[176].mxu1 }
 0x260   :  { %3558 = vst.msk [vmem:[%s7227_s3 + $0x15c] sm:$0xf] %vm3470_vm2, %v4291_v6  ;;  %v1651_v10 = vadd.f32 %v6698_v5, %v1650_v8  ;;  %v4747_v11 = vpop.f32.mrb[177].mxu0  ;;  %3680 = vst.msk [vmem:[%s7227_s3 + $0x344] sm:$0xf] %vm3470_vm2, %v4413_v7  ;;  %v2139_v12 = vadd.f32 %v6698_v5, %v2138_v9  ;;  %v4991_v13 = vpop.f32.mrb[177].mxu1 }
 0x261   :  { %v1653_v14 = vpop.f32.mrb[178].mxu0  ;;  %v2141_v60 = vpop.f32.mrb[178].mxu1 }
 0x262   :  { %v2352_v15 = vmax.f32 %v1651_v10, 0.0  ;;  %v1654_v16 = vadd.f32 %v6698_v5, %v1653_v14  ;;  %v4748_v17 = vpop.f32.mrb[179].mxu0  ;;  %v2474_v18 = vmax.f32 %v2139_v12, 0.0  ;;  %v2142_v19 = vadd.f32 %v6698_v5, %v2141_v60  ;;  %v4992_v20 = vpop.f32.mrb[179].mxu1 }
 0x264   :  { %v4292_v21 = vpack.c.bf16 %v2352_v15, %v2352_v15  ;;  %v2353_v22 = vmax.f32 %v1654_v16, 0.0  ;;  %v4414_v23 = vpack.c.bf16 %v2474_v18, %v2474_v18  ;;  %v2475_v24 = vmax.f32 %v2142_v19, 0.0 }
 0x266   :  { %3559 = vst.msk [vmem:[%s7227_s3 + $0x160] sm:$0xf] %vm3470_vm2, %v4292_v21  ;;  %v4293_v25 = vpack.c.bf16 %v2353_v22, %v2353_v22  ;;  %3681 = vst.msk [vmem:[%s7227_s3 + $0x348] sm:$0xf] %vm3470_vm2, %v4414_v23  ;;  %v4415_v26 = vpack.c.bf16 %v2475_v24, %v2475_v24 }
 0x267   :  { %v1658_v27 = vpop.f32.mrb[180].mxu0  ;;  %v2146_v28 = vpop.f32.mrb[180].mxu1 }
 0x268   :  { %3560 = vst.msk [vmem:[%s7227_s3 + $0x164] sm:$0xf] %vm3470_vm2, %v4293_v25  ;;  %v1659_v29 = vadd.f32 %v6698_v5, %v1658_v27  ;;  %v4751_v30 = vpop.f32.mrb[181].mxu0  ;;  %3682 = vst.msk [vmem:[%s7227_s3 + $0x34c] sm:$0xf] %vm3470_vm2, %v4415_v26  ;;  %v2147_v31 = vadd.f32 %v6698_v5, %v2146_v28  ;;  %v4995_v32 = vpop.f32.mrb[181].mxu1 }
 0x269   :  { %v1661_v33 = vpop.f32.mrb[182].mxu0  ;;  %v2149_v34 = vpop.f32.mrb[182].mxu1 }
 0x26a   :  { %v2354_v35 = vmax.f32 %v1659_v29, 0.0  ;;  %v1662_v36 = vadd.f32 %v6698_v5, %v1661_v33  ;;  %v4752_v37 = vpop.f32.mrb[183].mxu0  ;;  %v2476_v38 = vmax.f32 %v2147_v31, 0.0  ;;  %v2150_v39 = vadd.f32 %v6698_v5, %v2149_v34  ;;  %v4996_v0 = vpop.f32.mrb[183].mxu1 }
 0x26c   :  { %v4294_v40 = vpack.c.bf16 %v2354_v35, %v2354_v35  ;;  %v2355_v41 = vmax.f32 %v1662_v36, 0.0  ;;  %v4416_v42 = vpack.c.bf16 %v2476_v38, %v2476_v38  ;;  %v2477_v43 = vmax.f32 %v2150_v39, 0.0 }
 0x26e   :  { %3561 = vst.msk [vmem:[%s7227_s3 + $0x168] sm:$0xf] %vm3470_vm2, %v4294_v40  ;;  %v4295_v44 = vpack.c.bf16 %v2355_v41, %v2355_v41  ;;  %3683 = vst.msk [vmem:[%s7227_s3 + $0x350] sm:$0xf] %vm3470_vm2, %v4416_v42  ;;  %v4417_v45 = vpack.c.bf16 %v2477_v43, %v2477_v43 }
 0x26f   :  { %v1666_v46 = vpop.f32.mrb[184].mxu0  ;;  %v2154_v47 = vpop.f32.mrb[184].mxu1 }
 0x270   :  { %3562 = vst.msk [vmem:[%s7227_s3 + $0x16c] sm:$0xf] %vm3470_vm2, %v4295_v44  ;;  %v1667_v48 = vadd.f32 %v6698_v5, %v1666_v46  ;;  %v4755_v49 = vpop.f32.mrb[185].mxu0  ;;  %3684 = vst.msk [vmem:[%s7227_s3 + $0x354] sm:$0xf] %vm3470_vm2, %v4417_v45  ;;  %v2155_v50 = vadd.f32 %v6698_v5, %v2154_v47  ;;  %v4999_v51 = vpop.f32.mrb[185].mxu1 }
 0x271   :  { %v1669_v52 = vpop.f32.mrb[186].mxu0  ;;  %v2157_v53 = vpop.f32.mrb[186].mxu1 }
 0x272   :  { %v2356_v54 = vmax.f32 %v1667_v48, 0.0  ;;  %v1670_v55 = vadd.f32 %v6698_v5, %v1669_v52  ;;  %v4756_v56 = vpop.f32.mrb[187].mxu0  ;;  %v2478_v57 = vmax.f32 %v2155_v50, 0.0  ;;  %v2158_v58 = vadd.f32 %v6698_v5, %v2157_v53  ;;  %v5000_v59 = vpop.f32.mrb[187].mxu1 }
 0x274   :  { %v4296_v61 = vpack.c.bf16 %v2356_v54, %v2356_v54  ;;  %v2357_v62 = vmax.f32 %v1670_v55, 0.0  ;;  %v4418_v63 = vpack.c.bf16 %v2478_v57, %v2478_v57  ;;  %v2479_v1 = vmax.f32 %v2158_v58, 0.0 }
 0x276   :  { %3563 = vst.msk [vmem:[%s7227_s3 + $0x170] sm:$0xf] %vm3470_vm2, %v4296_v61  ;;  %v4297_v2 = vpack.c.bf16 %v2357_v62, %v2357_v62  ;;  %3685 = vst.msk [vmem:[%s7227_s3 + $0x358] sm:$0xf] %vm3470_vm2, %v4418_v63  ;;  %v4419_v3 = vpack.c.bf16 %v2479_v1, %v2479_v1 }
 0x277   :  { %v1674_v4 = vpop.f32.mrb[188].mxu0  ;;  %v2162_v6 = vpop.f32.mrb[188].mxu1 }
 0x278   :  { %3564 = vst.msk [vmem:[%s7227_s3 + $0x174] sm:$0xf] %vm3470_vm2, %v4297_v2  ;;  %v1675_v7 = vadd.f32 %v6698_v5, %v1674_v4  ;;  %v4759_v8 = vpop.f32.mrb[189].mxu0  ;;  %3686 = vst.msk [vmem:[%s7227_s3 + $0x35c] sm:$0xf] %vm3470_vm2, %v4419_v3  ;;  %v2163_v9 = vadd.f32 %v6698_v5, %v2162_v6  ;;  %v5003_v10 = vpop.f32.mrb[189].mxu1 }
 0x279   :  { %v1677_v11 = vpop.f32.mrb[190].mxu0  ;;  %v2165_v12 = vpop.f32.mrb[190].mxu1 }
 0x27a   :  { %v2358_v13 = vmax.f32 %v1675_v7, 0.0  ;;  %v1678_v14 = vadd.f32 %v6698_v5, %v1677_v11  ;;  %v4760_v60 = vpop.f32.mrb[191].mxu0  ;;  %v2480_v15 = vmax.f32 %v2163_v9, 0.0  ;;  %v2166_v16 = vadd.f32 %v6698_v5, %v2165_v12  ;;  %v5004_v17 = vpop.f32.mrb[191].mxu1 }
 0x27c   :  { %v4298_v18 = vpack.c.bf16 %v2358_v13, %v2358_v13  ;;  %v2359_v19 = vmax.f32 %v1678_v14, 0.0  ;;  %v4420_v20 = vpack.c.bf16 %v2480_v15, %v2480_v15  ;;  %v2481_v21 = vmax.f32 %v2166_v16, 0.0 }
 0x27e   :  { %3565 = vst.msk [vmem:[%s7227_s3 + $0x178] sm:$0xf] %vm3470_vm2, %v4298_v18  ;;  %v4299_v22 = vpack.c.bf16 %v2359_v19, %v2359_v19  ;;  %3687 = vst.msk [vmem:[%s7227_s3 + $0x360] sm:$0xf] %vm3470_vm2, %v4420_v20  ;;  %v4421_v23 = vpack.c.bf16 %v2481_v21, %v2481_v21 }
 0x27f   :  { %v1682_v24 = vpop.f32.mrb[192].mxu0  ;;  %v2170_v25 = vpop.f32.mrb[192].mxu1 }
 0x280   :  { %3566 = vst.msk [vmem:[%s7227_s3 + $0x17c] sm:$0xf] %vm3470_vm2, %v4299_v22  ;;  %v1683_v26 = vadd.f32 %v6698_v5, %v1682_v24  ;;  %v4763_v27 = vpop.f32.mrb[193].mxu0  ;;  %3688 = vst.msk [vmem:[%s7227_s3 + $0x364] sm:$0xf] %vm3470_vm2, %v4421_v23  ;;  %v2171_v28 = vadd.f32 %v6698_v5, %v2170_v25  ;;  %v5007_v29 = vpop.f32.mrb[193].mxu1 }
 0x281   :  { %v1685_v30 = vpop.f32.mrb[194].mxu0  ;;  %v2173_v31 = vpop.f32.mrb[194].mxu1 }
 0x282   :  { %v2360_v32 = vmax.f32 %v1683_v26, 0.0  ;;  %v1686_v33 = vadd.f32 %v6698_v5, %v1685_v30  ;;  %v4764_v34 = vpop.f32.mrb[195].mxu0  ;;  %v2482_v35 = vmax.f32 %v2171_v28, 0.0  ;;  %v2174_v36 = vadd.f32 %v6698_v5, %v2173_v31  ;;  %v5008_v37 = vpop.f32.mrb[195].mxu1 }
 0x284   :  { %v4300_v38 = vpack.c.bf16 %v2360_v32, %v2360_v32  ;;  %v2361_v39 = vmax.f32 %v1686_v33, 0.0  ;;  %v4422_v0 = vpack.c.bf16 %v2482_v35, %v2482_v35  ;;  %v2483_v40 = vmax.f32 %v2174_v36, 0.0 }
 0x286   :  { %3567 = vst.msk [vmem:[%s7227_s3 + $0x180] sm:$0xf] %vm3470_vm2, %v4300_v38  ;;  %v4301_v41 = vpack.c.bf16 %v2361_v39, %v2361_v39  ;;  %3689 = vst.msk [vmem:[%s7227_s3 + $0x368] sm:$0xf] %vm3470_vm2, %v4422_v0  ;;  %v4423_v42 = vpack.c.bf16 %v2483_v40, %v2483_v40 }
 0x287   :  { %v1690_v43 = vpop.f32.mrb[196].mxu0  ;;  %v2178_v44 = vpop.f32.mrb[196].mxu1 }
 0x288   :  { %3568 = vst.msk [vmem:[%s7227_s3 + $0x184] sm:$0xf] %vm3470_vm2, %v4301_v41  ;;  %v1691_v45 = vadd.f32 %v6698_v5, %v1690_v43  ;;  %v4767_v46 = vpop.f32.mrb[197].mxu0  ;;  %3690 = vst.msk [vmem:[%s7227_s3 + $0x36c] sm:$0xf] %vm3470_vm2, %v4423_v42  ;;  %v2179_v47 = vadd.f32 %v6698_v5, %v2178_v44  ;;  %v5011_v48 = vpop.f32.mrb[197].mxu1 }
 0x289   :  { %v1693_v49 = vpop.f32.mrb[198].mxu0  ;;  %v2181_v50 = vpop.f32.mrb[198].mxu1 }
 0x28a   :  { %v2362_v51 = vmax.f32 %v1691_v45, 0.0  ;;  %v1694_v52 = vadd.f32 %v6698_v5, %v1693_v49  ;;  %v4768_v53 = vpop.f32.mrb[199].mxu0  ;;  %v2484_v54 = vmax.f32 %v2179_v47, 0.0  ;;  %v2182_v55 = vadd.f32 %v6698_v5, %v2181_v50  ;;  %v5012_v56 = vpop.f32.mrb[199].mxu1 }
 0x28c   :  { %v4302_v57 = vpack.c.bf16 %v2362_v51, %v2362_v51  ;;  %v2363_v58 = vmax.f32 %v1694_v52, 0.0  ;;  %v4424_v59 = vpack.c.bf16 %v2484_v54, %v2484_v54  ;;  %v2485_v61 = vmax.f32 %v2182_v55, 0.0 }
 0x28e   :  { %3569 = vst.msk [vmem:[%s7227_s3 + $0x188] sm:$0xf] %vm3470_vm2, %v4302_v57  ;;  %v4303_v62 = vpack.c.bf16 %v2363_v58, %v2363_v58  ;;  %3691 = vst.msk [vmem:[%s7227_s3 + $0x370] sm:$0xf] %vm3470_vm2, %v4424_v59  ;;  %v4425_v63 = vpack.c.bf16 %v2485_v61, %v2485_v61 }
 0x28f   :  { %v1698_v1 = vpop.f32.mrb[200].mxu0  ;;  %v2186_v2 = vpop.f32.mrb[200].mxu1 }
 0x290   :  { %3570 = vst.msk [vmem:[%s7227_s3 + $0x18c] sm:$0xf] %vm3470_vm2, %v4303_v62  ;;  %v1699_v3 = vadd.f32 %v6698_v5, %v1698_v1  ;;  %v4771_v4 = vpop.f32.mrb[201].mxu0  ;;  %3692 = vst.msk [vmem:[%s7227_s3 + $0x374] sm:$0xf] %vm3470_vm2, %v4425_v63  ;;  %v2187_v6 = vadd.f32 %v6698_v5, %v2186_v2  ;;  %v5015_v7 = vpop.f32.mrb[201].mxu1 }
 0x291   :  { %v1701_v8 = vpop.f32.mrb[202].mxu0  ;;  %v2189_v9 = vpop.f32.mrb[202].mxu1 }
 0x292   :  { %v2364_v10 = vmax.f32 %v1699_v3, 0.0  ;;  %v1702_v11 = vadd.f32 %v6698_v5, %v1701_v8  ;;  %v4772_v12 = vpop.f32.mrb[203].mxu0  ;;  %v2486_v13 = vmax.f32 %v2187_v6, 0.0  ;;  %v2190_v14 = vadd.f32 %v6698_v5, %v2189_v9  ;;  %v5016_v60 = vpop.f32.mrb[203].mxu1 }
 0x294   :  { %v4304_v15 = vpack.c.bf16 %v2364_v10, %v2364_v10  ;;  %v2365_v16 = vmax.f32 %v1702_v11, 0.0  ;;  %v4426_v17 = vpack.c.bf16 %v2486_v13, %v2486_v13  ;;  %v2487_v18 = vmax.f32 %v2190_v14, 0.0 }
 0x296   :  { %3571 = vst.msk [vmem:[%s7227_s3 + $0x190] sm:$0xf] %vm3470_vm2, %v4304_v15  ;;  %v4305_v19 = vpack.c.bf16 %v2365_v16, %v2365_v16  ;;  %3693 = vst.msk [vmem:[%s7227_s3 + $0x378] sm:$0xf] %vm3470_vm2, %v4426_v17  ;;  %v4427_v20 = vpack.c.bf16 %v2487_v18, %v2487_v18 }
 0x297   :  { %v1706_v21 = vpop.f32.mrb[204].mxu0  ;;  %v2194_v22 = vpop.f32.mrb[204].mxu1 }
 0x298   :  { %3572 = vst.msk [vmem:[%s7227_s3 + $0x194] sm:$0xf] %vm3470_vm2, %v4305_v19  ;;  %v1707_v23 = vadd.f32 %v6698_v5, %v1706_v21  ;;  %v4775_v24 = vpop.f32.mrb[205].mxu0  ;;  %3694 = vst.msk [vmem:[%s7227_s3 + $0x37c] sm:$0xf] %vm3470_vm2, %v4427_v20  ;;  %v2195_v25 = vadd.f32 %v6698_v5, %v2194_v22  ;;  %v5019_v26 = vpop.f32.mrb[205].mxu1 }
 0x299   :  { %v1709_v27 = vpop.f32.mrb[206].mxu0  ;;  %v2197_v28 = vpop.f32.mrb[206].mxu1 }
 0x29a   :  { %v2366_v29 = vmax.f32 %v1707_v23, 0.0  ;;  %v1710_v30 = vadd.f32 %v6698_v5, %v1709_v27  ;;  %v4776_v31 = vpop.f32.mrb[207].mxu0  ;;  %v2488_v32 = vmax.f32 %v2195_v25, 0.0  ;;  %v2198_v33 = vadd.f32 %v6698_v5, %v2197_v28  ;;  %v5020_v34 = vpop.f32.mrb[207].mxu1 }
 0x29c   :  { %v4306_v35 = vpack.c.bf16 %v2366_v29, %v2366_v29  ;;  %v2367_v36 = vmax.f32 %v1710_v30, 0.0  ;;  %v4428_v37 = vpack.c.bf16 %v2488_v32, %v2488_v32  ;;  %v2489_v38 = vmax.f32 %v2198_v33, 0.0 }
 0x29e   :  { %3573 = vst.msk [vmem:[%s7227_s3 + $0x198] sm:$0xf] %vm3470_vm2, %v4306_v35  ;;  %v4307_v39 = vpack.c.bf16 %v2367_v36, %v2367_v36  ;;  %3695 = vst.msk [vmem:[%s7227_s3 + $0x380] sm:$0xf] %vm3470_vm2, %v4428_v37  ;;  %v4429_v0 = vpack.c.bf16 %v2489_v38, %v2489_v38 }
 0x29f   :  { %v1714_v40 = vpop.f32.mrb[208].mxu0  ;;  %v2202_v41 = vpop.f32.mrb[208].mxu1 }
 0x2a0   :  { %3574 = vst.msk [vmem:[%s7227_s3 + $0x19c] sm:$0xf] %vm3470_vm2, %v4307_v39  ;;  %v1715_v42 = vadd.f32 %v6698_v5, %v1714_v40  ;;  %v4779_v43 = vpop.f32.mrb[209].mxu0  ;;  %3696 = vst.msk [vmem:[%s7227_s3 + $0x384] sm:$0xf] %vm3470_vm2, %v4429_v0  ;;  %v2203_v44 = vadd.f32 %v6698_v5, %v2202_v41  ;;  %v5023_v45 = vpop.f32.mrb[209].mxu1 }
 0x2a1   :  { %v1717_v46 = vpop.f32.mrb[210].mxu0  ;;  %v2205_v47 = vpop.f32.mrb[210].mxu1 }
 0x2a2   :  { %v2368_v48 = vmax.f32 %v1715_v42, 0.0  ;;  %v1718_v49 = vadd.f32 %v6698_v5, %v1717_v46  ;;  %v4780_v50 = vpop.f32.mrb[211].mxu0  ;;  %v2490_v51 = vmax.f32 %v2203_v44, 0.0  ;;  %v2206_v52 = vadd.f32 %v6698_v5, %v2205_v47  ;;  %v5024_v53 = vpop.f32.mrb[211].mxu1 }
 0x2a4   :  { %v4308_v54 = vpack.c.bf16 %v2368_v48, %v2368_v48  ;;  %v2369_v55 = vmax.f32 %v1718_v49, 0.0  ;;  %v4430_v56 = vpack.c.bf16 %v2490_v51, %v2490_v51  ;;  %v2491_v57 = vmax.f32 %v2206_v52, 0.0 }
 0x2a6   :  { %3575 = vst.msk [vmem:[%s7227_s3 + $0x1a0] sm:$0xf] %vm3470_vm2, %v4308_v54  ;;  %v4309_v58 = vpack.c.bf16 %v2369_v55, %v2369_v55  ;;  %3697 = vst.msk [vmem:[%s7227_s3 + $0x388] sm:$0xf] %vm3470_vm2, %v4430_v56  ;;  %v4431_v59 = vpack.c.bf16 %v2491_v57, %v2491_v57 }
 0x2a7   :  { %v1722_v61 = vpop.f32.mrb[212].mxu0  ;;  %v2210_v62 = vpop.f32.mrb[212].mxu1 }
 0x2a8   :  { %3576 = vst.msk [vmem:[%s7227_s3 + $0x1a4] sm:$0xf] %vm3470_vm2, %v4309_v58  ;;  %v1723_v63 = vadd.f32 %v6698_v5, %v1722_v61  ;;  %v4783_v1 = vpop.f32.mrb[213].mxu0  ;;  %3698 = vst.msk [vmem:[%s7227_s3 + $0x38c] sm:$0xf] %vm3470_vm2, %v4431_v59  ;;  %v2211_v2 = vadd.f32 %v6698_v5, %v2210_v62  ;;  %v5027_v3 = vpop.f32.mrb[213].mxu1 }
 0x2a9   :  { %v1725_v4 = vpop.f32.mrb[214].mxu0  ;;  %v2213_v6 = vpop.f32.mrb[214].mxu1 }
 0x2aa   :  { %v2370_v7 = vmax.f32 %v1723_v63, 0.0  ;;  %v1726_v8 = vadd.f32 %v6698_v5, %v1725_v4  ;;  %v4784_v9 = vpop.f32.mrb[215].mxu0  ;;  %v2492_v10 = vmax.f32 %v2211_v2, 0.0  ;;  %v2214_v11 = vadd.f32 %v6698_v5, %v2213_v6  ;;  %v5028_v12 = vpop.f32.mrb[215].mxu1 }
 0x2ac   :  { %v4310_v13 = vpack.c.bf16 %v2370_v7, %v2370_v7  ;;  %v2371_v14 = vmax.f32 %v1726_v8, 0.0  ;;  %v4432_v60 = vpack.c.bf16 %v2492_v10, %v2492_v10  ;;  %v2493_v15 = vmax.f32 %v2214_v11, 0.0 }
 0x2ae   :  { %3577 = vst.msk [vmem:[%s7227_s3 + $0x1a8] sm:$0xf] %vm3470_vm2, %v4310_v13  ;;  %v4311_v16 = vpack.c.bf16 %v2371_v14, %v2371_v14  ;;  %3699 = vst.msk [vmem:[%s7227_s3 + $0x390] sm:$0xf] %vm3470_vm2, %v4432_v60  ;;  %v4433_v17 = vpack.c.bf16 %v2493_v15, %v2493_v15 }
 0x2af   :  { %v1730_v18 = vpop.f32.mrb[216].mxu0  ;;  %v2218_v19 = vpop.f32.mrb[216].mxu1 }
 0x2b0   :  { %3578 = vst.msk [vmem:[%s7227_s3 + $0x1ac] sm:$0xf] %vm3470_vm2, %v4311_v16  ;;  %v1731_v20 = vadd.f32 %v6698_v5, %v1730_v18  ;;  %v4787_v21 = vpop.f32.mrb[217].mxu0  ;;  %3700 = vst.msk [vmem:[%s7227_s3 + $0x394] sm:$0xf] %vm3470_vm2, %v4433_v17  ;;  %v2219_v22 = vadd.f32 %v6698_v5, %v2218_v19  ;;  %v5031_v23 = vpop.f32.mrb[217].mxu1 }
 0x2b1   :  { %v1733_v24 = vpop.f32.mrb[218].mxu0  ;;  %v2221_v25 = vpop.f32.mrb[218].mxu1 }
 0x2b2   :  { %v2372_v26 = vmax.f32 %v1731_v20, 0.0  ;;  %v1734_v27 = vadd.f32 %v6698_v5, %v1733_v24  ;;  %v4788_v28 = vpop.f32.mrb[219].mxu0  ;;  %v2494_v29 = vmax.f32 %v2219_v22, 0.0  ;;  %v2222_v30 = vadd.f32 %v6698_v5, %v2221_v25  ;;  %v5032_v31 = vpop.f32.mrb[219].mxu1 }
 0x2b4   :  { %v4312_v32 = vpack.c.bf16 %v2372_v26, %v2372_v26  ;;  %v2373_v33 = vmax.f32 %v1734_v27, 0.0  ;;  %v4434_v34 = vpack.c.bf16 %v2494_v29, %v2494_v29  ;;  %v2495_v35 = vmax.f32 %v2222_v30, 0.0 }
 0x2b6   :  { %3579 = vst.msk [vmem:[%s7227_s3 + $0x1b0] sm:$0xf] %vm3470_vm2, %v4312_v32  ;;  %v4313_v36 = vpack.c.bf16 %v2373_v33, %v2373_v33  ;;  %3701 = vst.msk [vmem:[%s7227_s3 + $0x398] sm:$0xf] %vm3470_vm2, %v4434_v34  ;;  %v4435_v37 = vpack.c.bf16 %v2495_v35, %v2495_v35 }
 0x2b7   :  { %v1738_v38 = vpop.f32.mrb[220].mxu0  ;;  %v2226_v39 = vpop.f32.mrb[220].mxu1 }
 0x2b8   :  { %3580 = vst.msk [vmem:[%s7227_s3 + $0x1b4] sm:$0xf] %vm3470_vm2, %v4313_v36  ;;  %v1739_v0 = vadd.f32 %v6698_v5, %v1738_v38  ;;  %v4791_v40 = vpop.f32.mrb[221].mxu0  ;;  %3702 = vst.msk [vmem:[%s7227_s3 + $0x39c] sm:$0xf] %vm3470_vm2, %v4435_v37  ;;  %v2227_v41 = vadd.f32 %v6698_v5, %v2226_v39  ;;  %v5035_v42 = vpop.f32.mrb[221].mxu1 }
 0x2b9   :  { %v1741_v43 = vpop.f32.mrb[222].mxu0  ;;  %v2229_v44 = vpop.f32.mrb[222].mxu1 }
 0x2ba   :  { %v2374_v45 = vmax.f32 %v1739_v0, 0.0  ;;  %v1742_v46 = vadd.f32 %v6698_v5, %v1741_v43  ;;  %v4792_v47 = vpop.f32.mrb[223].mxu0  ;;  %v2496_v48 = vmax.f32 %v2227_v41, 0.0  ;;  %v2230_v49 = vadd.f32 %v6698_v5, %v2229_v44  ;;  %v5036_v50 = vpop.f32.mrb[223].mxu1  ;;  %v7134_v5 = vld [vmem:[#allocation4] ss:$0 sm:$0xff] }
 0x2bc   :  { %v4314_v51 = vpack.c.bf16 %v2374_v45, %v2374_v45  ;;  %v2375_v52 = vmax.f32 %v1742_v46, 0.0  ;;  %v4436_v53 = vpack.c.bf16 %v2496_v48, %v2496_v48  ;;  %v2497_v54 = vmax.f32 %v2230_v49, 0.0 }
 0x2be   :  { %3581 = vst.msk [vmem:[%s7227_s3 + $0x1b8] sm:$0xf] %vm3470_vm2, %v4314_v51  ;;  %v4315_v55 = vpack.c.bf16 %v2375_v52, %v2375_v52  ;;  %3703 = vst.msk [vmem:[%s7227_s3 + $0x3a0] sm:$0xf] %vm3470_vm2, %v4436_v53  ;;  %v4437_v56 = vpack.c.bf16 %v2497_v54, %v2497_v54 }
 0x2bf   :  { %v1746_v57 = vpop.f32.mrb[224].mxu0  ;;  %v2234_v58 = vpop.f32.mrb[224].mxu1 }
 0x2c0   :  { %3582 = vst.msk [vmem:[%s7227_s3 + $0x1bc] sm:$0xf] %vm3470_vm2, %v4315_v55  ;;  %v1747_v59 = vadd.f32 %v7134_v5, %v1746_v57  ;;  %v4795_v61 = vpop.f32.mrb[225].mxu0  ;;  %3704 = vst.msk [vmem:[%s7227_s3 + $0x3a4] sm:$0xf] %vm3470_vm2, %v4437_v56  ;;  %v2235_v62 = vadd.f32 %v7134_v5, %v2234_v58  ;;  %v5039_v63 = vpop.f32.mrb[225].mxu1 }
 0x2c1   :  { %v1749_v1 = vpop.f32.mrb[226].mxu0  ;;  %v2237_v2 = vpop.f32.mrb[226].mxu1 }
 0x2c2   :  { %v2376_v3 = vmax.f32 %v1747_v59, 0.0  ;;  %v1750_v4 = vadd.f32 %v7134_v5, %v1749_v1  ;;  %v4796_v6 = vpop.f32.mrb[227].mxu0  ;;  %v2498_v7 = vmax.f32 %v2235_v62, 0.0  ;;  %v2238_v8 = vadd.f32 %v7134_v5, %v2237_v2  ;;  %v5040_v9 = vpop.f32.mrb[227].mxu1 }
 0x2c4   :  { %v4316_v10 = vpack.c.bf16 %v2376_v3, %v2376_v3  ;;  %v2377_v11 = vmax.f32 %v1750_v4, 0.0  ;;  %v4438_v12 = vpack.c.bf16 %v2498_v7, %v2498_v7  ;;  %v2499_v13 = vmax.f32 %v2238_v8, 0.0 }
 0x2c6   :  { %3583 = vst.msk [vmem:[%s7227_s3 + $0x1c0] sm:$0xf] %vm3470_vm2, %v4316_v10  ;;  %v4317_v14 = vpack.c.bf16 %v2377_v11, %v2377_v11  ;;  %3705 = vst.msk [vmem:[%s7227_s3 + $0x3a8] sm:$0xf] %vm3470_vm2, %v4438_v12  ;;  %v4439_v60 = vpack.c.bf16 %v2499_v13, %v2499_v13 }
 0x2c7   :  { %v1754_v15 = vpop.f32.mrb[228].mxu0  ;;  %v2242_v16 = vpop.f32.mrb[228].mxu1 }
 0x2c8   :  { %3584 = vst.msk [vmem:[%s7227_s3 + $0x1c4] sm:$0xf] %vm3470_vm2, %v4317_v14  ;;  %v1755_v17 = vadd.f32 %v7134_v5, %v1754_v15  ;;  %v4799_v18 = vpop.f32.mrb[229].mxu0  ;;  %3706 = vst.msk [vmem:[%s7227_s3 + $0x3ac] sm:$0xf] %vm3470_vm2, %v4439_v60  ;;  %v2243_v19 = vadd.f32 %v7134_v5, %v2242_v16  ;;  %v5043_v20 = vpop.f32.mrb[229].mxu1 }
 0x2c9   :  { %v1757_v21 = vpop.f32.mrb[230].mxu0  ;;  %v2245_v22 = vpop.f32.mrb[230].mxu1 }
 0x2ca   :  { %v2378_v23 = vmax.f32 %v1755_v17, 0.0  ;;  %v1758_v24 = vadd.f32 %v7134_v5, %v1757_v21  ;;  %v4800_v25 = vpop.f32.mrb[231].mxu0  ;;  %v2500_v26 = vmax.f32 %v2243_v19, 0.0  ;;  %v2246_v27 = vadd.f32 %v7134_v5, %v2245_v22  ;;  %v5044_v28 = vpop.f32.mrb[231].mxu1 }
 0x2cc   :  { %v4318_v29 = vpack.c.bf16 %v2378_v23, %v2378_v23  ;;  %v2379_v30 = vmax.f32 %v1758_v24, 0.0  ;;  %v4440_v31 = vpack.c.bf16 %v2500_v26, %v2500_v26  ;;  %v2501_v32 = vmax.f32 %v2246_v27, 0.0 }
 0x2ce   :  { %3585 = vst.msk [vmem:[%s7227_s3 + $0x1c8] sm:$0xf] %vm3470_vm2, %v4318_v29  ;;  %v4319_v33 = vpack.c.bf16 %v2379_v30, %v2379_v30  ;;  %3707 = vst.msk [vmem:[%s7227_s3 + $0x3b0] sm:$0xf] %vm3470_vm2, %v4440_v31  ;;  %v4441_v34 = vpack.c.bf16 %v2501_v32, %v2501_v32 }
 0x2cf   :  { %v1762_v35 = vpop.f32.mrb[232].mxu0  ;;  %v2250_v36 = vpop.f32.mrb[232].mxu1 }
 0x2d0   :  { %3586 = vst.msk [vmem:[%s7227_s3 + $0x1cc] sm:$0xf] %vm3470_vm2, %v4319_v33  ;;  %v1763_v37 = vadd.f32 %v7134_v5, %v1762_v35  ;;  %v4803_v38 = vpop.f32.mrb[233].mxu0  ;;  %3708 = vst.msk [vmem:[%s7227_s3 + $0x3b4] sm:$0xf] %vm3470_vm2, %v4441_v34  ;;  %v2251_v39 = vadd.f32 %v7134_v5, %v2250_v36  ;;  %v5047_v0 = vpop.f32.mrb[233].mxu1 }
 0x2d1   :  { %v1765_v40 = vpop.f32.mrb[234].mxu0  ;;  %v2253_v41 = vpop.f32.mrb[234].mxu1 }
 0x2d2   :  { %v2380_v42 = vmax.f32 %v1763_v37, 0.0  ;;  %v1766_v43 = vadd.f32 %v7134_v5, %v1765_v40  ;;  %v4804_v44 = vpop.f32.mrb[235].mxu0  ;;  %v2502_v45 = vmax.f32 %v2251_v39, 0.0  ;;  %v2254_v46 = vadd.f32 %v7134_v5, %v2253_v41  ;;  %v5048_v47 = vpop.f32.mrb[235].mxu1 }
 0x2d4   :  { %v4320_v48 = vpack.c.bf16 %v2380_v42, %v2380_v42  ;;  %v2381_v49 = vmax.f32 %v1766_v43, 0.0  ;;  %v4442_v50 = vpack.c.bf16 %v2502_v45, %v2502_v45  ;;  %v2503_v51 = vmax.f32 %v2254_v46, 0.0 }
 0x2d6   :  { %3587 = vst.msk [vmem:[%s7227_s3 + $0x1d0] sm:$0xf] %vm3470_vm2, %v4320_v48  ;;  %v4321_v52 = vpack.c.bf16 %v2381_v49, %v2381_v49  ;;  %3709 = vst.msk [vmem:[%s7227_s3 + $0x3b8] sm:$0xf] %vm3470_vm2, %v4442_v50  ;;  %v4443_v53 = vpack.c.bf16 %v2503_v51, %v2503_v51 }
 0x2d7   :  { %v1770_v54 = vpop.f32.mrb[236].mxu0  ;;  %v2258_v55 = vpop.f32.mrb[236].mxu1 }
 0x2d8   :  { %3588 = vst.msk [vmem:[%s7227_s3 + $0x1d4] sm:$0xf] %vm3470_vm2, %v4321_v52  ;;  %v1771_v56 = vadd.f32 %v7134_v5, %v1770_v54  ;;  %v4807_v57 = vpop.f32.mrb[237].mxu0  ;;  %3710 = vst.msk [vmem:[%s7227_s3 + $0x3bc] sm:$0xf] %vm3470_vm2, %v4443_v53  ;;  %v2259_v58 = vadd.f32 %v7134_v5, %v2258_v55  ;;  %v5051_v59 = vpop.f32.mrb[237].mxu1 }
 0x2d9   :  { %v1773_v61 = vpop.f32.mrb[238].mxu0  ;;  %v2261_v62 = vpop.f32.mrb[238].mxu1 }
 0x2da   :  { %v2382_v63 = vmax.f32 %v1771_v56, 0.0  ;;  %v1774_v1 = vadd.f32 %v7134_v5, %v1773_v61  ;;  %v4808_v2 = vpop.f32.mrb[239].mxu0  ;;  %v2504_v3 = vmax.f32 %v2259_v58, 0.0  ;;  %v5052_v4 = vpop.f32.mrb[239].mxu1 }
 0x2dc   :  { %v4322_v6 = vpack.c.bf16 %v2382_v63, %v2382_v63  ;;  %v2383_v7 = vmax.f32 %v1774_v1, 0.0  ;;  %v4444_v8 = vpack.c.bf16 %v2504_v3, %v2504_v3 }
 0x2de   :  { %3589 = vst.msk [vmem:[%s7227_s3 + $0x1d8] sm:$0xf] %vm3470_vm2, %v4322_v6  ;;  %v4323_v9 = vpack.c.bf16 %v2383_v7, %v2383_v7 }
 0x2df   :  { %3712 = vst.msk [vmem:[%s7227_s3 + $0x3c0] sm:$0x1] %vm3711_vm3, %v4444_v8  ;;  %v1778_v10 = vpop.f32.mrb[240].mxu0 }
 0x2e0   :  { %3590 = vst.msk [vmem:[%s7227_s3 + $0x1dc] sm:$0xf] %vm3470_vm2, %v4323_v9  ;;  %v1779_v11 = vadd.f32 %v7134_v5, %v1778_v10  ;;  %v4811_v12 = vpop.f32.mrb[241].mxu0 }
 0x2e1   :  { %v1781_v13 = vpop.f32.mrb[242].mxu0 }
 0x2e2   :  { %v2384_v14 = vmax.f32 %v1779_v11, 0.0  ;;  %v1782_v60 = vadd.f32 %v7134_v5, %v1781_v13  ;;  %v4812_v15 = vpop.f32.mrb[243].mxu0 }
 0x2e4   :  { %v4324_v16 = vpack.c.bf16 %v2384_v14, %v2384_v14  ;;  %v2385_v17 = vmax.f32 %v1782_v60, 0.0 }
 0x2e6   :  { %3591 = vst.msk [vmem:[%s7227_s3 + $0x1e0] sm:$0xf] %vm3470_vm2, %v4324_v16  ;;  %v4325_v18 = vpack.c.bf16 %v2385_v17, %v2385_v17 }
 0x2e8   :  { %3592 = vst.msk [vmem:[%s7227_s3 + $0x1e4] sm:$0xf] %vm3470_vm2, %v4325_v18 }
 0x2e9   :  { %3717 = vsyncpa [#allocation3], 1 }
 0x2ea   :  { %3718 = vsyncpa [#allocation5], 1 }

// kernel: _lambda_.9
= control target key start
LH: loop header
LB: loop body
LE: loop exit
PB: predicated region body
PF: predicated region fallthrough
CT: control target
= control target key end

     0   :  { %v2144_v0 = vmov 0   ;;  %vm1580_vm0 = vcmask 519168   ;;  %s2837_s1 = inlined_call_operand.vmem [shape: bf16[512,64], index: 1, kind: input, shape index: {}]   ;;  %s2838_s0 = inlined_call_operand.vmem [shape: bf16[392,512], index: 0, kind: input, shape index: {}]   ;;  %s2839_s2 = inlined_call_operand.vmem [shape: f32[1,64], index: 2, kind: input, shape index: {}]   ;;  %s2840_s3 = inlined_call_operand.vmem [shape: bf16[392,64], index: 3, kind: output, shape index: {}]  }
   0x1   :  { %870 = vmatprep.subr.bf16.mxu1 %v2144_v0  ;;  %1102 = vmatprep.subr.bf16.mxu0 %v2144_v0  ;;  %v1964_v1 = vld [vmem:[%s2837_s1] sm:$0xff]   ;;  %v1966_v3 = vld [vmem:[%s2837_s1 + $0x8] sm:$0xff]   ;;  %v1968_v5 = vld [vmem:[%s2837_s1 + $0x10] sm:$0xff]  }
   0x2   :  { %v1965_v2 = vld [vmem:[%s2837_s1 + $0x80] sm:$0xff]   ;;  %871 = vmatpush1.bf16.msra.mxu1 %v1964_v1  ;;  %v1967_v4 = vld [vmem:[%s2837_s1 + $0x88] sm:$0xff]   ;;  %v1969_v6 = vld [vmem:[%s2837_s1 + $0x90] sm:$0xff]  }
   0x3   :  { %1103 = vmatpush1.bf16.msra.mxu0 %v1965_v2  ;;  %872 = vmatprep.subr.bf16.mxu1 %v2144_v0  ;;  %v1970_v7 = vld [vmem:[%s2837_s1 + $0x18] sm:$0xff]   ;;  %v1972_v9 = vld [vmem:[%s2837_s1 + $0x20] sm:$0xff]   ;;  %v1974_v11 = vld [vmem:[%s2837_s1 + $0x28] sm:$0xff]  }
   0x4   :  { %1104 = vmatprep.subr.bf16.mxu0 %v2144_v0  ;;  %v1971_v8 = vld [vmem:[%s2837_s1 + $0x98] sm:$0xff]   ;;  %v1973_v10 = vld [vmem:[%s2837_s1 + $0xa0] sm:$0xff]   ;;  %v1975_v12 = vld [vmem:[%s2837_s1 + $0xa8] sm:$0xff]  }
   0x5   :  { %v1976_v13 = vld [vmem:[%s2837_s1 + $0x30] sm:$0xff]   ;;  %v1978_v15 = vld [vmem:[%s2837_s1 + $0x38] sm:$0xff]   ;;  %v1980_v17 = vld [vmem:[%s2837_s1 + $0x40] sm:$0xff]  }
   0x6   :  { %873 = vmatpush1.bf16.msra.mxu1 %v1966_v3  ;;  %v1977_v14 = vld [vmem:[%s2837_s1 + $0xb0] sm:$0xff]   ;;  %v1979_v16 = vld [vmem:[%s2837_s1 + $0xb8] sm:$0xff]   ;;  %v1981_v18 = vld [vmem:[%s2837_s1 + $0xc0] sm:$0xff]  }
   0x7   :  { %1105 = vmatpush1.bf16.msra.mxu0 %v1967_v4  ;;  %874 = vmatprep.subr.bf16.mxu1 %v2144_v0  ;;  %v1998_v19 = vld [vmem:[%s2838_s0 + $0x4] ss:$16 sps:$4 sm:$0xff]   ;;  %v1982_v20 = vld [vmem:[%s2837_s1 + $0x48] sm:$0xff]   ;;  %v1986_v25 = vld [vmem:[%s2837_s1 + $0x58] sm:$0xff]  }
   0x8   :  { %1106 = vmatprep.subr.bf16.mxu0 %v2144_v0  ;;  %v2001_v21 = vld [vmem:[%s2838_s0 + $0xc] ss:$16 sps:$4 sm:$0xff]   ;;  %902 = vmatprep.mubr.bf16.mxu1 %v1998_v19  ;;  %v1984_v23 = vld [vmem:[%s2837_s1 + $0x50] sm:$0xff]   ;;  %v1988_v27 = vld [vmem:[%s2837_s1 + $0x60] sm:$0xff]  }
   0x9   :  { %v1983_v22 = vld [vmem:[%s2837_s1 + $0xc8] sm:$0xff]   ;;  %1134 = vmatprep.mubr.bf16.mxu0 %v2001_v21  ;;  %v1985_v24 = vld [vmem:[%s2837_s1 + $0xd0] sm:$0xff]   ;;  %v1987_v26 = vld [vmem:[%s2837_s1 + $0xd8] sm:$0xff]  }
   0xa   :  { %875 = vmatpush1.bf16.msra.mxu1 %v1968_v5  ;;  %v1989_v28 = vld [vmem:[%s2837_s1 + $0xe0] sm:$0xff]   ;;  %v1990_v29 = vld [vmem:[%s2837_s1 + $0x68] sm:$0xff]   ;;  %v1992_v31 = vld [vmem:[%s2837_s1 + $0x70] sm:$0xff]  }
   0xb   :  { %1107 = vmatpush1.bf16.msra.mxu0 %v1969_v6  ;;  %876 = vmatprep.subr.bf16.mxu1 %v2144_v0  ;;  %v1991_v30 = vld [vmem:[%s2837_s1 + $0xe8] sm:$0xff]   ;;  %v1993_v32 = vld [vmem:[%s2837_s1 + $0xf0] sm:$0xff]   ;;  %v1994_v33 = vld [vmem:[%s2837_s1 + $0x78] sm:$0xff]  }
   0xc   :  { %1108 = vmatprep.subr.bf16.mxu0 %v2144_v0  ;;  %v1995_v34 = vld [vmem:[%s2837_s1 + $0xf8] sm:$0xff]   ;;  %v1996_v35 = vld [vmem:[%s2838_s0] ss:$16 sps:$4 sm:$0xff]   ;;  %v2002_v37 = vld [vmem:[%s2838_s0 + $0x24] ss:$16 sps:$4 sm:$0xff]  }
   0xd   :  { %v1999_v36 = vld [vmem:[%s2838_s0 + $0x8] ss:$16 sps:$4 sm:$0xff]   ;;  %v2004_v38 = vld [vmem:[%s2838_s0 + $0x2c] ss:$16 sps:$4 sm:$0xff]   ;;  %v2006_v39 = vld [vmem:[%s2838_s0 + $0x20] ss:$16 sps:$4 sm:$0xff]  }
   0xe   :  { %877 = vmatpush1.bf16.msra.mxu1 %v1970_v7  ;;  %v2007_v40 = vld [vmem:[%s2838_s0 + $0x28] ss:$16 sps:$4 sm:$0xff]   ;;  %v2008_v41 = vld [vmem:[%s2838_s0 + $0x44] ss:$16 sps:$4 sm:$0xff]   ;;  %v2010_v42 = vld [vmem:[%s2838_s0 + $0x4c] ss:$16 sps:$4 sm:$0xff]  }
   0xf   :  { %1109 = vmatpush1.bf16.msra.mxu0 %v1971_v8  ;;  %878 = vmatprep.subr.bf16.mxu1 %v2144_v0  ;;  %v2012_v43 = vld [vmem:[%s2838_s0 + $0x40] ss:$16 sps:$4 sm:$0xff]   ;;  %v2013_v44 = vld [vmem:[%s2838_s0 + $0x48] ss:$16 sps:$4 sm:$0xff]   ;;  %v2014_v45 = vld [vmem:[%s2838_s0 + $0x64] ss:$16 sps:$4 sm:$0xff]  }
  0x10   :  { %1110 = vmatprep.subr.bf16.mxu0 %v2144_v0  ;;  %v2016_v46 = vld [vmem:[%s2838_s0 + $0x6c] ss:$16 sps:$4 sm:$0xff]   ;;  %v2018_v47 = vld [vmem:[%s2838_s0 + $0x60] ss:$16 sps:$4 sm:$0xff]   ;;  %v2019_v48 = vld [vmem:[%s2838_s0 + $0x68] ss:$16 sps:$4 sm:$0xff]  }
  0x11   :  { %v2020_v49 = vld [vmem:[%s2838_s0 + $0x84] ss:$16 sps:$4 sm:$0xff]   ;;  %v2022_v50 = vld [vmem:[%s2838_s0 + $0x8c] ss:$16 sps:$4 sm:$0xff]   ;;  %v2024_v51 = vld [vmem:[%s2838_s0 + $0x80] ss:$16 sps:$4 sm:$0xff]  }
  0x12   :  { %879 = vmatpush1.bf16.msra.mxu1 %v1972_v9  ;;  %v2025_v52 = vld [vmem:[%s2838_s0 + $0x88] ss:$16 sps:$4 sm:$0xff]   ;;  %v2026_v53 = vld [vmem:[%s2838_s0 + $0xa4] ss:$16 sps:$4 sm:$0xff]   ;;  %v2028_v54 = vld [vmem:[%s2838_s0 + $0xac] ss:$16 sps:$4 sm:$0xff]  }
  0x13   :  { %1111 = vmatpush1.bf16.msra.mxu0 %v1973_v10  ;;  %880 = vmatprep.subr.bf16.mxu1 %v2144_v0  ;;  %v2030_v55 = vld [vmem:[%s2838_s0 + $0xa0] ss:$16 sps:$4 sm:$0xff]   ;;  %v2031_v56 = vld [vmem:[%s2838_s0 + $0xa8] ss:$16 sps:$4 sm:$0xff]   ;;  %v2032_v57 = vld [vmem:[%s2838_s0 + $0xc4] ss:$16 sps:$4 sm:$0xff]  }
  0x14   :  { %1112 = vmatprep.subr.bf16.mxu0 %v2144_v0  ;;  %v2034_v58 = vld [vmem:[%s2838_s0 + $0xcc] ss:$16 sps:$4 sm:$0xff]   ;;  %v2036_v59 = vld [vmem:[%s2838_s0 + $0xc0] ss:$16 sps:$4 sm:$0xff]   ;;  %v2037_v60 = vld [vmem:[%s2838_s0 + $0xc8] ss:$16 sps:$4 sm:$0xff]  }
  0x15   :  { %v2038_v61 = vld [vmem:[%s2838_s0 + $0xe4] ss:$16 sps:$4 sm:$0xff]   ;;  %v2040_v62 = vld [vmem:[%s2838_s0 + $0xec] ss:$16 sps:$4 sm:$0xff]   ;;  %v2042_v63 = vld [vmem:[%s2838_s0 + $0xe0] ss:$16 sps:$4 sm:$0xff]  }
  0x16   :  { %881 = vmatpush1.bf16.msra.mxu1 %v1974_v11  ;;  %v2044_v1 = vld [vmem:[%s2838_s0 + $0x104] ss:$16 sps:$4 sm:$0xff]   ;;  %v2046_v2 = vld [vmem:[%s2838_s0 + $0x10c] ss:$16 sps:$4 sm:$0xff]   ;;  %v2048_v3 = vld [vmem:[%s2838_s0 + $0x100] ss:$16 sps:$4 sm:$0xff]  }
  0x17   :  { %1113 = vmatpush1.bf16.msra.mxu0 %v1975_v12  ;;  %882 = vmatprep.subr.bf16.mxu1 %v2144_v0  ;;  %v2049_v4 = vld [vmem:[%s2838_s0 + $0x108] ss:$16 sps:$4 sm:$0xff]   ;;  %v2050_v5 = vld [vmem:[%s2838_s0 + $0x124] ss:$16 sps:$4 sm:$0xff]   ;;  %v2052_v6 = vld [vmem:[%s2838_s0 + $0x12c] ss:$16 sps:$4 sm:$0xff]  }
  0x18   :  { %1114 = vmatprep.subr.bf16.mxu0 %v2144_v0  ;;  %v2054_v7 = vld [vmem:[%s2838_s0 + $0x120] ss:$16 sps:$4 sm:$0xff]   ;;  %v2055_v8 = vld [vmem:[%s2838_s0 + $0x128] ss:$16 sps:$4 sm:$0xff]   ;;  %v2056_v9 = vld [vmem:[%s2838_s0 + $0x144] ss:$16 sps:$4 sm:$0xff]  }
  0x19   :  { %v2058_v10 = vld [vmem:[%s2838_s0 + $0x14c] ss:$16 sps:$4 sm:$0xff]   ;;  %v2060_v11 = vld [vmem:[%s2838_s0 + $0x140] ss:$16 sps:$4 sm:$0xff]   ;;  %v2061_v12 = vld [vmem:[%s2838_s0 + $0x148] ss:$16 sps:$4 sm:$0xff]  }
  0x1a   :  { %883 = vmatpush1.bf16.msra.mxu1 %v1976_v13  ;;  %v2062_v13 = vld [vmem:[%s2838_s0 + $0x164] ss:$16 sps:$4 sm:$0xff]   ;;  %v2072_v19 = vld [vmem:[%s2838_s0 + $0x180] ss:$16 sps:$4 sm:$0xff]  }
  0x1b   :  { %1115 = vmatpush1.bf16.msra.mxu0 %v1977_v14  ;;  %884 = vmatprep.subr.bf16.mxu1 %v2144_v0  ;;  %v2064_v14 = vld [vmem:[%s2838_s0 + $0x16c] ss:$16 sps:$4 sm:$0xff]   ;;  %v2074_v21 = vld [vmem:[%s2838_s0 + $0x1a4] ss:$16 sps:$4 sm:$0xff]  }
  0x1c   :  { %1116 = vmatprep.subr.bf16.mxu0 %v2144_v0 }
  0x1e   :  { %885 = vmatpush1.bf16.msra.mxu1 %v1978_v15  ;;  %v2066_v15 = vld [vmem:[%s2838_s0 + $0x160] ss:$16 sps:$4 sm:$0xff]  }
  0x1f   :  { %1117 = vmatpush1.bf16.msra.mxu0 %v1979_v16  ;;  %886 = vmatprep.subr.bf16.mxu1 %v2144_v0  ;;  %v2067_v16 = vld [vmem:[%s2838_s0 + $0x168] ss:$16 sps:$4 sm:$0xff]  }
  0x20   :  { %1118 = vmatprep.subr.bf16.mxu0 %v2144_v0 }
  0x22   :  { %887 = vmatpush1.bf16.msra.mxu1 %v1980_v17  ;;  %v2068_v17 = vld [vmem:[%s2838_s0 + $0x184] ss:$16 sps:$4 sm:$0xff]  }
  0x23   :  { %1119 = vmatpush1.bf16.msra.mxu0 %v1981_v18  ;;  %888 = vmatprep.subr.bf16.mxu1 %v2144_v0  ;;  %v2070_v18 = vld [vmem:[%s2838_s0 + $0x18c] ss:$16 sps:$4 sm:$0xff]  }
  0x24   :  { %1120 = vmatprep.subr.bf16.mxu0 %v2144_v0 }
  0x26   :  { %889 = vmatpush1.bf16.msra.mxu1 %v1982_v20  ;;  %v2073_v20 = vld [vmem:[%s2838_s0 + $0x188] ss:$16 sps:$4 sm:$0xff]  }
  0x27   :  { %1121 = vmatpush1.bf16.msra.mxu0 %v1983_v22  ;;  %890 = vmatprep.subr.bf16.mxu1 %v2144_v0  ;;  %v2076_v22 = vld [vmem:[%s2838_s0 + $0x1ac] ss:$16 sps:$4 sm:$0xff]  }
  0x28   :  { %1122 = vmatprep.subr.bf16.mxu0 %v2144_v0 }
  0x2a   :  { %891 = vmatpush1.bf16.msra.mxu1 %v1984_v23  ;;  %v2078_v23 = vld [vmem:[%s2838_s0 + $0x1a0] ss:$16 sps:$4 sm:$0xff]  }
  0x2b   :  { %1123 = vmatpush1.bf16.msra.mxu0 %v1985_v24  ;;  %892 = vmatprep.subr.bf16.mxu1 %v2144_v0  ;;  %v2079_v24 = vld [vmem:[%s2838_s0 + $0x1a8] ss:$16 sps:$4 sm:$0xff]  }
  0x2c   :  { %1124 = vmatprep.subr.bf16.mxu0 %v2144_v0 }
  0x2e   :  { %893 = vmatpush1.bf16.msra.mxu1 %v1986_v25  ;;  %v2080_v25 = vld [vmem:[%s2838_s0 + $0x1c4] ss:$16 sps:$4 sm:$0xff]  }
  0x2f   :  { %1125 = vmatpush1.bf16.msra.mxu0 %v1987_v26  ;;  %894 = vmatprep.subr.bf16.mxu1 %v2144_v0  ;;  %v2082_v26 = vld [vmem:[%s2838_s0 + $0x1cc] ss:$16 sps:$4 sm:$0xff]  }
  0x30   :  { %1126 = vmatprep.subr.bf16.mxu0 %v2144_v0 }
  0x32   :  { %895 = vmatpush1.bf16.msra.mxu1 %v1988_v27  ;;  %v2084_v27 = vld [vmem:[%s2838_s0 + $0x1c0] ss:$16 sps:$4 sm:$0xff]  }
  0x33   :  { %1127 = vmatpush1.bf16.msra.mxu0 %v1989_v28  ;;  %896 = vmatprep.subr.bf16.mxu1 %v2144_v0  ;;  %v2085_v28 = vld [vmem:[%s2838_s0 + $0x1c8] ss:$16 sps:$4 sm:$0xff]  }
  0x34   :  { %1128 = vmatprep.subr.bf16.mxu0 %v2144_v0 }
  0x36   :  { %897 = vmatpush1.bf16.msra.mxu1 %v1990_v29  ;;  %v2086_v29 = vld [vmem:[%s2838_s0 + $0x1e4] ss:$16 sps:$4 sm:$0xff]  }
  0x37   :  { %1129 = vmatpush1.bf16.msra.mxu0 %v1991_v30  ;;  %898 = vmatprep.subr.bf16.mxu1 %v2144_v0  ;;  %v2088_v30 = vld [vmem:[%s2838_s0 + $0x1ec] ss:$16 sps:$4 sm:$0xff]  }
  0x38   :  { %1130 = vmatprep.subr.bf16.mxu0 %v2144_v0 }
  0x3a   :  { %899 = vmatpush1.bf16.msra.mxu1 %v1992_v31  ;;  %v2090_v31 = vld [vmem:[%s2838_s0 + $0x1e0] ss:$16 sps:$4 sm:$0xff]  }
  0x3b   :  { %1131 = vmatpush1.bf16.msra.mxu0 %v1993_v32  ;;  %900 = vmatprep.subr.bf16.mxu1 %v2144_v0  ;;  %v2091_v32 = vld [vmem:[%s2838_s0 + $0x1e8] ss:$16 sps:$4 sm:$0xff]  }
  0x3c   :  { %1132 = vmatprep.subr.bf16.mxu0 %v2144_v0  ;;  %v2043_v0 = vld [vmem:[%s2838_s0 + $0xe8] ss:$16 sps:$4 sm:$0xff]  }
  0x3e   :  { %901 = vmatpush1.bf16.msra.mxu1 %v1994_v33  ;;  %v2092_v33 = vld [vmem:[%s2838_s0 + $0x204] ss:$16 sps:$4 sm:$0xff]  }
  0x3f   :  { %1133 = vmatpush1.bf16.msra.mxu0 %v1995_v34  ;;  %v2094_v34 = vld [vmem:[%s2838_s0 + $0x20c] ss:$16 sps:$4 sm:$0xff]  }
  0x41   :  { %903 = vmatmul.mubr.bf16.vlgmr.msra.gmra.mrb[0].mxu1 %v1996_v35  ;;  %v2096_v35 = vld [vmem:[%s2838_s0 + $0x200] ss:$16 sps:$4 sm:$0xff]  }
  0x42   :  { %1135 = vmatmul.mubr.bf16.vlgmr.msra.gmra.mrb[0].mxu0 %v1999_v36  ;;  %910 = vmatprep.mubr.bf16.mxu1 %v2002_v37  ;;  %v2097_v36 = vld [vmem:[%s2838_s0 + $0x208] ss:$16 sps:$4 sm:$0xff]   ;;  %v2098_v37 = vld [vmem:[%s2838_s0 + $0x224] ss:$16 sps:$4 sm:$0xff]  }
  0x43   :  { %1142 = vmatprep.mubr.bf16.mxu0 %v2004_v38  ;;  %v2100_v38 = vld [vmem:[%s2838_s0 + $0x22c] ss:$16 sps:$4 sm:$0xff]  }
  0x49   :  { %911 = vmatmul.mubr.bf16.gmra.mrb[4].mxu1 %v2006_v39  ;;  %v2102_v39 = vld [vmem:[%s2838_s0 + $0x220] ss:$16 sps:$4 sm:$0xff]  }
  0x4a   :  { %1143 = vmatmul.mubr.bf16.gmra.mrb[4].mxu0 %v2007_v40  ;;  %918 = vmatprep.mubr.bf16.mxu1 %v2008_v41  ;;  %v2103_v40 = vld [vmem:[%s2838_s0 + $0x228] ss:$16 sps:$4 sm:$0xff]   ;;  %v2104_v41 = vld [vmem:[%s2838_s0 + $0x244] ss:$16 sps:$4 sm:$0xff]  }
  0x4b   :  { %1150 = vmatprep.mubr.bf16.mxu0 %v2010_v42  ;;  %v2106_v42 = vld [vmem:[%s2838_s0 + $0x24c] ss:$16 sps:$4 sm:$0xff]  }
  0x51   :  { %919 = vmatmul.mubr.bf16.gmra.mrb[8].mxu1 %v2012_v43  ;;  %v2108_v43 = vld [vmem:[%s2838_s0 + $0x240] ss:$16 sps:$4 sm:$0xff]  }
  0x52   :  { %1151 = vmatmul.mubr.bf16.gmra.mrb[8].mxu0 %v2013_v44  ;;  %926 = vmatprep.mubr.bf16.mxu1 %v2014_v45  ;;  %v2109_v44 = vld [vmem:[%s2838_s0 + $0x248] ss:$16 sps:$4 sm:$0xff]   ;;  %v2110_v45 = vld [vmem:[%s2838_s0 + $0x264] ss:$16 sps:$4 sm:$0xff]  }
  0x53   :  { %1158 = vmatprep.mubr.bf16.mxu0 %v2016_v46  ;;  %v2112_v46 = vld [vmem:[%s2838_s0 + $0x26c] ss:$16 sps:$4 sm:$0xff]  }
  0x59   :  { %927 = vmatmul.mubr.bf16.gmra.mrb[12].mxu1 %v2018_v47  ;;  %v2114_v47 = vld [vmem:[%s2838_s0 + $0x260] ss:$16 sps:$4 sm:$0xff]  }
  0x5a   :  { %1159 = vmatmul.mubr.bf16.gmra.mrb[12].mxu0 %v2019_v48  ;;  %934 = vmatprep.mubr.bf16.mxu1 %v2020_v49  ;;  %v2115_v48 = vld [vmem:[%s2838_s0 + $0x268] ss:$16 sps:$4 sm:$0xff]   ;;  %v2116_v49 = vld [vmem:[%s2838_s0 + $0x284] ss:$16 sps:$4 sm:$0xff]  }
  0x5b   :  { %1166 = vmatprep.mubr.bf16.mxu0 %v2022_v50  ;;  %v2118_v50 = vld [vmem:[%s2838_s0 + $0x28c] ss:$16 sps:$4 sm:$0xff]  }
  0x61   :  { %935 = vmatmul.mubr.bf16.gmra.mrb[16].mxu1 %v2024_v51  ;;  %v2120_v51 = vld [vmem:[%s2838_s0 + $0x280] ss:$16 sps:$4 sm:$0xff]  }
  0x62   :  { %1167 = vmatmul.mubr.bf16.gmra.mrb[16].mxu0 %v2025_v52  ;;  %942 = vmatprep.mubr.bf16.mxu1 %v2026_v53  ;;  %v2121_v52 = vld [vmem:[%s2838_s0 + $0x288] ss:$16 sps:$4 sm:$0xff]   ;;  %v2122_v53 = vld [vmem:[%s2838_s0 + $0x2a4] ss:$16 sps:$4 sm:$0xff]  }
  0x63   :  { %1174 = vmatprep.mubr.bf16.mxu0 %v2028_v54  ;;  %v2124_v54 = vld [vmem:[%s2838_s0 + $0x2ac] ss:$16 sps:$4 sm:$0xff]  }
  0x69   :  { %943 = vmatmul.mubr.bf16.gmra.mrb[20].mxu1 %v2030_v55  ;;  %v2126_v55 = vld [vmem:[%s2838_s0 + $0x2a0] ss:$16 sps:$4 sm:$0xff]  }
  0x6a   :  { %1175 = vmatmul.mubr.bf16.gmra.mrb[20].mxu0 %v2031_v56  ;;  %950 = vmatprep.mubr.bf16.mxu1 %v2032_v57  ;;  %v2127_v56 = vld [vmem:[%s2838_s0 + $0x2a8] ss:$16 sps:$4 sm:$0xff]   ;;  %v2128_v57 = vld [vmem:[%s2838_s0 + $0x2c4] ss:$16 sps:$4 sm:$0xff]  }
  0x6b   :  { %1182 = vmatprep.mubr.bf16.mxu0 %v2034_v58  ;;  %v2130_v58 = vld [vmem:[%s2838_s0 + $0x2cc] ss:$16 sps:$4 sm:$0xff]  }
  0x71   :  { %951 = vmatmul.mubr.bf16.gmra.mrb[24].mxu1 %v2036_v59  ;;  %v2132_v59 = vld [vmem:[%s2838_s0 + $0x2c0] ss:$16 sps:$4 sm:$0xff]  }
  0x72   :  { %1183 = vmatmul.mubr.bf16.gmra.mrb[24].mxu0 %v2037_v60  ;;  %958 = vmatprep.mubr.bf16.mxu1 %v2038_v61  ;;  %v2133_v60 = vld [vmem:[%s2838_s0 + $0x2c8] ss:$16 sps:$4 sm:$0xff]   ;;  %v2134_v61 = vld [vmem:[%s2838_s0 + $0x2e4] ss:$16 sps:$4 sm:$0xff]  }
  0x73   :  { %1190 = vmatprep.mubr.bf16.mxu0 %v2040_v62  ;;  %v2136_v62 = vld [vmem:[%s2838_s0 + $0x2ec] ss:$16 sps:$4 sm:$0xff]  }
  0x79   :  { %959 = vmatmul.mubr.bf16.gmra.mrb[28].mxu1 %v2042_v63  ;;  %v111_v63 = vld [vmem:[%s2838_s0 + $0x300] sm:$0xff] }
  0x7a   :  { %1191 = vmatmul.mubr.bf16.gmra.mrb[28].mxu0 %v2043_v0  ;;  %966 = vmatprep.mubr.bf16.mxu1 %v2044_v1  ;;  %v112_v0 = vld [vmem:[%s2838_s0 + $0x308] sm:$0xff]  ;;  %v2138_v1 = vld [vmem:[%s2838_s0 + $0x2e0] ss:$16 sps:$4 sm:$0xff]  }
  0x7b   :  { %1198 = vmatprep.mubr.bf16.mxu0 %v2046_v2  ;;  %v2139_v2 = vld [vmem:[%s2838_s0 + $0x2e8] ss:$16 sps:$4 sm:$0xff]  }
  0x81   :  { %967 = vmatmul.mubr.bf16.gmra.mrb[32].mxu1 %v2048_v3  ;;  %v1732_v3 = vcombine.high %v111_v63, %v111_v63 }
  0x82   :  { %1199 = vmatmul.mubr.bf16.gmra.mrb[32].mxu0 %v2049_v4  ;;  %974 = vmatprep.mubr.bf16.mxu1 %v2050_v5  ;;  %v1734_v4 = vcombine.high %v112_v0, %v112_v0  ;;  %v1731_v5 = vcombine.low %v111_v63, %v111_v63 }
  0x83   :  { %1206 = vmatprep.mubr.bf16.mxu0 %v2052_v6  ;;  %v1733_v6 = vcombine.low %v112_v0, %v112_v0 }
  0x89   :  { %975 = vmatmul.mubr.bf16.gmra.mrb[36].mxu1 %v2054_v7  ;;  %v2590_v7 = vld [vmem:[%s2839_s2] ss:$0 sm:$0xff] }
  0x8a   :  { %1207 = vmatmul.mubr.bf16.gmra.mrb[36].mxu0 %v2055_v8  ;;  %982 = vmatprep.mubr.bf16.mxu1 %v2056_v9 }
  0x8b   :  { %1214 = vmatprep.mubr.bf16.mxu0 %v2058_v10 }
  0x91   :  { %983 = vmatmul.mubr.bf16.gmra.mrb[40].mxu1 %v2060_v11 }
  0x92   :  { %1215 = vmatmul.mubr.bf16.gmra.mrb[40].mxu0 %v2061_v12  ;;  %990 = vmatprep.mubr.bf16.mxu1 %v2062_v13 }
  0x93   :  { %1222 = vmatprep.mubr.bf16.mxu0 %v2064_v14 }
  0x99   :  { %991 = vmatmul.mubr.bf16.gmra.mrb[44].mxu1 %v2066_v15 }
  0x9a   :  { %1223 = vmatmul.mubr.bf16.gmra.mrb[44].mxu0 %v2067_v16  ;;  %998 = vmatprep.mubr.bf16.mxu1 %v2068_v17 }
  0x9b   :  { %1230 = vmatprep.mubr.bf16.mxu0 %v2070_v18 }
  0xa1   :  { %999 = vmatmul.mubr.bf16.gmra.mrb[48].mxu1 %v2072_v19 }
  0xa2   :  { %1231 = vmatmul.mubr.bf16.gmra.mrb[48].mxu0 %v2073_v20  ;;  %1006 = vmatprep.mubr.bf16.mxu1 %v2074_v21 }
  0xa3   :  { %1238 = vmatprep.mubr.bf16.mxu0 %v2076_v22 }
  0xa9   :  { %1007 = vmatmul.mubr.bf16.gmra.mrb[52].mxu1 %v2078_v23 }
  0xaa   :  { %1239 = vmatmul.mubr.bf16.gmra.mrb[52].mxu0 %v2079_v24  ;;  %1014 = vmatprep.mubr.bf16.mxu1 %v2080_v25 }
  0xab   :  { %1246 = vmatprep.mubr.bf16.mxu0 %v2082_v26 }
  0xb1   :  { %1015 = vmatmul.mubr.bf16.gmra.mrb[56].mxu1 %v2084_v27 }
  0xb2   :  { %1247 = vmatmul.mubr.bf16.gmra.mrb[56].mxu0 %v2085_v28  ;;  %1022 = vmatprep.mubr.bf16.mxu1 %v2086_v29 }
  0xb3   :  { %1254 = vmatprep.mubr.bf16.mxu0 %v2088_v30 }
  0xb9   :  { %1023 = vmatmul.mubr.bf16.gmra.mrb[60].mxu1 %v2090_v31 }
  0xba   :  { %1255 = vmatmul.mubr.bf16.gmra.mrb[60].mxu0 %v2091_v32  ;;  %1030 = vmatprep.mubr.bf16.mxu1 %v2092_v33 }
  0xbb   :  { %1262 = vmatprep.mubr.bf16.mxu0 %v2094_v34 }
  0xc1   :  { %1031 = vmatmul.mubr.bf16.gmra.mrb[64].mxu1 %v2096_v35 }
  0xc2   :  { %1263 = vmatmul.mubr.bf16.gmra.mrb[64].mxu0 %v2097_v36  ;;  %1038 = vmatprep.mubr.bf16.mxu1 %v2098_v37 }
  0xc3   :  { %1270 = vmatprep.mubr.bf16.mxu0 %v2100_v38 }
  0xc9   :  { %1039 = vmatmul.mubr.bf16.gmra.mrb[68].mxu1 %v2102_v39 }
  0xca   :  { %1271 = vmatmul.mubr.bf16.gmra.mrb[68].mxu0 %v2103_v40  ;;  %1046 = vmatprep.mubr.bf16.mxu1 %v2104_v41 }
  0xcb   :  { %1278 = vmatprep.mubr.bf16.mxu0 %v2106_v42 }
  0xd1   :  { %1047 = vmatmul.mubr.bf16.gmra.mrb[72].mxu1 %v2108_v43 }
  0xd2   :  { %1279 = vmatmul.mubr.bf16.gmra.mrb[72].mxu0 %v2109_v44  ;;  %1054 = vmatprep.mubr.bf16.mxu1 %v2110_v45 }
  0xd3   :  { %1286 = vmatprep.mubr.bf16.mxu0 %v2112_v46 }
  0xd9   :  { %1055 = vmatmul.mubr.bf16.gmra.mrb[76].mxu1 %v2114_v47 }
  0xda   :  { %1287 = vmatmul.mubr.bf16.gmra.mrb[76].mxu0 %v2115_v48  ;;  %1062 = vmatprep.mubr.bf16.mxu1 %v2116_v49 }
  0xdb   :  { %1294 = vmatprep.mubr.bf16.mxu0 %v2118_v50 }
  0xe1   :  { %1063 = vmatmul.mubr.bf16.gmra.mrb[80].mxu1 %v2120_v51 }
  0xe2   :  { %1295 = vmatmul.mubr.bf16.gmra.mrb[80].mxu0 %v2121_v52  ;;  %1070 = vmatprep.mubr.bf16.mxu1 %v2122_v53 }
  0xe3   :  { %1302 = vmatprep.mubr.bf16.mxu0 %v2124_v54 }
  0xe9   :  { %1071 = vmatmul.mubr.bf16.gmra.mrb[84].mxu1 %v2126_v55 }
  0xea   :  { %1303 = vmatmul.mubr.bf16.gmra.mrb[84].mxu0 %v2127_v56  ;;  %1078 = vmatprep.mubr.bf16.mxu1 %v2128_v57 }
  0xeb   :  { %1310 = vmatprep.mubr.bf16.mxu0 %v2130_v58 }
  0xf1   :  { %1079 = vmatmul.mubr.bf16.gmra.mrb[88].mxu1 %v2132_v59 }
  0xf2   :  { %1311 = vmatmul.mubr.bf16.gmra.mrb[88].mxu0 %v2133_v60  ;;  %1086 = vmatprep.mubr.bf16.mxu1 %v2134_v61 }
  0xf3   :  { %1318 = vmatprep.mubr.bf16.mxu0 %v2136_v62 }
  0xf9   :  { %1087 = vmatmul.mubr.bf16.gmra.mrb[92].mxu1 %v2138_v1 }
  0xfa   :  { %1319 = vmatmul.mubr.bf16.gmra.mrb[92].mxu0 %v2139_v2  ;;  %1094 = vmatprep.mubr.bf16.mxu1 %v1732_v3 }
  0xfb   :  { %1326 = vmatprep.mubr.bf16.mxu0 %v1734_v4 }
 0x101   :  { %1095 = vmatmul.mubr.bf16.gmra.mrb[96].mxu1 %v1731_v5 }
 0x102   :  { %1327 = vmatmul.mubr.bf16.gmra.mrb[96].mxu0 %v1733_v6 }
 0x114   :  { %v904_v8 = vpop.f32.mrb[0].mxu1 }
 0x115   :  { %v905_v9 = vadd.f32 %v2590_v7, %v904_v8  ;;  %v1136_v10 = vpop.f32.mrb[0].mxu0  ;;  %v906_v11 = vpop.f32.mrb[1].mxu1 }
 0x116   :  { %v1138_v12 = vpop.f32.mrb[1].mxu0  ;;  %v907_v13 = vpop.f32.mrb[2].mxu1 }
 0x117   :  { %v1137_v14 = vadd.f32 %v1136_v10, %v905_v9  ;;  %v908_v15 = vadd.f32 %v2590_v7, %v907_v13  ;;  %v1139_v16 = vpop.f32.mrb[2].mxu0  ;;  %v909_v17 = vpop.f32.mrb[3].mxu1 }
 0x118   :  { %v1141_v18 = vpop.f32.mrb[3].mxu0 }
 0x119   :  { %v1334_v19 = vmax.f32 %v1137_v14, 0.0  ;;  %v1140_v20 = vadd.f32 %v1139_v16, %v908_v15 }
 0x11b   :  { %v1816_v21 = vpack.c.bf16 %v1334_v19, %v1334_v19  ;;  %v1335_v22 = vmax.f32 %v1140_v20, 0.0 }
 0x11c   :  { %v912_v23 = vpop.f32.mrb[4].mxu1 }
 0x11d   :  { %1581 = vst.msk [vmem:[%s2840_s3] sm:$0xf] %vm1580_vm0, %v1816_v21  ;;  %v1817_v24 = vpack.c.bf16 %v1335_v22, %v1335_v22  ;;  %v913_v25 = vadd.f32 %v2590_v7, %v912_v23  ;;  %v1144_v26 = vpop.f32.mrb[4].mxu0  ;;  %v914_v27 = vpop.f32.mrb[5].mxu1 }
 0x11e   :  { %v1146_v28 = vpop.f32.mrb[5].mxu0  ;;  %v915_v29 = vpop.f32.mrb[6].mxu1 }
 0x11f   :  { %1582 = vst.msk [vmem:[%s2840_s3 + $0x4] sm:$0xf] %vm1580_vm0, %v1817_v24  ;;  %v1145_v30 = vadd.f32 %v1144_v26, %v913_v25  ;;  %v916_v31 = vadd.f32 %v2590_v7, %v915_v29  ;;  %v1147_v32 = vpop.f32.mrb[6].mxu0  ;;  %v917_v33 = vpop.f32.mrb[7].mxu1 }
 0x120   :  { %v1149_v34 = vpop.f32.mrb[7].mxu0 }
 0x121   :  { %v1336_v35 = vmax.f32 %v1145_v30, 0.0  ;;  %v1148_v36 = vadd.f32 %v1147_v32, %v916_v31 }
 0x123   :  { %v1818_v37 = vpack.c.bf16 %v1336_v35, %v1336_v35  ;;  %v1337_v38 = vmax.f32 %v1148_v36, 0.0 }
 0x124   :  { %v920_v39 = vpop.f32.mrb[8].mxu1 }
 0x125   :  { %1583 = vst.msk [vmem:[%s2840_s3 + $0x8] sm:$0xf] %vm1580_vm0, %v1818_v37  ;;  %v1819_v40 = vpack.c.bf16 %v1337_v38, %v1337_v38  ;;  %v921_v41 = vadd.f32 %v2590_v7, %v920_v39  ;;  %v1152_v42 = vpop.f32.mrb[8].mxu0  ;;  %v922_v43 = vpop.f32.mrb[9].mxu1 }
 0x126   :  { %v1154_v44 = vpop.f32.mrb[9].mxu0  ;;  %v923_v45 = vpop.f32.mrb[10].mxu1 }
 0x127   :  { %1584 = vst.msk [vmem:[%s2840_s3 + $0xc] sm:$0xf] %vm1580_vm0, %v1819_v40  ;;  %v1153_v46 = vadd.f32 %v1152_v42, %v921_v41  ;;  %v924_v47 = vadd.f32 %v2590_v7, %v923_v45  ;;  %v1155_v48 = vpop.f32.mrb[10].mxu0  ;;  %v925_v49 = vpop.f32.mrb[11].mxu1 }
 0x128   :  { %v1157_v50 = vpop.f32.mrb[11].mxu0 }
 0x129   :  { %v1338_v51 = vmax.f32 %v1153_v46, 0.0  ;;  %v1156_v52 = vadd.f32 %v1155_v48, %v924_v47 }
 0x12b   :  { %v1820_v53 = vpack.c.bf16 %v1338_v51, %v1338_v51  ;;  %v1339_v54 = vmax.f32 %v1156_v52, 0.0 }
 0x12c   :  { %v928_v55 = vpop.f32.mrb[12].mxu1 }
 0x12d   :  { %1585 = vst.msk [vmem:[%s2840_s3 + $0x10] sm:$0xf] %vm1580_vm0, %v1820_v53  ;;  %v1821_v56 = vpack.c.bf16 %v1339_v54, %v1339_v54  ;;  %v929_v57 = vadd.f32 %v2590_v7, %v928_v55  ;;  %v1160_v58 = vpop.f32.mrb[12].mxu0  ;;  %v930_v59 = vpop.f32.mrb[13].mxu1 }
 0x12e   :  { %v1162_v60 = vpop.f32.mrb[13].mxu0  ;;  %v931_v61 = vpop.f32.mrb[14].mxu1 }
 0x12f   :  { %1586 = vst.msk [vmem:[%s2840_s3 + $0x14] sm:$0xf] %vm1580_vm0, %v1821_v56  ;;  %v1161_v62 = vadd.f32 %v1160_v58, %v929_v57  ;;  %v932_v63 = vadd.f32 %v2590_v7, %v931_v61  ;;  %v1163_v0 = vpop.f32.mrb[14].mxu0  ;;  %v933_v1 = vpop.f32.mrb[15].mxu1 }
 0x130   :  { %v1165_v2 = vpop.f32.mrb[15].mxu0 }
 0x131   :  { %v1340_v3 = vmax.f32 %v1161_v62, 0.0  ;;  %v1164_v4 = vadd.f32 %v1163_v0, %v932_v63 }
 0x133   :  { %v1822_v5 = vpack.c.bf16 %v1340_v3, %v1340_v3  ;;  %v1341_v6 = vmax.f32 %v1164_v4, 0.0 }
 0x134   :  { %v936_v8 = vpop.f32.mrb[16].mxu1 }
 0x135   :  { %1587 = vst.msk [vmem:[%s2840_s3 + $0x18] sm:$0xf] %vm1580_vm0, %v1822_v5  ;;  %v1823_v9 = vpack.c.bf16 %v1341_v6, %v1341_v6  ;;  %v937_v10 = vadd.f32 %v2590_v7, %v936_v8  ;;  %v1168_v11 = vpop.f32.mrb[16].mxu0  ;;  %v938_v12 = vpop.f32.mrb[17].mxu1 }
 0x136   :  { %v1170_v13 = vpop.f32.mrb[17].mxu0  ;;  %v939_v14 = vpop.f32.mrb[18].mxu1 }
 0x137   :  { %1588 = vst.msk [vmem:[%s2840_s3 + $0x1c] sm:$0xf] %vm1580_vm0, %v1823_v9  ;;  %v1169_v15 = vadd.f32 %v1168_v11, %v937_v10  ;;  %v940_v16 = vadd.f32 %v2590_v7, %v939_v14  ;;  %v1171_v17 = vpop.f32.mrb[18].mxu0  ;;  %v941_v18 = vpop.f32.mrb[19].mxu1 }
 0x138   :  { %v1173_v19 = vpop.f32.mrb[19].mxu0 }
 0x139   :  { %v1342_v20 = vmax.f32 %v1169_v15, 0.0  ;;  %v1172_v21 = vadd.f32 %v1171_v17, %v940_v16 }
 0x13b   :  { %v1824_v22 = vpack.c.bf16 %v1342_v20, %v1342_v20  ;;  %v1343_v23 = vmax.f32 %v1172_v21, 0.0 }
 0x13c   :  { %v944_v24 = vpop.f32.mrb[20].mxu1 }
 0x13d   :  { %1589 = vst.msk [vmem:[%s2840_s3 + $0x20] sm:$0xf] %vm1580_vm0, %v1824_v22  ;;  %v1825_v25 = vpack.c.bf16 %v1343_v23, %v1343_v23  ;;  %v945_v26 = vadd.f32 %v2590_v7, %v944_v24  ;;  %v1176_v27 = vpop.f32.mrb[20].mxu0  ;;  %v946_v28 = vpop.f32.mrb[21].mxu1 }
 0x13e   :  { %v1178_v29 = vpop.f32.mrb[21].mxu0  ;;  %v947_v30 = vpop.f32.mrb[22].mxu1 }
 0x13f   :  { %1590 = vst.msk [vmem:[%s2840_s3 + $0x24] sm:$0xf] %vm1580_vm0, %v1825_v25  ;;  %v1177_v31 = vadd.f32 %v1176_v27, %v945_v26  ;;  %v948_v32 = vadd.f32 %v2590_v7, %v947_v30  ;;  %v1179_v33 = vpop.f32.mrb[22].mxu0  ;;  %v949_v34 = vpop.f32.mrb[23].mxu1 }
 0x140   :  { %v1181_v35 = vpop.f32.mrb[23].mxu0 }
 0x141   :  { %v1344_v36 = vmax.f32 %v1177_v31, 0.0  ;;  %v1180_v37 = vadd.f32 %v1179_v33, %v948_v32 }
 0x143   :  { %v1826_v38 = vpack.c.bf16 %v1344_v36, %v1344_v36  ;;  %v1345_v39 = vmax.f32 %v1180_v37, 0.0 }
 0x144   :  { %v952_v40 = vpop.f32.mrb[24].mxu1 }
 0x145   :  { %1591 = vst.msk [vmem:[%s2840_s3 + $0x28] sm:$0xf] %vm1580_vm0, %v1826_v38  ;;  %v1827_v41 = vpack.c.bf16 %v1345_v39, %v1345_v39  ;;  %v953_v42 = vadd.f32 %v2590_v7, %v952_v40  ;;  %v1184_v43 = vpop.f32.mrb[24].mxu0  ;;  %v954_v44 = vpop.f32.mrb[25].mxu1 }
 0x146   :  { %v1186_v45 = vpop.f32.mrb[25].mxu0  ;;  %v955_v46 = vpop.f32.mrb[26].mxu1 }
 0x147   :  { %1592 = vst.msk [vmem:[%s2840_s3 + $0x2c] sm:$0xf] %vm1580_vm0, %v1827_v41  ;;  %v1185_v47 = vadd.f32 %v1184_v43, %v953_v42  ;;  %v956_v48 = vadd.f32 %v2590_v7, %v955_v46  ;;  %v1187_v49 = vpop.f32.mrb[26].mxu0  ;;  %v957_v50 = vpop.f32.mrb[27].mxu1 }
 0x148   :  { %v1189_v51 = vpop.f32.mrb[27].mxu0 }
 0x149   :  { %v1346_v52 = vmax.f32 %v1185_v47, 0.0  ;;  %v1188_v53 = vadd.f32 %v1187_v49, %v956_v48 }
 0x14b   :  { %v1828_v54 = vpack.c.bf16 %v1346_v52, %v1346_v52  ;;  %v1347_v55 = vmax.f32 %v1188_v53, 0.0 }
 0x14c   :  { %v960_v56 = vpop.f32.mrb[28].mxu1 }
 0x14d   :  { %1593 = vst.msk [vmem:[%s2840_s3 + $0x30] sm:$0xf] %vm1580_vm0, %v1828_v54  ;;  %v1829_v57 = vpack.c.bf16 %v1347_v55, %v1347_v55  ;;  %v961_v58 = vadd.f32 %v2590_v7, %v960_v56  ;;  %v1192_v59 = vpop.f32.mrb[28].mxu0  ;;  %v962_v60 = vpop.f32.mrb[29].mxu1 }
 0x14e   :  { %v1194_v61 = vpop.f32.mrb[29].mxu0  ;;  %v963_v62 = vpop.f32.mrb[30].mxu1 }
 0x14f   :  { %1594 = vst.msk [vmem:[%s2840_s3 + $0x34] sm:$0xf] %vm1580_vm0, %v1829_v57  ;;  %v1193_v63 = vadd.f32 %v1192_v59, %v961_v58  ;;  %v964_v0 = vadd.f32 %v2590_v7, %v963_v62  ;;  %v1195_v1 = vpop.f32.mrb[30].mxu0  ;;  %v965_v2 = vpop.f32.mrb[31].mxu1 }
 0x150   :  { %v1197_v3 = vpop.f32.mrb[31].mxu0 }
 0x151   :  { %v1348_v4 = vmax.f32 %v1193_v63, 0.0  ;;  %v1196_v5 = vadd.f32 %v1195_v1, %v964_v0 }
 0x153   :  { %v1830_v6 = vpack.c.bf16 %v1348_v4, %v1348_v4  ;;  %v1349_v8 = vmax.f32 %v1196_v5, 0.0 }
 0x154   :  { %v968_v9 = vpop.f32.mrb[32].mxu1 }
 0x155   :  { %1595 = vst.msk [vmem:[%s2840_s3 + $0x38] sm:$0xf] %vm1580_vm0, %v1830_v6  ;;  %v1831_v10 = vpack.c.bf16 %v1349_v8, %v1349_v8  ;;  %v969_v11 = vadd.f32 %v2590_v7, %v968_v9  ;;  %v1200_v12 = vpop.f32.mrb[32].mxu0  ;;  %v970_v13 = vpop.f32.mrb[33].mxu1 }
 0x156   :  { %v1202_v14 = vpop.f32.mrb[33].mxu0  ;;  %v971_v15 = vpop.f32.mrb[34].mxu1 }
 0x157   :  { %1596 = vst.msk [vmem:[%s2840_s3 + $0x3c] sm:$0xf] %vm1580_vm0, %v1831_v10  ;;  %v1201_v16 = vadd.f32 %v1200_v12, %v969_v11  ;;  %v972_v17 = vadd.f32 %v2590_v7, %v971_v15  ;;  %v1203_v18 = vpop.f32.mrb[34].mxu0  ;;  %v973_v19 = vpop.f32.mrb[35].mxu1 }
 0x158   :  { %v1205_v20 = vpop.f32.mrb[35].mxu0 }
 0x159   :  { %v1350_v21 = vmax.f32 %v1201_v16, 0.0  ;;  %v1204_v22 = vadd.f32 %v1203_v18, %v972_v17 }
 0x15b   :  { %v1832_v23 = vpack.c.bf16 %v1350_v21, %v1350_v21  ;;  %v1351_v24 = vmax.f32 %v1204_v22, 0.0 }
 0x15c   :  { %v976_v25 = vpop.f32.mrb[36].mxu1 }
 0x15d   :  { %1597 = vst.msk [vmem:[%s2840_s3 + $0x40] sm:$0xf] %vm1580_vm0, %v1832_v23  ;;  %v1833_v26 = vpack.c.bf16 %v1351_v24, %v1351_v24  ;;  %v977_v27 = vadd.f32 %v2590_v7, %v976_v25  ;;  %v1208_v28 = vpop.f32.mrb[36].mxu0  ;;  %v978_v29 = vpop.f32.mrb[37].mxu1 }
 0x15e   :  { %v1210_v30 = vpop.f32.mrb[37].mxu0  ;;  %v979_v31 = vpop.f32.mrb[38].mxu1 }
 0x15f   :  { %1598 = vst.msk [vmem:[%s2840_s3 + $0x44] sm:$0xf] %vm1580_vm0, %v1833_v26  ;;  %v1209_v32 = vadd.f32 %v1208_v28, %v977_v27  ;;  %v980_v33 = vadd.f32 %v2590_v7, %v979_v31  ;;  %v1211_v34 = vpop.f32.mrb[38].mxu0  ;;  %v981_v35 = vpop.f32.mrb[39].mxu1 }
 0x160   :  { %v1213_v36 = vpop.f32.mrb[39].mxu0 }
 0x161   :  { %v1352_v37 = vmax.f32 %v1209_v32, 0.0  ;;  %v1212_v38 = vadd.f32 %v1211_v34, %v980_v33 }
 0x163   :  { %v1834_v39 = vpack.c.bf16 %v1352_v37, %v1352_v37  ;;  %v1353_v40 = vmax.f32 %v1212_v38, 0.0 }
 0x164   :  { %v984_v41 = vpop.f32.mrb[40].mxu1 }
 0x165   :  { %1599 = vst.msk [vmem:[%s2840_s3 + $0x48] sm:$0xf] %vm1580_vm0, %v1834_v39  ;;  %v1835_v42 = vpack.c.bf16 %v1353_v40, %v1353_v40  ;;  %v985_v43 = vadd.f32 %v2590_v7, %v984_v41  ;;  %v1216_v44 = vpop.f32.mrb[40].mxu0  ;;  %v986_v45 = vpop.f32.mrb[41].mxu1 }
 0x166   :  { %v1218_v46 = vpop.f32.mrb[41].mxu0  ;;  %v987_v47 = vpop.f32.mrb[42].mxu1 }
 0x167   :  { %1600 = vst.msk [vmem:[%s2840_s3 + $0x4c] sm:$0xf] %vm1580_vm0, %v1835_v42  ;;  %v1217_v48 = vadd.f32 %v1216_v44, %v985_v43  ;;  %v988_v49 = vadd.f32 %v2590_v7, %v987_v47  ;;  %v1219_v50 = vpop.f32.mrb[42].mxu0  ;;  %v989_v51 = vpop.f32.mrb[43].mxu1 }
 0x168   :  { %v1221_v52 = vpop.f32.mrb[43].mxu0 }
 0x169   :  { %v1354_v53 = vmax.f32 %v1217_v48, 0.0  ;;  %v1220_v54 = vadd.f32 %v1219_v50, %v988_v49 }
 0x16b   :  { %v1836_v55 = vpack.c.bf16 %v1354_v53, %v1354_v53  ;;  %v1355_v56 = vmax.f32 %v1220_v54, 0.0 }
 0x16c   :  { %v992_v57 = vpop.f32.mrb[44].mxu1 }
 0x16d   :  { %1601 = vst.msk [vmem:[%s2840_s3 + $0x50] sm:$0xf] %vm1580_vm0, %v1836_v55  ;;  %v1837_v58 = vpack.c.bf16 %v1355_v56, %v1355_v56  ;;  %v993_v59 = vadd.f32 %v2590_v7, %v992_v57  ;;  %v1224_v60 = vpop.f32.mrb[44].mxu0  ;;  %v994_v61 = vpop.f32.mrb[45].mxu1 }
 0x16e   :  { %v1226_v62 = vpop.f32.mrb[45].mxu0  ;;  %v995_v63 = vpop.f32.mrb[46].mxu1 }
 0x16f   :  { %1602 = vst.msk [vmem:[%s2840_s3 + $0x54] sm:$0xf] %vm1580_vm0, %v1837_v58  ;;  %v1225_v0 = vadd.f32 %v1224_v60, %v993_v59  ;;  %v996_v1 = vadd.f32 %v2590_v7, %v995_v63  ;;  %v1227_v2 = vpop.f32.mrb[46].mxu0  ;;  %v997_v3 = vpop.f32.mrb[47].mxu1 }
 0x170   :  { %v1229_v4 = vpop.f32.mrb[47].mxu0 }
 0x171   :  { %v1356_v5 = vmax.f32 %v1225_v0, 0.0  ;;  %v1228_v6 = vadd.f32 %v1227_v2, %v996_v1 }
 0x173   :  { %v1838_v8 = vpack.c.bf16 %v1356_v5, %v1356_v5  ;;  %v1357_v9 = vmax.f32 %v1228_v6, 0.0 }
 0x174   :  { %v1000_v10 = vpop.f32.mrb[48].mxu1 }
 0x175   :  { %1603 = vst.msk [vmem:[%s2840_s3 + $0x58] sm:$0xf] %vm1580_vm0, %v1838_v8  ;;  %v1839_v11 = vpack.c.bf16 %v1357_v9, %v1357_v9  ;;  %v1001_v12 = vadd.f32 %v2590_v7, %v1000_v10  ;;  %v1232_v13 = vpop.f32.mrb[48].mxu0  ;;  %v1002_v14 = vpop.f32.mrb[49].mxu1 }
 0x176   :  { %v1234_v15 = vpop.f32.mrb[49].mxu0  ;;  %v1003_v16 = vpop.f32.mrb[50].mxu1 }
 0x177   :  { %1604 = vst.msk [vmem:[%s2840_s3 + $0x5c] sm:$0xf] %vm1580_vm0, %v1839_v11  ;;  %v1233_v17 = vadd.f32 %v1232_v13, %v1001_v12  ;;  %v1004_v18 = vadd.f32 %v2590_v7, %v1003_v16  ;;  %v1235_v19 = vpop.f32.mrb[50].mxu0  ;;  %v1005_v20 = vpop.f32.mrb[51].mxu1 }
 0x178   :  { %v1237_v21 = vpop.f32.mrb[51].mxu0 }
 0x179   :  { %v1358_v22 = vmax.f32 %v1233_v17, 0.0  ;;  %v1236_v23 = vadd.f32 %v1235_v19, %v1004_v18 }
 0x17b   :  { %v1840_v24 = vpack.c.bf16 %v1358_v22, %v1358_v22  ;;  %v1359_v25 = vmax.f32 %v1236_v23, 0.0 }
 0x17c   :  { %v1008_v26 = vpop.f32.mrb[52].mxu1 }
 0x17d   :  { %1605 = vst.msk [vmem:[%s2840_s3 + $0x60] sm:$0xf] %vm1580_vm0, %v1840_v24  ;;  %v1841_v27 = vpack.c.bf16 %v1359_v25, %v1359_v25  ;;  %v1009_v28 = vadd.f32 %v2590_v7, %v1008_v26  ;;  %v1240_v29 = vpop.f32.mrb[52].mxu0  ;;  %v1010_v30 = vpop.f32.mrb[53].mxu1 }
 0x17e   :  { %v1242_v31 = vpop.f32.mrb[53].mxu0  ;;  %v1011_v32 = vpop.f32.mrb[54].mxu1 }
 0x17f   :  { %1606 = vst.msk [vmem:[%s2840_s3 + $0x64] sm:$0xf] %vm1580_vm0, %v1841_v27  ;;  %v1241_v33 = vadd.f32 %v1240_v29, %v1009_v28  ;;  %v1012_v34 = vadd.f32 %v2590_v7, %v1011_v32  ;;  %v1243_v35 = vpop.f32.mrb[54].mxu0  ;;  %v1013_v36 = vpop.f32.mrb[55].mxu1 }
 0x180   :  { %v1245_v37 = vpop.f32.mrb[55].mxu0 }
 0x181   :  { %v1360_v38 = vmax.f32 %v1241_v33, 0.0  ;;  %v1244_v39 = vadd.f32 %v1243_v35, %v1012_v34 }
 0x183   :  { %v1842_v40 = vpack.c.bf16 %v1360_v38, %v1360_v38  ;;  %v1361_v41 = vmax.f32 %v1244_v39, 0.0 }
 0x184   :  { %v1016_v42 = vpop.f32.mrb[56].mxu1 }
 0x185   :  { %1607 = vst.msk [vmem:[%s2840_s3 + $0x68] sm:$0xf] %vm1580_vm0, %v1842_v40  ;;  %v1843_v43 = vpack.c.bf16 %v1361_v41, %v1361_v41  ;;  %v1017_v44 = vadd.f32 %v2590_v7, %v1016_v42  ;;  %v1248_v45 = vpop.f32.mrb[56].mxu0  ;;  %v1018_v46 = vpop.f32.mrb[57].mxu1 }
 0x186   :  { %v1250_v47 = vpop.f32.mrb[57].mxu0  ;;  %v1019_v48 = vpop.f32.mrb[58].mxu1 }
 0x187   :  { %1608 = vst.msk [vmem:[%s2840_s3 + $0x6c] sm:$0xf] %vm1580_vm0, %v1843_v43  ;;  %v1249_v49 = vadd.f32 %v1248_v45, %v1017_v44  ;;  %v1020_v50 = vadd.f32 %v2590_v7, %v1019_v48  ;;  %v1251_v51 = vpop.f32.mrb[58].mxu0  ;;  %v1021_v52 = vpop.f32.mrb[59].mxu1 }
 0x188   :  { %v1253_v53 = vpop.f32.mrb[59].mxu0 }
 0x189   :  { %v1362_v54 = vmax.f32 %v1249_v49, 0.0  ;;  %v1252_v55 = vadd.f32 %v1251_v51, %v1020_v50 }
 0x18b   :  { %v1844_v56 = vpack.c.bf16 %v1362_v54, %v1362_v54  ;;  %v1363_v57 = vmax.f32 %v1252_v55, 0.0 }
 0x18c   :  { %v1024_v58 = vpop.f32.mrb[60].mxu1 }
 0x18d   :  { %1609 = vst.msk [vmem:[%s2840_s3 + $0x70] sm:$0xf] %vm1580_vm0, %v1844_v56  ;;  %v1845_v59 = vpack.c.bf16 %v1363_v57, %v1363_v57  ;;  %v1025_v60 = vadd.f32 %v2590_v7, %v1024_v58  ;;  %v1256_v61 = vpop.f32.mrb[60].mxu0  ;;  %v1026_v62 = vpop.f32.mrb[61].mxu1 }
 0x18e   :  { %v1258_v63 = vpop.f32.mrb[61].mxu0  ;;  %v1027_v0 = vpop.f32.mrb[62].mxu1 }
 0x18f   :  { %1610 = vst.msk [vmem:[%s2840_s3 + $0x74] sm:$0xf] %vm1580_vm0, %v1845_v59  ;;  %v1257_v1 = vadd.f32 %v1256_v61, %v1025_v60  ;;  %v1028_v2 = vadd.f32 %v2590_v7, %v1027_v0  ;;  %v1259_v3 = vpop.f32.mrb[62].mxu0  ;;  %v1029_v4 = vpop.f32.mrb[63].mxu1 }
 0x190   :  { %v1261_v5 = vpop.f32.mrb[63].mxu0 }
 0x191   :  { %v1364_v6 = vmax.f32 %v1257_v1, 0.0  ;;  %v1260_v8 = vadd.f32 %v1259_v3, %v1028_v2 }
 0x193   :  { %v1846_v9 = vpack.c.bf16 %v1364_v6, %v1364_v6  ;;  %v1365_v10 = vmax.f32 %v1260_v8, 0.0 }
 0x194   :  { %v1032_v11 = vpop.f32.mrb[64].mxu1 }
 0x195   :  { %1611 = vst.msk [vmem:[%s2840_s3 + $0x78] sm:$0xf] %vm1580_vm0, %v1846_v9  ;;  %v1847_v12 = vpack.c.bf16 %v1365_v10, %v1365_v10  ;;  %v1033_v13 = vadd.f32 %v2590_v7, %v1032_v11  ;;  %v1264_v14 = vpop.f32.mrb[64].mxu0  ;;  %v1034_v15 = vpop.f32.mrb[65].mxu1 }
 0x196   :  { %v1266_v16 = vpop.f32.mrb[65].mxu0  ;;  %v1035_v17 = vpop.f32.mrb[66].mxu1 }
 0x197   :  { %1612 = vst.msk [vmem:[%s2840_s3 + $0x7c] sm:$0xf] %vm1580_vm0, %v1847_v12  ;;  %v1265_v18 = vadd.f32 %v1264_v14, %v1033_v13  ;;  %v1036_v19 = vadd.f32 %v2590_v7, %v1035_v17  ;;  %v1267_v20 = vpop.f32.mrb[66].mxu0  ;;  %v1037_v21 = vpop.f32.mrb[67].mxu1 }
 0x198   :  { %v1269_v22 = vpop.f32.mrb[67].mxu0 }
 0x199   :  { %v1366_v23 = vmax.f32 %v1265_v18, 0.0  ;;  %v1268_v24 = vadd.f32 %v1267_v20, %v1036_v19 }
 0x19b   :  { %v1848_v25 = vpack.c.bf16 %v1366_v23, %v1366_v23  ;;  %v1367_v26 = vmax.f32 %v1268_v24, 0.0 }
 0x19c   :  { %v1040_v27 = vpop.f32.mrb[68].mxu1 }
 0x19d   :  { %1613 = vst.msk [vmem:[%s2840_s3 + $0x80] sm:$0xf] %vm1580_vm0, %v1848_v25  ;;  %v1849_v28 = vpack.c.bf16 %v1367_v26, %v1367_v26  ;;  %v1041_v29 = vadd.f32 %v2590_v7, %v1040_v27  ;;  %v1272_v30 = vpop.f32.mrb[68].mxu0  ;;  %v1042_v31 = vpop.f32.mrb[69].mxu1 }
 0x19e   :  { %v1274_v32 = vpop.f32.mrb[69].mxu0  ;;  %v1043_v33 = vpop.f32.mrb[70].mxu1 }
 0x19f   :  { %1614 = vst.msk [vmem:[%s2840_s3 + $0x84] sm:$0xf] %vm1580_vm0, %v1849_v28  ;;  %v1273_v34 = vadd.f32 %v1272_v30, %v1041_v29  ;;  %v1044_v35 = vadd.f32 %v2590_v7, %v1043_v33  ;;  %v1275_v36 = vpop.f32.mrb[70].mxu0  ;;  %v1045_v37 = vpop.f32.mrb[71].mxu1 }
 0x1a0   :  { %v1277_v38 = vpop.f32.mrb[71].mxu0 }
 0x1a1   :  { %v1368_v39 = vmax.f32 %v1273_v34, 0.0  ;;  %v1276_v40 = vadd.f32 %v1275_v36, %v1044_v35 }
 0x1a3   :  { %v1850_v41 = vpack.c.bf16 %v1368_v39, %v1368_v39  ;;  %v1369_v42 = vmax.f32 %v1276_v40, 0.0 }
 0x1a4   :  { %v1048_v43 = vpop.f32.mrb[72].mxu1 }
 0x1a5   :  { %1615 = vst.msk [vmem:[%s2840_s3 + $0x88] sm:$0xf] %vm1580_vm0, %v1850_v41  ;;  %v1851_v44 = vpack.c.bf16 %v1369_v42, %v1369_v42  ;;  %v1049_v45 = vadd.f32 %v2590_v7, %v1048_v43  ;;  %v1280_v46 = vpop.f32.mrb[72].mxu0  ;;  %v1050_v47 = vpop.f32.mrb[73].mxu1 }
 0x1a6   :  { %v1282_v48 = vpop.f32.mrb[73].mxu0  ;;  %v1051_v49 = vpop.f32.mrb[74].mxu1 }
 0x1a7   :  { %1616 = vst.msk [vmem:[%s2840_s3 + $0x8c] sm:$0xf] %vm1580_vm0, %v1851_v44  ;;  %v1281_v50 = vadd.f32 %v1280_v46, %v1049_v45  ;;  %v1052_v51 = vadd.f32 %v2590_v7, %v1051_v49  ;;  %v1283_v52 = vpop.f32.mrb[74].mxu0  ;;  %v1053_v53 = vpop.f32.mrb[75].mxu1 }
 0x1a8   :  { %v1285_v54 = vpop.f32.mrb[75].mxu0 }
 0x1a9   :  { %v1370_v55 = vmax.f32 %v1281_v50, 0.0  ;;  %v1284_v56 = vadd.f32 %v1283_v52, %v1052_v51 }
 0x1ab   :  { %v1852_v57 = vpack.c.bf16 %v1370_v55, %v1370_v55  ;;  %v1371_v58 = vmax.f32 %v1284_v56, 0.0 }
 0x1ac   :  { %v1056_v59 = vpop.f32.mrb[76].mxu1 }
 0x1ad   :  { %1617 = vst.msk [vmem:[%s2840_s3 + $0x90] sm:$0xf] %vm1580_vm0, %v1852_v57  ;;  %v1853_v60 = vpack.c.bf16 %v1371_v58, %v1371_v58  ;;  %v1057_v61 = vadd.f32 %v2590_v7, %v1056_v59  ;;  %v1288_v62 = vpop.f32.mrb[76].mxu0  ;;  %v1058_v63 = vpop.f32.mrb[77].mxu1 }
 0x1ae   :  { %v1290_v0 = vpop.f32.mrb[77].mxu0  ;;  %v1059_v1 = vpop.f32.mrb[78].mxu1 }
 0x1af   :  { %1618 = vst.msk [vmem:[%s2840_s3 + $0x94] sm:$0xf] %vm1580_vm0, %v1853_v60  ;;  %v1289_v2 = vadd.f32 %v1288_v62, %v1057_v61  ;;  %v1060_v3 = vadd.f32 %v2590_v7, %v1059_v1  ;;  %v1291_v4 = vpop.f32.mrb[78].mxu0  ;;  %v1061_v5 = vpop.f32.mrb[79].mxu1 }
 0x1b0   :  { %v1293_v6 = vpop.f32.mrb[79].mxu0 }
 0x1b1   :  { %v1372_v8 = vmax.f32 %v1289_v2, 0.0  ;;  %v1292_v9 = vadd.f32 %v1291_v4, %v1060_v3 }
 0x1b3   :  { %v1854_v10 = vpack.c.bf16 %v1372_v8, %v1372_v8  ;;  %v1373_v11 = vmax.f32 %v1292_v9, 0.0 }
 0x1b4   :  { %v1064_v12 = vpop.f32.mrb[80].mxu1 }
 0x1b5   :  { %1619 = vst.msk [vmem:[%s2840_s3 + $0x98] sm:$0xf] %vm1580_vm0, %v1854_v10  ;;  %v1855_v13 = vpack.c.bf16 %v1373_v11, %v1373_v11  ;;  %v1065_v14 = vadd.f32 %v2590_v7, %v1064_v12  ;;  %v1296_v15 = vpop.f32.mrb[80].mxu0  ;;  %v1066_v16 = vpop.f32.mrb[81].mxu1 }
 0x1b6   :  { %v1298_v17 = vpop.f32.mrb[81].mxu0  ;;  %v1067_v18 = vpop.f32.mrb[82].mxu1 }
 0x1b7   :  { %1620 = vst.msk [vmem:[%s2840_s3 + $0x9c] sm:$0xf] %vm1580_vm0, %v1855_v13  ;;  %v1297_v19 = vadd.f32 %v1296_v15, %v1065_v14  ;;  %v1068_v20 = vadd.f32 %v2590_v7, %v1067_v18  ;;  %v1299_v21 = vpop.f32.mrb[82].mxu0  ;;  %v1069_v22 = vpop.f32.mrb[83].mxu1 }
 0x1b8   :  { %v1301_v23 = vpop.f32.mrb[83].mxu0 }
 0x1b9   :  { %v1374_v24 = vmax.f32 %v1297_v19, 0.0  ;;  %v1300_v25 = vadd.f32 %v1299_v21, %v1068_v20 }
 0x1bb   :  { %v1856_v26 = vpack.c.bf16 %v1374_v24, %v1374_v24  ;;  %v1375_v27 = vmax.f32 %v1300_v25, 0.0 }
 0x1bc   :  { %v1072_v28 = vpop.f32.mrb[84].mxu1 }
 0x1bd   :  { %1621 = vst.msk [vmem:[%s2840_s3 + $0xa0] sm:$0xf] %vm1580_vm0, %v1856_v26  ;;  %v1857_v29 = vpack.c.bf16 %v1375_v27, %v1375_v27  ;;  %v1073_v30 = vadd.f32 %v2590_v7, %v1072_v28  ;;  %v1304_v31 = vpop.f32.mrb[84].mxu0  ;;  %v1074_v32 = vpop.f32.mrb[85].mxu1 }
 0x1be   :  { %v1306_v33 = vpop.f32.mrb[85].mxu0  ;;  %v1075_v34 = vpop.f32.mrb[86].mxu1 }
 0x1bf   :  { %1622 = vst.msk [vmem:[%s2840_s3 + $0xa4] sm:$0xf] %vm1580_vm0, %v1857_v29  ;;  %v1305_v35 = vadd.f32 %v1304_v31, %v1073_v30  ;;  %v1076_v36 = vadd.f32 %v2590_v7, %v1075_v34  ;;  %v1307_v37 = vpop.f32.mrb[86].mxu0  ;;  %v1077_v38 = vpop.f32.mrb[87].mxu1 }
 0x1c0   :  { %v1309_v39 = vpop.f32.mrb[87].mxu0 }
 0x1c1   :  { %v1376_v40 = vmax.f32 %v1305_v35, 0.0  ;;  %v1308_v41 = vadd.f32 %v1307_v37, %v1076_v36 }
 0x1c3   :  { %v1858_v42 = vpack.c.bf16 %v1376_v40, %v1376_v40  ;;  %v1377_v43 = vmax.f32 %v1308_v41, 0.0 }
 0x1c4   :  { %v1080_v44 = vpop.f32.mrb[88].mxu1 }
 0x1c5   :  { %1623 = vst.msk [vmem:[%s2840_s3 + $0xa8] sm:$0xf] %vm1580_vm0, %v1858_v42  ;;  %v1859_v45 = vpack.c.bf16 %v1377_v43, %v1377_v43  ;;  %v1081_v46 = vadd.f32 %v2590_v7, %v1080_v44  ;;  %v1312_v47 = vpop.f32.mrb[88].mxu0  ;;  %v1082_v48 = vpop.f32.mrb[89].mxu1 }
 0x1c6   :  { %v1314_v49 = vpop.f32.mrb[89].mxu0  ;;  %v1083_v50 = vpop.f32.mrb[90].mxu1 }
 0x1c7   :  { %1624 = vst.msk [vmem:[%s2840_s3 + $0xac] sm:$0xf] %vm1580_vm0, %v1859_v45  ;;  %v1313_v51 = vadd.f32 %v1312_v47, %v1081_v46  ;;  %v1084_v52 = vadd.f32 %v2590_v7, %v1083_v50  ;;  %v1315_v53 = vpop.f32.mrb[90].mxu0  ;;  %v1085_v54 = vpop.f32.mrb[91].mxu1 }
 0x1c8   :  { %v1317_v55 = vpop.f32.mrb[91].mxu0 }
 0x1c9   :  { %v1378_v56 = vmax.f32 %v1313_v51, 0.0  ;;  %v1316_v57 = vadd.f32 %v1315_v53, %v1084_v52 }
 0x1cb   :  { %v1860_v58 = vpack.c.bf16 %v1378_v56, %v1378_v56  ;;  %v1379_v59 = vmax.f32 %v1316_v57, 0.0 }
 0x1cc   :  { %v1088_v60 = vpop.f32.mrb[92].mxu1 }
 0x1cd   :  { %1625 = vst.msk [vmem:[%s2840_s3 + $0xb0] sm:$0xf] %vm1580_vm0, %v1860_v58  ;;  %v1861_v61 = vpack.c.bf16 %v1379_v59, %v1379_v59  ;;  %v1089_v62 = vadd.f32 %v2590_v7, %v1088_v60  ;;  %v1320_v63 = vpop.f32.mrb[92].mxu0  ;;  %v1090_v0 = vpop.f32.mrb[93].mxu1 }
 0x1ce   :  { %v1322_v1 = vpop.f32.mrb[93].mxu0  ;;  %v1091_v2 = vpop.f32.mrb[94].mxu1 }
 0x1cf   :  { %1626 = vst.msk [vmem:[%s2840_s3 + $0xb4] sm:$0xf] %vm1580_vm0, %v1861_v61  ;;  %v1321_v3 = vadd.f32 %v1320_v63, %v1089_v62  ;;  %v1092_v4 = vadd.f32 %v2590_v7, %v1091_v2  ;;  %v1323_v5 = vpop.f32.mrb[94].mxu0  ;;  %v1093_v6 = vpop.f32.mrb[95].mxu1 }
 0x1d0   :  { %v1325_v8 = vpop.f32.mrb[95].mxu0 }
 0x1d1   :  { %v1380_v9 = vmax.f32 %v1321_v3, 0.0  ;;  %v1324_v10 = vadd.f32 %v1323_v5, %v1092_v4 }
 0x1d3   :  { %v1862_v11 = vpack.c.bf16 %v1380_v9, %v1380_v9  ;;  %v1381_v12 = vmax.f32 %v1324_v10, 0.0 }
 0x1d4   :  { %v1096_v13 = vpop.f32.mrb[96].mxu1 }
 0x1d5   :  { %1627 = vst.msk [vmem:[%s2840_s3 + $0xb8] sm:$0xf] %vm1580_vm0, %v1862_v11  ;;  %v1863_v14 = vpack.c.bf16 %v1381_v12, %v1381_v12  ;;  %v1097_v15 = vadd.f32 %v2590_v7, %v1096_v13  ;;  %v1328_v16 = vpop.f32.mrb[96].mxu0  ;;  %v1098_v17 = vpop.f32.mrb[97].mxu1 }
 0x1d6   :  { %v1330_v18 = vpop.f32.mrb[97].mxu0  ;;  %v1099_v19 = vpop.f32.mrb[98].mxu1 }
 0x1d7   :  { %1628 = vst.msk [vmem:[%s2840_s3 + $0xbc] sm:$0xf] %vm1580_vm0, %v1863_v14  ;;  %v1329_v20 = vadd.f32 %v1328_v16, %v1097_v15  ;;  %v1331_v21 = vpop.f32.mrb[98].mxu0  ;;  %v1100_v22 = vpop.f32.mrb[99].mxu1 }
 0x1d8   :  { %v1332_v23 = vpop.f32.mrb[99].mxu0 }
 0x1d9   :  { %v1382_v24 = vmax.f32 %v1329_v20, 0.0 }
 0x1db   :  { %v1864_v25 = vpack.c.bf16 %v1382_v24, %v1382_v24 }
 0x1dd   :  { %1629 = vst.msk [vmem:[%s2840_s3 + $0xc0] sm:$0xf] %vm1580_vm0, %v1864_v25 }

// kernel: _lambda_.10
= control target key start
LH: loop header
LB: loop body
LE: loop exit
PB: predicated region body
PF: predicated region fallthrough
CT: control target
= control target key end

     0   :  { %vm1092_vm0 = vcmask 519168   ;;  %s1882_s1 = inlined_call_operand.vmem [shape: bf16[1024,64], index: 1, kind: input, shape index: {}]   ;;  %s1883_s0 = inlined_call_operand.vmem [shape: bf16[72,1024], index: 0, kind: input, shape index: {}]   ;;  %s1884_s2 = inlined_call_operand.vmem [shape: f32[1,64], index: 2, kind: input, shape index: {}]   ;;  %s1885_s3 = inlined_call_operand.vmem [shape: bf16[72,64], index: 3, kind: output, shape index: {}]  }
   0x1   :  { %v1413_v0 = vld [vmem:[%s1882_s1 + $0x40] sm:$0xff]   ;;  %v1417_v4 = vld [vmem:[%s1882_s1 + $0x48] sm:$0xff]   ;;  %v1421_v8 = vld [vmem:[%s1882_s1 + $0x50] sm:$0xff]  }
   0x2   :  { %v1414_v1 = vld [vmem:[%s1882_s1 + $0xc0] sm:$0xff]   ;;  %1229 = vmatprep.subr.bf16.mxu0 %v1413_v0  ;;  %v1418_v5 = vld [vmem:[%s1882_s1 + $0xc8] sm:$0xff]   ;;  %v1422_v9 = vld [vmem:[%s1882_s1 + $0xd0] sm:$0xff]  }
   0x3   :  { %v1415_v2 = vld [vmem:[%s1882_s1] sm:$0xff]   ;;  %1275 = vmatprep.subr.bf16.mxu1 %v1414_v1  ;;  %v1419_v6 = vld [vmem:[%s1882_s1 + $0x8] sm:$0xff]   ;;  %v1423_v10 = vld [vmem:[%s1882_s1 + $0x10] sm:$0xff]  }
   0x4   :  { %v1416_v3 = vld [vmem:[%s1882_s1 + $0x80] sm:$0xff]   ;;  %1230 = vmatpush3.bf16.msra.mxu0 %v1415_v2  ;;  %v1420_v7 = vld [vmem:[%s1882_s1 + $0x88] sm:$0xff]   ;;  %v1424_v11 = vld [vmem:[%s1882_s1 + $0x90] sm:$0xff]  }
   0x5   :  { %1276 = vmatpush3.bf16.msra.mxu1 %v1416_v3  ;;  %1231 = vmatprep.subr.bf16.mxu0 %v1417_v4  ;;  %v1425_v12 = vld [vmem:[%s1882_s1 + $0x58] sm:$0xff]   ;;  %v1429_v16 = vld [vmem:[%s1882_s1 + $0x60] sm:$0xff]   ;;  %v1433_v20 = vld [vmem:[%s1882_s1 + $0x68] sm:$0xff]  }
   0x6   :  { %1277 = vmatprep.subr.bf16.mxu1 %v1418_v5  ;;  %v1426_v13 = vld [vmem:[%s1882_s1 + $0xd8] sm:$0xff]   ;;  %v1430_v17 = vld [vmem:[%s1882_s1 + $0xe0] sm:$0xff]   ;;  %v1434_v21 = vld [vmem:[%s1882_s1 + $0xe8] sm:$0xff]  }
   0x7   :  { %v1427_v14 = vld [vmem:[%s1882_s1 + $0x18] sm:$0xff]   ;;  %v1431_v18 = vld [vmem:[%s1882_s1 + $0x20] sm:$0xff]   ;;  %v1435_v22 = vld [vmem:[%s1882_s1 + $0x28] sm:$0xff]  }
   0x8   :  { %1232 = vmatpush3.bf16.msra.mxu0 %v1419_v6  ;;  %v1428_v15 = vld [vmem:[%s1882_s1 + $0x98] sm:$0xff]   ;;  %v1432_v19 = vld [vmem:[%s1882_s1 + $0xa0] sm:$0xff]   ;;  %v1436_v23 = vld [vmem:[%s1882_s1 + $0xa8] sm:$0xff]  }
   0x9   :  { %1278 = vmatpush3.bf16.msra.mxu1 %v1420_v7  ;;  %1233 = vmatprep.subr.bf16.mxu0 %v1421_v8  ;;  %v1437_v24 = vld [vmem:[%s1882_s1 + $0x70] sm:$0xff]   ;;  %v1441_v28 = vld [vmem:[%s1882_s1 + $0x78] sm:$0xff]   ;;  %v15_v32 = vld [vmem:[%s1883_s0] sm:$0xff] }
   0xa   :  { %1279 = vmatprep.subr.bf16.mxu1 %v1422_v9  ;;  %v1438_v25 = vld [vmem:[%s1882_s1 + $0xf0] sm:$0xff]   ;;  %v1442_v29 = vld [vmem:[%s1882_s1 + $0xf8] sm:$0xff]   ;;  %v19_v33 = vld [vmem:[%s1883_s0 + $0x20] sm:$0xff] }
   0xb   :  { %v1439_v26 = vld [vmem:[%s1882_s1 + $0x30] sm:$0xff]   ;;  %v1443_v30 = vld [vmem:[%s1882_s1 + $0x38] sm:$0xff]   ;;  %v16_v34 = vld [vmem:[%s1883_s0 + $0x8] sm:$0xff]  ;;  %v1107_v35 = vcombine.low %v15_v32, %v19_v33  ;;  %v1108_v36 = vcombine.high %v15_v32, %v19_v33 }
   0xc   :  { %1234 = vmatpush3.bf16.msra.mxu0 %v1423_v10  ;;  %v1440_v27 = vld [vmem:[%s1882_s1 + $0xb0] sm:$0xff]   ;;  %v1444_v31 = vld [vmem:[%s1882_s1 + $0xb8] sm:$0xff]   ;;  %v20_v37 = vld [vmem:[%s1883_s0 + $0x28] sm:$0xff] }
   0xd   :  { %1280 = vmatpush3.bf16.msra.mxu1 %v1424_v11  ;;  %1235 = vmatprep.subr.bf16.mxu0 %v1425_v12  ;;  %v1109_v38 = vcombine.low %v16_v34, %v20_v37  ;;  %v1110_v39 = vcombine.high %v16_v34, %v20_v37  ;;  %v1445_v40 = vld [vmem:[%s1882_s1 + $0x140] sm:$0xff]   ;;  %v1449_v44 = vld [vmem:[%s1882_s1 + $0x148] sm:$0xff]   ;;  %v1453_v56 = vld [vmem:[%s1882_s1 + $0x150] sm:$0xff]  }
   0xe   :  { %1281 = vmatprep.subr.bf16.mxu1 %v1426_v13  ;;  %790 = vmatprep.mubr.bf16.mxu0 %v1108_v36  ;;  %v1446_v41 = vld [vmem:[%s1882_s1 + $0x100] sm:$0xff]   ;;  %v1450_v45 = vld [vmem:[%s1882_s1 + $0x108] sm:$0xff]   ;;  %v1454_v57 = vld [vmem:[%s1882_s1 + $0x110] sm:$0xff]  }
   0xf   :  { %862 = vmatprep.mubr.bf16.mxu1 %v1110_v39  ;;  %v1447_v42 = vld [vmem:[%s1882_s1 + $0x1c0] sm:$0xff]   ;;  %v24_v49 = vld [vmem:[%s1883_s0 + $0x48] sm:$0xff]  ;;  %v1455_v58 = vld [vmem:[%s1882_s1 + $0x1d0] sm:$0xff]  }
  0x10   :  { %1236 = vmatpush3.bf16.msra.mxu0 %v1427_v14  ;;  %v1448_v43 = vld [vmem:[%s1882_s1 + $0x180] sm:$0xff]   ;;  %v28_v50 = vld [vmem:[%s1883_s0 + $0x68] sm:$0xff]  ;;  %v1456_v59 = vld [vmem:[%s1882_s1 + $0x190] sm:$0xff]  }
  0x11   :  { %1282 = vmatpush3.bf16.msra.mxu1 %v1428_v15  ;;  %1237 = vmatprep.subr.bf16.mxu0 %v1429_v16  ;;  %v23_v46 = vld [vmem:[%s1883_s0 + $0x40] sm:$0xff]  ;;  %v1118_v52 = vcombine.high %v24_v49, %v28_v50  ;;  %v1451_v53 = vld [vmem:[%s1882_s1 + $0x1c8] sm:$0xff]   ;;  %v1117_v54 = vcombine.low %v24_v49, %v28_v50  ;;  %v1457_v2 = vld [vmem:[%s1882_s1 + $0x158] sm:$0xff]  }
  0x12   :  { %1283 = vmatprep.subr.bf16.mxu1 %v1430_v17  ;;  %v27_v47 = vld [vmem:[%s1883_s0 + $0x60] sm:$0xff]  ;;  %v1452_v55 = vld [vmem:[%s1882_s1 + $0x188] sm:$0xff]   ;;  %v1458_v5 = vld [vmem:[%s1882_s1 + $0x118] sm:$0xff]  }
  0x13   :  { %v1116_v48 = vcombine.high %v23_v46, %v27_v47  ;;  %v1115_v51 = vcombine.low %v23_v46, %v27_v47  ;;  %v31_v60 = vld [vmem:[%s1883_s0 + $0x80] sm:$0xff]  ;;  %v32_v62 = vld [vmem:[%s1883_s0 + $0x88] sm:$0xff]  ;;  %v1459_v6 = vld [vmem:[%s1882_s1 + $0x1d8] sm:$0xff]  }
  0x14   :  { %1238 = vmatpush3.bf16.msra.mxu0 %v1431_v18  ;;  %v35_v61 = vld [vmem:[%s1883_s0 + $0xa0] sm:$0xff]  ;;  %v36_v63 = vld [vmem:[%s1883_s0 + $0xa8] sm:$0xff]  ;;  %v1460_v7 = vld [vmem:[%s1882_s1 + $0x198] sm:$0xff]  }
  0x15   :  { %1284 = vmatpush3.bf16.msra.mxu1 %v1432_v19  ;;  %1239 = vmatprep.subr.bf16.mxu0 %v1433_v20  ;;  %v1124_v0 = vcombine.high %v31_v60, %v35_v61  ;;  %v1126_v1 = vcombine.high %v32_v62, %v36_v63  ;;  %v1123_v3 = vcombine.low %v31_v60, %v35_v61  ;;  %v1461_v8 = vld [vmem:[%s1882_s1 + $0x160] sm:$0xff]   ;;  %v40_v13 = vld [vmem:[%s1883_s0 + $0xc8] sm:$0xff]  ;;  %v1476_v33 = vld [vmem:[%s1882_s1 + $0x1b0] sm:$0xff]  }
  0x16   :  { %1285 = vmatprep.subr.bf16.mxu1 %v1434_v21  ;;  %v1125_v4 = vcombine.low %v32_v62, %v36_v63  ;;  %v1462_v9 = vld [vmem:[%s1882_s1 + $0x120] sm:$0xff]   ;;  %v44_v15 = vld [vmem:[%s1883_s0 + $0xe8] sm:$0xff]  ;;  %v1477_v34 = vld [vmem:[%s1882_s1 + $0x178] sm:$0xff]  }
  0x17   :  { %v1463_v10 = vld [vmem:[%s1882_s1 + $0x1e0] sm:$0xff]   ;;  %v1134_v17 = vcombine.high %v40_v13, %v44_v15  ;;  %v1133_v19 = vcombine.low %v40_v13, %v44_v15  ;;  %v1465_v20 = vld [vmem:[%s1882_s1 + $0x168] sm:$0xff]   ;;  %v1479_v36 = vld [vmem:[%s1882_s1 + $0x1f8] sm:$0xff]  }
  0x18   :  { %1240 = vmatpush3.bf16.msra.mxu0 %v1435_v22  ;;  %v39_v11 = vld [vmem:[%s1883_s0 + $0xc0] sm:$0xff]  ;;  %v1466_v21 = vld [vmem:[%s1882_s1 + $0x128] sm:$0xff]   ;;  %v1480_v37 = vld [vmem:[%s1882_s1 + $0x1b8] sm:$0xff]  }
  0x19   :  { %1286 = vmatpush3.bf16.msra.mxu1 %v1436_v23  ;;  %1241 = vmatprep.subr.bf16.mxu0 %v1437_v24  ;;  %v43_v12 = vld [vmem:[%s1883_s0 + $0xe0] sm:$0xff]  ;;  %v1467_v22 = vld [vmem:[%s1882_s1 + $0x1e8] sm:$0xff]   ;;  %v1469_v24 = vld [vmem:[%s1882_s1 + $0x170] sm:$0xff]  }
  0x1a   :  { %1287 = vmatprep.subr.bf16.mxu1 %v1438_v25  ;;  %v1132_v14 = vcombine.high %v39_v11, %v43_v12  ;;  %v1131_v16 = vcombine.low %v39_v11, %v43_v12  ;;  %v1464_v18 = vld [vmem:[%s1882_s1 + $0x1a0] sm:$0xff]   ;;  %v1468_v23 = vld [vmem:[%s1882_s1 + $0x1a8] sm:$0xff]   ;;  %v21_v39 = vld [vmem:[%s1883_s0 + $0x30] sm:$0xff] }
  0x1b   :  { %v47_v25 = vld [vmem:[%s1883_s0 + $0x100] sm:$0xff]  ;;  %v26_v47 = vld [vmem:[%s1883_s0 + $0x58] sm:$0xff]  ;;  %v41_v60 = vld [vmem:[%s1883_s0 + $0xd0] sm:$0xff] }
  0x1c   :  { %1242 = vmatpush3.bf16.msra.mxu0 %v1439_v26  ;;  %v48_v26 = vld [vmem:[%s1883_s0 + $0x108] sm:$0xff]  ;;  %v45_v61 = vld [vmem:[%s1883_s0 + $0xf0] sm:$0xff]  ;;  %v42_v62 = vld [vmem:[%s1883_s0 + $0xd8] sm:$0xff] }
  0x1d   :  { %1288 = vmatpush3.bf16.msra.mxu1 %v1440_v27  ;;  %1243 = vmatprep.subr.bf16.mxu0 %v1441_v28  ;;  %v1140_v27 = vcombine.high %v47_v25, %v47_v25  ;;  %v1142_v28 = vcombine.high %v48_v26, %v48_v26  ;;  %v1141_v32 = vcombine.low %v48_v26, %v48_v26  ;;  %v46_v63 = vld [vmem:[%s1883_s0 + $0xf8] sm:$0xff] }
  0x1e   :  { %1289 = vmatprep.subr.bf16.mxu1 %v1442_v29  ;;  %v1472_v29 = vld [vmem:[%s1882_s1 + $0x130] sm:$0xff]  }
  0x20   :  { %1244 = vmatpush3.bf16.msra.mxu0 %v1443_v30  ;;  %v1139_v30 = vcombine.low %v47_v25, %v47_v25 }
  0x21   :  { %1290 = vmatpush3.bf16.msra.mxu1 %v1444_v31  ;;  %1321 = vmatprep.subr.bf16.mxu0 %v1445_v40  ;;  %v1475_v31 = vld [vmem:[%s1882_s1 + $0x1f0] sm:$0xff]   ;;  %v18_v40 = vld [vmem:[%s1883_s0 + $0x18] sm:$0xff] }
  0x22   :  { %1367 = vmatprep.subr.bf16.mxu1 %v1447_v42  ;;  %v22_v42 = vld [vmem:[%s1883_s0 + $0x38] sm:$0xff] }
  0x23   :  { %791 = vmatmul.mubr.bf16.vlgmr.msra.gmra.mrb[0].mxu0 %v1107_v35  ;;  %v1478_v35 = vld [vmem:[%s1882_s1 + $0x138] sm:$0xff]   ;;  %v1114_v46 = vcombine.high %v18_v40, %v22_v42  ;;  %v1113_v49 = vcombine.low %v18_v40, %v22_v42 }
  0x24   :  { %863 = vmatmul.mubr.bf16.vlgmr.msra.gmra.mrb[0].mxu1 %v1109_v38  ;;  %1322 = vmatpush3.bf16.msra.mxu0 %v1446_v41  ;;  %v17_v38 = vld [vmem:[%s1883_s0 + $0x10] sm:$0xff] }
  0x25   :  { %1368 = vmatpush3.bf16.msra.mxu1 %v1448_v43  ;;  %1323 = vmatprep.subr.bf16.mxu0 %v1449_v44  ;;  %v1112_v41 = vcombine.high %v17_v38, %v21_v39  ;;  %v25_v43 = vld [vmem:[%s1883_s0 + $0x50] sm:$0xff] }
  0x26   :  { %798 = vmatprep.mubr.bf16.mxu0 %v1116_v48  ;;  %870 = vmatprep.mubr.bf16.mxu1 %v1118_v52  ;;  %v29_v44 = vld [vmem:[%s1883_s0 + $0x70] sm:$0xff]  ;;  %v30_v48 = vld [vmem:[%s1883_s0 + $0x78] sm:$0xff] }
  0x27   :  { %1369 = vmatprep.subr.bf16.mxu1 %v1451_v53  ;;  %v1120_v50 = vcombine.high %v25_v43, %v29_v44  ;;  %v33_v52 = vld [vmem:[%s1883_s0 + $0x90] sm:$0xff] }
  0x28   :  { %1324 = vmatpush3.bf16.msra.mxu0 %v1450_v45  ;;  %v1111_v45 = vcombine.low %v17_v38, %v21_v39  ;;  %v37_v53 = vld [vmem:[%s1883_s0 + $0xb0] sm:$0xff] }
  0x29   :  { %1370 = vmatpush3.bf16.msra.mxu1 %v1452_v55  ;;  %1325 = vmatprep.subr.bf16.mxu0 %v1453_v56  ;;  %v38_v55 = vld [vmem:[%s1883_s0 + $0xb8] sm:$0xff]  ;;  %v1119_v56 = vcombine.low %v25_v43, %v29_v44 }
  0x2a   :  { %1371 = vmatprep.subr.bf16.mxu1 %v1455_v58  ;;  %v1128_v58 = vcombine.high %v33_v52, %v37_v53 }
  0x2b   :  { %799 = vmatmul.mubr.bf16.gmra.mrb[4].mxu0 %v1115_v51  ;;  %v1122_v51 = vcombine.high %v26_v47, %v30_v48 }
  0x2c   :  { %871 = vmatmul.mubr.bf16.gmra.mrb[4].mxu1 %v1117_v54  ;;  %1326 = vmatpush3.bf16.msra.mxu0 %v1454_v57  ;;  %v34_v54 = vld [vmem:[%s1883_s0 + $0x98] sm:$0xff]  ;;  %v1121_v57 = vcombine.low %v26_v47, %v30_v48 }
  0x2d   :  { %1372 = vmatpush3.bf16.msra.mxu1 %v1456_v59  ;;  %806 = vmatprep.mubr.bf16.mxu0 %v1124_v0  ;;  %v1130_v59 = vcombine.high %v34_v54, %v38_v55  ;;  %v1127_v0 = vcombine.low %v33_v52, %v37_v53 }
  0x2e   :  { %878 = vmatprep.mubr.bf16.mxu1 %v1126_v1  ;;  %1327 = vmatprep.subr.bf16.mxu0 %v1457_v2  ;;  %v1129_v1 = vcombine.low %v34_v54, %v38_v55  ;;  %v1136_v2 = vcombine.high %v41_v60, %v45_v61 }
  0x2f   :  { %1373 = vmatprep.subr.bf16.mxu1 %v1459_v6  ;;  %v1135_v6 = vcombine.low %v41_v60, %v45_v61 }
  0x30   :  { %1328 = vmatpush3.bf16.msra.mxu0 %v1458_v5  ;;  %v50_v5 = vld [vmem:[%s1883_s0 + $0x118] sm:$0xff] }
  0x31   :  { %1374 = vmatpush3.bf16.msra.mxu1 %v1460_v7  ;;  %1329 = vmatprep.subr.bf16.mxu0 %v1461_v8  ;;  %v1137_v7 = vcombine.low %v42_v62, %v46_v63  ;;  %v1145_v11 = vcombine.low %v50_v5, %v50_v5 }
  0x32   :  { %1375 = vmatprep.subr.bf16.mxu1 %v1463_v10 }
  0x33   :  { %807 = vmatmul.mubr.bf16.gmra.mrb[8].mxu0 %v1123_v3  ;;  %v1138_v3 = vcombine.high %v42_v62, %v46_v63 }
  0x34   :  { %879 = vmatmul.mubr.bf16.gmra.mrb[8].mxu1 %v1125_v4  ;;  %1330 = vmatpush3.bf16.msra.mxu0 %v1462_v9  ;;  %v49_v4 = vld [vmem:[%s1883_s0 + $0x110] sm:$0xff]  ;;  %v1146_v9 = vcombine.high %v50_v5, %v50_v5 }
  0x35   :  { %814 = vmatprep.mubr.bf16.mxu0 %v1132_v14  ;;  %886 = vmatprep.mubr.bf16.mxu1 %v1134_v17  ;;  %v1144_v8 = vcombine.high %v49_v4, %v49_v4  ;;  %v1143_v10 = vcombine.low %v49_v4, %v49_v4  ;;  %v1808_v14 = vld [vmem:[%s1884_s2] ss:$0 sm:$0xff] }
  0x36   :  { %1376 = vmatpush3.bf16.msra.mxu1 %v1464_v18  ;;  %1331 = vmatprep.subr.bf16.mxu0 %v1465_v20 }
  0x37   :  { %1377 = vmatprep.subr.bf16.mxu1 %v1467_v22 }
  0x38   :  { %1332 = vmatpush3.bf16.msra.mxu0 %v1466_v21 }
  0x39   :  { %1333 = vmatprep.subr.bf16.mxu0 %v1469_v24 }
  0x3a   :  { %1378 = vmatpush3.bf16.msra.mxu1 %v1468_v23 }
  0x3b   :  { %815 = vmatmul.mubr.bf16.gmra.mrb[12].mxu0 %v1131_v16  ;;  %1379 = vmatprep.subr.bf16.mxu1 %v1475_v31 }
  0x3c   :  { %887 = vmatmul.mubr.bf16.gmra.mrb[12].mxu1 %v1133_v19  ;;  %822 = vmatprep.mubr.bf16.mxu0 %v1140_v27 }
  0x3d   :  { %894 = vmatprep.mubr.bf16.mxu1 %v1142_v28  ;;  %1334 = vmatpush3.bf16.msra.mxu0 %v1472_v29 }
  0x3e   :  { %1380 = vmatpush3.bf16.msra.mxu1 %v1476_v33  ;;  %1335 = vmatprep.subr.bf16.mxu0 %v1477_v34 }
  0x3f   :  { %1381 = vmatprep.subr.bf16.mxu1 %v1479_v36 }
  0x41   :  { %1336 = vmatpush3.bf16.msra.mxu0 %v1478_v35 }
  0x42   :  { %1382 = vmatpush3.bf16.msra.mxu1 %v1480_v37 }
  0x43   :  { %823 = vmatmul.mubr.bf16.gmra.mrb[16].mxu0 %v1139_v30 }
  0x44   :  { %895 = vmatmul.mubr.bf16.gmra.mrb[16].mxu1 %v1141_v32  ;;  %934 = vmatprep.mubr.bf16.mxu0 %v1112_v41 }
  0x45   :  { %1006 = vmatprep.mubr.bf16.mxu1 %v1114_v46 }
  0x4b   :  { %935 = vmatmul.mubr.bf16.vlgmr.msra.gmra.mrb[20].mxu0 %v1111_v45 }
  0x4c   :  { %1007 = vmatmul.mubr.bf16.vlgmr.msra.gmra.mrb[20].mxu1 %v1113_v49  ;;  %942 = vmatprep.mubr.bf16.mxu0 %v1120_v50 }
  0x4d   :  { %1014 = vmatprep.mubr.bf16.mxu1 %v1122_v51 }
  0x53   :  { %943 = vmatmul.mubr.bf16.gmra.mrb[24].mxu0 %v1119_v56 }
  0x54   :  { %1015 = vmatmul.mubr.bf16.gmra.mrb[24].mxu1 %v1121_v57  ;;  %950 = vmatprep.mubr.bf16.mxu0 %v1128_v58 }
  0x55   :  { %1022 = vmatprep.mubr.bf16.mxu1 %v1130_v59 }
  0x5b   :  { %951 = vmatmul.mubr.bf16.gmra.mrb[28].mxu0 %v1127_v0 }
  0x5c   :  { %1023 = vmatmul.mubr.bf16.gmra.mrb[28].mxu1 %v1129_v1  ;;  %958 = vmatprep.mubr.bf16.mxu0 %v1136_v2 }
  0x5d   :  { %1030 = vmatprep.mubr.bf16.mxu1 %v1138_v3 }
  0x63   :  { %959 = vmatmul.mubr.bf16.gmra.mrb[32].mxu0 %v1135_v6 }
  0x64   :  { %1031 = vmatmul.mubr.bf16.gmra.mrb[32].mxu1 %v1137_v7  ;;  %966 = vmatprep.mubr.bf16.mxu0 %v1144_v8 }
  0x65   :  { %1038 = vmatprep.mubr.bf16.mxu1 %v1146_v9 }
  0x6b   :  { %967 = vmatmul.mubr.bf16.gmra.mrb[36].mxu0 %v1143_v10 }
  0x6c   :  { %1039 = vmatmul.mubr.bf16.gmra.mrb[36].mxu1 %v1145_v11 }
  0xf6   :  { %v1245_v12 = vpop.f32.mrb[0].mxu0 }
  0xf7   :  { %v1291_v13 = vpop.f32.mrb[0].mxu1  ;;  %v1246_v15 = vpop.f32.mrb[1].mxu0 }
  0xf8   :  { %v1247_v16 = vadd.f32 %v1246_v15, %v1245_v12  ;;  %v1292_v17 = vpop.f32.mrb[1].mxu1  ;;  %v1248_v18 = vpop.f32.mrb[2].mxu0 }
  0xf9   :  { %v1293_v19 = vadd.f32 %v1292_v17, %v1291_v13  ;;  %v1294_v20 = vpop.f32.mrb[2].mxu1  ;;  %v1249_v21 = vpop.f32.mrb[3].mxu0 }
  0xfa   :  { %v793_v22 = vadd.f32 %v1247_v16, %v1808_v14  ;;  %v1250_v23 = vadd.f32 %v1249_v21, %v1248_v18  ;;  %v1295_v24 = vpop.f32.mrb[3].mxu1 }
  0xfb   :  { %v1296_v25 = vadd.f32 %v1295_v24, %v1294_v20 }
  0xfc   :  { %v1811_v26 = vadd.f32 %v1293_v19, %v793_v22  ;;  %v796_v27 = vadd.f32 %v1250_v23, %v1808_v14 }
  0xfe   :  { %v1814_v28 = vadd.f32 %v1296_v25, %v796_v27  ;;  %v1251_v29 = vpop.f32.mrb[4].mxu0 }
  0xff   :  { %v1297_v30 = vpop.f32.mrb[4].mxu1  ;;  %v1252_v31 = vpop.f32.mrb[5].mxu0 }
 0x100   :  { %v1253_v32 = vadd.f32 %v1252_v31, %v1251_v29  ;;  %v1298_v33 = vpop.f32.mrb[5].mxu1  ;;  %v1254_v34 = vpop.f32.mrb[6].mxu0 }
 0x101   :  { %v1299_v35 = vadd.f32 %v1298_v33, %v1297_v30  ;;  %v1300_v36 = vpop.f32.mrb[6].mxu1  ;;  %v1255_v37 = vpop.f32.mrb[7].mxu0 }
 0x102   :  { %v801_v38 = vadd.f32 %v1253_v32, %v1808_v14  ;;  %v1256_v39 = vadd.f32 %v1255_v37, %v1254_v34  ;;  %v1301_v40 = vpop.f32.mrb[7].mxu1 }
 0x103   :  { %v1302_v41 = vadd.f32 %v1301_v40, %v1300_v36 }
 0x104   :  { %v1817_v42 = vadd.f32 %v1299_v35, %v801_v38  ;;  %v804_v43 = vadd.f32 %v1256_v39, %v1808_v14 }
 0x106   :  { %v1820_v44 = vadd.f32 %v1302_v41, %v804_v43  ;;  %v1257_v45 = vpop.f32.mrb[8].mxu0 }
 0x107   :  { %v1303_v46 = vpop.f32.mrb[8].mxu1  ;;  %v1258_v47 = vpop.f32.mrb[9].mxu0 }
 0x108   :  { %v1259_v48 = vadd.f32 %v1258_v47, %v1257_v45  ;;  %v1304_v49 = vpop.f32.mrb[9].mxu1  ;;  %v1260_v50 = vpop.f32.mrb[10].mxu0 }
 0x109   :  { %v1305_v51 = vadd.f32 %v1304_v49, %v1303_v46  ;;  %v1306_v52 = vpop.f32.mrb[10].mxu1  ;;  %v1261_v53 = vpop.f32.mrb[11].mxu0 }
 0x10a   :  { %v809_v54 = vadd.f32 %v1259_v48, %v1808_v14  ;;  %v1262_v55 = vadd.f32 %v1261_v53, %v1260_v50  ;;  %v1307_v56 = vpop.f32.mrb[11].mxu1 }
 0x10b   :  { %v1308_v57 = vadd.f32 %v1307_v56, %v1306_v52 }
 0x10c   :  { %v1823_v58 = vadd.f32 %v1305_v51, %v809_v54  ;;  %v812_v59 = vadd.f32 %v1262_v55, %v1808_v14 }
 0x10e   :  { %v1826_v60 = vadd.f32 %v1308_v57, %v812_v59  ;;  %v1263_v61 = vpop.f32.mrb[12].mxu0 }
 0x10f   :  { %v1309_v62 = vpop.f32.mrb[12].mxu1  ;;  %v1264_v63 = vpop.f32.mrb[13].mxu0 }
 0x110   :  { %v1265_v0 = vadd.f32 %v1264_v63, %v1263_v61  ;;  %v1310_v1 = vpop.f32.mrb[13].mxu1  ;;  %v1266_v2 = vpop.f32.mrb[14].mxu0 }
 0x111   :  { %v1311_v3 = vadd.f32 %v1310_v1, %v1309_v62  ;;  %v1312_v4 = vpop.f32.mrb[14].mxu1  ;;  %v1267_v5 = vpop.f32.mrb[15].mxu0 }
 0x112   :  { %v817_v6 = vadd.f32 %v1265_v0, %v1808_v14  ;;  %v1268_v7 = vadd.f32 %v1267_v5, %v1266_v2  ;;  %v1313_v8 = vpop.f32.mrb[15].mxu1 }
 0x113   :  { %v1314_v9 = vadd.f32 %v1313_v8, %v1312_v4 }
 0x114   :  { %v1829_v10 = vadd.f32 %v1311_v3, %v817_v6  ;;  %v820_v11 = vadd.f32 %v1268_v7, %v1808_v14 }
 0x116   :  { %v1832_v12 = vadd.f32 %v1314_v9, %v820_v11  ;;  %v1269_v13 = vpop.f32.mrb[16].mxu0 }
 0x117   :  { %v1315_v15 = vpop.f32.mrb[16].mxu1  ;;  %v1270_v16 = vpop.f32.mrb[17].mxu0 }
 0x118   :  { %v1271_v17 = vadd.f32 %v1270_v16, %v1269_v13  ;;  %v1316_v18 = vpop.f32.mrb[17].mxu1  ;;  %v1272_v19 = vpop.f32.mrb[18].mxu0 }
 0x119   :  { %v1317_v20 = vadd.f32 %v1316_v18, %v1315_v15  ;;  %v1318_v21 = vpop.f32.mrb[18].mxu1  ;;  %v1273_v22 = vpop.f32.mrb[19].mxu0 }
 0x11a   :  { %v825_v23 = vadd.f32 %v1271_v17, %v1808_v14  ;;  %v1319_v24 = vpop.f32.mrb[19].mxu1 }
 0x11c   :  { %v1835_v25 = vadd.f32 %v1317_v20, %v825_v23 }
 0x11e   :  { %v1337_v27 = vpop.f32.mrb[20].mxu0 }
 0x11f   :  { %v1383_v29 = vpop.f32.mrb[20].mxu1  ;;  %v1338_v30 = vpop.f32.mrb[21].mxu0 }
 0x120   :  { %v1339_v31 = vadd.f32 %v1338_v30, %v1337_v27  ;;  %v1384_v32 = vpop.f32.mrb[21].mxu1  ;;  %v1340_v33 = vpop.f32.mrb[22].mxu0 }
 0x121   :  { %v1385_v34 = vadd.f32 %v1384_v32, %v1383_v29  ;;  %v1386_v35 = vpop.f32.mrb[22].mxu1  ;;  %v1341_v36 = vpop.f32.mrb[23].mxu0 }
 0x122   :  { %v937_v37 = vadd.f32 %v1339_v31, %v1811_v26  ;;  %v1342_v38 = vadd.f32 %v1341_v36, %v1340_v33  ;;  %v1387_v39 = vpop.f32.mrb[23].mxu1 }
 0x123   :  { %v1388_v40 = vadd.f32 %v1387_v39, %v1386_v35 }
 0x124   :  { %v1009_v41 = vadd.f32 %v1385_v34, %v937_v37  ;;  %v940_v14 = vadd.f32 %v1342_v38, %v1814_v28 }
 0x126   :  { %v1046_v43 = vmax.f32 %v1009_v41, 0.0  ;;  %v1012_v45 = vadd.f32 %v1388_v40, %v940_v14  ;;  %v1343_v46 = vpop.f32.mrb[24].mxu0 }
 0x127   :  { %v1389_v47 = vpop.f32.mrb[24].mxu1  ;;  %v1344_v48 = vpop.f32.mrb[25].mxu0 }
 0x128   :  { %v1220_v49 = vpack.c.bf16 %v1046_v43, %v1046_v43  ;;  %v1047_v50 = vmax.f32 %v1012_v45, 0.0  ;;  %v1345_v51 = vadd.f32 %v1344_v48, %v1343_v46  ;;  %v1390_v52 = vpop.f32.mrb[25].mxu1  ;;  %v1346_v53 = vpop.f32.mrb[26].mxu0 }
 0x129   :  { %v1391_v54 = vadd.f32 %v1390_v52, %v1389_v47  ;;  %v1392_v55 = vpop.f32.mrb[26].mxu1  ;;  %v1347_v26 = vpop.f32.mrb[27].mxu0 }
 0x12a   :  { %1093 = vst.msk [vmem:[%s1885_s3] sm:$0xf] %vm1092_vm0, %v1220_v49  ;;  %v1221_v28 = vpack.c.bf16 %v1047_v50, %v1047_v50  ;;  %v945_v56 = vadd.f32 %v1345_v51, %v1817_v42  ;;  %v1348_v57 = vadd.f32 %v1347_v26, %v1346_v53  ;;  %v1393_v59 = vpop.f32.mrb[27].mxu1 }
 0x12b   :  { %v1394_v61 = vadd.f32 %v1393_v59, %v1392_v55 }
 0x12c   :  { %1094 = vst.msk [vmem:[%s1885_s3 + $0x4] sm:$0xf] %vm1092_vm0, %v1221_v28  ;;  %v1017_v62 = vadd.f32 %v1391_v54, %v945_v56  ;;  %v948_v63 = vadd.f32 %v1348_v57, %v1820_v44 }
 0x12e   :  { %v1048_v0 = vmax.f32 %v1017_v62, 0.0  ;;  %v1020_v1 = vadd.f32 %v1394_v61, %v948_v63  ;;  %v1349_v2 = vpop.f32.mrb[28].mxu0 }
 0x12f   :  { %v1395_v3 = vpop.f32.mrb[28].mxu1  ;;  %v1350_v4 = vpop.f32.mrb[29].mxu0 }
 0x130   :  { %v1222_v5 = vpack.c.bf16 %v1048_v0, %v1048_v0  ;;  %v1049_v6 = vmax.f32 %v1020_v1, 0.0  ;;  %v1351_v7 = vadd.f32 %v1350_v4, %v1349_v2  ;;  %v1396_v42 = vpop.f32.mrb[29].mxu1  ;;  %v1352_v8 = vpop.f32.mrb[30].mxu0 }
 0x131   :  { %v1397_v9 = vadd.f32 %v1396_v42, %v1395_v3  ;;  %v1398_v11 = vpop.f32.mrb[30].mxu1  ;;  %v1353_v13 = vpop.f32.mrb[31].mxu0 }
 0x132   :  { %1095 = vst.msk [vmem:[%s1885_s3 + $0x8] sm:$0xf] %vm1092_vm0, %v1222_v5  ;;  %v1223_v15 = vpack.c.bf16 %v1049_v6, %v1049_v6  ;;  %v953_v44 = vadd.f32 %v1351_v7, %v1823_v58  ;;  %v1354_v16 = vadd.f32 %v1353_v13, %v1352_v8  ;;  %v1399_v17 = vpop.f32.mrb[31].mxu1 }
 0x133   :  { %v1400_v18 = vadd.f32 %v1399_v17, %v1398_v11 }
 0x134   :  { %1096 = vst.msk [vmem:[%s1885_s3 + $0xc] sm:$0xf] %vm1092_vm0, %v1223_v15  ;;  %v1025_v19 = vadd.f32 %v1397_v9, %v953_v44  ;;  %v956_v20 = vadd.f32 %v1354_v16, %v1826_v60 }
 0x136   :  { %v1050_v21 = vmax.f32 %v1025_v19, 0.0  ;;  %v1028_v22 = vadd.f32 %v1400_v18, %v956_v20  ;;  %v1355_v23 = vpop.f32.mrb[32].mxu0 }
 0x137   :  { %v1401_v24 = vpop.f32.mrb[32].mxu1  ;;  %v1356_v27 = vpop.f32.mrb[33].mxu0 }
 0x138   :  { %v1224_v29 = vpack.c.bf16 %v1050_v21, %v1050_v21  ;;  %v1051_v30 = vmax.f32 %v1028_v22, 0.0  ;;  %v1357_v31 = vadd.f32 %v1356_v27, %v1355_v23  ;;  %v1402_v58 = vpop.f32.mrb[33].mxu1  ;;  %v1358_v32 = vpop.f32.mrb[34].mxu0 }
 0x139   :  { %v1403_v33 = vadd.f32 %v1402_v58, %v1401_v24  ;;  %v1404_v34 = vpop.f32.mrb[34].mxu1  ;;  %v1359_v35 = vpop.f32.mrb[35].mxu0 }
 0x13a   :  { %1097 = vst.msk [vmem:[%s1885_s3 + $0x10] sm:$0xf] %vm1092_vm0, %v1224_v29  ;;  %v1225_v36 = vpack.c.bf16 %v1051_v30, %v1051_v30  ;;  %v961_v60 = vadd.f32 %v1357_v31, %v1829_v10  ;;  %v1360_v37 = vadd.f32 %v1359_v35, %v1358_v32  ;;  %v1405_v38 = vpop.f32.mrb[35].mxu1 }
 0x13b   :  { %v1406_v39 = vadd.f32 %v1405_v38, %v1404_v34 }
 0x13c   :  { %1098 = vst.msk [vmem:[%s1885_s3 + $0x14] sm:$0xf] %vm1092_vm0, %v1225_v36  ;;  %v1033_v40 = vadd.f32 %v1403_v33, %v961_v60  ;;  %v964_v41 = vadd.f32 %v1360_v37, %v1832_v12 }
 0x13e   :  { %v1052_v14 = vmax.f32 %v1033_v40, 0.0  ;;  %v1036_v43 = vadd.f32 %v1406_v39, %v964_v41  ;;  %v1361_v45 = vpop.f32.mrb[36].mxu0 }
 0x13f   :  { %v1407_v46 = vpop.f32.mrb[36].mxu1  ;;  %v1362_v47 = vpop.f32.mrb[37].mxu0 }
 0x140   :  { %v1226_v48 = vpack.c.bf16 %v1052_v14, %v1052_v14  ;;  %v1053_v49 = vmax.f32 %v1036_v43, 0.0  ;;  %v1363_v50 = vadd.f32 %v1362_v47, %v1361_v45  ;;  %v1408_v10 = vpop.f32.mrb[37].mxu1  ;;  %v1364_v51 = vpop.f32.mrb[38].mxu0 }
 0x141   :  { %v1409_v52 = vadd.f32 %v1408_v10, %v1407_v46  ;;  %v1410_v53 = vpop.f32.mrb[38].mxu1  ;;  %v1365_v54 = vpop.f32.mrb[39].mxu0 }
 0x142   :  { %1099 = vst.msk [vmem:[%s1885_s3 + $0x18] sm:$0xf] %vm1092_vm0, %v1226_v48  ;;  %v1227_v55 = vpack.c.bf16 %v1053_v49, %v1053_v49  ;;  %v969_v12 = vadd.f32 %v1363_v50, %v1835_v25  ;;  %v1411_v26 = vpop.f32.mrb[39].mxu1 }
 0x144   :  { %1100 = vst.msk [vmem:[%s1885_s3 + $0x1c] sm:$0xf] %vm1092_vm0, %v1227_v55  ;;  %v1041_v28 = vadd.f32 %v1409_v52, %v969_v12 }
 0x146   :  { %v1054_v56 = vmax.f32 %v1041_v28, 0.0 }
 0x148   :  { %v1228_v57 = vpack.c.bf16 %v1054_v56, %v1054_v56 }
 0x14a   :  { %1101 = vst.msk [vmem:[%s1885_s3 + $0x20] sm:$0xf] %vm1092_vm0, %v1228_v57 }

// kernel: _lambda_.12
= control target key start
LH: loop header
LB: loop body
LE: loop exit
PB: predicated region body
PF: predicated region fallthrough
CT: control target
= control target key end

     0   :  { %vm372_vm0 = vcmask 523264   ;;  %s913_s1 = inlined_call_operand.vmem [shape: bf16[576,128], index: 1, kind: input, shape index: {}]   ;;  %s914_s0 = inlined_call_operand.vmem [shape: bf16[32,576], index: 0, kind: input, shape index: {}]   ;;  %s915_s2 = inlined_call_operand.vmem [shape: f32[1,128], index: 2, kind: input, shape index: {}]   ;;  %s916_s3 = inlined_call_operand.vmem [shape: bf16[32,128], index: 3, kind: output, shape index: {}]  }
   0x1   :  { %v696_v0 = vld [vmem:[%s913_s1 + $0x40] sm:$0xff]   ;;  %v700_v4 = vld [vmem:[%s913_s1 + $0x48] sm:$0xff]   ;;  %v704_v8 = vld [vmem:[%s913_s1 + $0x50] sm:$0xff]  }
   0x2   :  { %v697_v1 = vld [vmem:[%s913_s1] sm:$0xff]   ;;  %622 = vmatprep.subr.bf16.mxu0 %v696_v0  ;;  %v701_v5 = vld [vmem:[%s913_s1 + $0x8] sm:$0xff]   ;;  %v705_v9 = vld [vmem:[%s913_s1 + $0x10] sm:$0xff]  }
   0x3   :  { %v698_v2 = vld [vmem:[%s913_s1 + $0xc0] sm:$0xff]   ;;  %623 = vmatpush3.bf16.msra.mxu0 %v697_v1  ;;  %v702_v6 = vld [vmem:[%s913_s1 + $0xc8] sm:$0xff]   ;;  %v706_v10 = vld [vmem:[%s913_s1 + $0xd0] sm:$0xff]  }
   0x4   :  { %v699_v3 = vld [vmem:[%s913_s1 + $0x80] sm:$0xff]   ;;  %650 = vmatprep.subr.bf16.mxu1 %v698_v2  ;;  %624 = vmatprep.subr.bf16.mxu0 %v700_v4  ;;  %v703_v7 = vld [vmem:[%s913_s1 + $0x88] sm:$0xff]   ;;  %v707_v11 = vld [vmem:[%s913_s1 + $0x90] sm:$0xff]  }
   0x5   :  { %651 = vmatpush3.bf16.msra.mxu1 %v699_v3  ;;  %v708_v12 = vld [vmem:[%s913_s1 + $0x58] sm:$0xff]   ;;  %v712_v16 = vld [vmem:[%s913_s1 + $0x60] sm:$0xff]   ;;  %v716_v20 = vld [vmem:[%s913_s1 + $0x68] sm:$0xff]  }
   0x6   :  { %652 = vmatprep.subr.bf16.mxu1 %v702_v6  ;;  %v709_v13 = vld [vmem:[%s913_s1 + $0x18] sm:$0xff]   ;;  %v713_v17 = vld [vmem:[%s913_s1 + $0x20] sm:$0xff]   ;;  %v717_v21 = vld [vmem:[%s913_s1 + $0x28] sm:$0xff]  }
   0x7   :  { %625 = vmatpush3.bf16.msra.mxu0 %v701_v5  ;;  %v710_v14 = vld [vmem:[%s913_s1 + $0xd8] sm:$0xff]   ;;  %v714_v18 = vld [vmem:[%s913_s1 + $0xe0] sm:$0xff]   ;;  %v718_v22 = vld [vmem:[%s913_s1 + $0xe8] sm:$0xff]  }
   0x8   :  { %626 = vmatprep.subr.bf16.mxu0 %v704_v8  ;;  %v711_v15 = vld [vmem:[%s913_s1 + $0x98] sm:$0xff]   ;;  %v715_v19 = vld [vmem:[%s913_s1 + $0xa0] sm:$0xff]   ;;  %v719_v23 = vld [vmem:[%s913_s1 + $0xa8] sm:$0xff]  }
   0x9   :  { %653 = vmatpush3.bf16.msra.mxu1 %v703_v7  ;;  %v720_v24 = vld [vmem:[%s913_s1 + $0x70] sm:$0xff]   ;;  %v724_v28 = vld [vmem:[%s913_s1 + $0x78] sm:$0xff]   ;;  %v731_v34 = vld [vmem:[%s913_s1 + $0x100] sm:$0xff]  }
   0xa   :  { %654 = vmatprep.subr.bf16.mxu1 %v706_v10  ;;  %v721_v25 = vld [vmem:[%s913_s1 + $0x30] sm:$0xff]   ;;  %v725_v29 = vld [vmem:[%s913_s1 + $0x38] sm:$0xff]   ;;  %v734_v36 = vld [vmem:[%s914_s0 + $0xc] ss:$20 sps:$4 sm:$0xff]  }
   0xb   :  { %627 = vmatpush3.bf16.msra.mxu0 %v705_v9  ;;  %v722_v26 = vld [vmem:[%s913_s1 + $0xf0] sm:$0xff]   ;;  %v726_v30 = vld [vmem:[%s913_s1 + $0xf8] sm:$0xff]   ;;  %v735_v37 = vld [vmem:[%s913_s1 + $0x108] sm:$0xff]   ;;  %460 = vmatprep.mubr.bf16.mxu1 %v734_v36 }
   0xc   :  { %628 = vmatprep.subr.bf16.mxu0 %v708_v12  ;;  %v723_v27 = vld [vmem:[%s913_s1 + $0xb0] sm:$0xff]   ;;  %v729_v32 = vld [vmem:[%s914_s0 + $0x4] ss:$20 sps:$4 sm:$0xff]   ;;  %v732_v35 = vld [vmem:[%s914_s0 + $0x8] ss:$20 sps:$4 sm:$0xff]  }
   0xd   :  { %655 = vmatpush3.bf16.msra.mxu1 %v707_v11  ;;  %v727_v31 = vld [vmem:[%s914_s0] ss:$20 sps:$4 sm:$0xff]   ;;  %v730_v33 = vld [vmem:[%s913_s1 + $0xb8] sm:$0xff]   ;;  %411 = vmatprep.mubr.bf16.mxu0 %v729_v32  ;;  %v742_v42 = vld [vmem:[%s914_s0 + $0x30] ss:$20 sps:$4 sm:$0xff]  }
   0xe   :  { %656 = vmatprep.subr.bf16.mxu1 %v710_v14  ;;  %v736_v38 = vld [vmem:[%s914_s0 + $0x2c] ss:$20 sps:$4 sm:$0xff]   ;;  %v738_v39 = vld [vmem:[%s914_s0 + $0x28] ss:$20 sps:$4 sm:$0xff]   ;;  %v739_v40 = vld [vmem:[%s913_s1 + $0x110] sm:$0xff]  }
   0xf   :  { %629 = vmatpush3.bf16.msra.mxu0 %v709_v13  ;;  %v740_v41 = vld [vmem:[%s914_s0 + $0x34] ss:$20 sps:$4 sm:$0xff]   ;;  %v743_v43 = vld [vmem:[%s913_s1 + $0x118] sm:$0xff]   ;;  %v744_v44 = vld [vmem:[%s914_s0 + $0x10] ss:$20 sps:$4 sm:$0xff]  }
  0x10   :  { %630 = vmatprep.subr.bf16.mxu0 %v712_v16  ;;  %v745_v45 = vld [vmem:[%s914_s0 + $0x38] ss:$20 sps:$4 sm:$0xff]   ;;  %v554_v47 = vld [vmem:[%s915_s2] ss:$0 sm:$0xff] }
  0x11   :  { %657 = vmatpush3.bf16.msra.mxu1 %v711_v15 }
  0x12   :  { %658 = vmatprep.subr.bf16.mxu1 %v714_v18 }
  0x13   :  { %631 = vmatpush3.bf16.msra.mxu0 %v713_v17 }
  0x14   :  { %632 = vmatprep.subr.bf16.mxu0 %v716_v20 }
  0x15   :  { %659 = vmatpush3.bf16.msra.mxu1 %v715_v19 }
  0x16   :  { %660 = vmatprep.subr.bf16.mxu1 %v718_v22 }
  0x17   :  { %633 = vmatpush3.bf16.msra.mxu0 %v717_v21 }
  0x18   :  { %634 = vmatprep.subr.bf16.mxu0 %v720_v24 }
  0x19   :  { %661 = vmatpush3.bf16.msra.mxu1 %v719_v23 }
  0x1a   :  { %662 = vmatprep.subr.bf16.mxu1 %v722_v26 }
  0x1b   :  { %635 = vmatpush3.bf16.msra.mxu0 %v721_v25 }
  0x1c   :  { %636 = vmatprep.subr.bf16.mxu0 %v724_v28 }
  0x1d   :  { %663 = vmatpush3.bf16.msra.mxu1 %v723_v27 }
  0x1e   :  { %664 = vmatprep.subr.bf16.mxu1 %v726_v30 }
  0x1f   :  { %637 = vmatpush3.bf16.msra.mxu0 %v725_v29 }
  0x20   :  { %684 = vmatprep.subr.bf16.mxu0 %v731_v34 }
  0x21   :  { %665 = vmatpush3.bf16.msra.mxu1 %v730_v33 }
  0x22   :  { %412 = vmatmul.mubr.bf16.vlgmr.msra.gmra.mrb[0].mxu0 %v727_v31 }
  0x23   :  { %685 = vmatpush3.bf16.msra.mxu0 %v731_v34  ;;  %419 = vmatprep.mubr.bf16.mxu0 %v736_v38 }
  0x24   :  { %461 = vmatmul.mubr.bf16.vlgmr.msra.gmra.mrb[0].mxu1 %v732_v35  ;;  %686 = vmatprep.subr.bf16.mxu0 %v735_v37 }
  0x25   :  { %468 = vmatprep.mubr.bf16.mxu1 %v740_v41 }
  0x27   :  { %687 = vmatpush3.bf16.msra.mxu0 %v735_v37 }
  0x28   :  { %688 = vmatprep.subr.bf16.mxu0 %v739_v40 }
  0x2a   :  { %420 = vmatmul.mubr.bf16.gmra.mrb[4].mxu0 %v738_v39 }
  0x2b   :  { %692 = vmatprep.mubr.msk.bf16.mxu0 %vm372_vm0, %v744_v44  ;;  %689 = vmatpush3.bf16.msra.mxu0 %v739_v40 }
  0x2c   :  { %469 = vmatmul.mubr.bf16.gmra.mrb[4].mxu1 %v742_v42  ;;  %690 = vmatprep.subr.bf16.mxu0 %v743_v43 }
  0x2f   :  { %691 = vmatpush3.bf16.msra.mxu0 %v743_v43 }
  0x32   :  { %693 = vmatmul.mubr.msk.bf16.vlgmr.msra.gmra.mrb[8].mxu0 %vm372_vm0, %v745_v45 }
  0xf5   :  { %v638_v46 = vpop.f32.mrb[0].mxu0 }
  0xf6   :  { %v639_v48 = vpop.f32.mrb[1].mxu0 }
  0xf7   :  { %v640_v49 = vadd.f32 %v639_v48, %v638_v46  ;;  %v641_v50 = vpop.f32.mrb[2].mxu0  ;;  %v666_v51 = vpop.f32.mrb[0].mxu1 }
  0xf8   :  { %v642_v52 = vpop.f32.mrb[3].mxu0  ;;  %v667_v55 = vpop.f32.mrb[1].mxu1 }
  0xf9   :  { %v414_v53 = vadd.f32 %v640_v49, %v554_v47  ;;  %v643_v54 = vadd.f32 %v642_v52, %v641_v50  ;;  %v668_v56 = vadd.f32 %v667_v55, %v666_v51  ;;  %v669_v57 = vpop.f32.mrb[2].mxu1 }
  0xfa   :  { %v670_v59 = vpop.f32.mrb[3].mxu1 }
  0xfb   :  { %v417_v58 = vadd.f32 %v643_v54, %v554_v47  ;;  %v671_v60 = vadd.f32 %v670_v59, %v669_v57  ;;  %v463_v61 = vadd.f32 %v668_v56, %v414_v53 }
  0xfd   :  { %v644_v62 = vpop.f32.mrb[4].mxu0  ;;  %v466_v0 = vadd.f32 %v671_v60, %v417_v58 }
  0xfe   :  { %v645_v63 = vpop.f32.mrb[5].mxu0 }
  0xff   :  { %v646_v1 = vadd.f32 %v645_v63, %v644_v62  ;;  %v647_v2 = vpop.f32.mrb[6].mxu0  ;;  %v672_v3 = vpop.f32.mrb[4].mxu1 }
 0x100   :  { %v648_v4 = vpop.f32.mrb[7].mxu0  ;;  %v673_v7 = vpop.f32.mrb[5].mxu1 }
 0x101   :  { %v422_v5 = vadd.f32 %v646_v1, %v554_v47  ;;  %v649_v6 = vadd.f32 %v648_v4, %v647_v2  ;;  %v674_v8 = vadd.f32 %v673_v7, %v672_v3  ;;  %v675_v9 = vpop.f32.mrb[6].mxu1 }
 0x102   :  { %v676_v11 = vpop.f32.mrb[7].mxu1 }
 0x103   :  { %v425_v10 = vadd.f32 %v649_v6, %v554_v47  ;;  %v677_v12 = vadd.f32 %v676_v11, %v675_v9  ;;  %v471_v13 = vadd.f32 %v674_v8, %v422_v5 }
 0x105   :  { %v694_v14 = vpop.f32.mrb[8].mxu0  ;;  %v474_v15 = vadd.f32 %v677_v12, %v425_v10 }
 0x106   :  { %v520_v16 = vadd.f32 %v694_v14, %v471_v13  ;;  %v511_v17 = vpop.f32.mrb[9].mxu0 }
 0x107   :  { %v512_v18 = vadd.f32 %v511_v17, %v463_v61  ;;  %v695_v19 = vpop.f32.mrb[10].mxu0 }
 0x108   :  { %v523_v20 = vadd.f32 %v695_v19, %v474_v15  ;;  %v514_v21 = vpop.f32.mrb[11].mxu0  ;;  %v528_v23 = vmax.f32 %v520_v16, 0.0 }
 0x109   :  { %v515_v22 = vadd.f32 %v514_v21, %v466_v0  ;;  %v526_v25 = vmax.f32 %v512_v18, 0.0 }
 0x10a   :  { %v529_v24 = vmax.f32 %v523_v20, 0.0 }
 0x10b   :  { %v527_v26 = vmax.f32 %v515_v22, 0.0 }
 0x10c   :  { %v619_v27 = vpack.c.bf16 %v529_v24, %v528_v23 }
 0x10d   :  { %v614_v28 = vpack.c.bf16 %v527_v26, %v526_v25 }
 0x10e   :  { %621 = vst [vmem:[%s916_s3 + $0x8] sm:$0xff] %v619_v27  }
 0x10f   :  { %615 = vst [vmem:[%s916_s3] sm:$0xff] %v614_v28  }

// kernel: _lambda_.11
= control target key start
LH: loop header
LB: loop body
LE: loop exit
PB: predicated region body
PF: predicated region fallthrough
CT: control target
= control target key end

     0   :  { %16 = vsyncpa [#allocation3], 0  ;;  %v340_v27 = vlaneseq  ;;  %v3564_v35 = vmov 1966171168   ;;  %s4570_s0 = inlined_call_operand.vmem [shape: bf16[2,2304], index: 0, kind: input, shape index: {}]   ;;  %s4571_s1 = inlined_call_operand.vmem [shape: bf16[2304,20], index: 1, kind: input, shape index: {}]   ;;  %s4572_s2 = inlined_call_operand.vmem [shape: f32[1,20], index: 2, kind: input, shape index: {}]   ;;  %s4573_s3 = inlined_call_operand.vmem [shape: f32[2,10], index: 3, kind: input, shape index: {}]   ;;  %s4574_s4 = inlined_call_operand.vmem [shape: bf16[10,256], index: 4, kind: input, shape index: {}]   ;;  %s4575_s5 = inlined_call_operand.vmem [shape: f32[1,256], index: 5, kind: input, shape index: {}]   ;;  %s4576_s6 = inlined_call_operand.vmem [shape: bf16[256,1024], index: 6, kind: input, shape index: {}]   ;;  %s4577_s7 = inlined_call_operand.vmem [shape: f32[1,1024], index: 7, kind: input, shape index: {}]   ;;  %s4578_s8 = inlined_call_operand.hbm [shape: f32[2,10], index: 8, kind: output, shape index: {0}]   ;;  %s4579_s9 = inlined_call_operand.hbm [shape: f32[2,10], index: 9, kind: output, shape index: {1}]   ;;  %s4580_s10 = inlined_call_operand.vmem [shape: bf16[2,1024], index: 10, kind: output, shape index: {2}]  }
   0x1   :  { %v3365_v0 = vld [vmem:[%s4571_s1 + $0x40] sm:$0xff]   ;;  %v3369_v4 = vld [vmem:[%s4571_s1 + $0x48] sm:$0xff]   ;;  %v3373_v8 = vld [vmem:[%s4571_s1 + $0x50] sm:$0xff]   ;;  %v338_v36 = vunpack.c.l.s4 %v3564_v35 }
   0x2   :  { %v3366_v1 = vld [vmem:[%s4571_s1] sm:$0xff]   ;;  %3161 = vmatprep.subr.bf16.mxu0 %v3365_v0  ;;  %v3370_v5 = vld [vmem:[%s4571_s1 + $0x8] sm:$0xff]   ;;  %v3374_v9 = vld [vmem:[%s4571_s1 + $0x10] sm:$0xff]   ;;  %v3718_v32 = vshrl.u32 %v340_v27, 7 }
   0x3   :  { %v3367_v2 = vld [vmem:[%s4571_s1 + $0xc0] sm:$0xff]   ;;  %3162 = vmatpush3.bf16.msra.mxu0 %v3366_v1  ;;  %v3371_v6 = vld [vmem:[%s4571_s1 + $0xc8] sm:$0xff]   ;;  %v3375_v10 = vld [vmem:[%s4571_s1 + $0xd0] sm:$0xff]   ;;  %v339_v39 = vunpack.c.0.s8 %v338_v36 }
   0x4   :  { %v3368_v3 = vld [vmem:[%s4571_s1 + $0x80] sm:$0xff]   ;;  %3183 = vmatprep.subr.bf16.mxu1 %v3367_v2  ;;  %3163 = vmatprep.subr.bf16.mxu0 %v3369_v4  ;;  %v3372_v7 = vld [vmem:[%s4571_s1 + $0x88] sm:$0xff]   ;;  %v3376_v11 = vld [vmem:[%s4571_s1 + $0x90] sm:$0xff]  }
   0x5   :  { %3184 = vmatpush3.bf16.msra.mxu1 %v3368_v3  ;;  %v3377_v12 = vld [vmem:[%s4571_s1 + $0x58] sm:$0xff]   ;;  %v3381_v16 = vld [vmem:[%s4571_s1 + $0x60] sm:$0xff]   ;;  %v3385_v20 = vld [vmem:[%s4571_s1 + $0x68] sm:$0xff]   ;;  %v3733_v41 = vsub.s32 %v339_v39, %v3718_v32 }
   0x6   :  { %3185 = vmatprep.subr.bf16.mxu1 %v3371_v6  ;;  %v3378_v13 = vld [vmem:[%s4571_s1 + $0x18] sm:$0xff]   ;;  %v3382_v17 = vld [vmem:[%s4571_s1 + $0x20] sm:$0xff]   ;;  %v3386_v21 = vld [vmem:[%s4571_s1 + $0x28] sm:$0xff]  }
   0x7   :  { %3164 = vmatpush3.bf16.msra.mxu0 %v3370_v5  ;;  %v3379_v14 = vld [vmem:[%s4571_s1 + $0xd8] sm:$0xff]   ;;  %v3383_v18 = vld [vmem:[%s4571_s1 + $0xe0] sm:$0xff]   ;;  %v3387_v22 = vld [vmem:[%s4571_s1 + $0xe8] sm:$0xff]  }
   0x8   :  { %3165 = vmatprep.subr.bf16.mxu0 %v3373_v8  ;;  %v3380_v15 = vld [vmem:[%s4571_s1 + $0x98] sm:$0xff]   ;;  %v3384_v19 = vld [vmem:[%s4571_s1 + $0xa0] sm:$0xff]   ;;  %v3388_v23 = vld [vmem:[%s4571_s1 + $0xa8] sm:$0xff]  }
   0x9   :  { %3186 = vmatpush3.bf16.msra.mxu1 %v3372_v7  ;;  %v3389_v24 = vld [vmem:[%s4571_s1 + $0x70] sm:$0xff]   ;;  %v3393_v29 = vld [vmem:[%s4571_s1 + $0x78] sm:$0xff]   ;;  %v35_v33 = vld [vmem:[%s4570_s0] sm:$0xff] }
   0xa   :  { %3187 = vmatprep.subr.bf16.mxu1 %v3375_v10  ;;  %v3390_v25 = vld [vmem:[%s4571_s1 + $0x30] sm:$0xff]   ;;  %v3394_v30 = vld [vmem:[%s4571_s1 + $0x38] sm:$0xff]   ;;  %v3398_v37 = vld [vmem:[%s4571_s1 + $0x140] sm:$0xff]   ;;  %v336_v38 = vcombine.high %v35_v33, %v35_v33  ;;  %v343_v42 = vrot.slane %v35_v33, %v3733_v41 }
   0xb   :  { %3166 = vmatpush3.bf16.msra.mxu0 %v3374_v9  ;;  %v3391_v26 = vld [vmem:[%s4571_s1 + $0xf0] sm:$0xff]   ;;  %v3395_v31 = vld [vmem:[%s4571_s1 + $0xf8] sm:$0xff]   ;;  %v3400_v40 = vld [vmem:[%s4571_s1 + $0x1c0] sm:$0xff]  }
   0xc   :  { %3167 = vmatprep.subr.bf16.mxu0 %v3377_v12  ;;  %v3392_v28 = vld [vmem:[%s4571_s1 + $0xb0] sm:$0xff]   ;;  %v3397_v34 = vld [vmem:[%s4571_s1 + $0xb8] sm:$0xff]   ;;  %v3737_v43 = vrot.slane %v336_v38, %v3733_v41  ;;  %v351_v44 = vcombine.high %v343_v42, %v343_v42  ;;  %v359_v45 = vrot.slane %v343_v42, %v3733_v41  ;;  %v3399_v48 = vld [vmem:[%s4571_s1 + $0x100] sm:$0xff]  }
   0xd   :  { %3188 = vmatpush3.bf16.msra.mxu1 %v3376_v11  ;;  %v3402_v51 = vld [vmem:[%s4571_s1 + $0x148] sm:$0xff]   ;;  %v3401_v53 = vld [vmem:[%s4571_s1 + $0x180] sm:$0xff]   ;;  %v3406_v57 = vld [vmem:[%s4571_s1 + $0x150] sm:$0xff]  }
   0xe   :  { %3189 = vmatprep.subr.bf16.mxu1 %v3379_v14  ;;  %v352_v46 = vcombine.high %v3737_v43, %v3737_v43  ;;  %v373_v47 = vrot.slane %v351_v44, %v3733_v41  ;;  %v381_v50 = vcombine.high %v359_v45, %v359_v45  ;;  %v3404_v54 = vld [vmem:[%s4571_s1 + $0x1c8] sm:$0xff]   ;;  %v3408_v59 = vld [vmem:[%s4571_s1 + $0x1d0] sm:$0xff]   ;;  %v3410_v61 = vld [vmem:[%s4571_s1 + $0x158] sm:$0xff]  }
   0xf   :  { %3168 = vmatpush3.bf16.msra.mxu0 %v3378_v13  ;;  %v3403_v56 = vld [vmem:[%s4571_s1 + $0x108] sm:$0xff]   ;;  %v3407_v60 = vld [vmem:[%s4571_s1 + $0x110] sm:$0xff]   ;;  %v3412_v63 = vld [vmem:[%s4571_s1 + $0x1d8] sm:$0xff]  }
  0x10   :  { %3169 = vmatprep.subr.bf16.mxu0 %v3381_v16  ;;  %v380_v49 = vrot.slane %v352_v46, %v3733_v41  ;;  %1370 = vmatprep.mubr.bf16.mxu0 %v373_v47  ;;  %v383_v52 = vcombine.high %v373_v47, %v373_v47  ;;  %v3405_v58 = vld [vmem:[%s4571_s1 + $0x188] sm:$0xff]   ;;  %v3409_v62 = vld [vmem:[%s4571_s1 + $0x190] sm:$0xff]   ;;  %v3411_v0 = vld [vmem:[%s4571_s1 + $0x118] sm:$0xff]  }
  0x11   :  { %3190 = vmatpush3.bf16.msra.mxu1 %v3380_v15  ;;  %v3414_v1 = vld [vmem:[%s4571_s1 + $0x160] sm:$0xff]   ;;  %v3413_v2 = vld [vmem:[%s4571_s1 + $0x198] sm:$0xff]   ;;  %v3418_v5 = vld [vmem:[%s4571_s1 + $0x168] sm:$0xff]  }
  0x12   :  { %3191 = vmatprep.subr.bf16.mxu1 %v3383_v18  ;;  %v384_v55 = vcombine.high %v380_v49, %v380_v49  ;;  %1410 = vmatprep.mubr.bf16.mxu1 %v383_v52  ;;  %v3416_v3 = vld [vmem:[%s4571_s1 + $0x1e0] sm:$0xff]   ;;  %v3420_v7 = vld [vmem:[%s4571_s1 + $0x1e8] sm:$0xff]   ;;  %v3422_v9 = vld [vmem:[%s4571_s1 + $0x170] sm:$0xff]  }
  0x13   :  { %3170 = vmatpush3.bf16.msra.mxu0 %v3382_v17  ;;  %v3415_v4 = vld [vmem:[%s4571_s1 + $0x120] sm:$0xff]   ;;  %v3419_v8 = vld [vmem:[%s4571_s1 + $0x128] sm:$0xff]   ;;  %v3424_v11 = vld [vmem:[%s4571_s1 + $0x1f0] sm:$0xff]   ;;  %v366_v17 = vrot.slane %v3737_v43, %v3733_v41 }
  0x14   :  { %3171 = vmatprep.subr.bf16.mxu0 %v3385_v20  ;;  %v3417_v6 = vld [vmem:[%s4571_s1 + $0x1a0] sm:$0xff]   ;;  %v3421_v10 = vld [vmem:[%s4571_s1 + $0x1a8] sm:$0xff]   ;;  %v3423_v12 = vld [vmem:[%s4571_s1 + $0x130] sm:$0xff]  }
  0x15   :  { %3192 = vmatpush3.bf16.msra.mxu1 %v3384_v19  ;;  %v3426_v13 = vld [vmem:[%s4571_s1 + $0x178] sm:$0xff]   ;;  %v3425_v14 = vld [vmem:[%s4571_s1 + $0x1b0] sm:$0xff]   ;;  %v3430_v18 = vld [vmem:[%s4571_s1 + $0x240] sm:$0xff]  }
  0x16   :  { %3193 = vmatprep.subr.bf16.mxu1 %v3387_v22  ;;  %v3428_v15 = vld [vmem:[%s4571_s1 + $0x1f8] sm:$0xff]   ;;  %v3432_v20 = vld [vmem:[%s4571_s1 + $0x2c0] sm:$0xff]   ;;  %v382_v22 = vcombine.high %v366_v17, %v366_v17  ;;  %v3438_v27 = vld [vmem:[%s4571_s1 + $0x250] sm:$0xff]  }
  0x17   :  { %3172 = vmatpush3.bf16.msra.mxu0 %v3386_v21  ;;  %v3427_v16 = vld [vmem:[%s4571_s1 + $0x138] sm:$0xff]   ;;  %v3431_v21 = vld [vmem:[%s4571_s1 + $0x200] sm:$0xff]   ;;  %v3441_v33 = vld [vmem:[%s4571_s1 + $0x290] sm:$0xff]  }
  0x18   :  { %3173 = vmatprep.subr.bf16.mxu0 %v3389_v24  ;;  %v3429_v19 = vld [vmem:[%s4571_s1 + $0x1b8] sm:$0xff]   ;;  %v3433_v24 = vld [vmem:[%s4571_s1 + $0x280] sm:$0xff]   ;;  %v3452_v43 = vld [vmem:[%s4571_s1 + $0x2e8] sm:$0xff]  }
  0x19   :  { %3194 = vmatpush3.bf16.msra.mxu1 %v3388_v23  ;;  %v3434_v23 = vld [vmem:[%s4571_s1 + $0x248] sm:$0xff]   ;;  %v3443_v35 = vld [vmem:[%s4571_s1 + $0x218] sm:$0xff]   ;;  %v3446_v36 = vld [vmem:[%s4571_s1 + $0x260] sm:$0xff]  }
  0x1a   :  { %3195 = vmatprep.subr.bf16.mxu1 %v3391_v26  ;;  %v3435_v26 = vld [vmem:[%s4571_s1 + $0x208] sm:$0xff]   ;;  %v3448_v38 = vld [vmem:[%s4571_s1 + $0x2e0] sm:$0xff]  }
  0x1b   :  { %3174 = vmatpush3.bf16.msra.mxu0 %v3390_v25  ;;  %v3436_v25 = vld [vmem:[%s4571_s1 + $0x2c8] sm:$0xff]   ;;  %v3447_v39 = vld [vmem:[%s4571_s1 + $0x220] sm:$0xff]  }
  0x1c   :  { %3175 = vmatprep.subr.bf16.mxu0 %v3393_v29  ;;  %v3440_v29 = vld [vmem:[%s4571_s1 + $0x2d0] sm:$0xff]   ;;  %v3449_v42 = vld [vmem:[%s4571_s1 + $0x2a0] sm:$0xff]   ;;  %v3451_v44 = vld [vmem:[%s4571_s1 + $0x228] sm:$0xff]  }
  0x1d   :  { %3196 = vmatpush3.bf16.msra.mxu1 %v3392_v28  ;;  %v3437_v28 = vld [vmem:[%s4571_s1 + $0x288] sm:$0xff]  }
  0x1e   :  { %3197 = vmatprep.subr.bf16.mxu1 %v3395_v31  ;;  %v3442_v31 = vld [vmem:[%s4571_s1 + $0x258] sm:$0xff]   ;;  %v36_v46 = vld [vmem:[%s4570_s0 + $0x8] sm:$0xff] }
  0x1f   :  { %3176 = vmatpush3.bf16.msra.mxu0 %v3394_v30  ;;  %v3439_v30 = vld [vmem:[%s4571_s1 + $0x210] sm:$0xff]   ;;  %v3453_v47 = vld [vmem:[%s4571_s1 + $0x2a8] sm:$0xff]  }
  0x20   :  { %3205 = vmatprep.subr.bf16.mxu0 %v3398_v37  ;;  %v3445_v37 = vld [vmem:[%s4571_s1 + $0x298] sm:$0xff]  }
  0x21   :  { %3198 = vmatpush3.bf16.msra.mxu1 %v3397_v34  ;;  %v3444_v34 = vld [vmem:[%s4571_s1 + $0x2d8] sm:$0xff]  }
  0x22   :  { %3227 = vmatprep.subr.bf16.mxu1 %v3400_v40  ;;  %1371 = vmatmul.mubr.bf16.vlgmr.msra.gmra.mrb[0].mxu0 %v359_v45  ;;  %v3450_v40 = vld [vmem:[%s4571_s1 + $0x268] sm:$0xff]   ;;  %v3454_v45 = vld [vmem:[%s4571_s1 + $0x270] sm:$0xff]  }
  0x23   :  { %3206 = vmatpush3.bf16.msra.mxu0 %v3399_v48  ;;  %1450 = vmatprep.mubr.bf16.mxu0 %v380_v49  ;;  %v392_v48 = vrot.slane %v36_v46, %v3733_v41  ;;  %v385_v49 = vcombine.high %v36_v46, %v36_v46 }
  0x24   :  { %1411 = vmatmul.mubr.bf16.vlgmr.msra.gmra.mrb[0].mxu1 %v381_v50  ;;  %3207 = vmatprep.subr.bf16.mxu0 %v3402_v51  ;;  %v3456_v50 = vld [vmem:[%s4571_s1 + $0x2f0] sm:$0xff]  }
  0x25   :  { %3228 = vmatpush3.bf16.msra.mxu1 %v3401_v53  ;;  %1490 = vmatprep.mubr.bf16.mxu1 %v384_v55  ;;  %v3455_v51 = vld [vmem:[%s4571_s1 + $0x230] sm:$0xff]   ;;  %v400_v52 = vcombine.high %v392_v48, %v392_v48  ;;  %v3922_v53 = vrot.slane %v385_v49, %v3733_v41 }
  0x26   :  { %3229 = vmatprep.subr.bf16.mxu1 %v3404_v54  ;;  %v3458_v54 = vld [vmem:[%s4571_s1 + $0x278] sm:$0xff]   ;;  %v3457_v55 = vld [vmem:[%s4571_s1 + $0x2b0] sm:$0xff]  }
  0x27   :  { %3208 = vmatpush3.bf16.msra.mxu0 %v3403_v56  ;;  %v422_v56 = vrot.slane %v400_v52, %v3733_v41 }
  0x28   :  { %3209 = vmatprep.subr.bf16.mxu0 %v3406_v57  ;;  %v401_v57 = vcombine.high %v3922_v53, %v3922_v53 }
  0x29   :  { %3230 = vmatpush3.bf16.msra.mxu1 %v3405_v58  ;;  %v3460_v58 = vld [vmem:[%s4571_s1 + $0x2f8] sm:$0xff]  }
  0x2a   :  { %3231 = vmatprep.subr.bf16.mxu1 %v3408_v59  ;;  %v3459_v59 = vld [vmem:[%s4571_s1 + $0x238] sm:$0xff]  }
  0x2b   :  { %3210 = vmatpush3.bf16.msra.mxu0 %v3407_v60  ;;  %v432_v60 = vcombine.high %v422_v56, %v422_v56 }
  0x2c   :  { %3211 = vmatprep.subr.bf16.mxu0 %v3410_v61  ;;  %v408_v61 = vrot.slane %v392_v48, %v3733_v41 }
  0x2d   :  { %3232 = vmatpush3.bf16.msra.mxu1 %v3409_v62  ;;  %v3462_v62 = vld [vmem:[%s4571_s1 + $0x340] sm:$0xff]  }
  0x2e   :  { %3233 = vmatprep.subr.bf16.mxu1 %v3412_v63  ;;  %v3461_v63 = vld [vmem:[%s4571_s1 + $0x2b8] sm:$0xff]  }
  0x2f   :  { %3212 = vmatpush3.bf16.msra.mxu0 %v3411_v0  ;;  %v429_v0 = vrot.slane %v401_v57, %v3733_v41 }
  0x30   :  { %3213 = vmatprep.subr.bf16.mxu0 %v3414_v1  ;;  %v3464_v1 = vld [vmem:[%s4571_s1 + $0x3c0] sm:$0xff]  }
  0x31   :  { %3234 = vmatpush3.bf16.msra.mxu1 %v3413_v2  ;;  %v3463_v2 = vld [vmem:[%s4571_s1 + $0x300] sm:$0xff]  }
  0x32   :  { %3235 = vmatprep.subr.bf16.mxu1 %v3416_v3  ;;  %v430_v3 = vcombine.high %v408_v61, %v408_v61 }
  0x33   :  { %3214 = vmatpush3.bf16.msra.mxu0 %v3415_v4  ;;  %v3466_v4 = vld [vmem:[%s4571_s1 + $0x348] sm:$0xff]  }
  0x34   :  { %3215 = vmatprep.subr.bf16.mxu0 %v3418_v5  ;;  %v3465_v5 = vld [vmem:[%s4571_s1 + $0x380] sm:$0xff]  }
  0x35   :  { %3236 = vmatpush3.bf16.msra.mxu1 %v3417_v6  ;;  %v433_v6 = vcombine.high %v429_v0, %v429_v0 }
  0x36   :  { %3237 = vmatprep.subr.bf16.mxu1 %v3420_v7  ;;  %v3468_v7 = vld [vmem:[%s4571_s1 + $0x3c8] sm:$0xff]  }
  0x37   :  { %3216 = vmatpush3.bf16.msra.mxu0 %v3419_v8  ;;  %v3467_v8 = vld [vmem:[%s4571_s1 + $0x308] sm:$0xff]  }
  0x38   :  { %3217 = vmatprep.subr.bf16.mxu0 %v3422_v9  ;;  %v3470_v9 = vld [vmem:[%s4571_s1 + $0x350] sm:$0xff]  }
  0x39   :  { %3238 = vmatpush3.bf16.msra.mxu1 %v3421_v10  ;;  %v3469_v10 = vld [vmem:[%s4571_s1 + $0x388] sm:$0xff]  }
  0x3a   :  { %3239 = vmatprep.subr.bf16.mxu1 %v3424_v11  ;;  %v3472_v11 = vld [vmem:[%s4571_s1 + $0x3d0] sm:$0xff]  }
  0x3b   :  { %3218 = vmatpush3.bf16.msra.mxu0 %v3423_v12  ;;  %v3471_v12 = vld [vmem:[%s4571_s1 + $0x310] sm:$0xff]  }
  0x3c   :  { %3219 = vmatprep.subr.bf16.mxu0 %v3426_v13  ;;  %v3474_v13 = vld [vmem:[%s4571_s1 + $0x358] sm:$0xff]  }
  0x3d   :  { %3240 = vmatpush3.bf16.msra.mxu1 %v3425_v14  ;;  %v3473_v14 = vld [vmem:[%s4571_s1 + $0x390] sm:$0xff]  }
  0x3e   :  { %3241 = vmatprep.subr.bf16.mxu1 %v3428_v15  ;;  %v3476_v15 = vld [vmem:[%s4571_s1 + $0x3d8] sm:$0xff]  }
  0x3f   :  { %3220 = vmatpush3.bf16.msra.mxu0 %v3427_v16  ;;  %v3475_v16 = vld [vmem:[%s4571_s1 + $0x318] sm:$0xff]  }
  0x40   :  { %3249 = vmatprep.subr.bf16.mxu0 %v3430_v18  ;;  %v3477_v18 = vld [vmem:[%s4571_s1 + $0x398] sm:$0xff]  }
  0x41   :  { %3242 = vmatpush3.bf16.msra.mxu1 %v3429_v19  ;;  %v3480_v19 = vld [vmem:[%s4571_s1 + $0x3e0] sm:$0xff]  }
  0x42   :  { %1451 = vmatmul.mubr.bf16.vlgmr.msra.gmra.mrb[4].mxu0 %v366_v17  ;;  %3271 = vmatprep.subr.bf16.mxu1 %v3432_v20  ;;  %v3478_v17 = vld [vmem:[%s4571_s1 + $0x360] sm:$0xff]  }
  0x43   :  { %3250 = vmatpush3.bf16.msra.mxu0 %v3431_v21  ;;  %1530 = vmatprep.mubr.bf16.mxu0 %v422_v56  ;;  %v3479_v20 = vld [vmem:[%s4571_s1 + $0x320] sm:$0xff]   ;;  %v3482_v21 = vld [vmem:[%s4571_s1 + $0x368] sm:$0xff]  }
  0x44   :  { %1491 = vmatmul.mubr.bf16.vlgmr.msra.gmra.mrb[4].mxu1 %v382_v22  ;;  %3251 = vmatprep.subr.bf16.mxu0 %v3434_v23  ;;  %v3481_v22 = vld [vmem:[%s4571_s1 + $0x3a0] sm:$0xff]   ;;  %v3484_v23 = vld [vmem:[%s4571_s1 + $0x3e8] sm:$0xff]  }
  0x45   :  { %3272 = vmatpush3.bf16.msra.mxu1 %v3433_v24  ;;  %1570 = vmatprep.mubr.bf16.mxu1 %v432_v60  ;;  %v3483_v24 = vld [vmem:[%s4571_s1 + $0x328] sm:$0xff]  }
  0x46   :  { %3273 = vmatprep.subr.bf16.mxu1 %v3436_v25  ;;  %v3486_v25 = vld [vmem:[%s4571_s1 + $0x370] sm:$0xff]  }
  0x47   :  { %3252 = vmatpush3.bf16.msra.mxu0 %v3435_v26  ;;  %v3485_v26 = vld [vmem:[%s4571_s1 + $0x3a8] sm:$0xff]  }
  0x48   :  { %3253 = vmatprep.subr.bf16.mxu0 %v3438_v27  ;;  %v3488_v27 = vld [vmem:[%s4571_s1 + $0x3f0] sm:$0xff]  }
  0x49   :  { %3274 = vmatpush3.bf16.msra.mxu1 %v3437_v28  ;;  %v3487_v28 = vld [vmem:[%s4571_s1 + $0x330] sm:$0xff]  }
  0x4a   :  { %3275 = vmatprep.subr.bf16.mxu1 %v3440_v29  ;;  %v3490_v29 = vld [vmem:[%s4571_s1 + $0x378] sm:$0xff]  }
  0x4b   :  { %3254 = vmatpush3.bf16.msra.mxu0 %v3439_v30  ;;  %v3489_v30 = vld [vmem:[%s4571_s1 + $0x3b0] sm:$0xff]  }
  0x4c   :  { %3255 = vmatprep.subr.bf16.mxu0 %v3442_v31  ;;  %v3492_v31 = vld [vmem:[%s4571_s1 + $0x3f8] sm:$0xff]  }
  0x4d   :  { %3276 = vmatpush3.bf16.msra.mxu1 %v3441_v33  ;;  %v3491_v33 = vld [vmem:[%s4571_s1 + $0x338] sm:$0xff]  }
  0x4e   :  { %3277 = vmatprep.subr.bf16.mxu1 %v3444_v34  ;;  %v415_v34 = vrot.slane %v3922_v53, %v3733_v41 }
  0x4f   :  { %3256 = vmatpush3.bf16.msra.mxu0 %v3443_v35  ;;  %v3495_v35 = vld [vmem:[%s4571_s1 + $0x440] sm:$0xff]  }
  0x50   :  { %3257 = vmatprep.subr.bf16.mxu0 %v3446_v36  ;;  %v3494_v36 = vld [vmem:[%s4571_s1 + $0x3b8] sm:$0xff]  }
  0x51   :  { %3278 = vmatpush3.bf16.msra.mxu1 %v3445_v37  ;;  %v3496_v37 = vld [vmem:[%s4571_s1 + $0x400] sm:$0xff]  }
  0x52   :  { %3279 = vmatprep.subr.bf16.mxu1 %v3448_v38  ;;  %v431_v38 = vcombine.high %v415_v34, %v415_v34 }
  0x53   :  { %3258 = vmatpush3.bf16.msra.mxu0 %v3447_v39  ;;  %v3497_v39 = vld [vmem:[%s4571_s1 + $0x448] sm:$0xff]  }
  0x54   :  { %3259 = vmatprep.subr.bf16.mxu0 %v3450_v40  ;;  %v3498_v40 = vld [vmem:[%s4571_s1 + $0x408] sm:$0xff]  }
  0x55   :  { %3280 = vmatpush3.bf16.msra.mxu1 %v3449_v42  ;;  %v3499_v42 = vld [vmem:[%s4571_s1 + $0x450] sm:$0xff]  }
  0x56   :  { %3281 = vmatprep.subr.bf16.mxu1 %v3452_v43  ;;  %v2880_v43 = vld.sshfl [vmem:[%s4570_s0 + $0x10] sm:$0x11 pattern:$0x75316420] }
  0x57   :  { %3260 = vmatpush3.bf16.msra.mxu0 %v3451_v44  ;;  %v3500_v44 = vld [vmem:[%s4571_s1 + $0x410] sm:$0xff]  }
  0x58   :  { %3261 = vmatprep.subr.bf16.mxu0 %v3454_v45  ;;  %v441_v45 = vcombine.high %v2880_v43, %v2880_v43 }
  0x59   :  { %3282 = vmatpush3.bf16.msra.mxu1 %v3453_v47 }
  0x5a   :  { %3283 = vmatprep.subr.bf16.mxu1 %v3456_v50 }
  0x5b   :  { %3262 = vmatpush3.bf16.msra.mxu0 %v3455_v51 }
  0x5c   :  { %3263 = vmatprep.subr.bf16.mxu0 %v3458_v54 }
  0x5d   :  { %3284 = vmatpush3.bf16.msra.mxu1 %v3457_v55 }
  0x5e   :  { %3285 = vmatprep.subr.bf16.mxu1 %v3460_v58 }
  0x5f   :  { %3264 = vmatpush3.bf16.msra.mxu0 %v3459_v59 }
  0x60   :  { %3293 = vmatprep.subr.bf16.mxu0 %v3462_v62 }
  0x61   :  { %3286 = vmatpush3.bf16.msra.mxu1 %v3461_v63 }
  0x62   :  { %1531 = vmatmul.mubr.bf16.vlgmr.msra.gmra.mrb[8].mxu0 %v408_v61  ;;  %3315 = vmatprep.subr.bf16.mxu1 %v3464_v1 }
  0x63   :  { %3294 = vmatpush3.bf16.msra.mxu0 %v3463_v2  ;;  %1610 = vmatprep.mubr.bf16.mxu0 %v429_v0 }
  0x64   :  { %1571 = vmatmul.mubr.bf16.vlgmr.msra.gmra.mrb[8].mxu1 %v430_v3  ;;  %3295 = vmatprep.subr.bf16.mxu0 %v3466_v4 }
  0x65   :  { %3316 = vmatpush3.bf16.msra.mxu1 %v3465_v5  ;;  %1650 = vmatprep.mubr.bf16.mxu1 %v433_v6 }
  0x66   :  { %3317 = vmatprep.subr.bf16.mxu1 %v3468_v7 }
  0x67   :  { %3296 = vmatpush3.bf16.msra.mxu0 %v3467_v8 }
  0x68   :  { %3297 = vmatprep.subr.bf16.mxu0 %v3470_v9 }
  0x69   :  { %3318 = vmatpush3.bf16.msra.mxu1 %v3469_v10 }
  0x6a   :  { %3319 = vmatprep.subr.bf16.mxu1 %v3472_v11 }
  0x6b   :  { %3298 = vmatpush3.bf16.msra.mxu0 %v3471_v12 }
  0x6c   :  { %3299 = vmatprep.subr.bf16.mxu0 %v3474_v13 }
  0x6d   :  { %3320 = vmatpush3.bf16.msra.mxu1 %v3473_v14 }
  0x6e   :  { %3321 = vmatprep.subr.bf16.mxu1 %v3476_v15 }
  0x6f   :  { %3300 = vmatpush3.bf16.msra.mxu0 %v3475_v16 }
  0x70   :  { %3301 = vmatprep.subr.bf16.mxu0 %v3478_v17 }
  0x71   :  { %3322 = vmatpush3.bf16.msra.mxu1 %v3477_v18 }
  0x72   :  { %3323 = vmatprep.subr.bf16.mxu1 %v3480_v19 }
  0x73   :  { %3302 = vmatpush3.bf16.msra.mxu0 %v3479_v20 }
  0x74   :  { %3303 = vmatprep.subr.bf16.mxu0 %v3482_v21 }
  0x75   :  { %3324 = vmatpush3.bf16.msra.mxu1 %v3481_v22 }
  0x76   :  { %3325 = vmatprep.subr.bf16.mxu1 %v3484_v23 }
  0x77   :  { %3304 = vmatpush3.bf16.msra.mxu0 %v3483_v24 }
  0x78   :  { %3305 = vmatprep.subr.bf16.mxu0 %v3486_v25 }
  0x79   :  { %3326 = vmatpush3.bf16.msra.mxu1 %v3485_v26 }
  0x7a   :  { %3327 = vmatprep.subr.bf16.mxu1 %v3488_v27 }
  0x7b   :  { %3306 = vmatpush3.bf16.msra.mxu0 %v3487_v28 }
  0x7c   :  { %3307 = vmatprep.subr.bf16.mxu0 %v3490_v29 }
  0x7d   :  { %3328 = vmatpush3.bf16.msra.mxu1 %v3489_v30 }
  0x7e   :  { %3329 = vmatprep.subr.bf16.mxu1 %v3492_v31 }
  0x7f   :  { %3308 = vmatpush3.bf16.msra.mxu0 %v3491_v33 }
  0x80   :  { %3337 = vmatprep.subr.bf16.mxu0 %v3495_v35 }
  0x81   :  { %3330 = vmatpush3.bf16.msra.mxu1 %v3494_v36 }
  0x82   :  { %1611 = vmatmul.mubr.bf16.vlgmr.msra.gmra.mrb[12].mxu0 %v415_v34 }
  0x83   :  { %3338 = vmatpush3.bf16.msra.mxu0 %v3496_v37 }
  0x84   :  { %1651 = vmatmul.mubr.bf16.vlgmr.msra.gmra.mrb[12].mxu1 %v431_v38  ;;  %3339 = vmatprep.subr.bf16.mxu0 %v3497_v39 }
  0x87   :  { %3340 = vmatpush3.bf16.msra.mxu0 %v3498_v40 }
  0x88   :  { %17 = vsyncpa [#allocation5], 0  ;;  %3341 = vmatprep.subr.bf16.mxu0 %v3499_v42  ;;  %v3501_v46 = vld [vmem:[%s4571_s1 + $0x458] sm:$0xff]   ;;  %v455_v47 = vrot.slane %v441_v45, %v3733_v41  ;;  %v3503_v49 = vld [vmem:[%s4571_s1 + $0x460] sm:$0xff]   ;;  %s3565_s24 = smov 10   ;;  %v448_v58 = vrot.slane %v2880_v43, %v3733_v41  ;;  %vm1739_vm0 = vcmask 1044480  }
  0x89   :  { %v3502_v48 = vld [vmem:[%s4571_s1 + $0x418] sm:$0xff]   ;;  %v3504_v50 = vld [vmem:[%s4571_s1 + $0x420] sm:$0xff]   ;;  %v3505_v51 = vld [vmem:[%s4571_s1 + $0x468] sm:$0xff]   ;;  %vm2773_vm1 = vcmask 74752   ;;  %s3567_s26 = smov 118   ;;  %vm1735_vm2 = vcmask 80896  }
  0x8a   :  { %1690 = vmatprep.mubr.bf16.mxu0 %v455_v47  ;;  %v3506_v52 = vld [vmem:[%s4571_s1 + $0x428] sm:$0xff]   ;;  %v3507_v53 = vld [vmem:[%s4571_s1 + $0x470] sm:$0xff]   ;;  %v1701_v54 = vld [vmem:[%s4573_s3] sm:$0x3]  ;;  %s3569_s15 = smov [#allocation4]  }
  0x8b   :  { %3342 = vmatpush3.bf16.msra.mxu0 %v3500_v44  ;;  %v3508_v55 = vld [vmem:[%s4571_s1 + $0x430] sm:$0xff]   ;;  %1703 = vrot.lane.b32.xlu0 %v1701_v54, %s3565_s24  ;;  %v3509_v56 = vld [vmem:[%s4571_s1 + $0x478] sm:$0xff]   ;;  %v2879_v60 = vld [vmem:[%s4572_s2] ss:$0 sm:$0xff]  ;;  %s2863_s16 = sshll.u32 %s3569_s15, 4  ;;  %s2864_s16 = int_to_ptr.vmem [resolvable:$true] %s2863_s16 }
  0x8c   :  { %3343 = vmatprep.subr.bf16.mxu0 %v3501_v46  ;;  %v3510_v57 = vld [vmem:[%s4571_s1 + $0x438] sm:$0xff]   ;;  %v3511_v8 = vld [vmem:[%s4574_s4 + $0x4] ss:$8 sps:$4 sm:$0x1f]  }
  0x8d   :  { %v3513_v9 = vld [vmem:[%s4574_s4] ss:$8 sps:$4 sm:$0x1f]   ;;  %3027 = vmatprep.subr.msk.bf16.mxu1 %vm1739_vm0, %v3511_v8 }
  0x8e   :  { %v1741_v10 = vsel %vm1739_vm0, %v3513_v9, 0  ;;  %v1808_v8 = vld [vmem:[%s4576_s6 + $0x88] sm:$0xff] }
  0x8f   :  { %3344 = vmatpush3.bf16.msra.mxu0 %v3502_v48  ;;  %1747 = vmatpush1.bf16.msra.mxu1 %v1741_v10  ;;  %v1812_v9 = vld [vmem:[%s4576_s6 + $0xa8] sm:$0xff] }
  0x90   :  { %3345 = vmatprep.subr.bf16.mxu0 %v3503_v49 }
  0x93   :  { %3346 = vmatpush3.bf16.msra.mxu0 %v3504_v50 }
  0x94   :  { %3347 = vmatprep.subr.bf16.mxu0 %v3505_v51 }
  0x97   :  { %3348 = vmatpush3.bf16.msra.mxu0 %v3506_v52 }
  0x98   :  { %3349 = vmatprep.subr.bf16.mxu0 %v3507_v53 }
  0x9b   :  { %3350 = vmatpush3.bf16.msra.mxu0 %v3508_v55 }
  0x9c   :  { %3351 = vmatprep.subr.bf16.mxu0 %v3509_v56 }
  0x9f   :  { %3352 = vmatpush3.bf16.msra.mxu0 %v3510_v57  ;;  %v3566_v57 = vmov 0  }
  0xa0   :  { %1778 = vmatprep.mubr.bf16.mxu1 %v3566_v57  ;;  %v1900_v57 = vld [vmem:[%s4576_s6 + $0x368] sm:$0xff] }
  0xa2   :  { %1691 = vmatmul.mubr.bf16.vlgmr.msra.gmra.mrb[16].mxu0 %v448_v58  ;;  %v4115_v58 = vld [vmem:[%s4576_s6] sm:$0xff] }
  0xf5   :  { %v3177_v59 = vpop.f32.mrb[0].mxu0 }
  0xf6   :  { %v3178_v61 = vpop.f32.mrb[1].mxu0 }
  0xf7   :  { %v3179_v62 = vadd.f32 %v3178_v61, %v3177_v59  ;;  %v3180_v63 = vpop.f32.mrb[2].mxu0  ;;  %v3199_v0 = vpop.f32.mrb[0].mxu1  ;;  %v4120_v59 = vld [vmem:[%s4576_s6 + $0x20] sm:$0xff] }
  0xf8   :  { %v3181_v1 = vpop.f32.mrb[3].mxu0  ;;  %v3200_v2 = vpop.f32.mrb[1].mxu1  ;;  %v3029_v61 = vcombine.low %v4115_v58, %v4120_v59  ;;  %v1796_v63 = vld [vmem:[%s4576_s6 + $0x28] sm:$0xff] }
  0xf9   :  { %v1373_v3 = vadd.f32 %v3179_v62, %v2879_v60  ;;  %v3201_v4 = vadd.f32 %v3200_v2, %v3199_v0  ;;  %v3202_v5 = vpop.f32.mrb[2].mxu1  ;;  %v1792_v60 = vld [vmem:[%s4576_s6 + $0x8] sm:$0xff]  ;;  %v3030_v62 = vcombine.high %v4115_v58, %v4120_v59  ;;  %v1823_v58 = vld [vmem:[%s4576_s6 + $0x100] sm:$0xff] }
  0xfa   :  { %v3203_v6 = vpop.f32.mrb[3].mxu1  ;;  %v3031_v0 = vcombine.low %v1792_v60, %v1796_v63  ;;  %v3032_v1 = vcombine.high %v1792_v60, %v1796_v63  ;;  %v1800_v2 = vld [vmem:[%s4576_s6 + $0x48] sm:$0xff]  ;;  %v1827_v59 = vld [vmem:[%s4576_s6 + $0x120] sm:$0xff] }
  0xfb   :  { %v1413_v7 = vadd.f32 %v3201_v4, %v1373_v3  ;;  %v1804_v3 = vld [vmem:[%s4576_s6 + $0x68] sm:$0xff]  ;;  %2601 = vmatprep.subr.bf16.mxu1 %v3030_v62 }
  0xfc   :  { %v3040_v4 = vcombine.high %v1800_v2, %v1804_v3  ;;  %2642 = vmatprep.subr.bf16.mxu0 %v3032_v1  ;;  %v3039_v6 = vcombine.low %v1800_v2, %v1804_v3  ;;  %v1799_v1 = vld [vmem:[%s4576_s6 + $0x40] sm:$0xff] }
  0xfd   :  { %v1704_v5 = vpop.permute.xlu0 %1703  ;;  %2643 = vmatpush1.bf16.msra.mxu0 %v3031_v0  ;;  %v1803_v2 = vld [vmem:[%s4576_s6 + $0x60] sm:$0xff] }
  0xfe   :  { %2644 = vmatprep.subr.bf16.mxu0 %v3040_v4 }
 0x101   :  { %2645 = vmatpush1.bf16.msra.mxu0 %v3039_v6  ;;  %v1807_v6 = vld [vmem:[%s4576_s6 + $0x80] sm:$0xff] }
 0x115   :  { %v3221_v11 = vpop.f32.mrb[4].mxu0 }
 0x116   :  { %v3222_v12 = vpop.f32.mrb[5].mxu0 }
 0x117   :  { %v3223_v13 = vadd.f32 %v3222_v12, %v3221_v11  ;;  %v3224_v14 = vpop.f32.mrb[6].mxu0  ;;  %v3243_v15 = vpop.f32.mrb[4].mxu1  ;;  %v3048_v11 = vcombine.high %v1808_v8, %v1812_v9  ;;  %v3047_v12 = vcombine.low %v1808_v8, %v1812_v9  ;;  %v3037_v8 = vcombine.low %v1799_v1, %v1803_v2 }
 0x118   :  { %v3225_v16 = vpop.f32.mrb[7].mxu0  ;;  %v3244_v17 = vpop.f32.mrb[5].mxu1  ;;  %v1820_v14 = vld [vmem:[%s4576_s6 + $0xe8] sm:$0xff] }
 0x119   :  { %v1453_v18 = vadd.f32 %v3223_v13, %v1413_v7  ;;  %v3245_v19 = vadd.f32 %v3244_v17, %v3243_v15  ;;  %v3246_v20 = vpop.f32.mrb[6].mxu1  ;;  %2646 = vmatprep.subr.bf16.mxu0 %v3048_v11  ;;  %v1816_v13 = vld [vmem:[%s4576_s6 + $0xc8] sm:$0xff] }
 0x11a   :  { %v3247_v21 = vpop.f32.mrb[7].mxu1  ;;  %v3056_v15 = vcombine.high %v1816_v13, %v1820_v14  ;;  %2647 = vmatpush1.bf16.msra.mxu0 %v3047_v12  ;;  %v3055_v16 = vcombine.low %v1816_v13, %v1820_v14  ;;  %v1824_v17 = vld [vmem:[%s4576_s6 + $0x108] sm:$0xff]  ;;  %v3062_v13 = vcombine.high %v1823_v58, %v1827_v59  ;;  %v1831_v14 = vld [vmem:[%s4576_s6 + $0x140] sm:$0xff] }
 0x11b   :  { %v1493_v22 = vadd.f32 %v3245_v19, %v1453_v18  ;;  %v1828_v18 = vld [vmem:[%s4576_s6 + $0x128] sm:$0xff] }
 0x11c   :  { %2648 = vmatprep.subr.bf16.mxu0 %v3056_v15  ;;  %v3064_v19 = vcombine.high %v1824_v17, %v1828_v18  ;;  %v3063_v20 = vcombine.low %v1824_v17, %v1828_v18  ;;  %v1832_v21 = vld [vmem:[%s4576_s6 + $0x148] sm:$0xff]  ;;  %v1835_v15 = vld [vmem:[%s4576_s6 + $0x160] sm:$0xff] }
 0x11d   :  { %v3070_v17 = vcombine.high %v1831_v14, %v1835_v15  ;;  %v1839_v18 = vld [vmem:[%s4576_s6 + $0x180] sm:$0xff] }
 0x11e   :  { %2649 = vmatpush1.bf16.msra.mxu0 %v3055_v16  ;;  %v3061_v16 = vcombine.low %v1823_v58, %v1827_v59 }
 0x11f   :  { %2650 = vmatprep.subr.bf16.mxu0 %v3064_v19  ;;  %v1843_v19 = vld [vmem:[%s4576_s6 + $0x1a0] sm:$0xff] }
 0x122   :  { %2651 = vmatpush1.bf16.msra.mxu0 %v3063_v20  ;;  %v3069_v20 = vcombine.low %v1831_v14, %v1835_v15  ;;  %v1715_v14 = vld [vmem:[%s4575_s5] sm:$0x3]  ;;  %v1723_v15 = vsub.s32 1, %v3718_v32 }
 0x135   :  { %v3265_v23 = vpop.f32.mrb[8].mxu0 }
 0x136   :  { %v3266_v24 = vpop.f32.mrb[9].mxu0 }
 0x137   :  { %v3267_v25 = vadd.f32 %v3266_v24, %v3265_v23  ;;  %v3268_v26 = vpop.f32.mrb[10].mxu0  ;;  %v3287_v27 = vpop.f32.mrb[8].mxu1 }
 0x138   :  { %v3269_v28 = vpop.f32.mrb[11].mxu0  ;;  %v3288_v29 = vpop.f32.mrb[9].mxu1  ;;  %v1844_v26 = vld [vmem:[%s4576_s6 + $0x1a8] sm:$0xff] }
 0x139   :  { %v1533_v30 = vadd.f32 %v3267_v25, %v1493_v22  ;;  %v3289_v31 = vadd.f32 %v3288_v29, %v3287_v27  ;;  %v3290_v33 = vpop.f32.mrb[10].mxu1  ;;  %v1836_v22 = vld [vmem:[%s4576_s6 + $0x168] sm:$0xff] }
 0x13a   :  { %v3291_v34 = vpop.f32.mrb[11].mxu1  ;;  %v3072_v23 = vcombine.high %v1832_v21, %v1836_v22  ;;  %v3071_v24 = vcombine.low %v1832_v21, %v1836_v22  ;;  %v1840_v25 = vld [vmem:[%s4576_s6 + $0x188] sm:$0xff]  ;;  %v3078_v21 = vcombine.high %v1839_v18, %v1843_v19  ;;  %v1847_v22 = vld [vmem:[%s4576_s6 + $0x1c0] sm:$0xff] }
 0x13b   :  { %v1573_v35 = vadd.f32 %v3289_v31, %v1533_v30  ;;  %v3080_v27 = vcombine.high %v1840_v25, %v1844_v26  ;;  %v3079_v28 = vcombine.low %v1840_v25, %v1844_v26  ;;  %v1848_v29 = vld [vmem:[%s4576_s6 + $0x1c8] sm:$0xff]  ;;  %v1855_v26 = vld [vmem:[%s4576_s6 + $0x200] sm:$0xff] }
 0x13c   :  { %2652 = vmatprep.subr.bf16.mxu0 %v3072_v23  ;;  %v1852_v30 = vld [vmem:[%s4576_s6 + $0x1e8] sm:$0xff]  ;;  %v1851_v23 = vld [vmem:[%s4576_s6 + $0x1e0] sm:$0xff] }
 0x13d   :  { %2653 = vmatpush1.bf16.msra.mxu0 %v3071_v24  ;;  %v3088_v31 = vcombine.high %v1848_v29, %v1852_v30  ;;  %v3087_v33 = vcombine.low %v1848_v29, %v1852_v30  ;;  %v1856_v34 = vld [vmem:[%s4576_s6 + $0x208] sm:$0xff]  ;;  %v3077_v24 = vcombine.low %v1839_v18, %v1843_v19  ;;  %v3086_v25 = vcombine.high %v1847_v22, %v1851_v23  ;;  %v1863_v30 = vld [vmem:[%s4576_s6 + $0x240] sm:$0xff] }
 0x13e   :  { %2654 = vmatprep.subr.bf16.mxu0 %v3080_v27  ;;  %v1859_v27 = vld [vmem:[%s4576_s6 + $0x220] sm:$0xff] }
 0x13f   :  { %v3094_v29 = vcombine.high %v1855_v26, %v1859_v27 }
 0x141   :  { %2655 = vmatpush1.bf16.msra.mxu0 %v3079_v28  ;;  %v3085_v28 = vcombine.low %v1847_v22, %v1851_v23 }
 0x142   :  { %2656 = vmatprep.subr.bf16.mxu0 %v3088_v31  ;;  %v1867_v31 = vld [vmem:[%s4576_s6 + $0x260] sm:$0xff] }
 0x145   :  { %2657 = vmatpush1.bf16.msra.mxu0 %v3087_v33  ;;  %v3093_v33 = vcombine.low %v1855_v26, %v1859_v27  ;;  %v1801_v26 = vld [vmem:[%s4576_s6 + $0x50] sm:$0xff] }
 0x146   :  { %v1805_v27 = vld [vmem:[%s4576_s6 + $0x70] sm:$0xff] }
 0x155   :  { %v3309_v36 = vpop.f32.mrb[12].mxu0 }
 0x156   :  { %v3310_v37 = vpop.f32.mrb[13].mxu0 }
 0x157   :  { %v3311_v38 = vadd.f32 %v3310_v37, %v3309_v36  ;;  %v3312_v39 = vpop.f32.mrb[14].mxu0  ;;  %v3331_v40 = vpop.f32.mrb[12].mxu1 }
 0x158   :  { %v3313_v42 = vpop.f32.mrb[15].mxu0  ;;  %v3332_v43 = vpop.f32.mrb[13].mxu1  ;;  %v1868_v39 = vld [vmem:[%s4576_s6 + $0x268] sm:$0xff] }
 0x159   :  { %v1613_v44 = vadd.f32 %v3311_v38, %v1573_v35  ;;  %v3333_v45 = vadd.f32 %v3332_v43, %v3331_v40  ;;  %v3334_v46 = vpop.f32.mrb[14].mxu1  ;;  %v1860_v35 = vld [vmem:[%s4576_s6 + $0x228] sm:$0xff] }
 0x15a   :  { %v3335_v47 = vpop.f32.mrb[15].mxu1  ;;  %v3096_v36 = vcombine.high %v1856_v34, %v1860_v35  ;;  %v3095_v37 = vcombine.low %v1856_v34, %v1860_v35  ;;  %v1864_v38 = vld [vmem:[%s4576_s6 + $0x248] sm:$0xff]  ;;  %v3102_v34 = vcombine.high %v1863_v30, %v1867_v31  ;;  %v1871_v35 = vld [vmem:[%s4576_s6 + $0x280] sm:$0xff] }
 0x15b   :  { %v1653_v48 = vadd.f32 %v3333_v45, %v1613_v44  ;;  %v3104_v40 = vcombine.high %v1864_v38, %v1868_v39  ;;  %v3103_v42 = vcombine.low %v1864_v38, %v1868_v39  ;;  %v1872_v43 = vld [vmem:[%s4576_s6 + $0x288] sm:$0xff]  ;;  %v1879_v39 = vld [vmem:[%s4576_s6 + $0x2c0] sm:$0xff] }
 0x15c   :  { %2658 = vmatprep.subr.bf16.mxu0 %v3096_v36  ;;  %v1876_v44 = vld [vmem:[%s4576_s6 + $0x2a8] sm:$0xff]  ;;  %v1875_v36 = vld [vmem:[%s4576_s6 + $0x2a0] sm:$0xff] }
 0x15d   :  { %2659 = vmatpush1.bf16.msra.mxu0 %v3095_v37  ;;  %v3112_v45 = vcombine.high %v1872_v43, %v1876_v44  ;;  %v3111_v46 = vcombine.low %v1872_v43, %v1876_v44  ;;  %v1880_v47 = vld [vmem:[%s4576_s6 + $0x2c8] sm:$0xff]  ;;  %v3101_v37 = vcombine.low %v1863_v30, %v1867_v31  ;;  %v3110_v38 = vcombine.high %v1871_v35, %v1875_v36  ;;  %v1887_v44 = vld [vmem:[%s4576_s6 + $0x300] sm:$0xff] }
 0x15e   :  { %2660 = vmatprep.subr.bf16.mxu0 %v3104_v40  ;;  %v1883_v40 = vld [vmem:[%s4576_s6 + $0x2e0] sm:$0xff] }
 0x15f   :  { %v3118_v43 = vcombine.high %v1879_v39, %v1883_v40 }
 0x161   :  { %2661 = vmatpush1.bf16.msra.mxu0 %v3103_v42  ;;  %v3109_v42 = vcombine.low %v1871_v35, %v1875_v36  ;;  %v1813_v36 = vld [vmem:[%s4576_s6 + $0xb0] sm:$0xff] }
 0x162   :  { %2662 = vmatprep.subr.bf16.mxu0 %v3112_v45  ;;  %v1891_v45 = vld [vmem:[%s4576_s6 + $0x320] sm:$0xff] }
 0x165   :  { %2663 = vmatpush1.bf16.msra.mxu0 %v3111_v46  ;;  %v3117_v46 = vcombine.low %v1879_v39, %v1883_v40  ;;  %v3041_v39 = vcombine.low %v1801_v26, %v1805_v27 }
 0x175   :  { %v3353_v49 = vpop.f32.mrb[16].mxu0 }
 0x176   :  { %v3354_v50 = vpop.f32.mrb[17].mxu0 }
 0x177   :  { %v3355_v51 = vadd.f32 %v3354_v50, %v3353_v49  ;;  %v3356_v52 = vpop.f32.mrb[18].mxu0 }
 0x178   :  { %v3357_v53 = vpop.f32.mrb[19].mxu0  ;;  %v1892_v52 = vld [vmem:[%s4576_s6 + $0x328] sm:$0xff] }
 0x179   :  { %v4107_v54 = vadd.f32 %v3355_v51, %v1653_v48  ;;  %v1884_v48 = vld [vmem:[%s4576_s6 + $0x2e8] sm:$0xff] }
 0x17a   :  { %v3120_v49 = vcombine.high %v1880_v47, %v1884_v48  ;;  %v3119_v50 = vcombine.low %v1880_v47, %v1884_v48  ;;  %v1888_v51 = vld [vmem:[%s4576_s6 + $0x308] sm:$0xff]  ;;  %v3126_v47 = vcombine.high %v1887_v44, %v1891_v45  ;;  %v1895_v48 = vld [vmem:[%s4576_s6 + $0x340] sm:$0xff] }
 0x17b   :  { %v1698_v55 = vmul.f32 0.5, %v4107_v54  ;;  %2774 = vst.msk [vmem:[#allocation2] sm:$0x3] %vm2773_vm1, %v4107_v54  ;;  %v3128_v53 = vcombine.high %v1888_v51, %v1892_v52 }
 0x17c   :  { %2664 = vmatprep.subr.bf16.mxu0 %v3120_v49  ;;  %v1899_v49 = vld [vmem:[%s4576_s6 + $0x360] sm:$0xff] }
 0x17d   :  { %v1699_v56 = vmul.f32 1.442695, %v1698_v55  ;;  %2665 = vmatpush1.bf16.msra.mxu0 %v3119_v50  ;;  %v3127_v55 = vcombine.low %v1888_v51, %v1892_v52  ;;  %v3125_v50 = vcombine.low %v1887_v44, %v1891_v45  ;;  %v3134_v51 = vcombine.high %v1895_v48, %v1899_v49  ;;  %v1817_v44 = vld [vmem:[%s4576_s6 + $0xd0] sm:$0xff] }
 0x17e   :  { %2666 = vmatprep.subr.bf16.mxu0 %v3128_v53  ;;  %v3133_v52 = vcombine.low %v1895_v48, %v1899_v49  ;;  %v1903_v53 = vld [vmem:[%s4576_s6 + $0x380] sm:$0xff]  ;;  %v1821_v45 = vld [vmem:[%s4576_s6 + $0xf0] sm:$0xff] }
 0x17f   :  { %3514 = vpow2.f32 %v1699_v56  ;;  %v1896_v56 = vld [vmem:[%s4576_s6 + $0x348] sm:$0xff] }
 0x180   :  { %v3136_v60 = vcombine.high %v1896_v56, %v1900_v57  ;;  %v3135_v62 = vcombine.low %v1896_v56, %v1900_v57  ;;  %v1904_v56 = vld [vmem:[%s4576_s6 + $0x388] sm:$0xff] }
 0x181   :  { %2667 = vmatpush1.bf16.msra.mxu0 %v3127_v55  ;;  %v1907_v55 = vld [vmem:[%s4576_s6 + $0x3a0] sm:$0xff] }
 0x182   :  { %2668 = vmatprep.subr.bf16.mxu0 %v3136_v60  ;;  %v3142_v57 = vcombine.high %v1903_v53, %v1907_v55  ;;  %v1908_v60 = vld [vmem:[%s4576_s6 + $0x3a8] sm:$0xff] }
 0x185   :  { %2669 = vmatpush1.bf16.msra.mxu0 %v3135_v62  ;;  %v3141_v62 = vcombine.low %v1903_v53, %v1907_v55  ;;  %v1829_v53 = vld [vmem:[%s4576_s6 + $0x130] sm:$0xff]  ;;  %v1826_v55 = vld [vmem:[%s4576_s6 + $0x118] sm:$0xff] }
 0x189   :  { %v3515_v7 = vpop.eup %3514 }
 0x18a   :  { %v1706_v10 = vmul.f32 %v3515_v7, %v1704_v5  ;;  %2776 = vrot.lane.b32.xlu1 %v3515_v7, %s3567_s26  ;;  %v3038_v5 = vcombine.high %v1799_v1, %v1803_v2  ;;  %v1811_v7 = vld [vmem:[%s4576_s6 + $0xa0] sm:$0xff] }
 0x18b   :  { %v3046_v9 = vcombine.high %v1807_v6, %v1811_v7  ;;  %v3045_v11 = vcombine.low %v1807_v6, %v1811_v7  ;;  %v1911_v1 = vld [vmem:[%s4576_s6 + $0x3c0] sm:$0xff] }
 0x18c   :  { %1708 = vrot.lane.b32.xlu0 %v1706_v10, %s3567_s26  ;;  %v1819_v10 = vld [vmem:[%s4576_s6 + $0xe0] sm:$0xff] }
 0x18d   :  { %v1915_v2 = vld [vmem:[%s4576_s6 + $0x3e0] sm:$0xff] }
 0x18e   :  { %v3149_v6 = vcombine.low %v1911_v1, %v1915_v2 }
 0x1fc   :  { %v2777_v63 = vpop.permute.xlu1 %2776 }
 0x1fd   :  { %2779 = vst.msk [vmem:[#allocation4] sm:$0x3] %vm2773_vm1, %v2777_v63  ;;  %v3143_v63 = vcombine.low %v1904_v56, %v1908_v60 }
 0x1fe   :  { %v1709_v0 = vpop.permute.xlu0 %1708 }
 0x1ff   :  { %v1711_v3 = vadd.f32 %v1709_v0, %v4107_v54  ;;  %v1815_v54 = vld [vmem:[%s4576_s6 + $0xc0] sm:$0xff]  ;;  %v3144_v0 = vcombine.high %v1904_v56, %v1908_v60  ;;  %v1830_v56 = vld [vmem:[%s4576_s6 + $0x138] sm:$0xff] }
 0x200   :  { %v3054_v12 = vcombine.high %v1815_v54, %v1819_v10 }
 0x201   :  { %v1712_v4 = vpack.c.bf16 %v1711_v3, %v1711_v3  ;;  %2670 = vmatprep.subr.bf16.mxu0 %v3144_v0  ;;  %v1912_v3 = vld [vmem:[%s4576_s6 + $0x3c8] sm:$0xff]  ;;  %v1833_v0 = vld [vmem:[%s4576_s6 + $0x150] sm:$0xff] }
 0x202   :  { %2671 = vmatpush1.bf16.msra.mxu0 %v3143_v63  ;;  %v3068_v63 = vcombine.high %v1826_v55, %v1830_v56 }
 0x203   :  { %3028 = vmatmul.mubr.msk.bf16.vlgmr.msra.gmra.mrb[16].mxu1 %vm1735_vm2, %v1712_v4  ;;  %v3150_v4 = vcombine.high %v1911_v1, %v1915_v2  ;;  %v1837_v1 = vld [vmem:[%s4576_s6 + $0x170] sm:$0xff]  ;;  %v1834_v2 = vld [vmem:[%s4576_s6 + $0x158] sm:$0xff] }
 0x204   :  { %2602 = vmatpush1.bf16.msra.mxu1 %v3029_v61  ;;  %v3053_v61 = vcombine.low %v1815_v54, %v1819_v10  ;;  %v1797_v54 = vld [vmem:[%s4576_s6 + $0x30] sm:$0xff]  ;;  %v1794_v10 = vld [vmem:[%s4576_s6 + $0x18] sm:$0xff] }
 0x205   :  { %2603 = vmatprep.subr.bf16.mxu1 %v3038_v5  ;;  %v1916_v5 = vld [vmem:[%s4576_s6 + $0x3e8] sm:$0xff] }
 0x206   :  { %v3151_v7 = vcombine.low %v1912_v3, %v1916_v5 }
 0x208   :  { %2604 = vmatpush1.bf16.msra.mxu1 %v3037_v8  ;;  %v3152_v8 = vcombine.high %v1912_v3, %v1916_v5  ;;  %v1838_v3 = vld [vmem:[%s4576_s6 + $0x178] sm:$0xff]  ;;  %v3067_v5 = vcombine.low %v1826_v55, %v1830_v56 }
 0x209   :  { %2605 = vmatprep.subr.bf16.mxu1 %v3046_v9  ;;  %v1793_v9 = vld [vmem:[%s4576_s6 + $0x10] sm:$0xff] }
 0x20a   :  { %2672 = vmatprep.subr.bf16.mxu0 %v3152_v8  ;;  %v3033_v58 = vcombine.low %v1793_v9, %v1797_v54  ;;  %v1841_v8 = vld [vmem:[%s4576_s6 + $0x190] sm:$0xff] }
 0x20b   :  { %2673 = vmatpush1.bf16.msra.mxu0 %v3151_v7  ;;  %v3076_v7 = vcombine.high %v1834_v2, %v1838_v3 }
 0x20c   :  { %2606 = vmatpush1.bf16.msra.mxu1 %v3045_v11  ;;  %v3034_v11 = vcombine.high %v1793_v9, %v1797_v54  ;;  %v1845_v9 = vld [vmem:[%s4576_s6 + $0x1b0] sm:$0xff]  ;;  %v1842_v54 = vld [vmem:[%s4576_s6 + $0x198] sm:$0xff] }
 0x20d   :  { %2607 = vmatprep.subr.bf16.mxu1 %v3054_v12  ;;  %v1798_v12 = vld [vmem:[%s4576_s6 + $0x38] sm:$0xff] }
 0x20e   :  { %v3035_v59 = vcombine.low %v1794_v10, %v1798_v12 }
 0x210   :  { %2608 = vmatpush1.bf16.msra.mxu1 %v3053_v61  ;;  %v3036_v61 = vcombine.high %v1794_v10, %v1798_v12  ;;  %v1846_v10 = vld [vmem:[%s4576_s6 + $0x1b8] sm:$0xff]  ;;  %v3075_v12 = vcombine.low %v1834_v2, %v1838_v3 }
 0x211   :  { %2609 = vmatprep.subr.bf16.mxu1 %v3062_v13  ;;  %v1719_v13 = vsub.s32 0, %v3718_v32 }
 0x212   :  { %2724 = vmatprep.subr.bf16.mxu0 %v3036_v61  ;;  %v1849_v61 = vld [vmem:[%s4576_s6 + $0x1d0] sm:$0xff] }
 0x214   :  { %2610 = vmatpush1.bf16.msra.mxu1 %v3061_v16  ;;  %v1720_v16 = vrot.slane %v1715_v14, %v1719_v13 }
 0x215   :  { %2611 = vmatprep.subr.bf16.mxu1 %v3070_v17  ;;  %v1724_v17 = vrot.slane %v1715_v14, %v1723_v15  ;;  %v1853_v14 = vld [vmem:[%s4576_s6 + $0x1f0] sm:$0xff] }
 0x218   :  { %2612 = vmatpush1.bf16.msra.mxu1 %v3069_v20 }
 0x219   :  { %2613 = vmatprep.subr.bf16.mxu1 %v3078_v21 }
 0x21c   :  { %2614 = vmatpush1.bf16.msra.mxu1 %v3077_v24 }
 0x21d   :  { %2615 = vmatprep.subr.bf16.mxu1 %v3086_v25 }
 0x220   :  { %2616 = vmatpush1.bf16.msra.mxu1 %v3085_v28  ;;  %v1802_v28 = vld [vmem:[%s4576_s6 + $0x58] sm:$0xff] }
 0x221   :  { %2617 = vmatprep.subr.bf16.mxu1 %v3094_v29  ;;  %v1806_v29 = vld [vmem:[%s4576_s6 + $0x78] sm:$0xff] }
 0x222   :  { %v3044_v35 = vcombine.high %v1802_v28, %v1806_v29  ;;  %v3043_v40 = vcombine.low %v1802_v28, %v1806_v29 }
 0x224   :  { %2618 = vmatpush1.bf16.msra.mxu1 %v3093_v33  ;;  %v1809_v33 = vld [vmem:[%s4576_s6 + $0x90] sm:$0xff] }
 0x225   :  { %2619 = vmatprep.subr.bf16.mxu1 %v3102_v34  ;;  %v3042_v34 = vcombine.high %v1801_v26, %v1805_v27  ;;  %v3049_v48 = vcombine.low %v1809_v33, %v1813_v36  ;;  %v3089_v26 = vcombine.low %v1849_v61, %v1853_v14 }
 0x228   :  { %2620 = vmatpush1.bf16.msra.mxu1 %v3101_v37  ;;  %v1810_v37 = vld [vmem:[%s4576_s6 + $0x98] sm:$0xff] }
 0x229   :  { %2621 = vmatprep.subr.bf16.mxu1 %v3110_v38  ;;  %v1814_v38 = vld [vmem:[%s4576_s6 + $0xb8] sm:$0xff] }
 0x22a   :  { %v3051_v49 = vcombine.low %v1810_v37, %v1814_v38 }
 0x22c   :  { %2622 = vmatpush1.bf16.msra.mxu1 %v3109_v42  ;;  %v3050_v42 = vcombine.high %v1809_v33, %v1813_v36  ;;  %v1869_v33 = vld [vmem:[%s4576_s6 + $0x270] sm:$0xff] }
 0x22d   :  { %2623 = vmatprep.subr.bf16.mxu1 %v3118_v43  ;;  %v3052_v43 = vcombine.high %v1810_v37, %v1814_v38 }
 0x230   :  { %2624 = vmatpush1.bf16.msra.mxu1 %v3117_v46  ;;  %v1818_v46 = vld [vmem:[%s4576_s6 + $0xd8] sm:$0xff] }
 0x231   :  { %2625 = vmatprep.subr.bf16.mxu1 %v3126_v47  ;;  %v1822_v47 = vld [vmem:[%s4576_s6 + $0xf8] sm:$0xff] }
 0x232   :  { %v3059_v60 = vcombine.low %v1818_v46, %v1822_v47 }
 0x234   :  { %2626 = vmatpush1.bf16.msra.mxu1 %v3125_v50  ;;  %v3058_v50 = vcombine.high %v1817_v44, %v1821_v45 }
 0x235   :  { %2627 = vmatprep.subr.bf16.mxu1 %v3134_v51  ;;  %v3060_v51 = vcombine.high %v1818_v46, %v1822_v47 }
 0x238   :  { %2628 = vmatpush1.bf16.msra.mxu1 %v3133_v52  ;;  %v1825_v52 = vld [vmem:[%s4576_s6 + $0x110] sm:$0xff] }
 0x239   :  { %2629 = vmatprep.subr.bf16.mxu1 %v3142_v57  ;;  %v3057_v57 = vcombine.low %v1817_v44, %v1821_v45  ;;  %v1878_v44 = vld [vmem:[%s4576_s6 + $0x2b8] sm:$0xff] }
 0x23c   :  { %2630 = vmatpush1.bf16.msra.mxu1 %v3141_v62  ;;  %v3066_v62 = vcombine.high %v1825_v52, %v1829_v53 }
 0x23d   :  { %2631 = vmatprep.subr.bf16.mxu1 %v3150_v4  ;;  %v3065_v4 = vcombine.low %v1825_v52, %v1829_v53  ;;  %v1886_v52 = vld [vmem:[%s4576_s6 + $0x2f8] sm:$0xff] }
 0x240   :  { %2632 = vmatpush1.bf16.msra.mxu1 %v3149_v6  ;;  %v3074_v6 = vcombine.high %v1833_v0, %v1837_v1 }
 0x241   :  { %2683 = vmatprep.subr.bf16.mxu1 %v3034_v11  ;;  %v3073_v11 = vcombine.low %v1833_v0, %v1837_v1  ;;  %v1894_v0 = vld [vmem:[%s4576_s6 + $0x338] sm:$0xff] }
 0x2d6   :  { %v1780_v18 = vpop.f32.mrb[16].mxu1 }
 0x2d7   :  { %v1781_v19 = vadd.f32 %v1780_v18, %v1720_v16  ;;  %v1782_v20 = vpop.f32.mrb[17].mxu1  ;;  %v1850_v16 = vld [vmem:[%s4576_s6 + $0x1d8] sm:$0xff]  ;;  %v3081_v18 = vcombine.low %v1841_v8, %v1845_v9 }
 0x2d8   :  { %v1783_v21 = vadd.f32 %v1782_v20, %v1724_v17  ;;  %v1784_v22 = vpop.f32.mrb[18].mxu1  ;;  %v1854_v17 = vld [vmem:[%s4576_s6 + $0x1f8] sm:$0xff]  ;;  %v3090_v20 = vcombine.high %v1849_v61, %v1853_v14 }
 0x2d9   :  { %v1787_v23 = vmax.f32 %v1781_v19, 0.0  ;;  %v1785_v24 = vpop.f32.mrb[19].mxu1  ;;  %v3083_v19 = vcombine.low %v1842_v54, %v1846_v10  ;;  %v1857_v22 = vld [vmem:[%s4576_s6 + $0x210] sm:$0xff]  ;;  %v3091_v27 = vcombine.low %v1850_v16, %v1854_v17  ;;  %v1910_v61 = vld [vmem:[%s4576_s6 + $0x3b8] sm:$0xff] }
 0x2da   :  { %v1788_v25 = vmax.f32 %v1783_v21, 0.0  ;;  %v3092_v21 = vcombine.high %v1850_v16, %v1854_v17  ;;  %v1858_v24 = vld [vmem:[%s4576_s6 + $0x218] sm:$0xff] }
 0x2db   :  { %v4350_v31 = vpack.c.bf16 %v1787_v23, %v1787_v23  ;;  %v1861_v23 = vld [vmem:[%s4576_s6 + $0x230] sm:$0xff] }
 0x2dc   :  { %v1790_v30 = vpack.c.bf16 %v1788_v25, %v1788_v25  ;;  %v1862_v25 = vld [vmem:[%s4576_s6 + $0x238] sm:$0xff]  ;;  %v3098_v28 = vcombine.high %v1857_v22, %v1861_v23  ;;  %v3097_v36 = vcombine.low %v1857_v22, %v1861_v23 }
 0x2dd   :  { %v3100_v29 = vcombine.high %v1858_v24, %v1862_v25  ;;  %v3099_v37 = vcombine.low %v1858_v24, %v1862_v25  ;;  %v1918_v22 = vld [vmem:[%s4576_s6 + $0x3f8] sm:$0xff] }
 0x2de   :  { %2633 = vmatprep.mubr.bf16.mxu1 %v1790_v30  ;;  %2674 = vmatprep.mubr.bf16.mxu0 %v1790_v30 }
 0x2df   :  { %2634 = vmatmul.mubr.bf16.vlgmr.msra.gmra.mrb[20].mxu1 %v4350_v31  ;;  %2675 = vmatmul.mubr.bf16.vlgmr.msra.gmra.mrb[20].mxu0 %v4350_v31 }
 0x2e0   :  { %2684 = vmatpush1.bf16.msra.mxu1 %v3033_v58  ;;  %2725 = vmatpush1.bf16.msra.mxu0 %v3035_v59  ;;  %v3082_v58 = vcombine.high %v1841_v8, %v1845_v9  ;;  %v3084_v59 = vcombine.high %v1842_v54, %v1846_v10  ;;  %v1902_v8 = vld [vmem:[%s4576_s6 + $0x378] sm:$0xff] }
 0x2e1   :  { %2715 = vmatprep.mubr.bf16.mxu1 %v1790_v30  ;;  %2756 = vmatprep.mubr.bf16.mxu0 %v1790_v30  ;;  %v1865_v30 = vld [vmem:[%s4576_s6 + $0x250] sm:$0xff] }
 0x2e2   :  { %2685 = vmatprep.subr.bf16.mxu1 %v3042_v34  ;;  %2726 = vmatprep.subr.bf16.mxu0 %v3044_v35  ;;  %v1866_v34 = vld [vmem:[%s4576_s6 + $0x258] sm:$0xff]  ;;  %v3106_v38 = vcombine.high %v1865_v30, %v1869_v33  ;;  %v3105_v45 = vcombine.low %v1865_v30, %v1869_v33 }
 0x2e3   :  { %v1870_v35 = vld [vmem:[%s4576_s6 + $0x278] sm:$0xff] }
 0x2e4   :  { %2686 = vmatpush1.bf16.msra.mxu1 %v3041_v39  ;;  %2727 = vmatpush1.bf16.msra.mxu0 %v3043_v40  ;;  %v3108_v39 = vcombine.high %v1866_v34, %v1870_v35  ;;  %v1873_v40 = vld [vmem:[%s4576_s6 + $0x290] sm:$0xff]  ;;  %v3107_v46 = vcombine.low %v1866_v34, %v1870_v35 }
 0x2e5   :  { %2687 = vmatprep.subr.bf16.mxu1 %v3050_v42  ;;  %2728 = vmatprep.subr.bf16.mxu0 %v3052_v43  ;;  %v1877_v42 = vld [vmem:[%s4576_s6 + $0x2b0] sm:$0xff]  ;;  %v1874_v43 = vld [vmem:[%s4576_s6 + $0x298] sm:$0xff] }
 0x2e6   :  { %v3114_v47 = vcombine.high %v1873_v40, %v1877_v42  ;;  %v3113_v53 = vcombine.low %v1873_v40, %v1877_v42  ;;  %v3115_v55 = vcombine.low %v1874_v43, %v1878_v44 }
 0x2e8   :  { %2688 = vmatpush1.bf16.msra.mxu1 %v3049_v48  ;;  %2729 = vmatpush1.bf16.msra.mxu0 %v3051_v49  ;;  %v3116_v48 = vcombine.high %v1874_v43, %v1878_v44  ;;  %v1881_v49 = vld [vmem:[%s4576_s6 + $0x2d0] sm:$0xff] }
 0x2e9   :  { %2689 = vmatprep.subr.bf16.mxu1 %v3058_v50  ;;  %2730 = vmatprep.subr.bf16.mxu0 %v3060_v51  ;;  %v1885_v50 = vld [vmem:[%s4576_s6 + $0x2f0] sm:$0xff]  ;;  %v1882_v51 = vld [vmem:[%s4576_s6 + $0x2d8] sm:$0xff] }
 0x2ea   :  { %v3122_v56 = vcombine.high %v1881_v49, %v1885_v50  ;;  %v3121_v1 = vcombine.low %v1881_v49, %v1885_v50  ;;  %v3123_v2 = vcombine.low %v1882_v51, %v1886_v52 }
 0x2ec   :  { %2690 = vmatpush1.bf16.msra.mxu1 %v3057_v57  ;;  %2731 = vmatpush1.bf16.msra.mxu0 %v3059_v60  ;;  %v3124_v57 = vcombine.high %v1882_v51, %v1886_v52  ;;  %v1889_v60 = vld [vmem:[%s4576_s6 + $0x310] sm:$0xff] }
 0x2ed   :  { %2691 = vmatprep.subr.bf16.mxu1 %v3066_v62  ;;  %2732 = vmatprep.subr.bf16.mxu0 %v3068_v63  ;;  %v1893_v62 = vld [vmem:[%s4576_s6 + $0x330] sm:$0xff]  ;;  %v1890_v63 = vld [vmem:[%s4576_s6 + $0x318] sm:$0xff] }
 0x2ee   :  { %v3130_v3 = vcombine.high %v1889_v60, %v1893_v62  ;;  %v3129_v9 = vcombine.low %v1889_v60, %v1893_v62  ;;  %v3131_v54 = vcombine.low %v1890_v63, %v1894_v0 }
 0x2f0   :  { %2692 = vmatpush1.bf16.msra.mxu1 %v3065_v4  ;;  %2733 = vmatpush1.bf16.msra.mxu0 %v3067_v5  ;;  %v3132_v4 = vcombine.high %v1890_v63, %v1894_v0  ;;  %v1897_v5 = vld [vmem:[%s4576_s6 + $0x350] sm:$0xff] }
 0x2f1   :  { %2693 = vmatprep.subr.bf16.mxu1 %v3074_v6  ;;  %2734 = vmatprep.subr.bf16.mxu0 %v3076_v7  ;;  %v1901_v6 = vld [vmem:[%s4576_s6 + $0x370] sm:$0xff]  ;;  %v1898_v7 = vld [vmem:[%s4576_s6 + $0x358] sm:$0xff] }
 0x2f2   :  { %v3138_v10 = vcombine.high %v1897_v5, %v1901_v6  ;;  %v3137_v14 = vcombine.low %v1897_v5, %v1901_v6  ;;  %v3139_v16 = vcombine.low %v1898_v7, %v1902_v8 }
 0x2f4   :  { %2694 = vmatpush1.bf16.msra.mxu1 %v3073_v11  ;;  %2735 = vmatpush1.bf16.msra.mxu0 %v3075_v12  ;;  %v3140_v11 = vcombine.high %v1898_v7, %v1902_v8  ;;  %v1905_v12 = vld [vmem:[%s4576_s6 + $0x390] sm:$0xff] }
 0x2f5   :  { %2695 = vmatprep.subr.bf16.mxu1 %v3082_v58  ;;  %2736 = vmatprep.subr.bf16.mxu0 %v3084_v59  ;;  %v1909_v58 = vld [vmem:[%s4576_s6 + $0x3b0] sm:$0xff]  ;;  %v1906_v59 = vld [vmem:[%s4576_s6 + $0x398] sm:$0xff] }
 0x2f6   :  { %v3146_v17 = vcombine.high %v1905_v12, %v1909_v58  ;;  %v3145_v23 = vcombine.low %v1905_v12, %v1909_v58  ;;  %v3147_v24 = vcombine.low %v1906_v59, %v1910_v61 }
 0x2f8   :  { %2696 = vmatpush1.bf16.msra.mxu1 %v3081_v18  ;;  %2737 = vmatpush1.bf16.msra.mxu0 %v3083_v19  ;;  %v3148_v18 = vcombine.high %v1906_v59, %v1910_v61  ;;  %v1913_v19 = vld [vmem:[%s4576_s6 + $0x3d0] sm:$0xff] }
 0x2f9   :  { %2697 = vmatprep.subr.bf16.mxu1 %v3090_v20  ;;  %2738 = vmatprep.subr.bf16.mxu0 %v3092_v21  ;;  %v1917_v20 = vld [vmem:[%s4576_s6 + $0x3f0] sm:$0xff]  ;;  %v1914_v21 = vld [vmem:[%s4576_s6 + $0x3d8] sm:$0xff]  ;;  %s3568_s6 = smov [#allocation2]  }
 0x2fa   :  { %v3154_v25 = vcombine.high %v1913_v19, %v1917_v20  ;;  %s2853_s14 = sshll.u32 %s3568_s6, 4  ;;  %s2854_s14 = int_to_ptr.vmem [resolvable:$true] %s2853_s14 }
 0x2fb   :  { %s3516_s17 = scalar_lea.vmem %s2854_s14, 32  ;;  %p3521_p1 = scmp.lt.s32.totalorder %s2854_s14, %s2854_s14 }
 0x2fc   :  { %2698 = vmatpush1.bf16.msra.mxu1 %v3089_v26  ;;  %2739 = vmatpush1.bf16.msra.mxu0 %v3091_v27  ;;  %v3156_v26 = vcombine.high %v1914_v21, %v1918_v22  ;;  %v3153_v27 = vcombine.low %v1913_v19, %v1917_v20  ;;  %p3517_p0 = scmp.ne.s32.totalorder %s2854_s14, %s3516_s17  ;;  %p3522_p2 = scmp.lt.s32.totalorder %s3516_s17, %s3516_s17 }
 0x2fd   :  { %2699 = vmatprep.subr.bf16.mxu1 %v3098_v28  ;;  %2740 = vmatprep.subr.bf16.mxu0 %v3100_v29  ;;  %v3155_v28 = vcombine.low %v1914_v21, %v1918_v22 }
 0x2fe   :  { %p3523_p3 = por %p3522_p2, %p3521_p1 }
 0x300   :  { %2700 = vmatpush1.bf16.msra.mxu1 %v3097_v36  ;;  %2741 = vmatpush1.bf16.msra.mxu0 %v3099_v37  ;;  %p3524_p4 = pnand %p3523_p3, %p3517_p0 }
 0x301   :  { %2701 = vmatprep.subr.bf16.mxu1 %v3106_v38  ;;  %2742 = vmatprep.subr.bf16.mxu0 %v3108_v39 }
 0x304   :  { %2702 = vmatpush1.bf16.msra.mxu1 %v3105_v45  ;;  %2743 = vmatpush1.bf16.msra.mxu0 %v3107_v46 }
 0x305   :  { %2703 = vmatprep.subr.bf16.mxu1 %v3114_v47  ;;  %2744 = vmatprep.subr.bf16.mxu0 %v3116_v48 }
 0x308   :  { %2704 = vmatpush1.bf16.msra.mxu1 %v3113_v53  ;;  %2745 = vmatpush1.bf16.msra.mxu0 %v3115_v55 }
 0x309   :  { %2705 = vmatprep.subr.bf16.mxu1 %v3122_v56  ;;  %2746 = vmatprep.subr.bf16.mxu0 %v3124_v57 }
 0x30c   :  { %2706 = vmatpush1.bf16.msra.mxu1 %v3121_v1  ;;  %2747 = vmatpush1.bf16.msra.mxu0 %v3123_v2 }
 0x30d   :  { %2707 = vmatprep.subr.bf16.mxu1 %v3130_v3  ;;  %2748 = vmatprep.subr.bf16.mxu0 %v3132_v4 }
 0x310   :  { %2708 = vmatpush1.bf16.msra.mxu1 %v3129_v9  ;;  %2749 = vmatpush1.bf16.msra.mxu0 %v3131_v54 }
 0x311   :  { %2709 = vmatprep.subr.bf16.mxu1 %v3138_v10  ;;  %2750 = vmatprep.subr.bf16.mxu0 %v3140_v11 }
 0x314   :  { %2710 = vmatpush1.bf16.msra.mxu1 %v3137_v14  ;;  %2751 = vmatpush1.bf16.msra.mxu0 %v3139_v16 }
 0x315   :  { %2711 = vmatprep.subr.bf16.mxu1 %v3146_v17  ;;  %2752 = vmatprep.subr.bf16.mxu0 %v3148_v18 }
 0x318   :  { %2712 = vmatpush1.bf16.msra.mxu1 %v3145_v23  ;;  %2753 = vmatpush1.bf16.msra.mxu0 %v3147_v24 }
 0x319   :  { %2713 = vmatprep.subr.bf16.mxu1 %v3154_v25  ;;  %2754 = vmatprep.subr.bf16.mxu0 %v3156_v26 }
 0x31c   :  { %2714 = vmatpush1.bf16.msra.mxu1 %v3153_v27  ;;  %2755 = vmatpush1.bf16.msra.mxu0 %v3155_v28 }
 0x31f   :  { %2716 = vmatmul.mubr.bf16.vlgmr.msra.gmra.mrb[24].mxu1 %v4350_v31  ;;  %2757 = vmatmul.mubr.bf16.vlgmr.msra.gmra.mrb[24].mxu0 %v4350_v31 }
 0x320   :  { %3527 = shalt.err (!%p3524_p4)
}
 0x321   :  { %s3528_s20 = scalar_lea.hbm %s4578_s8, 32 }
 0x322   :  { %p3529_p5 = scmp.ne.s32.totalorder %s4578_s8, %s3528_s20  ;;  %p3532_p6 = scmp.lt.u32.totalorder %s3528_s20, %s4578_s8 }
 0x324   :  { %p3534_p7 = pnand %p3532_p6, %p3529_p5 }
 0x326   :  { %3537 = shalt.err (!%p3534_p7)
}
 0x327   :  { %2856 = dma.vmem_to_hbm [thread:$0]  %s2854_s14, 32, %s4578_s8, [#allocation3]  }
 0x328   :  { %s3538_s26 = scalar_lea.vmem %s2864_s16, 32  ;;  %p3543_p9 = scmp.lt.s32.totalorder %s2864_s16, %s2864_s16 }
 0x329   :  { %p3539_p8 = scmp.ne.s32.totalorder %s2864_s16, %s3538_s26  ;;  %p3544_p10 = scmp.lt.s32.totalorder %s3538_s26, %s3538_s26 }
 0x32b   :  { %p3545_p11 = por %p3544_p10, %p3543_p9 }
 0x32d   :  { %p3546_p12 = pnand %p3545_p11, %p3539_p8 }
 0x32f   :  { %3549 = shalt.err (!%p3546_p12)
}
 0x330   :  { %s3550_s3 = scalar_lea.hbm %s4579_s9, 32 }
 0x331   :  { %p3551_p13 = scmp.ne.s32.totalorder %s4579_s9, %s3550_s3  ;;  %p3554_p0 = scmp.lt.u32.totalorder %s3550_s3, %s4579_s9 }
 0x333   :  { %p3556_p1 = pnand %p3554_p0, %p3551_p13 }
 0x335   :  { %3559 = shalt.err (!%p3556_p1)
}
 0x336   :  { %2866 = dma.vmem_to_hbm [thread:$0]  %s2864_s16, 32, %s4579_s9, [#allocation5]   ;;  %v1931_v31 = vsub.s32 2, %v3718_v32  ;;  %v1919_v29 = vld [vmem:[%s4577_s7] sm:$0xff]  ;;  %v1935_v30 = vsub.s32 3, %v3718_v32  ;;  %v1939_v60 = vsub.s32 4, %v3718_v32 }
 0x337   :  { %v1924_v33 = vrot.slane %v1919_v29, %v1719_v13  ;;  %v1928_v35 = vrot.slane %v1919_v29, %v1723_v15  ;;  %v1947_v62 = vsub.s32 6, %v3718_v32  ;;  %v1943_v63 = vsub.s32 5, %v3718_v32 }
 0x338   :  { %v1932_v34 = vrot.slane %v1919_v29, %v1931_v31  ;;  %v1936_v36 = vrot.slane %v1919_v29, %v1935_v30  ;;  %v1951_v0 = vsub.s32 7, %v3718_v32  ;;  %v1940_v1 = vrot.slane %v1919_v29, %v1939_v60 }
 0x339   :  { %v1948_v2 = vrot.slane %v1919_v29, %v1947_v62  ;;  %v1944_v3 = vrot.slane %v1919_v29, %v1943_v63 }
 0x33a   :  { %v1952_v4 = vrot.slane %v1919_v29, %v1951_v0 }
 0x3b2   :  { %v2635_v37 = vpop.f32.mrb[20].mxu1  ;;  %v2676_v38 = vpop.f32.mrb[20].mxu0 }
 0x3b3   :  { %v2636_v39 = vadd.f32 %v2635_v37, %v1924_v33  ;;  %v2677_v40 = vadd.f32 %v2676_v38, %v1932_v34  ;;  %v2637_v42 = vpop.f32.mrb[21].mxu1  ;;  %v2678_v43 = vpop.f32.mrb[21].mxu0 }
 0x3b4   :  { %v2638_v44 = vadd.f32 %v2637_v42, %v1928_v35  ;;  %v2679_v45 = vadd.f32 %v2678_v43, %v1936_v36  ;;  %v2639_v46 = vpop.f32.mrb[22].mxu1  ;;  %v2680_v47 = vpop.f32.mrb[22].mxu0 }
 0x3b5   :  { %v2765_v48 = vmax.f32 %v2636_v39, 0.0  ;;  %v2767_v49 = vmax.f32 %v2677_v40, 0.0  ;;  %v2640_v50 = vpop.f32.mrb[23].mxu1  ;;  %v2681_v51 = vpop.f32.mrb[23].mxu0 }
 0x3b6   :  { %v2766_v13 = vmax.f32 %v2638_v44, 0.0  ;;  %v2768_v52 = vmax.f32 %v2679_v45, 0.0 }
 0x3b8   :  { %v3157_v53 = vpack.c.bf16 %v2766_v13, %v2765_v48  ;;  %v3158_v55 = vpack.c.bf16 %v2768_v52, %v2767_v49 }
 0x3ba   :  { %v2806_v15 = vrot.slane %v3157_v53, %v3733_v41  ;;  %v2813_v56 = vrot.slane %v3158_v55, %v3733_v41 }
 0x3bc   :  { %v2828_v57 = vcombine.low %v2806_v15, %v2813_v56 }
 0x3be   :  { %v2836_v23 = vrot.slane %v2828_v57, %v3733_v41 }
 0x3f2   :  { %v2717_v5 = vpop.f32.mrb[24].mxu1  ;;  %v2758_v6 = vpop.f32.mrb[24].mxu0 }
 0x3f3   :  { %v2718_v7 = vadd.f32 %v2717_v5, %v1940_v1  ;;  %v2759_v8 = vadd.f32 %v2758_v6, %v1948_v2  ;;  %v2719_v9 = vpop.f32.mrb[25].mxu1  ;;  %v2760_v54 = vpop.f32.mrb[25].mxu0 }
 0x3f4   :  { %v2720_v10 = vadd.f32 %v2719_v9, %v1944_v3  ;;  %v2761_v11 = vadd.f32 %v2760_v54, %v1952_v4  ;;  %v2721_v12 = vpop.f32.mrb[26].mxu1  ;;  %v2762_v58 = vpop.f32.mrb[26].mxu0 }
 0x3f5   :  { %v2769_v59 = vmax.f32 %v2718_v7, 0.0  ;;  %v2771_v61 = vmax.f32 %v2759_v8, 0.0  ;;  %v2722_v14 = vpop.f32.mrb[27].mxu1  ;;  %v2763_v16 = vpop.f32.mrb[27].mxu0 }
 0x3f6   :  { %v2770_v17 = vmax.f32 %v2720_v10, 0.0  ;;  %v2772_v32 = vmax.f32 %v2761_v11, 0.0 }
 0x3f8   :  { %v3159_v18 = vpack.c.bf16 %v2770_v17, %v2769_v59  ;;  %v3160_v19 = vpack.c.bf16 %v2772_v32, %v2771_v61 }
 0x3fa   :  { %v2820_v20 = vrot.slane %v3159_v18, %v3733_v41  ;;  %v2827_v21 = vrot.slane %v3160_v19, %v3733_v41 }
 0x3fc   :  { %v2829_v22 = vcombine.low %v2820_v20, %v2827_v21 }
 0x3fe   :  { %v2843_v24 = vrot.slane %v2829_v22, %v3733_v41 }
 0x400   :  { %v2844_v25 = vcombine.low %v2836_v23, %v2843_v24 }
 0x402   :  { %2846 = vst [vmem:[%s4580_s10] sm:$0xff] %v2844_v25 }
 0x403   :  { %3560 = dma.done.wait [#allocation3], 32  }
 0x404   :  { %3561 = vsyncadd [#allocation3], 4294967264 }
 0x405   :  { %3562 = dma.done.wait [#allocation5], 32  }
 0x406   :  { %3563 = vsyncadd [#allocation5], 4294967264 }
 0x407   :  { %2877 = vsyncpa [#allocation3], 1 }
 0x408   :  { %2878 = vsyncpa [#allocation5], 1 }

// kernel: _lambda_.13
= control target key start
LH: loop header
LB: loop body
LE: loop exit
PB: predicated region body
PF: predicated region fallthrough
CT: control target
= control target key end

     0   :  { %vm318_vm0 = vcmask 261120   ;;  %s1138_s1 = inlined_call_operand.vmem [shape: bf16[288,128], index: 1, kind: input, shape index: {}]   ;;  %s1139_s0 = inlined_call_operand.vmem [shape: bf16[128,288], index: 0, kind: input, shape index: {}]   ;;  %s1140_s2 = inlined_call_operand.vmem [shape: f32[1,128], index: 2, kind: input, shape index: {}]   ;;  %s1141_s3 = inlined_call_operand.vmem [shape: bf16[128,128], index: 3, kind: output, shape index: {}]  }
   0x1   :  { %v877_v0 = vld [vmem:[%s1138_s1 + $0x40] sm:$0xff]   ;;  %v879_v2 = vld [vmem:[%s1138_s1 + $0x48] sm:$0xff]   ;;  %v881_v4 = vld [vmem:[%s1138_s1 + $0x50] sm:$0xff]  }
   0x2   :  { %v878_v1 = vld [vmem:[%s1138_s1] sm:$0xff]   ;;  %767 = vmatprep.subr.bf16.mxu0 %v877_v0  ;;  %861 = vmatprep.subr.bf16.mxu1 %v877_v0  ;;  %v880_v3 = vld [vmem:[%s1138_s1 + $0x8] sm:$0xff]   ;;  %v882_v5 = vld [vmem:[%s1138_s1 + $0x10] sm:$0xff]  }
   0x3   :  { %768 = vmatpush3.bf16.msra.mxu0 %v878_v1  ;;  %869 = vmatpush3.bf16.msra.mxu1 %v878_v1  ;;  %v883_v6 = vld [vmem:[%s1138_s1 + $0x58] sm:$0xff]   ;;  %v885_v8 = vld [vmem:[%s1138_s1 + $0x60] sm:$0xff]   ;;  %v887_v10 = vld [vmem:[%s1138_s1 + $0x68] sm:$0xff]  }
   0x4   :  { %769 = vmatprep.subr.bf16.mxu0 %v879_v2  ;;  %862 = vmatprep.subr.bf16.mxu1 %v879_v2  ;;  %v884_v7 = vld [vmem:[%s1138_s1 + $0x18] sm:$0xff]   ;;  %v886_v9 = vld [vmem:[%s1138_s1 + $0x20] sm:$0xff]   ;;  %v888_v13 = vld [vmem:[%s1138_s1 + $0x28] sm:$0xff]  }
   0x5   :  { %v895_v11 = vld [vmem:[%s1139_s0 + $0x4] ss:$12 sps:$4 sm:$0xff]   ;;  %v898_v12 = vld [vmem:[%s1139_s0 + $0x94] ss:$12 sps:$4 sm:$0xff]   ;;  %v891_v16 = vld [vmem:[%s1138_s1 + $0x78] sm:$0xff]  }
   0x6   :  { %v889_v14 = vld [vmem:[%s1138_s1 + $0x70] sm:$0xff]   ;;  %375 = vmatprep.mubr.bf16.mxu0 %v895_v11  ;;  %423 = vmatprep.mubr.bf16.mxu1 %v898_v12  ;;  %v892_v17 = vld [vmem:[%s1138_s1 + $0x38] sm:$0xff]   ;;  %v893_v18 = vld [vmem:[%s1139_s0] ss:$12 sps:$4 sm:$0xff]  }
   0x7   :  { %770 = vmatpush3.bf16.msra.mxu0 %v880_v3  ;;  %870 = vmatpush3.bf16.msra.mxu1 %v880_v3  ;;  %v890_v15 = vld [vmem:[%s1138_s1 + $0x30] sm:$0xff]   ;;  %v899_v19 = vld [vmem:[%s1138_s1 + $0x80] sm:$0xff]   ;;  %v900_v21 = vld [vmem:[%s1139_s0 + $0x1c] ss:$12 sps:$4 sm:$0xff]  }
   0x8   :  { %771 = vmatprep.subr.bf16.mxu0 %v881_v4  ;;  %863 = vmatprep.subr.bf16.mxu1 %v881_v4  ;;  %v896_v20 = vld [vmem:[%s1139_s0 + $0x90] ss:$12 sps:$4 sm:$0xff]   ;;  %v902_v22 = vld [vmem:[%s1139_s0 + $0xac] ss:$12 sps:$4 sm:$0xff]   ;;  %v905_v25 = vld [vmem:[%s1139_s0 + $0xa8] ss:$12 sps:$4 sm:$0xff]  }
   0x9   :  { %v906_v23 = vld [vmem:[%s1138_s1 + $0x88] sm:$0xff]   ;;  %v904_v24 = vld [vmem:[%s1139_s0 + $0x18] ss:$12 sps:$4 sm:$0xff]   ;;  %v907_v26 = vld [vmem:[%s1139_s0 + $0x34] ss:$12 sps:$4 sm:$0xff]  }
   0xa   :  { %v909_v27 = vld [vmem:[%s1139_s0 + $0x8] ss:$12 sps:$4 sm:$0xff]   ;;  %v910_v28 = vld [vmem:[%s1139_s0 + $0x30] ss:$12 sps:$4 sm:$0xff]   ;;  %v911_v29 = vld [vmem:[%s1139_s0 + $0x20] ss:$12 sps:$4 sm:$0xff]  }
   0xb   :  { %772 = vmatpush3.bf16.msra.mxu0 %v882_v5  ;;  %871 = vmatpush3.bf16.msra.mxu1 %v882_v5  ;;  %v912_v30 = vld [vmem:[%s1139_s0 + $0x4c] ss:$12 sps:$4 sm:$0xff]   ;;  %v915_v32 = vld [vmem:[%s1139_s0 + $0x48] ss:$12 sps:$4 sm:$0xff]   ;;  %v916_v33 = vld [vmem:[%s1139_s0 + $0x50] ss:$12 sps:$4 sm:$0xff]  }
   0xc   :  { %773 = vmatprep.subr.bf16.mxu0 %v883_v6  ;;  %864 = vmatprep.subr.bf16.mxu1 %v883_v6  ;;  %v914_v31 = vld [vmem:[%s1139_s0 + $0x38] ss:$12 sps:$4 sm:$0xff]   ;;  %v919_v35 = vld [vmem:[%s1139_s0 + $0x68] ss:$12 sps:$4 sm:$0xff]   ;;  %v920_v36 = vld [vmem:[%s1139_s0 + $0x60] ss:$12 sps:$4 sm:$0xff]  }
   0xd   :  { %v917_v34 = vld [vmem:[%s1139_s0 + $0x64] ss:$12 sps:$4 sm:$0xff]   ;;  %v921_v37 = vld [vmem:[%s1139_s0 + $0x80] ss:$12 sps:$4 sm:$0xff]   ;;  %v922_v38 = vld [vmem:[%s1139_s0 + $0x7c] ss:$12 sps:$4 sm:$0xff]  }
   0xe   :  { %v924_v39 = vld [vmem:[%s1139_s0 + $0x98] ss:$12 sps:$4 sm:$0xff]   ;;  %v926_v41 = vld [vmem:[%s1139_s0 + $0xb0] ss:$12 sps:$4 sm:$0xff]   ;;  %v1092_v2 = vld [vmem:[%s1140_s2] ss:$0 sm:$0xff] }
   0xf   :  { %774 = vmatpush3.bf16.msra.mxu0 %v884_v7  ;;  %872 = vmatpush3.bf16.msra.mxu1 %v884_v7  ;;  %v925_v40 = vld [vmem:[%s1139_s0 + $0x78] ss:$12 sps:$4 sm:$0xff]  }
  0x10   :  { %775 = vmatprep.subr.bf16.mxu0 %v885_v8  ;;  %865 = vmatprep.subr.bf16.mxu1 %v885_v8 }
  0x13   :  { %776 = vmatpush3.bf16.msra.mxu0 %v886_v9  ;;  %873 = vmatpush3.bf16.msra.mxu1 %v886_v9 }
  0x14   :  { %777 = vmatprep.subr.bf16.mxu0 %v887_v10  ;;  %866 = vmatprep.subr.bf16.mxu1 %v887_v10 }
  0x17   :  { %778 = vmatpush3.bf16.msra.mxu0 %v888_v13  ;;  %874 = vmatpush3.bf16.msra.mxu1 %v888_v13 }
  0x18   :  { %779 = vmatprep.subr.bf16.mxu0 %v889_v14  ;;  %867 = vmatprep.subr.bf16.mxu1 %v889_v14 }
  0x1b   :  { %780 = vmatpush3.bf16.msra.mxu0 %v890_v15  ;;  %875 = vmatpush3.bf16.msra.mxu1 %v890_v15 }
  0x1c   :  { %781 = vmatprep.subr.bf16.mxu0 %v891_v16  ;;  %868 = vmatprep.subr.bf16.mxu1 %v891_v16 }
  0x1f   :  { %782 = vmatpush3.bf16.msra.mxu0 %v892_v17  ;;  %876 = vmatpush3.bf16.msra.mxu1 %v892_v17 }
  0x20   :  { %841 = vmatprep.subr.bf16.mxu1 %v899_v19 }
  0x22   :  { %376 = vmatmul.mubr.bf16.vlgmr.msra.gmra.mrb[0].mxu0 %v893_v18  ;;  %424 = vmatmul.mubr.bf16.vlgmr.msra.gmra.mrb[0].mxu1 %v896_v20 }
  0x23   :  { %842 = vmatpush3.bf16.msra.mxu1 %v899_v19  ;;  %383 = vmatprep.mubr.bf16.mxu0 %v900_v21 }
  0x24   :  { %431 = vmatprep.mubr.bf16.mxu1 %v902_v22  ;;  %843 = vmatprep.subr.bf16.mxu1 %v906_v23 }
  0x27   :  { %844 = vmatpush3.bf16.msra.mxu1 %v906_v23 }
  0x2a   :  { %384 = vmatmul.mubr.bf16.gmra.mrb[4].mxu0 %v904_v24  ;;  %432 = vmatmul.mubr.bf16.gmra.mrb[4].mxu1 %v905_v25 }
  0x2b   :  { %391 = vmatprep.mubr.bf16.mxu0 %v907_v26  ;;  %845 = vmatprep.mubr.msk.bf16.mxu1 %vm318_vm0, %v909_v27 }
  0x32   :  { %392 = vmatmul.mubr.bf16.gmra.mrb[8].mxu0 %v910_v28  ;;  %846 = vmatmul.mubr.msk.bf16.vlgmr.msra.gmra.mrb[8].mxu1 %vm318_vm0, %v911_v29 }
  0x33   :  { %399 = vmatprep.mubr.bf16.mxu0 %v912_v30  ;;  %849 = vmatprep.mubr.msk.bf16.mxu1 %vm318_vm0, %v914_v31 }
  0x3a   :  { %400 = vmatmul.mubr.bf16.gmra.mrb[12].mxu0 %v915_v32  ;;  %850 = vmatmul.mubr.msk.bf16.gmra.mrb[12].mxu1 %vm318_vm0, %v916_v33 }
  0x3b   :  { %407 = vmatprep.mubr.bf16.mxu0 %v917_v34  ;;  %853 = vmatprep.mubr.msk.bf16.mxu1 %vm318_vm0, %v919_v35 }
  0x42   :  { %408 = vmatmul.mubr.bf16.gmra.mrb[16].mxu0 %v920_v36  ;;  %854 = vmatmul.mubr.msk.bf16.gmra.mrb[16].mxu1 %vm318_vm0, %v921_v37 }
  0x43   :  { %415 = vmatprep.mubr.bf16.mxu0 %v922_v38  ;;  %857 = vmatprep.mubr.msk.bf16.mxu1 %vm318_vm0, %v924_v39 }
  0x4a   :  { %416 = vmatmul.mubr.bf16.gmra.mrb[20].mxu0 %v925_v40  ;;  %858 = vmatmul.mubr.msk.bf16.gmra.mrb[20].mxu1 %vm318_vm0, %v926_v41 }
  0xf5   :  { %v783_v42 = vpop.f32.mrb[0].mxu0  ;;  %v819_v43 = vpop.f32.mrb[0].mxu1 }
  0xf6   :  { %v784_v44 = vpop.f32.mrb[1].mxu0  ;;  %v820_v45 = vpop.f32.mrb[1].mxu1 }
  0xf7   :  { %v785_v46 = vadd.f32 %v784_v44, %v783_v42  ;;  %v786_v47 = vpop.f32.mrb[2].mxu0  ;;  %v1081_v48 = vadd.f32 %v820_v45, %v819_v43  ;;  %v822_v49 = vpop.f32.mrb[2].mxu1 }
  0xf8   :  { %v787_v50 = vpop.f32.mrb[3].mxu0  ;;  %v823_v51 = vpop.f32.mrb[3].mxu1 }
  0xf9   :  { %v788_v52 = vadd.f32 %v787_v50, %v786_v47  ;;  %v1083_v53 = vadd.f32 %v823_v51, %v822_v49  ;;  %v378_v6 = vadd.f32 %v785_v46, %v1092_v2 }
  0xfb   :  { %v381_v15 = vadd.f32 %v788_v52, %v1092_v2 }
  0xfd   :  { %v789_v54 = vpop.f32.mrb[4].mxu0  ;;  %v825_v55 = vpop.f32.mrb[4].mxu1 }
  0xfe   :  { %v790_v56 = vpop.f32.mrb[5].mxu0  ;;  %v826_v57 = vpop.f32.mrb[5].mxu1 }
  0xff   :  { %v791_v58 = vadd.f32 %v790_v56, %v789_v54  ;;  %v792_v59 = vpop.f32.mrb[6].mxu0  ;;  %v1085_v60 = vadd.f32 %v826_v57, %v825_v55  ;;  %v828_v61 = vpop.f32.mrb[6].mxu1 }
 0x100   :  { %v793_v62 = vpop.f32.mrb[7].mxu0  ;;  %v829_v63 = vpop.f32.mrb[7].mxu1 }
 0x101   :  { %v794_v0 = vadd.f32 %v793_v62, %v792_v59  ;;  %v1087_v1 = vadd.f32 %v829_v63, %v828_v61  ;;  %v386_v3 = vadd.f32 %v791_v58, %v1092_v2 }
 0x103   :  { %v389_v10 = vadd.f32 %v794_v0, %v1092_v2 }
 0x105   :  { %v795_v4 = vpop.f32.mrb[8].mxu0  ;;  %v847_v5 = vpop.f32.mrb[8].mxu1 }
 0x106   :  { %v483_v7 = vadd.f32 %v847_v5, %v386_v3  ;;  %v796_v8 = vpop.f32.mrb[9].mxu0  ;;  %v474_v9 = vpop.f32.mrb[9].mxu1  ;;  %v434_v5 = vadd.f32 %v1085_v60, %v1092_v2 }
 0x107   :  { %v797_v11 = vadd.f32 %v796_v8, %v795_v4  ;;  %v475_v12 = vadd.f32 %v474_v9, %v378_v6  ;;  %v798_v13 = vpop.f32.mrb[10].mxu0  ;;  %v848_v14 = vpop.f32.mrb[10].mxu1  ;;  %v426_v9 = vadd.f32 %v1081_v48, %v1092_v2 }
 0x108   :  { %v486_v16 = vadd.f32 %v848_v14, %v389_v10  ;;  %v799_v17 = vpop.f32.mrb[11].mxu0  ;;  %v477_v18 = vpop.f32.mrb[11].mxu1  ;;  %v539_v21 = vmax.f32 %v483_v7, 0.0 }
 0x109   :  { %v800_v19 = vadd.f32 %v799_v17, %v798_v13  ;;  %v478_v20 = vadd.f32 %v477_v18, %v381_v15  ;;  %v537_v23 = vmax.f32 %v475_v12, 0.0  ;;  %v394_v29 = vadd.f32 %v797_v11, %v1092_v2 }
 0x10a   :  { %v540_v22 = vmax.f32 %v486_v16, 0.0  ;;  %v437_v13 = vadd.f32 %v1087_v1, %v1092_v2 }
 0x10b   :  { %v538_v24 = vmax.f32 %v478_v20, 0.0  ;;  %v397_v36 = vadd.f32 %v800_v19, %v1092_v2 }
 0x10c   :  { %v728_v25 = vpack.c.bf16 %v540_v22, %v539_v21  ;;  %v429_v21 = vadd.f32 %v1083_v53, %v1092_v2 }
 0x10d   :  { %v723_v26 = vpack.c.bf16 %v538_v24, %v537_v23  ;;  %v801_v27 = vpop.f32.mrb[12].mxu0  ;;  %v851_v28 = vpop.f32.mrb[12].mxu1 }
 0x10e   :  { %760 = vst [vmem:[%s1141_s3 + $0x8] sm:$0xff] %v728_v25   ;;  %v802_v30 = vpop.f32.mrb[13].mxu0  ;;  %v490_v31 = vpop.f32.mrb[13].mxu1 }
 0x10f   :  { %724 = vst [vmem:[%s1141_s3] sm:$0xff] %v723_v26   ;;  %v803_v32 = vadd.f32 %v802_v30, %v801_v27  ;;  %v491_v33 = vadd.f32 %v490_v31, %v394_v29  ;;  %v804_v34 = vpop.f32.mrb[14].mxu0  ;;  %v852_v35 = vpop.f32.mrb[14].mxu1 }
 0x110   :  { %v805_v37 = vpop.f32.mrb[15].mxu0  ;;  %v493_v38 = vpop.f32.mrb[15].mxu1 }
 0x111   :  { %v402_v39 = vadd.f32 %v803_v32, %v1092_v2  ;;  %v806_v40 = vadd.f32 %v805_v37, %v804_v34  ;;  %v494_v41 = vadd.f32 %v493_v38, %v397_v36  ;;  %v541_v43 = vmax.f32 %v491_v33, 0.0 }
 0x113   :  { %v499_v42 = vadd.f32 %v851_v28, %v402_v39  ;;  %v405_v44 = vadd.f32 %v806_v40, %v1092_v2  ;;  %v542_v45 = vmax.f32 %v494_v41, 0.0 }
 0x115   :  { %v502_v46 = vadd.f32 %v852_v35, %v405_v44  ;;  %v733_v47 = vpack.c.bf16 %v542_v45, %v541_v43  ;;  %v807_v49 = vpop.f32.mrb[16].mxu0  ;;  %v855_v50 = vpop.f32.mrb[16].mxu1  ;;  %v543_v54 = vmax.f32 %v499_v42, 0.0 }
 0x116   :  { %v808_v51 = vpop.f32.mrb[17].mxu0  ;;  %v506_v52 = vpop.f32.mrb[17].mxu1 }
 0x117   :  { %v544_v55 = vmax.f32 %v502_v46, 0.0  ;;  %761 = vst [vmem:[%s1141_s3 + $0x10] sm:$0xff] %v733_v47   ;;  %v809_v56 = vadd.f32 %v808_v51, %v807_v49  ;;  %v810_v57 = vpop.f32.mrb[18].mxu0  ;;  %v856_v58 = vpop.f32.mrb[18].mxu1 }
 0x118   :  { %v811_v59 = vpop.f32.mrb[19].mxu0  ;;  %v509_v61 = vpop.f32.mrb[19].mxu1 }
 0x119   :  { %v738_v62 = vpack.c.bf16 %v544_v55, %v543_v54  ;;  %v410_v63 = vadd.f32 %v809_v56, %v1092_v2  ;;  %v812_v0 = vadd.f32 %v811_v59, %v810_v57 }
 0x11b   :  { %762 = vst [vmem:[%s1141_s3 + $0x18] sm:$0xff] %v738_v62   ;;  %v507_v3 = vadd.f32 %v506_v52, %v410_v63  ;;  %v413_v4 = vadd.f32 %v812_v0, %v1092_v2 }
 0x11d   :  { %v510_v6 = vadd.f32 %v509_v61, %v413_v4  ;;  %v813_v7 = vpop.f32.mrb[20].mxu0  ;;  %v859_v8 = vpop.f32.mrb[20].mxu1  ;;  %v545_v14 = vmax.f32 %v507_v3, 0.0 }
 0x11e   :  { %v531_v10 = vadd.f32 %v859_v8, %v434_v5  ;;  %v814_v11 = vpop.f32.mrb[21].mxu0  ;;  %v522_v12 = vpop.f32.mrb[21].mxu1 }
 0x11f   :  { %v546_v15 = vmax.f32 %v510_v6, 0.0  ;;  %v815_v16 = vadd.f32 %v814_v11, %v813_v7  ;;  %v523_v17 = vadd.f32 %v522_v12, %v426_v9  ;;  %v816_v18 = vpop.f32.mrb[22].mxu0  ;;  %v860_v19 = vpop.f32.mrb[22].mxu1 }
 0x120   :  { %v534_v20 = vadd.f32 %v860_v19, %v437_v13  ;;  %v817_v60 = vpop.f32.mrb[23].mxu0  ;;  %v525_v22 = vpop.f32.mrb[23].mxu1  ;;  %v551_v25 = vmax.f32 %v531_v10, 0.0 }
 0x121   :  { %v743_v23 = vpack.c.bf16 %v546_v15, %v545_v14  ;;  %v418_v48 = vadd.f32 %v815_v16, %v1092_v2  ;;  %v818_v24 = vadd.f32 %v817_v60, %v816_v18  ;;  %v526_v27 = vadd.f32 %v525_v22, %v429_v21 }
 0x122   :  { %v552_v26 = vmax.f32 %v534_v20, 0.0  ;;  %v549_v29 = vmax.f32 %v523_v17, 0.0 }
 0x123   :  { %763 = vst [vmem:[%s1141_s3 + $0x20] sm:$0xff] %v743_v23   ;;  %v515_v1 = vadd.f32 %v855_v50, %v418_v48  ;;  %v421_v28 = vadd.f32 %v818_v24, %v1092_v2  ;;  %v550_v31 = vmax.f32 %v526_v27, 0.0 }
 0x124   :  { %v758_v30 = vpack.c.bf16 %v552_v26, %v551_v25 }
 0x125   :  { %v518_v32 = vadd.f32 %v856_v58, %v421_v28  ;;  %v753_v53 = vpack.c.bf16 %v550_v31, %v549_v29  ;;  %v547_v33 = vmax.f32 %v515_v1, 0.0 }
 0x126   :  { %766 = vst [vmem:[%s1141_s3 + $0x38] sm:$0xff] %v758_v30  }
 0x127   :  { %v548_v34 = vmax.f32 %v518_v32, 0.0  ;;  %765 = vst [vmem:[%s1141_s3 + $0x30] sm:$0xff] %v753_v53  }
 0x129   :  { %v748_v35 = vpack.c.bf16 %v548_v34, %v547_v33 }
 0x12b   :  { %764 = vst [vmem:[%s1141_s3 + $0x28] sm:$0xff] %v748_v35  }

// kernel: _lambda_.14
= control target key start
LH: loop header
LB: loop body
LE: loop exit
PB: predicated region body
PF: predicated region fallthrough
CT: control target
= control target key end

     0   :  { %v2584_v0 = vmov 0   ;;  %vm774_vm0 = vcmask 261120   ;;  %s3302_s1 = inlined_call_operand.vmem [shape: bf16[288,128], index: 1, kind: input, shape index: {}]   ;;  %s3303_s0 = inlined_call_operand.vmem [shape: bf16[512,288], index: 0, kind: input, shape index: {}]   ;;  %s3304_s2 = inlined_call_operand.vmem [shape: f32[1,128], index: 2, kind: input, shape index: {}]   ;;  %s3305_s3 = inlined_call_operand.vmem [shape: bf16[512,128], index: 3, kind: output, shape index: {}]  }
   0x1   :  { %871 = vmatprep.subr.bf16.mxu0 %v2584_v0  ;;  %2405 = vmatprep.subr.bf16.mxu1 %v2584_v0  ;;  %v2438_v1 = vld [vmem:[%s3302_s1] sm:$0xff]   ;;  %v2439_v2 = vld [vmem:[%s3302_s1 + $0x8] sm:$0xff]   ;;  %v2440_v3 = vld [vmem:[%s3302_s1 + $0x10] sm:$0xff]  }
   0x2   :  { %872 = vmatpush1.bf16.msra.mxu0 %v2438_v1  ;;  %2421 = vmatpush1.bf16.msra.mxu1 %v2438_v1  ;;  %v2441_v4 = vld [vmem:[%s3302_s1 + $0x18] sm:$0xff]   ;;  %v2442_v5 = vld [vmem:[%s3302_s1 + $0x20] sm:$0xff]   ;;  %v2443_v7 = vld [vmem:[%s3302_s1 + $0x28] sm:$0xff]  }
   0x3   :  { %873 = vmatprep.subr.bf16.mxu0 %v2584_v0  ;;  %2406 = vmatprep.subr.bf16.mxu1 %v2584_v0  ;;  %v2456_v6 = vld [vmem:[%s3303_s0 + $0x4] ss:$12 sps:$4 sm:$0xff]   ;;  %v2445_v10 = vld [vmem:[%s3302_s1 + $0x38] sm:$0xff]   ;;  %v2447_v12 = vld [vmem:[%s3302_s1 + $0x48] sm:$0xff]  }
   0x4   :  { %v2459_v8 = vld [vmem:[%s3303_s0 + $0x244] ss:$12 sps:$4 sm:$0xff]   ;;  %903 = vmatprep.mubr.bf16.mxu0 %v2456_v6  ;;  %v2449_v14 = vld [vmem:[%s3302_s1 + $0x58] sm:$0xff]   ;;  %v2451_v16 = vld [vmem:[%s3302_s1 + $0x68] sm:$0xff]  }
   0x5   :  { %1095 = vmatprep.mubr.bf16.mxu1 %v2459_v8  ;;  %v2444_v9 = vld [vmem:[%s3302_s1 + $0x30] sm:$0xff]   ;;  %v2446_v11 = vld [vmem:[%s3302_s1 + $0x40] sm:$0xff]   ;;  %v2453_v18 = vld [vmem:[%s3302_s1 + $0x78] sm:$0xff]  }
   0x6   :  { %874 = vmatpush1.bf16.msra.mxu0 %v2439_v2  ;;  %2422 = vmatpush1.bf16.msra.mxu1 %v2439_v2  ;;  %v2448_v13 = vld [vmem:[%s3302_s1 + $0x50] sm:$0xff]   ;;  %v2450_v15 = vld [vmem:[%s3302_s1 + $0x60] sm:$0xff]   ;;  %v2461_v22 = vld [vmem:[%s3303_s0 + $0x1c] ss:$12 sps:$4 sm:$0xff]  }
   0x7   :  { %875 = vmatprep.subr.bf16.mxu0 %v2584_v0  ;;  %2407 = vmatprep.subr.bf16.mxu1 %v2584_v0  ;;  %v2452_v17 = vld [vmem:[%s3302_s1 + $0x70] sm:$0xff]   ;;  %v2460_v19 = vld [vmem:[%s3302_s1 + $0x80] sm:$0xff]   ;;  %v2463_v23 = vld [vmem:[%s3303_s0 + $0x25c] ss:$12 sps:$4 sm:$0xff]  }
   0x8   :  { %v2454_v20 = vld [vmem:[%s3303_s0] ss:$12 sps:$4 sm:$0xff]   ;;  %v2465_v25 = vld [vmem:[%s3303_s0 + $0x18] ss:$12 sps:$4 sm:$0xff]   ;;  %v2471_v29 = vld [vmem:[%s3303_s0 + $0x30] ss:$12 sps:$4 sm:$0xff]  }
   0x9   :  { %v2457_v21 = vld [vmem:[%s3303_s0 + $0x240] ss:$12 sps:$4 sm:$0xff]   ;;  %v2466_v26 = vld [vmem:[%s3303_s0 + $0x258] ss:$12 sps:$4 sm:$0xff]   ;;  %v2472_v30 = vld [vmem:[%s3303_s0 + $0x270] ss:$12 sps:$4 sm:$0xff]  }
   0xa   :  { %876 = vmatpush1.bf16.msra.mxu0 %v2440_v3  ;;  %2423 = vmatpush1.bf16.msra.mxu1 %v2440_v3  ;;  %v2485_v24 = vld [vmem:[%s3302_s1 + $0x88] sm:$0xff]   ;;  %v2467_v27 = vld [vmem:[%s3303_s0 + $0x34] ss:$12 sps:$4 sm:$0xff]   ;;  %v2479_v35 = vld [vmem:[%s3303_s0 + $0x64] ss:$12 sps:$4 sm:$0xff]  }
   0xb   :  { %877 = vmatprep.subr.bf16.mxu0 %v2584_v0  ;;  %2408 = vmatprep.subr.bf16.mxu1 %v2584_v0  ;;  %v2469_v28 = vld [vmem:[%s3303_s0 + $0x274] ss:$12 sps:$4 sm:$0xff]   ;;  %v2473_v31 = vld [vmem:[%s3303_s0 + $0x4c] ss:$12 sps:$4 sm:$0xff]   ;;  %v2481_v36 = vld [vmem:[%s3303_s0 + $0x2a4] ss:$12 sps:$4 sm:$0xff]  }
   0xc   :  { %v2475_v32 = vld [vmem:[%s3303_s0 + $0x28c] ss:$12 sps:$4 sm:$0xff]   ;;  %v2477_v33 = vld [vmem:[%s3303_s0 + $0x48] ss:$12 sps:$4 sm:$0xff]   ;;  %v2496_v45 = vld [vmem:[%s3303_s0 + $0x90] ss:$12 sps:$4 sm:$0xff]  }
   0xd   :  { %v2478_v34 = vld [vmem:[%s3303_s0 + $0x288] ss:$12 sps:$4 sm:$0xff]   ;;  %v2483_v37 = vld [vmem:[%s3303_s0 + $0x60] ss:$12 sps:$4 sm:$0xff]   ;;  %v2490_v41 = vld [vmem:[%s3303_s0 + $0x78] ss:$12 sps:$4 sm:$0xff]  }
   0xe   :  { %878 = vmatpush1.bf16.msra.mxu0 %v2441_v4  ;;  %2424 = vmatpush1.bf16.msra.mxu1 %v2441_v4  ;;  %v2484_v38 = vld [vmem:[%s3303_s0 + $0x2a0] ss:$12 sps:$4 sm:$0xff]   ;;  %v2486_v39 = vld [vmem:[%s3303_s0 + $0x7c] ss:$12 sps:$4 sm:$0xff]   ;;  %v2491_v42 = vld [vmem:[%s3303_s0 + $0x2b8] ss:$12 sps:$4 sm:$0xff]  }
   0xf   :  { %879 = vmatprep.subr.bf16.mxu0 %v2584_v0  ;;  %2409 = vmatprep.subr.bf16.mxu1 %v2584_v0  ;;  %v2488_v40 = vld [vmem:[%s3303_s0 + $0x2bc] ss:$12 sps:$4 sm:$0xff]   ;;  %v2492_v43 = vld [vmem:[%s3303_s0 + $0x94] ss:$12 sps:$4 sm:$0xff]   ;;  %v2498_v47 = vld [vmem:[%s3303_s0 + $0xac] ss:$12 sps:$4 sm:$0xff]  }
  0x10   :  { %v2494_v44 = vld [vmem:[%s3303_s0 + $0x2d4] ss:$12 sps:$4 sm:$0xff]   ;;  %v2497_v46 = vld [vmem:[%s3303_s0 + $0x2d0] ss:$12 sps:$4 sm:$0xff]   ;;  %v2500_v48 = vld [vmem:[%s3303_s0 + $0x2ec] ss:$12 sps:$4 sm:$0xff]  }
  0x11   :  { %v2502_v49 = vld [vmem:[%s3303_s0 + $0xa8] ss:$12 sps:$4 sm:$0xff]   ;;  %v2504_v51 = vld [vmem:[%s3303_s0 + $0xc4] ss:$12 sps:$4 sm:$0xff]   ;;  %v2507_v53 = vld [vmem:[%s3303_s0 + $0xc0] ss:$12 sps:$4 sm:$0xff]  }
  0x12   :  { %880 = vmatpush1.bf16.msra.mxu0 %v2442_v5  ;;  %2425 = vmatpush1.bf16.msra.mxu1 %v2442_v5  ;;  %v2503_v50 = vld [vmem:[%s3303_s0 + $0x2e8] ss:$12 sps:$4 sm:$0xff]   ;;  %v2508_v54 = vld [vmem:[%s3303_s0 + $0x20] ss:$12 sps:$4 sm:$0xff]   ;;  %v2511_v56 = vld [vmem:[%s3303_s0 + $0x38] ss:$12 sps:$4 sm:$0xff]  }
  0x13   :  { %881 = vmatprep.subr.bf16.mxu0 %v2584_v0  ;;  %2410 = vmatprep.subr.bf16.mxu1 %v2584_v0  ;;  %v2506_v52 = vld [vmem:[%s3303_s0 + $0x8] ss:$12 sps:$4 sm:$0xff]   ;;  %v2512_v57 = vld [vmem:[%s3303_s0 + $0xd8] ss:$12 sps:$4 sm:$0xff]   ;;  %v2513_v58 = vld [vmem:[%s3303_s0 + $0x50] ss:$12 sps:$4 sm:$0xff]  }
  0x14   :  { %v2509_v55 = vld [vmem:[%s3303_s0 + $0xdc] ss:$12 sps:$4 sm:$0xff]   ;;  %v2514_v59 = vld [vmem:[%s3303_s0 + $0xf4] ss:$12 sps:$4 sm:$0xff]   ;;  %v2519_v63 = vld [vmem:[%s3303_s0 + $0x10c] ss:$12 sps:$4 sm:$0xff]  }
  0x15   :  { %v2516_v60 = vld [vmem:[%s3303_s0 + $0x68] ss:$12 sps:$4 sm:$0xff]   ;;  %v2517_v61 = vld [vmem:[%s3303_s0 + $0xf0] ss:$12 sps:$4 sm:$0xff]   ;;  %v2518_v62 = vld [vmem:[%s3303_s0 + $0x80] ss:$12 sps:$4 sm:$0xff]  }
  0x16   :  { %882 = vmatpush1.bf16.msra.mxu0 %v2443_v7  ;;  %2426 = vmatpush1.bf16.msra.mxu1 %v2443_v7  ;;  %v2522_v1 = vld [vmem:[%s3303_s0 + $0x108] ss:$12 sps:$4 sm:$0xff]   ;;  %v2523_v2 = vld [vmem:[%s3303_s0 + $0xb0] ss:$12 sps:$4 sm:$0xff]   ;;  %v2527_v5 = vld [vmem:[%s3303_s0 + $0x120] ss:$12 sps:$4 sm:$0xff]  }
  0x17   :  { %883 = vmatprep.subr.bf16.mxu0 %v2584_v0  ;;  %2411 = vmatprep.subr.bf16.mxu1 %v2584_v0  ;;  %v2524_v3 = vld [vmem:[%s3303_s0 + $0x124] ss:$12 sps:$4 sm:$0xff]   ;;  %v2526_v4 = vld [vmem:[%s3303_s0 + $0xc8] ss:$12 sps:$4 sm:$0xff]   ;;  %v2528_v6 = vld [vmem:[%s3303_s0 + $0xe0] ss:$12 sps:$4 sm:$0xff]  }
  0x18   :  { %v2529_v7 = vld [vmem:[%s3303_s0 + $0x13c] ss:$12 sps:$4 sm:$0xff]   ;;  %v2531_v8 = vld [vmem:[%s3303_s0 + $0xf8] ss:$12 sps:$4 sm:$0xff]  }
  0x1a   :  { %884 = vmatpush1.bf16.msra.mxu0 %v2444_v9  ;;  %2427 = vmatpush1.bf16.msra.mxu1 %v2444_v9  ;;  %v2532_v9 = vld [vmem:[%s3303_s0 + $0x138] ss:$12 sps:$4 sm:$0xff]  }
  0x1b   :  { %885 = vmatprep.subr.bf16.mxu0 %v2584_v0  ;;  %2412 = vmatprep.subr.bf16.mxu1 %v2584_v0 }
  0x1e   :  { %886 = vmatpush1.bf16.msra.mxu0 %v2445_v10  ;;  %2428 = vmatpush1.bf16.msra.mxu1 %v2445_v10  ;;  %v2533_v10 = vld [vmem:[%s3303_s0 + $0x110] ss:$12 sps:$4 sm:$0xff]  }
  0x1f   :  { %887 = vmatprep.subr.bf16.mxu0 %v2584_v0  ;;  %2413 = vmatprep.subr.bf16.mxu1 %v2584_v0 }
  0x22   :  { %888 = vmatpush1.bf16.msra.mxu0 %v2446_v11  ;;  %2429 = vmatpush1.bf16.msra.mxu1 %v2446_v11  ;;  %v2534_v11 = vld [vmem:[%s3303_s0 + $0x154] ss:$12 sps:$4 sm:$0xff]  }
  0x23   :  { %889 = vmatprep.subr.bf16.mxu0 %v2584_v0  ;;  %2414 = vmatprep.subr.bf16.mxu1 %v2584_v0 }
  0x26   :  { %890 = vmatpush1.bf16.msra.mxu0 %v2447_v12  ;;  %2430 = vmatpush1.bf16.msra.mxu1 %v2447_v12  ;;  %v2536_v12 = vld [vmem:[%s3303_s0 + $0x128] ss:$12 sps:$4 sm:$0xff]  }
  0x27   :  { %891 = vmatprep.subr.bf16.mxu0 %v2584_v0  ;;  %2415 = vmatprep.subr.bf16.mxu1 %v2584_v0 }
  0x2a   :  { %892 = vmatpush1.bf16.msra.mxu0 %v2448_v13  ;;  %2431 = vmatpush1.bf16.msra.mxu1 %v2448_v13  ;;  %v2537_v13 = vld [vmem:[%s3303_s0 + $0x150] ss:$12 sps:$4 sm:$0xff]  }
  0x2b   :  { %893 = vmatprep.subr.bf16.mxu0 %v2584_v0  ;;  %2416 = vmatprep.subr.bf16.mxu1 %v2584_v0 }
  0x2e   :  { %894 = vmatpush1.bf16.msra.mxu0 %v2449_v14  ;;  %2432 = vmatpush1.bf16.msra.mxu1 %v2449_v14  ;;  %v2538_v14 = vld [vmem:[%s3303_s0 + $0x140] ss:$12 sps:$4 sm:$0xff]  }
  0x2f   :  { %895 = vmatprep.subr.bf16.mxu0 %v2584_v0  ;;  %2417 = vmatprep.subr.bf16.mxu1 %v2584_v0 }
  0x32   :  { %896 = vmatpush1.bf16.msra.mxu0 %v2450_v15  ;;  %2433 = vmatpush1.bf16.msra.mxu1 %v2450_v15  ;;  %v2539_v15 = vld [vmem:[%s3303_s0 + $0x16c] ss:$12 sps:$4 sm:$0xff]  }
  0x33   :  { %897 = vmatprep.subr.bf16.mxu0 %v2584_v0  ;;  %2418 = vmatprep.subr.bf16.mxu1 %v2584_v0 }
  0x36   :  { %898 = vmatpush1.bf16.msra.mxu0 %v2451_v16  ;;  %2434 = vmatpush1.bf16.msra.mxu1 %v2451_v16  ;;  %v2541_v16 = vld [vmem:[%s3303_s0 + $0x158] ss:$12 sps:$4 sm:$0xff]  }
  0x37   :  { %899 = vmatprep.subr.bf16.mxu0 %v2584_v0  ;;  %2419 = vmatprep.subr.bf16.mxu1 %v2584_v0 }
  0x3a   :  { %900 = vmatpush1.bf16.msra.mxu0 %v2452_v17  ;;  %2435 = vmatpush1.bf16.msra.mxu1 %v2452_v17  ;;  %v2542_v17 = vld [vmem:[%s3303_s0 + $0x168] ss:$12 sps:$4 sm:$0xff]  }
  0x3b   :  { %901 = vmatprep.subr.bf16.mxu0 %v2584_v0  ;;  %2420 = vmatprep.subr.bf16.mxu1 %v2584_v0  ;;  %v2521_v0 = vld [vmem:[%s3303_s0 + $0x98] ss:$12 sps:$4 sm:$0xff]  }
  0x3e   :  { %902 = vmatpush1.bf16.msra.mxu0 %v2453_v18  ;;  %2436 = vmatpush1.bf16.msra.mxu1 %v2453_v18  ;;  %v2543_v18 = vld [vmem:[%s3303_s0 + $0x170] ss:$12 sps:$4 sm:$0xff]  }
  0x3f   :  { %2337 = vmatprep.subr.bf16.mxu1 %v2460_v19 }
  0x41   :  { %904 = vmatmul.mubr.bf16.vlgmr.msra.gmra.mrb[0].mxu0 %v2454_v20  ;;  %1096 = vmatmul.mubr.bf16.vlgmr.msra.gmra.mrb[0].mxu1 %v2457_v21  ;;  %v2546_v20 = vld [vmem:[%s3303_s0 + $0x188] ss:$12 sps:$4 sm:$0xff]   ;;  %v2547_v21 = vld [vmem:[%s3303_s0 + $0x180] ss:$12 sps:$4 sm:$0xff]  }
  0x42   :  { %2338 = vmatpush3.bf16.msra.mxu1 %v2460_v19  ;;  %911 = vmatprep.mubr.bf16.mxu0 %v2461_v22  ;;  %v2544_v19 = vld [vmem:[%s3303_s0 + $0x184] ss:$12 sps:$4 sm:$0xff]   ;;  %v2548_v22 = vld [vmem:[%s3303_s0 + $0x1a0] ss:$12 sps:$4 sm:$0xff]  }
  0x43   :  { %1103 = vmatprep.mubr.bf16.mxu1 %v2463_v23  ;;  %2339 = vmatprep.subr.bf16.mxu1 %v2485_v24  ;;  %v2549_v23 = vld [vmem:[%s3303_s0 + $0x19c] ss:$12 sps:$4 sm:$0xff]  }
  0x46   :  { %2340 = vmatpush3.bf16.msra.mxu1 %v2485_v24  ;;  %v2551_v24 = vld [vmem:[%s3303_s0 + $0x1b8] ss:$12 sps:$4 sm:$0xff]  }
  0x49   :  { %912 = vmatmul.mubr.bf16.gmra.mrb[4].mxu0 %v2465_v25  ;;  %1104 = vmatmul.mubr.bf16.gmra.mrb[4].mxu1 %v2466_v26  ;;  %v2552_v25 = vld [vmem:[%s3303_s0 + $0x198] ss:$12 sps:$4 sm:$0xff]   ;;  %v2553_v26 = vld [vmem:[%s3303_s0 + $0x1d0] ss:$12 sps:$4 sm:$0xff]  }
  0x4a   :  { %919 = vmatprep.mubr.bf16.mxu0 %v2467_v27  ;;  %1111 = vmatprep.mubr.bf16.mxu1 %v2469_v28  ;;  %v2554_v27 = vld [vmem:[%s3303_s0 + $0x1b4] ss:$12 sps:$4 sm:$0xff]  }
  0x4b   :  { %v2556_v28 = vld [vmem:[%s3303_s0 + $0x1e8] ss:$12 sps:$4 sm:$0xff]  }
  0x51   :  { %920 = vmatmul.mubr.bf16.gmra.mrb[8].mxu0 %v2471_v29  ;;  %1112 = vmatmul.mubr.bf16.gmra.mrb[8].mxu1 %v2472_v30  ;;  %v2557_v29 = vld [vmem:[%s3303_s0 + $0x1b0] ss:$12 sps:$4 sm:$0xff]   ;;  %v2558_v30 = vld [vmem:[%s3303_s0 + $0x200] ss:$12 sps:$4 sm:$0xff]  }
  0x52   :  { %927 = vmatprep.mubr.bf16.mxu0 %v2473_v31  ;;  %1119 = vmatprep.mubr.bf16.mxu1 %v2475_v32  ;;  %v2559_v31 = vld [vmem:[%s3303_s0 + $0x1cc] ss:$12 sps:$4 sm:$0xff]  }
  0x53   :  { %v2561_v32 = vld [vmem:[%s3303_s0 + $0x218] ss:$12 sps:$4 sm:$0xff]  }
  0x59   :  { %928 = vmatmul.mubr.bf16.gmra.mrb[12].mxu0 %v2477_v33  ;;  %1120 = vmatmul.mubr.bf16.gmra.mrb[12].mxu1 %v2478_v34  ;;  %v2562_v33 = vld [vmem:[%s3303_s0 + $0x1c8] ss:$12 sps:$4 sm:$0xff]   ;;  %v2563_v34 = vld [vmem:[%s3303_s0 + $0x230] ss:$12 sps:$4 sm:$0xff]  }
  0x5a   :  { %935 = vmatprep.mubr.bf16.mxu0 %v2479_v35  ;;  %1127 = vmatprep.mubr.bf16.mxu1 %v2481_v36  ;;  %v2564_v35 = vld [vmem:[%s3303_s0 + $0x1e4] ss:$12 sps:$4 sm:$0xff]   ;;  %v2566_v36 = vld [vmem:[%s3303_s0 + $0x248] ss:$12 sps:$4 sm:$0xff]  }
  0x61   :  { %936 = vmatmul.mubr.bf16.gmra.mrb[16].mxu0 %v2483_v37  ;;  %1128 = vmatmul.mubr.bf16.gmra.mrb[16].mxu1 %v2484_v38  ;;  %v2567_v37 = vld [vmem:[%s3303_s0 + $0x1e0] ss:$12 sps:$4 sm:$0xff]  }
  0x62   :  { %943 = vmatprep.mubr.bf16.mxu0 %v2486_v39  ;;  %1135 = vmatprep.mubr.bf16.mxu1 %v2488_v40  ;;  %v2568_v38 = vld [vmem:[%s3303_s0 + $0x260] ss:$12 sps:$4 sm:$0xff]   ;;  %v2569_v39 = vld [vmem:[%s3303_s0 + $0x1fc] ss:$12 sps:$4 sm:$0xff]   ;;  %v2571_v40 = vld [vmem:[%s3303_s0 + $0x278] ss:$12 sps:$4 sm:$0xff]  }
  0x69   :  { %944 = vmatmul.mubr.bf16.gmra.mrb[20].mxu0 %v2490_v41  ;;  %1136 = vmatmul.mubr.bf16.gmra.mrb[20].mxu1 %v2491_v42  ;;  %v2572_v41 = vld [vmem:[%s3303_s0 + $0x1f8] ss:$12 sps:$4 sm:$0xff]   ;;  %v2573_v42 = vld [vmem:[%s3303_s0 + $0x290] ss:$12 sps:$4 sm:$0xff]  }
  0x6a   :  { %951 = vmatprep.mubr.bf16.mxu0 %v2492_v43  ;;  %1143 = vmatprep.mubr.bf16.mxu1 %v2494_v44  ;;  %v2574_v43 = vld [vmem:[%s3303_s0 + $0x214] ss:$12 sps:$4 sm:$0xff]  }
  0x6b   :  { %v2576_v44 = vld [vmem:[%s3303_s0 + $0x2a8] ss:$12 sps:$4 sm:$0xff]  }
  0x71   :  { %952 = vmatmul.mubr.bf16.gmra.mrb[24].mxu0 %v2496_v45  ;;  %1144 = vmatmul.mubr.bf16.gmra.mrb[24].mxu1 %v2497_v46  ;;  %v2577_v45 = vld [vmem:[%s3303_s0 + $0x210] ss:$12 sps:$4 sm:$0xff]   ;;  %v2578_v46 = vld [vmem:[%s3303_s0 + $0x2c0] ss:$12 sps:$4 sm:$0xff]  }
  0x72   :  { %959 = vmatprep.mubr.bf16.mxu0 %v2498_v47  ;;  %1151 = vmatprep.mubr.bf16.mxu1 %v2500_v48  ;;  %v2579_v47 = vld [vmem:[%s3303_s0 + $0x22c] ss:$12 sps:$4 sm:$0xff]  }
  0x73   :  { %v2581_v48 = vld [vmem:[%s3303_s0 + $0x2d8] ss:$12 sps:$4 sm:$0xff]  }
  0x79   :  { %960 = vmatmul.mubr.bf16.gmra.mrb[28].mxu0 %v2502_v49  ;;  %1152 = vmatmul.mubr.bf16.gmra.mrb[28].mxu1 %v2503_v50  ;;  %v2582_v49 = vld [vmem:[%s3303_s0 + $0x228] ss:$12 sps:$4 sm:$0xff]   ;;  %v2583_v50 = vld [vmem:[%s3303_s0 + $0x2f0] ss:$12 sps:$4 sm:$0xff]  }
  0x7a   :  { %967 = vmatprep.mubr.bf16.mxu0 %v2504_v51  ;;  %2341 = vmatprep.mubr.msk.bf16.mxu1 %vm774_vm0, %v2506_v52 }
  0x81   :  { %968 = vmatmul.mubr.bf16.gmra.mrb[32].mxu0 %v2507_v53  ;;  %2342 = vmatmul.mubr.msk.bf16.vlgmr.msra.gmra.mrb[32].mxu1 %vm774_vm0, %v2508_v54 }
  0x82   :  { %975 = vmatprep.mubr.bf16.mxu0 %v2509_v55  ;;  %2345 = vmatprep.mubr.msk.bf16.mxu1 %vm774_vm0, %v2511_v56 }
  0x89   :  { %976 = vmatmul.mubr.bf16.gmra.mrb[36].mxu0 %v2512_v57  ;;  %2346 = vmatmul.mubr.msk.bf16.gmra.mrb[36].mxu1 %vm774_vm0, %v2513_v58 }
  0x8a   :  { %983 = vmatprep.mubr.bf16.mxu0 %v2514_v59  ;;  %2349 = vmatprep.mubr.msk.bf16.mxu1 %vm774_vm0, %v2516_v60 }
  0x91   :  { %984 = vmatmul.mubr.bf16.gmra.mrb[40].mxu0 %v2517_v61  ;;  %2350 = vmatmul.mubr.msk.bf16.gmra.mrb[40].mxu1 %vm774_vm0, %v2518_v62 }
  0x92   :  { %991 = vmatprep.mubr.bf16.mxu0 %v2519_v63  ;;  %2353 = vmatprep.mubr.msk.bf16.mxu1 %vm774_vm0, %v2521_v0 }
  0x99   :  { %992 = vmatmul.mubr.bf16.gmra.mrb[44].mxu0 %v2522_v1  ;;  %2354 = vmatmul.mubr.msk.bf16.gmra.mrb[44].mxu1 %vm774_vm0, %v2523_v2 }
  0x9a   :  { %999 = vmatprep.mubr.bf16.mxu0 %v2524_v3  ;;  %2357 = vmatprep.mubr.msk.bf16.mxu1 %vm774_vm0, %v2526_v4 }
  0xa1   :  { %1000 = vmatmul.mubr.bf16.gmra.mrb[48].mxu0 %v2527_v5  ;;  %2358 = vmatmul.mubr.msk.bf16.gmra.mrb[48].mxu1 %vm774_vm0, %v2528_v6 }
  0xa2   :  { %1007 = vmatprep.mubr.bf16.mxu0 %v2529_v7  ;;  %2361 = vmatprep.mubr.msk.bf16.mxu1 %vm774_vm0, %v2531_v8 }
  0xa9   :  { %1008 = vmatmul.mubr.bf16.gmra.mrb[52].mxu0 %v2532_v9  ;;  %2362 = vmatmul.mubr.msk.bf16.gmra.mrb[52].mxu1 %vm774_vm0, %v2533_v10 }
  0xaa   :  { %1015 = vmatprep.mubr.bf16.mxu0 %v2534_v11  ;;  %2365 = vmatprep.mubr.msk.bf16.mxu1 %vm774_vm0, %v2536_v12 }
  0xb1   :  { %1016 = vmatmul.mubr.bf16.gmra.mrb[56].mxu0 %v2537_v13  ;;  %2366 = vmatmul.mubr.msk.bf16.gmra.mrb[56].mxu1 %vm774_vm0, %v2538_v14 }
  0xb2   :  { %1023 = vmatprep.mubr.bf16.mxu0 %v2539_v15  ;;  %2369 = vmatprep.mubr.msk.bf16.mxu1 %vm774_vm0, %v2541_v16 }
  0xb9   :  { %1024 = vmatmul.mubr.bf16.gmra.mrb[60].mxu0 %v2542_v17  ;;  %2370 = vmatmul.mubr.msk.bf16.gmra.mrb[60].mxu1 %vm774_vm0, %v2543_v18 }
  0xba   :  { %1031 = vmatprep.mubr.bf16.mxu0 %v2544_v19  ;;  %2373 = vmatprep.mubr.msk.bf16.mxu1 %vm774_vm0, %v2546_v20 }
  0xc1   :  { %1032 = vmatmul.mubr.bf16.gmra.mrb[64].mxu0 %v2547_v21  ;;  %2374 = vmatmul.mubr.msk.bf16.gmra.mrb[64].mxu1 %vm774_vm0, %v2548_v22 }
  0xc2   :  { %1039 = vmatprep.mubr.bf16.mxu0 %v2549_v23  ;;  %2377 = vmatprep.mubr.msk.bf16.mxu1 %vm774_vm0, %v2551_v24 }
  0xc9   :  { %1040 = vmatmul.mubr.bf16.gmra.mrb[68].mxu0 %v2552_v25  ;;  %2378 = vmatmul.mubr.msk.bf16.gmra.mrb[68].mxu1 %vm774_vm0, %v2553_v26 }
  0xca   :  { %1047 = vmatprep.mubr.bf16.mxu0 %v2554_v27  ;;  %2381 = vmatprep.mubr.msk.bf16.mxu1 %vm774_vm0, %v2556_v28 }
  0xd1   :  { %1048 = vmatmul.mubr.bf16.gmra.mrb[72].mxu0 %v2557_v29  ;;  %2382 = vmatmul.mubr.msk.bf16.gmra.mrb[72].mxu1 %vm774_vm0, %v2558_v30 }
  0xd2   :  { %1055 = vmatprep.mubr.bf16.mxu0 %v2559_v31  ;;  %2385 = vmatprep.mubr.msk.bf16.mxu1 %vm774_vm0, %v2561_v32 }
  0xd9   :  { %1056 = vmatmul.mubr.bf16.gmra.mrb[76].mxu0 %v2562_v33  ;;  %2386 = vmatmul.mubr.msk.bf16.gmra.mrb[76].mxu1 %vm774_vm0, %v2563_v34 }
  0xda   :  { %1063 = vmatprep.mubr.bf16.mxu0 %v2564_v35  ;;  %2389 = vmatprep.mubr.msk.bf16.mxu1 %vm774_vm0, %v2566_v36 }
  0xe1   :  { %1064 = vmatmul.mubr.bf16.gmra.mrb[80].mxu0 %v2567_v37  ;;  %2390 = vmatmul.mubr.msk.bf16.gmra.mrb[80].mxu1 %vm774_vm0, %v2568_v38 }
  0xe2   :  { %1071 = vmatprep.mubr.bf16.mxu0 %v2569_v39  ;;  %2393 = vmatprep.mubr.msk.bf16.mxu1 %vm774_vm0, %v2571_v40 }
  0xe9   :  { %1072 = vmatmul.mubr.bf16.gmra.mrb[84].mxu0 %v2572_v41  ;;  %2394 = vmatmul.mubr.msk.bf16.gmra.mrb[84].mxu1 %vm774_vm0, %v2573_v42 }
  0xea   :  { %1079 = vmatprep.mubr.bf16.mxu0 %v2574_v43  ;;  %2397 = vmatprep.mubr.msk.bf16.mxu1 %vm774_vm0, %v2576_v44 }
  0xf1   :  { %1080 = vmatmul.mubr.bf16.gmra.mrb[88].mxu0 %v2577_v45  ;;  %2398 = vmatmul.mubr.msk.bf16.gmra.mrb[88].mxu1 %vm774_vm0, %v2578_v46 }
  0xf2   :  { %1087 = vmatprep.mubr.bf16.mxu0 %v2579_v47  ;;  %2401 = vmatprep.mubr.msk.bf16.mxu1 %vm774_vm0, %v2581_v48 }
  0xf9   :  { %1088 = vmatmul.mubr.bf16.gmra.mrb[92].mxu0 %v2582_v49  ;;  %2402 = vmatmul.mubr.msk.bf16.gmra.mrb[92].mxu1 %vm774_vm0, %v2583_v50 }
 0x114   :  { %v3011_v51 = vpop.f32.mrb[0].mxu0  ;;  %v3013_v52 = vpop.f32.mrb[0].mxu1 }
 0x115   :  { %v907_v53 = vpop.f32.mrb[1].mxu0  ;;  %v1099_v54 = vpop.f32.mrb[1].mxu1 }
 0x116   :  { %v3015_v55 = vpop.f32.mrb[2].mxu0  ;;  %v3017_v56 = vpop.f32.mrb[2].mxu1  ;;  %v3074_v53 = vld [vmem:[%s3304_s2] ss:$0 sm:$0xff] }
 0x117   :  { %v910_v57 = vpop.f32.mrb[3].mxu0  ;;  %v1102_v58 = vpop.f32.mrb[3].mxu1 }
 0x118   :  { %v906_v57 = vadd.f32 %v3074_v53, %v3011_v51 }
 0x11c   :  { %v913_v59 = vpop.f32.mrb[4].mxu0  ;;  %v3019_v60 = vpop.f32.mrb[4].mxu1 }
 0x11d   :  { %v915_v61 = vpop.f32.mrb[5].mxu0  ;;  %v1107_v62 = vpop.f32.mrb[5].mxu1  ;;  %v914_v54 = vadd.f32 %v3074_v53, %v913_v59 }
 0x11e   :  { %v916_v63 = vpop.f32.mrb[6].mxu0  ;;  %v3021_v0 = vpop.f32.mrb[6].mxu1 }
 0x11f   :  { %v918_v1 = vpop.f32.mrb[7].mxu0  ;;  %v1110_v2 = vpop.f32.mrb[7].mxu1  ;;  %v917_v62 = vadd.f32 %v3074_v53, %v916_v63 }
 0x124   :  { %v3023_v3 = vpop.f32.mrb[8].mxu0  ;;  %v3025_v4 = vpop.f32.mrb[8].mxu1 }
 0x125   :  { %v923_v5 = vpop.f32.mrb[9].mxu0  ;;  %v1115_v6 = vpop.f32.mrb[9].mxu1 }
 0x126   :  { %v3027_v7 = vpop.f32.mrb[10].mxu0  ;;  %v3029_v8 = vpop.f32.mrb[10].mxu1  ;;  %v909_v6 = vadd.f32 %v3074_v53, %v3015_v55 }
 0x127   :  { %v926_v9 = vpop.f32.mrb[11].mxu0  ;;  %v1118_v10 = vpop.f32.mrb[11].mxu1 }
 0x12c   :  { %v3031_v11 = vpop.f32.mrb[12].mxu0  ;;  %v3033_v12 = vpop.f32.mrb[12].mxu1 }
 0x12d   :  { %v931_v13 = vpop.f32.mrb[13].mxu0  ;;  %v1123_v14 = vpop.f32.mrb[13].mxu1  ;;  %v930_v63 = vadd.f32 %v3074_v53, %v3031_v11  ;;  %v925_v11 = vadd.f32 %v3074_v53, %v3027_v7 }
 0x12e   :  { %v3035_v15 = vpop.f32.mrb[14].mxu0  ;;  %v3037_v16 = vpop.f32.mrb[14].mxu1 }
 0x12f   :  { %v934_v17 = vpop.f32.mrb[15].mxu0  ;;  %v1126_v18 = vpop.f32.mrb[15].mxu1 }
 0x134   :  { %v3039_v19 = vpop.f32.mrb[16].mxu0  ;;  %v3041_v20 = vpop.f32.mrb[16].mxu1 }
 0x135   :  { %v939_v21 = vpop.f32.mrb[17].mxu0  ;;  %v1131_v22 = vpop.f32.mrb[17].mxu1 }
 0x136   :  { %v3043_v23 = vpop.f32.mrb[18].mxu0  ;;  %v3045_v24 = vpop.f32.mrb[18].mxu1 }
 0x137   :  { %v942_v25 = vpop.f32.mrb[19].mxu0  ;;  %v1134_v26 = vpop.f32.mrb[19].mxu1 }
 0x13c   :  { %v3047_v27 = vpop.f32.mrb[20].mxu0  ;;  %v3049_v28 = vpop.f32.mrb[20].mxu1 }
 0x13d   :  { %v947_v29 = vpop.f32.mrb[21].mxu0  ;;  %v1139_v30 = vpop.f32.mrb[21].mxu1 }
 0x13e   :  { %v3051_v31 = vpop.f32.mrb[22].mxu0  ;;  %v3053_v32 = vpop.f32.mrb[22].mxu1  ;;  %v922_v29 = vadd.f32 %v3074_v53, %v3023_v3 }
 0x13f   :  { %v950_v33 = vpop.f32.mrb[23].mxu0  ;;  %v1142_v34 = vpop.f32.mrb[23].mxu1 }
 0x140   :  { %v933_v34 = vadd.f32 %v3074_v53, %v3035_v15 }
 0x144   :  { %v3055_v35 = vpop.f32.mrb[24].mxu0  ;;  %v3057_v36 = vpop.f32.mrb[24].mxu1 }
 0x145   :  { %v955_v37 = vpop.f32.mrb[25].mxu0  ;;  %v1147_v38 = vpop.f32.mrb[25].mxu1 }
 0x146   :  { %v3059_v39 = vpop.f32.mrb[26].mxu0  ;;  %v3061_v40 = vpop.f32.mrb[26].mxu1 }
 0x147   :  { %v958_v41 = vpop.f32.mrb[27].mxu0  ;;  %v1150_v42 = vpop.f32.mrb[27].mxu1 }
 0x14c   :  { %v3063_v43 = vpop.f32.mrb[28].mxu0  ;;  %v3065_v44 = vpop.f32.mrb[28].mxu1 }
 0x14d   :  { %v963_v45 = vpop.f32.mrb[29].mxu0  ;;  %v1155_v46 = vpop.f32.mrb[29].mxu1 }
 0x14e   :  { %v3067_v47 = vpop.f32.mrb[30].mxu0  ;;  %v3069_v48 = vpop.f32.mrb[30].mxu1 }
 0x14f   :  { %v966_v49 = vpop.f32.mrb[31].mxu0  ;;  %v1158_v50 = vpop.f32.mrb[31].mxu1 }
 0x154   :  { %v3079_v58 = vpop.f32.mrb[32].mxu0  ;;  %v2343_v61 = vpop.f32.mrb[32].mxu1 }
 0x155   :  { %v1203_v1 = vadd.f32 %v2343_v61, %v914_v54  ;;  %v971_v2 = vpop.f32.mrb[33].mxu0  ;;  %v1194_v5 = vpop.f32.mrb[33].mxu1 }
 0x156   :  { %v1195_v9 = vadd.f32 %v1194_v5, %v906_v57  ;;  %v3084_v10 = vpop.f32.mrb[34].mxu0  ;;  %v2344_v13 = vpop.f32.mrb[34].mxu1  ;;  %v938_v2 = vadd.f32 %v3074_v53, %v3039_v19 }
 0x157   :  { %v1206_v14 = vadd.f32 %v2344_v13, %v917_v62  ;;  %v974_v59 = vpop.f32.mrb[35].mxu0  ;;  %v1197_v17 = vpop.f32.mrb[35].mxu1  ;;  %v1451_v51 = vmax.f32 %v1203_v1, 0.0  ;;  %v946_v1 = vadd.f32 %v3074_v53, %v3047_v27  ;;  %v949_v13 = vadd.f32 %v3074_v53, %v3051_v31 }
 0x158   :  { %v1198_v18 = vadd.f32 %v1197_v17, %v909_v6  ;;  %v1449_v22 = vmax.f32 %v1195_v9, 0.0  ;;  %v941_v27 = vadd.f32 %v3074_v53, %v3043_v23 }
 0x159   :  { %v1452_v21 = vmax.f32 %v1206_v14, 0.0 }
 0x15a   :  { %v1450_v25 = vmax.f32 %v1198_v18, 0.0 }
 0x15b   :  { %v2120_v26 = vpack.c.bf16 %v1452_v21, %v1451_v51 }
 0x15c   :  { %v2115_v55 = vpack.c.bf16 %v1450_v25, %v1449_v22  ;;  %v3090_v30 = vpop.f32.mrb[36].mxu0  ;;  %v2347_v33 = vpop.f32.mrb[36].mxu1 }
 0x15d   :  { %2272 = vst [vmem:[%s3305_s3 + $0x8] sm:$0xff] %v2120_v26   ;;  %v1219_v37 = vadd.f32 %v2347_v33, %v930_v63  ;;  %v979_v38 = vpop.f32.mrb[37].mxu0  ;;  %v1210_v41 = vpop.f32.mrb[37].mxu1  ;;  %v962_v33 = vadd.f32 %v3074_v53, %v3063_v43  ;;  %v957_v43 = vadd.f32 %v3074_v53, %v3059_v39  ;;  %v970_v39 = vadd.f32 %v3074_v53, %v3079_v58 }
 0x15e   :  { %2116 = vst [vmem:[%s3305_s3] sm:$0xff] %v2115_v55   ;;  %v1211_v3 = vadd.f32 %v1210_v41, %v922_v29  ;;  %v3102_v42 = vpop.f32.mrb[38].mxu0  ;;  %v2348_v45 = vpop.f32.mrb[38].mxu1 }
 0x15f   :  { %v1222_v46 = vadd.f32 %v2348_v45, %v933_v34  ;;  %v982_v15 = vpop.f32.mrb[39].mxu0  ;;  %v1213_v49 = vpop.f32.mrb[39].mxu1  ;;  %v1455_v54 = vmax.f32 %v1219_v37, 0.0  ;;  %v954_v34 = vadd.f32 %v3074_v53, %v3055_v35 }
 0x160   :  { %v1214_v50 = vadd.f32 %v1213_v49, %v925_v11  ;;  %v1453_v61 = vmax.f32 %v1211_v3, 0.0  ;;  %v965_v11 = vadd.f32 %v3074_v53, %v3067_v47 }
 0x161   :  { %v1456_v57 = vmax.f32 %v1222_v46, 0.0 }
 0x162   :  { %v1454_v62 = vmax.f32 %v1214_v50, 0.0 }
 0x163   :  { %v2130_v7 = vpack.c.bf16 %v1456_v57, %v1455_v54 }
 0x164   :  { %v2125_v5 = vpack.c.bf16 %v1454_v62, %v1453_v61  ;;  %v3108_v6 = vpop.f32.mrb[40].mxu0  ;;  %v2351_v9 = vpop.f32.mrb[40].mxu1 }
 0x165   :  { %2274 = vst [vmem:[%s3305_s3 + $0x18] sm:$0xff] %v2130_v7   ;;  %v1235_v14 = vadd.f32 %v2351_v9, %v946_v1  ;;  %v987_v59 = vpop.f32.mrb[41].mxu0  ;;  %v1226_v17 = vpop.f32.mrb[41].mxu1 }
 0x166   :  { %2273 = vst [vmem:[%s3305_s3 + $0x10] sm:$0xff] %v2125_v5   ;;  %v1227_v19 = vadd.f32 %v1226_v17, %v938_v2  ;;  %v3120_v18 = vpop.f32.mrb[42].mxu0  ;;  %v2352_v51 = vpop.f32.mrb[42].mxu1  ;;  %v978_v2 = vadd.f32 %v3074_v53, %v3090_v30  ;;  %v981_v59 = vadd.f32 %v3074_v53, %v3102_v42  ;;  %v973_v30 = vadd.f32 %v3074_v53, %v3084_v10 }
 0x167   :  { %v1238_v21 = vadd.f32 %v2352_v51, %v949_v13  ;;  %v990_v31 = vpop.f32.mrb[43].mxu0  ;;  %v1229_v22 = vpop.f32.mrb[43].mxu1  ;;  %v1459_v63 = vmax.f32 %v1235_v14, 0.0  ;;  %v986_v10 = vadd.f32 %v3074_v53, %v3108_v6 }
 0x168   :  { %v1230_v25 = vadd.f32 %v1229_v22, %v941_v27  ;;  %v1457_v29 = vmax.f32 %v1227_v19, 0.0 }
 0x169   :  { %v1460_v26 = vmax.f32 %v1238_v21, 0.0 }
 0x16a   :  { %v1458_v55 = vmax.f32 %v1230_v25, 0.0 }
 0x16b   :  { %v2140_v23 = vpack.c.bf16 %v1460_v26, %v1459_v63 }
 0x16c   :  { %v2135_v37 = vpack.c.bf16 %v1458_v55, %v1457_v29  ;;  %v993_v38 = vpop.f32.mrb[44].mxu0  ;;  %v2355_v41 = vpop.f32.mrb[44].mxu1 }
 0x16d   :  { %2276 = vst [vmem:[%s3305_s3 + $0x28] sm:$0xff] %v2140_v23   ;;  %v1251_v3 = vadd.f32 %v2355_v41, %v962_v33  ;;  %v995_v45 = vpop.f32.mrb[45].mxu0  ;;  %v1242_v46 = vpop.f32.mrb[45].mxu1  ;;  %v994_v33 = vadd.f32 %v3074_v53, %v993_v38 }
 0x16e   :  { %2275 = vst [vmem:[%s3305_s3 + $0x20] sm:$0xff] %v2135_v37   ;;  %v1243_v35 = vadd.f32 %v1242_v46, %v954_v34  ;;  %v996_v15 = vpop.f32.mrb[46].mxu0  ;;  %v2356_v49 = vpop.f32.mrb[46].mxu1 }
 0x16f   :  { %v1254_v50 = vadd.f32 %v2356_v49, %v965_v11  ;;  %v998_v54 = vpop.f32.mrb[47].mxu0  ;;  %v1245_v47 = vpop.f32.mrb[47].mxu1  ;;  %v1463_v61 = vmax.f32 %v1251_v3, 0.0  ;;  %v997_v11 = vadd.f32 %v3074_v53, %v996_v15 }
 0x170   :  { %v1246_v57 = vadd.f32 %v1245_v47, %v957_v43  ;;  %v1461_v1 = vmax.f32 %v1243_v35, 0.0  ;;  %v989_v43 = vadd.f32 %v3074_v53, %v3120_v18 }
 0x171   :  { %v1464_v62 = vmax.f32 %v1254_v50, 0.0 }
 0x172   :  { %v1462_v7 = vmax.f32 %v1246_v57, 0.0 }
 0x173   :  { %v2150_v5 = vpack.c.bf16 %v1464_v62, %v1463_v61 }
 0x174   :  { %v2145_v9 = vpack.c.bf16 %v1462_v7, %v1461_v1  ;;  %v1001_v13 = vpop.f32.mrb[48].mxu0  ;;  %v2359_v14 = vpop.f32.mrb[48].mxu1 }
 0x175   :  { %2278 = vst [vmem:[%s3305_s3 + $0x38] sm:$0xff] %v2150_v5   ;;  %v1267_v17 = vadd.f32 %v2359_v14, %v978_v2  ;;  %v1003_v27 = vpop.f32.mrb[49].mxu0  ;;  %v1258_v19 = vpop.f32.mrb[49].mxu1  ;;  %v1002_v18 = vadd.f32 %v3074_v53, %v1001_v13 }
 0x176   :  { %2277 = vst [vmem:[%s3305_s3 + $0x30] sm:$0xff] %v2145_v9   ;;  %v1259_v58 = vadd.f32 %v1258_v19, %v970_v39  ;;  %v1004_v51 = vpop.f32.mrb[50].mxu0  ;;  %v2360_v21 = vpop.f32.mrb[50].mxu1 }
 0x177   :  { %v1270_v31 = vadd.f32 %v2360_v21, %v981_v59  ;;  %v1006_v22 = vpop.f32.mrb[51].mxu0  ;;  %v1261_v42 = vpop.f32.mrb[51].mxu1  ;;  %v1467_v63 = vmax.f32 %v1267_v17, 0.0  ;;  %v1005_v27 = vadd.f32 %v3074_v53, %v1004_v51 }
 0x178   :  { %v1262_v25 = vadd.f32 %v1261_v42, %v973_v30  ;;  %v1465_v29 = vmax.f32 %v1259_v58, 0.0 }
 0x179   :  { %v1468_v26 = vmax.f32 %v1270_v31, 0.0 }
 0x17a   :  { %v1466_v55 = vmax.f32 %v1262_v25, 0.0 }
 0x17b   :  { %v2160_v23 = vpack.c.bf16 %v1468_v26, %v1467_v63 }
 0x17c   :  { %v2155_v34 = vpack.c.bf16 %v1466_v55, %v1465_v29  ;;  %v1009_v37 = vpop.f32.mrb[52].mxu0  ;;  %v2363_v41 = vpop.f32.mrb[52].mxu1 }
 0x17d   :  { %2280 = vst [vmem:[%s3305_s3 + $0x48] sm:$0xff] %v2160_v23   ;;  %v1283_v3 = vadd.f32 %v2363_v41, %v994_v33  ;;  %v1011_v45 = vpop.f32.mrb[53].mxu0  ;;  %v1274_v46 = vpop.f32.mrb[53].mxu1  ;;  %v1010_v1 = vadd.f32 %v3074_v53, %v1009_v37 }
 0x17e   :  { %2279 = vst [vmem:[%s3305_s3 + $0x40] sm:$0xff] %v2155_v34   ;;  %v1275_v6 = vadd.f32 %v1274_v46, %v986_v10  ;;  %v1012_v38 = vpop.f32.mrb[54].mxu0  ;;  %v2364_v35 = vpop.f32.mrb[54].mxu1 }
 0x17f   :  { %v1286_v49 = vadd.f32 %v2364_v35, %v997_v11  ;;  %v1014_v50 = vpop.f32.mrb[55].mxu0  ;;  %v1277_v15 = vpop.f32.mrb[55].mxu1  ;;  %v1471_v47 = vmax.f32 %v1283_v3, 0.0  ;;  %v1013_v9 = vadd.f32 %v3074_v53, %v1012_v38 }
 0x180   :  { %v1278_v54 = vadd.f32 %v1277_v15, %v989_v43  ;;  %v1469_v61 = vmax.f32 %v1275_v6, 0.0 }
 0x181   :  { %v1472_v57 = vmax.f32 %v1286_v49, 0.0 }
 0x182   :  { %v1470_v62 = vmax.f32 %v1278_v54, 0.0 }
 0x183   :  { %v2170_v7 = vpack.c.bf16 %v1472_v57, %v1471_v47 }
 0x184   :  { %v2165_v2 = vpack.c.bf16 %v1470_v62, %v1469_v61  ;;  %v1017_v5 = vpop.f32.mrb[56].mxu0  ;;  %v2367_v39 = vpop.f32.mrb[56].mxu1 }
 0x185   :  { %2282 = vst [vmem:[%s3305_s3 + $0x58] sm:$0xff] %v2170_v7   ;;  %v1299_v14 = vadd.f32 %v2367_v39, %v1010_v1  ;;  %v1019_v59 = vpop.f32.mrb[57].mxu0  ;;  %v1290_v17 = vpop.f32.mrb[57].mxu1  ;;  %v1018_v55 = vadd.f32 %v3074_v53, %v1017_v5 }
 0x186   :  { %2281 = vst [vmem:[%s3305_s3 + $0x50] sm:$0xff] %v2165_v2   ;;  %v1291_v19 = vadd.f32 %v1290_v17, %v1002_v18  ;;  %v1020_v13 = vpop.f32.mrb[58].mxu0  ;;  %v2368_v30 = vpop.f32.mrb[58].mxu1 }
 0x187   :  { %v1302_v58 = vadd.f32 %v2368_v30, %v1013_v9  ;;  %v1022_v21 = vpop.f32.mrb[59].mxu0  ;;  %v1293_v31 = vpop.f32.mrb[59].mxu1  ;;  %v1475_v42 = vmax.f32 %v1299_v14, 0.0  ;;  %v1021_v41 = vadd.f32 %v3074_v53, %v1020_v13 }
 0x188   :  { %v1294_v22 = vadd.f32 %v1293_v31, %v1005_v27  ;;  %v1473_v63 = vmax.f32 %v1291_v19, 0.0 }
 0x189   :  { %v1476_v25 = vmax.f32 %v1302_v58, 0.0 }
 0x18a   :  { %v1474_v26 = vmax.f32 %v1294_v22, 0.0 }
 0x18b   :  { %v2180_v29 = vpack.c.bf16 %v1476_v25, %v1475_v42 }
 0x18c   :  { %v2175_v33 = vpack.c.bf16 %v1474_v26, %v1473_v63  ;;  %v1025_v51 = vpop.f32.mrb[60].mxu0  ;;  %v2371_v23 = vpop.f32.mrb[60].mxu1 }
 0x18d   :  { %2284 = vst [vmem:[%s3305_s3 + $0x68] sm:$0xff] %v2180_v29   ;;  %v1026_v10 = vadd.f32 %v3074_v53, %v1025_v51  ;;  %v1027_v34 = vpop.f32.mrb[61].mxu0  ;;  %v1306_v37 = vpop.f32.mrb[61].mxu1 }
 0x18e   :  { %2283 = vst [vmem:[%s3305_s3 + $0x60] sm:$0xff] %v2175_v33   ;;  %v1307_v11 = vadd.f32 %v1306_v37, %v1018_v55  ;;  %v1028_v3 = vpop.f32.mrb[62].mxu0  ;;  %v2372_v45 = vpop.f32.mrb[62].mxu1 }
 0x18f   :  { %v1315_v46 = vadd.f32 %v2371_v23, %v1026_v10  ;;  %v1029_v43 = vadd.f32 %v3074_v53, %v1028_v3  ;;  %v1030_v6 = vpop.f32.mrb[63].mxu0  ;;  %v1309_v38 = vpop.f32.mrb[63].mxu1 }
 0x190   :  { %v1310_v35 = vadd.f32 %v1309_v38, %v1021_v41  ;;  %v1477_v50 = vmax.f32 %v1307_v11, 0.0 }
 0x191   :  { %v1318_v49 = vadd.f32 %v2372_v45, %v1029_v43  ;;  %v1479_v54 = vmax.f32 %v1315_v46, 0.0 }
 0x192   :  { %v1478_v15 = vmax.f32 %v1310_v35, 0.0 }
 0x193   :  { %v1480_v47 = vmax.f32 %v1318_v49, 0.0 }
 0x194   :  { %v2185_v57 = vpack.c.bf16 %v1478_v15, %v1477_v50  ;;  %v1033_v61 = vpop.f32.mrb[64].mxu0  ;;  %v2375_v62 = vpop.f32.mrb[64].mxu1 }
 0x195   :  { %v2190_v1 = vpack.c.bf16 %v1480_v47, %v1479_v54  ;;  %v1034_v7 = vadd.f32 %v3074_v53, %v1033_v61  ;;  %v1035_v18 = vpop.f32.mrb[65].mxu0  ;;  %v1322_v2 = vpop.f32.mrb[65].mxu1 }
 0x196   :  { %2285 = vst [vmem:[%s3305_s3 + $0x70] sm:$0xff] %v2185_v57   ;;  %v1036_v5 = vpop.f32.mrb[66].mxu0  ;;  %v2376_v39 = vpop.f32.mrb[66].mxu1 }
 0x197   :  { %2286 = vst [vmem:[%s3305_s3 + $0x78] sm:$0xff] %v2190_v1   ;;  %v1323_v9 = vadd.f32 %v1322_v2, %v1034_v7  ;;  %v1037_v14 = vadd.f32 %v3074_v53, %v1036_v5  ;;  %v1038_v59 = vpop.f32.mrb[67].mxu0  ;;  %v1325_v17 = vpop.f32.mrb[67].mxu1 }
 0x199   :  { %v1326_v27 = vadd.f32 %v1325_v17, %v1037_v14  ;;  %v1481_v19 = vmax.f32 %v1323_v9, 0.0  ;;  %v1106_v17 = vadd.f32 %v3074_v53, %v3019_v60 }
 0x19b   :  { %v1482_v13 = vmax.f32 %v1326_v27, 0.0 }
 0x19c   :  { %v1041_v30 = vpop.f32.mrb[68].mxu0  ;;  %v2379_v58 = vpop.f32.mrb[68].mxu1 }
 0x19d   :  { %v2195_v21 = vpack.c.bf16 %v1482_v13, %v1481_v19  ;;  %v1042_v31 = vadd.f32 %v3074_v53, %v1041_v30  ;;  %v1043_v22 = vpop.f32.mrb[69].mxu0  ;;  %v1338_v42 = vpop.f32.mrb[69].mxu1  ;;  %v1098_v13 = vadd.f32 %v3074_v53, %v3013_v52 }
 0x19e   :  { %v1044_v25 = vpop.f32.mrb[70].mxu0  ;;  %v2380_v63 = vpop.f32.mrb[70].mxu1 }
 0x19f   :  { %2287 = vst [vmem:[%s3305_s3 + $0x80] sm:$0xff] %v2195_v21   ;;  %v1331_v26 = vadd.f32 %v2375_v62, %v1042_v31  ;;  %v1045_v29 = vadd.f32 %v3074_v53, %v1044_v25  ;;  %v1046_v55 = vpop.f32.mrb[71].mxu0  ;;  %v1341_v33 = vpop.f32.mrb[71].mxu1  ;;  %v1109_v31 = vadd.f32 %v3074_v53, %v3021_v0 }
 0x1a1   :  { %v1334_v51 = vadd.f32 %v2376_v39, %v1045_v29  ;;  %v1483_v23 = vmax.f32 %v1331_v26, 0.0 }
 0x1a3   :  { %v1484_v10 = vmax.f32 %v1334_v51, 0.0 }
 0x1a4   :  { %v1049_v34 = vpop.f32.mrb[72].mxu0  ;;  %v3195_v37 = vpop.f32.mrb[72].mxu1 }
 0x1a5   :  { %v2200_v41 = vpack.c.bf16 %v1484_v10, %v1483_v23  ;;  %v1050_v11 = vadd.f32 %v3074_v53, %v1049_v34  ;;  %v1051_v3 = vpop.f32.mrb[73].mxu0  ;;  %v1354_v45 = vpop.f32.mrb[73].mxu1 }
 0x1a6   :  { %v1052_v46 = vpop.f32.mrb[74].mxu0  ;;  %v3198_v43 = vpop.f32.mrb[74].mxu1 }
 0x1a7   :  { %2288 = vst [vmem:[%s3305_s3 + $0x88] sm:$0xff] %v2200_v41   ;;  %v1339_v6 = vadd.f32 %v1338_v42, %v1050_v11  ;;  %v1053_v38 = vadd.f32 %v3074_v53, %v1052_v46  ;;  %v1054_v35 = vpop.f32.mrb[75].mxu0  ;;  %v1357_v49 = vpop.f32.mrb[75].mxu1 }
 0x1a9   :  { %v1342_v50 = vadd.f32 %v1341_v33, %v1053_v38  ;;  %v1485_v15 = vmax.f32 %v1339_v6, 0.0 }
 0x1ab   :  { %v1486_v54 = vmax.f32 %v1342_v50, 0.0 }
 0x1ac   :  { %v1057_v47 = vpop.f32.mrb[76].mxu0  ;;  %v3204_v57 = vpop.f32.mrb[76].mxu1 }
 0x1ad   :  { %v2205_v61 = vpack.c.bf16 %v1486_v54, %v1485_v15  ;;  %v1058_v62 = vadd.f32 %v3074_v53, %v1057_v47  ;;  %v1059_v1 = vpop.f32.mrb[77].mxu0  ;;  %v3207_v7 = vpop.f32.mrb[77].mxu1  ;;  %v1125_v47 = vadd.f32 %v3074_v53, %v3037_v16 }
 0x1ae   :  { %v1060_v18 = vpop.f32.mrb[78].mxu0  ;;  %v3209_v2 = vpop.f32.mrb[78].mxu1 }
 0x1af   :  { %2289 = vst [vmem:[%s3305_s3 + $0x90] sm:$0xff] %v2205_v61   ;;  %v1347_v5 = vadd.f32 %v2379_v58, %v1058_v62  ;;  %v1061_v39 = vadd.f32 %v3074_v53, %v1060_v18  ;;  %v1062_v9 = vpop.f32.mrb[79].mxu0  ;;  %v3215_v14 = vpop.f32.mrb[79].mxu1  ;;  %v1117_v18 = vadd.f32 %v3074_v53, %v3029_v8 }
 0x1b1   :  { %v1350_v59 = vadd.f32 %v2380_v63, %v1061_v39  ;;  %v1487_v27 = vmax.f32 %v1347_v5, 0.0  ;;  %v1101_v63 = vadd.f32 %v3074_v53, %v3017_v56  ;;  %v1122_v56 = vadd.f32 %v3074_v53, %v3033_v12 }
 0x1b3   :  { %v1488_v19 = vmax.f32 %v1350_v59, 0.0 }
 0x1b4   :  { %v1065_v30 = vpop.f32.mrb[80].mxu0  ;;  %v2391_v21 = vpop.f32.mrb[80].mxu1 }
 0x1b5   :  { %v2210_v58 = vpack.c.bf16 %v1488_v19, %v1487_v27  ;;  %v1066_v22 = vadd.f32 %v3074_v53, %v1065_v30  ;;  %v1395_v42 = vadd.f32 %v2391_v21, %v1106_v17  ;;  %v1067_v25 = vpop.f32.mrb[81].mxu0  ;;  %v1386_v26 = vpop.f32.mrb[81].mxu1 }
 0x1b6   :  { %v1387_v60 = vadd.f32 %v1386_v26, %v1098_v13  ;;  %v1068_v29 = vpop.f32.mrb[82].mxu0  ;;  %v2392_v55 = vpop.f32.mrb[82].mxu1 }
 0x1b7   :  { %2290 = vst [vmem:[%s3305_s3 + $0x98] sm:$0xff] %v2210_v58   ;;  %v1355_v52 = vadd.f32 %v1354_v45, %v1066_v22  ;;  %v1069_v33 = vadd.f32 %v3074_v53, %v1068_v29  ;;  %v1398_v0 = vadd.f32 %v2392_v55, %v1109_v31  ;;  %v1070_v51 = vpop.f32.mrb[83].mxu0  ;;  %v1389_v23 = vpop.f32.mrb[83].mxu1  ;;  %v1499_v34 = vmax.f32 %v1395_v42, 0.0 }
 0x1b8   :  { %v1390_v10 = vadd.f32 %v1389_v23, %v1101_v63  ;;  %v1497_v3 = vmax.f32 %v1387_v60, 0.0  ;;  %v1114_v45 = vadd.f32 %v3074_v53, %v3025_v4  ;;  %v1138_v58 = vadd.f32 %v3074_v53, %v3049_v28 }
 0x1b9   :  { %v1358_v41 = vadd.f32 %v1357_v49, %v1069_v33  ;;  %v1500_v11 = vmax.f32 %v1398_v0, 0.0  ;;  %v1489_v6 = vmax.f32 %v1355_v52, 0.0  ;;  %v1141_v29 = vadd.f32 %v3074_v53, %v3053_v32 }
 0x1ba   :  { %v1498_v46 = vmax.f32 %v1390_v10, 0.0  ;;  %v1133_v0 = vadd.f32 %v3074_v53, %v3045_v24 }
 0x1bb   :  { %v1490_v38 = vmax.f32 %v1358_v41, 0.0  ;;  %v2240_v35 = vpack.c.bf16 %v1500_v11, %v1499_v34 }
 0x1bc   :  { %v2235_v50 = vpack.c.bf16 %v1498_v46, %v1497_v3  ;;  %v1073_v15 = vpop.f32.mrb[84].mxu0  ;;  %v2395_v54 = vpop.f32.mrb[84].mxu1 }
 0x1bd   :  { %v2215_v61 = vpack.c.bf16 %v1490_v38, %v1489_v6  ;;  %2296 = vst [vmem:[%s3305_s3 + $0xc8] sm:$0xff] %v2240_v35   ;;  %v1074_v49 = vadd.f32 %v3074_v53, %v1073_v15  ;;  %v1411_v12 = vadd.f32 %v2395_v54, %v1122_v56  ;;  %v1075_v62 = vpop.f32.mrb[85].mxu0  ;;  %v1402_v1 = vpop.f32.mrb[85].mxu1  ;;  %v1154_v35 = vadd.f32 %v3074_v53, %v3065_v44 }
 0x1be   :  { %2295 = vst [vmem:[%s3305_s3 + $0xc0] sm:$0xff] %v2235_v50   ;;  %v1403_v4 = vadd.f32 %v1402_v1, %v1114_v45  ;;  %v1076_v5 = vpop.f32.mrb[86].mxu0  ;;  %v2396_v16 = vpop.f32.mrb[86].mxu1 }
 0x1bf   :  { %2291 = vst [vmem:[%s3305_s3 + $0xa0] sm:$0xff] %v2215_v61   ;;  %v1363_v39 = vadd.f32 %v3195_v37, %v1074_v49  ;;  %v1077_v9 = vadd.f32 %v3074_v53, %v1076_v5  ;;  %v1414_v59 = vadd.f32 %v2396_v16, %v1125_v47  ;;  %v1078_v17 = vpop.f32.mrb[87].mxu0  ;;  %v1405_v27 = vpop.f32.mrb[87].mxu1  ;;  %v1503_v8 = vmax.f32 %v1411_v12, 0.0 }
 0x1c0   :  { %v1406_v19 = vadd.f32 %v1405_v27, %v1117_v18  ;;  %v1501_v21 = vmax.f32 %v1403_v4, 0.0  ;;  %v1130_v37 = vadd.f32 %v3074_v53, %v3041_v20  ;;  %v1157_v49 = vadd.f32 %v3074_v53, %v3069_v48 }
 0x1c1   :  { %v1366_v13 = vadd.f32 %v3198_v43, %v1077_v9  ;;  %v1504_v30 = vmax.f32 %v1414_v59, 0.0  ;;  %v1491_v22 = vmax.f32 %v1363_v39, 0.0  ;;  %v1149_v18 = vadd.f32 %v3074_v53, %v3061_v40 }
 0x1c2   :  { %v1502_v31 = vmax.f32 %v1406_v19, 0.0 }
 0x1c3   :  { %v1492_v42 = vmax.f32 %v1366_v13, 0.0  ;;  %v2250_v25 = vpack.c.bf16 %v1504_v30, %v1503_v8 }
 0x1c4   :  { %v2245_v26 = vpack.c.bf16 %v1502_v31, %v1501_v21  ;;  %v1081_v63 = vpop.f32.mrb[88].mxu0  ;;  %v2399_v60 = vpop.f32.mrb[88].mxu1 }
 0x1c5   :  { %v2220_v55 = vpack.c.bf16 %v1492_v42, %v1491_v22  ;;  %2298 = vst [vmem:[%s3305_s3 + $0xd8] sm:$0xff] %v2250_v25   ;;  %v1082_v43 = vadd.f32 %v3074_v53, %v1081_v63  ;;  %v1427_v28 = vadd.f32 %v2399_v60, %v1138_v58  ;;  %v1083_v52 = vpop.f32.mrb[89].mxu0  ;;  %v1418_v33 = vpop.f32.mrb[89].mxu1 }
 0x1c6   :  { %2297 = vst [vmem:[%s3305_s3 + $0xd0] sm:$0xff] %v2245_v26   ;;  %v1419_v20 = vadd.f32 %v1418_v33, %v1130_v37  ;;  %v1084_v51 = vpop.f32.mrb[90].mxu0  ;;  %v2400_v32 = vpop.f32.mrb[90].mxu1 }
 0x1c7   :  { %2292 = vst [vmem:[%s3305_s3 + $0xa8] sm:$0xff] %v2220_v55   ;;  %v1371_v23 = vadd.f32 %v3207_v7, %v1082_v43  ;;  %v1085_v10 = vadd.f32 %v3074_v53, %v1084_v51  ;;  %v1430_v34 = vadd.f32 %v2400_v32, %v1141_v29  ;;  %v1086_v41 = vpop.f32.mrb[91].mxu0  ;;  %v1421_v11 = vpop.f32.mrb[91].mxu1  ;;  %v1507_v24 = vmax.f32 %v1427_v28, 0.0 }
 0x1c8   :  { %v1422_v3 = vadd.f32 %v1421_v11, %v1133_v0  ;;  %v1505_v6 = vmax.f32 %v1419_v20, 0.0  ;;  %v1146_v7 = vadd.f32 %v3074_v53, %v3057_v36 }
 0x1c9   :  { %v1374_v46 = vadd.f32 %v3215_v14, %v1085_v10  ;;  %v1508_v56 = vmax.f32 %v1430_v34, 0.0  ;;  %v1493_v45 = vmax.f32 %v1371_v23, 0.0 }
 0x1ca   :  { %v1506_v38 = vmax.f32 %v1422_v3, 0.0 }
 0x1cb   :  { %v1494_v50 = vmax.f32 %v1374_v46, 0.0  ;;  %v2260_v15 = vpack.c.bf16 %v1508_v56, %v1507_v24 }
 0x1cc   :  { %v2255_v54 = vpack.c.bf16 %v1506_v38, %v1505_v6  ;;  %v1089_v47 = vpop.f32.mrb[92].mxu0  ;;  %v2403_v61 = vpop.f32.mrb[92].mxu1 }
 0x1cd   :  { %v2225_v12 = vpack.c.bf16 %v1494_v50, %v1493_v45  ;;  %2300 = vst [vmem:[%s3305_s3 + $0xe8] sm:$0xff] %v2260_v15   ;;  %v1090_v14 = vadd.f32 %v3074_v53, %v1089_v47  ;;  %v1443_v44 = vadd.f32 %v2403_v61, %v1154_v35  ;;  %v1091_v62 = vpop.f32.mrb[93].mxu0  ;;  %v1434_v1 = vpop.f32.mrb[93].mxu1 }
 0x1ce   :  { %2299 = vst [vmem:[%s3305_s3 + $0xe0] sm:$0xff] %v2255_v54   ;;  %v1435_v36 = vadd.f32 %v1434_v1, %v1146_v7  ;;  %v1092_v4 = vpop.f32.mrb[94].mxu0  ;;  %v2404_v48 = vpop.f32.mrb[94].mxu1 }
 0x1cf   :  { %2293 = vst [vmem:[%s3305_s3 + $0xb0] sm:$0xff] %v2225_v12   ;;  %v1379_v5 = vadd.f32 %v3204_v57, %v1090_v14  ;;  %v1093_v16 = vadd.f32 %v3074_v53, %v1092_v4  ;;  %v1446_v39 = vadd.f32 %v2404_v48, %v1157_v49  ;;  %v1094_v9 = vpop.f32.mrb[95].mxu0  ;;  %v1437_v59 = vpop.f32.mrb[95].mxu1  ;;  %v1511_v40 = vmax.f32 %v1443_v44, 0.0 }
 0x1d0   :  { %v1438_v17 = vadd.f32 %v1437_v59, %v1149_v18  ;;  %v1509_v8 = vmax.f32 %v1435_v36, 0.0 }
 0x1d1   :  { %v1382_v27 = vadd.f32 %v3209_v2, %v1093_v16  ;;  %v1512_v19 = vmax.f32 %v1446_v39, 0.0  ;;  %v1495_v30 = vmax.f32 %v1379_v5, 0.0 }
 0x1d2   :  { %v1510_v13 = vmax.f32 %v1438_v17, 0.0 }
 0x1d3   :  { %v1496_v21 = vmax.f32 %v1382_v27, 0.0  ;;  %v2270_v31 = vpack.c.bf16 %v1512_v19, %v1511_v40 }
 0x1d4   :  { %v2265_v58 = vpack.c.bf16 %v1510_v13, %v1509_v8 }
 0x1d5   :  { %v2230_v22 = vpack.c.bf16 %v1496_v21, %v1495_v30  ;;  %2302 = vst [vmem:[%s3305_s3 + $0xf8] sm:$0xff] %v2270_v31  }
 0x1d6   :  { %2301 = vst [vmem:[%s3305_s3 + $0xf0] sm:$0xff] %v2265_v58  }
 0x1d7   :  { %2294 = vst [vmem:[%s3305_s3 + $0xb8] sm:$0xff] %v2230_v22  }

// kernel: _lambda_.15
= control target key start
LH: loop header
LB: loop body
LE: loop exit
PB: predicated region body
PF: predicated region fallthrough
CT: control target
= control target key end

     0   :  { %v2821_v3 = vmov 0   ;;  %v2822_v33 = vmov 1983009808   ;;  %v315_v35 = vlaneseq  ;;  %vm1769_vm0 = vcmask 261120   ;;  %s3813_s1 = inlined_call_operand.vmem [shape: bf16[288,2048], index: 1, kind: input, shape index: {}]   ;;  %s3814_s0 = inlined_call_operand.vmem [shape: bf16[4,288], index: 0, kind: input, shape index: {}]   ;;  %s3815_s2 = inlined_call_operand.vmem [shape: f32[4,1], index: 2, kind: input, shape index: {}]   ;;  %s3816_s3 = inlined_call_operand.vmem [shape: f32[4,2048], index: 3, kind: output, shape index: {}]  }
   0x1   :  { %v16_v0 = vld [vmem:[%s3813_s1] sm:$0xff]  ;;  %v17_v2 = vld [vmem:[%s3813_s1 + $0x8] sm:$0xff]  ;;  %2819 = vset.pattern.permute.xlu0 %v2821_v3  ;;  %v313_v34 = vunpack.c.l.s4 %v2822_v33 }
   0x2   :  { %v24_v1 = vld [vmem:[%s3813_s1 + $0x40] sm:$0xff]  ;;  %v25_v5 = vld [vmem:[%s3813_s1 + $0x48] sm:$0xff]  ;;  %v316_v45 = vshrl.u32 %v315_v35, 7 }
   0x3   :  { %v2474_v4 = vcombine.high %v16_v0, %v24_v1  ;;  %v2473_v6 = vcombine.low %v16_v0, %v24_v1  ;;  %v32_v7 = vld [vmem:[%s3813_s1 + $0x80] sm:$0xff]  ;;  %v2476_v9 = vcombine.high %v17_v2, %v25_v5  ;;  %v2475_v10 = vcombine.low %v17_v2, %v25_v5  ;;  %v33_v12 = vld [vmem:[%s3813_s1 + $0x88] sm:$0xff] }
   0x4   :  { %v40_v8 = vld [vmem:[%s3813_s1 + $0xc0] sm:$0xff]  ;;  %v41_v13 = vld [vmem:[%s3813_s1 + $0xc8] sm:$0xff]  ;;  %v314_v44 = vunpack.c.0.s8 %v313_v34 }
   0x5   :  { %v2490_v11 = vcombine.high %v32_v7, %v40_v8  ;;  %v48_v14 = vld [vmem:[%s3813_s1 + $0x100] sm:$0xff]  ;;  %1773 = vmatprep.subr.bf16.mxu0 %v2474_v4  ;;  %v2492_v15 = vcombine.high %v33_v12, %v41_v13  ;;  %v49_v17 = vld [vmem:[%s3813_s1 + $0x108] sm:$0xff]  ;;  %1855 = vmatprep.subr.bf16.mxu1 %v2476_v9  ;;  %v2489_v19 = vcombine.low %v32_v7, %v40_v8 }
   0x6   :  { %v56_v16 = vld [vmem:[%s3813_s1 + $0x140] sm:$0xff]  ;;  %v57_v18 = vld [vmem:[%s3813_s1 + $0x148] sm:$0xff]  ;;  %1774 = vmatpush1.bf16.msra.mxu0 %v2473_v6  ;;  %1856 = vmatpush1.bf16.msra.mxu1 %v2475_v10  ;;  %v2491_v20 = vcombine.low %v33_v12, %v41_v13  ;;  %v2922_v54 = vsub.s32 %v314_v44, %v316_v45 }
   0x7   :  { %1775 = vmatprep.subr.bf16.mxu0 %v2490_v11  ;;  %v2506_v21 = vcombine.high %v48_v14, %v56_v16  ;;  %1857 = vmatprep.subr.bf16.mxu1 %v2492_v15  ;;  %v2508_v22 = vcombine.high %v49_v17, %v57_v18  ;;  %v64_v23 = vld [vmem:[%s3813_s1 + $0x180] sm:$0xff]  ;;  %v65_v25 = vld [vmem:[%s3813_s1 + $0x188] sm:$0xff]  ;;  %v2505_v27 = vcombine.low %v48_v14, %v56_v16 }
   0x8   :  { %v72_v24 = vld [vmem:[%s3813_s1 + $0x1c0] sm:$0xff]  ;;  %v73_v26 = vld [vmem:[%s3813_s1 + $0x1c8] sm:$0xff]  ;;  %v2507_v28 = vcombine.low %v49_v17, %v57_v18 }
   0x9   :  { %v2522_v29 = vcombine.high %v64_v23, %v72_v24  ;;  %v2524_v30 = vcombine.high %v65_v25, %v73_v26  ;;  %v80_v31 = vld [vmem:[%s3813_s1 + $0x200] sm:$0xff]  ;;  %v81_v36 = vld [vmem:[%s3813_s1 + $0x208] sm:$0xff]  ;;  %v2521_v38 = vcombine.low %v64_v23, %v72_v24  ;;  %v2523_v39 = vcombine.low %v65_v25, %v73_v26 }
   0xa   :  { %1776 = vmatpush1.bf16.msra.mxu0 %v2489_v19  ;;  %1858 = vmatpush1.bf16.msra.mxu1 %v2491_v20  ;;  %v88_v32 = vld [vmem:[%s3813_s1 + $0x240] sm:$0xff]  ;;  %v89_v37 = vld [vmem:[%s3813_s1 + $0x248] sm:$0xff] }
   0xb   :  { %1777 = vmatprep.subr.bf16.mxu0 %v2506_v21  ;;  %1859 = vmatprep.subr.bf16.mxu1 %v2508_v22  ;;  %v2538_v40 = vcombine.high %v80_v31, %v88_v32  ;;  %v2540_v41 = vcombine.high %v81_v36, %v89_v37  ;;  %v96_v42 = vld [vmem:[%s3813_s1 + $0x280] sm:$0xff]  ;;  %v97_v46 = vld [vmem:[%s3813_s1 + $0x288] sm:$0xff]  ;;  %v2537_v48 = vcombine.low %v80_v31, %v88_v32 }
   0xc   :  { %v104_v43 = vld [vmem:[%s3813_s1 + $0x2c0] sm:$0xff]  ;;  %v105_v47 = vld [vmem:[%s3813_s1 + $0x2c8] sm:$0xff]  ;;  %v2539_v49 = vcombine.low %v81_v36, %v89_v37 }
   0xd   :  { %v2554_v50 = vcombine.high %v96_v42, %v104_v43  ;;  %v2556_v51 = vcombine.high %v97_v46, %v105_v47  ;;  %v112_v52 = vld [vmem:[%s3813_s1 + $0x300] sm:$0xff]  ;;  %v113_v55 = vld [vmem:[%s3813_s1 + $0x308] sm:$0xff]  ;;  %v2553_v57 = vcombine.low %v96_v42, %v104_v43  ;;  %v2555_v58 = vcombine.low %v97_v46, %v105_v47 }
   0xe   :  { %1778 = vmatpush1.bf16.msra.mxu0 %v2505_v27  ;;  %1860 = vmatpush1.bf16.msra.mxu1 %v2507_v28  ;;  %v120_v53 = vld [vmem:[%s3813_s1 + $0x340] sm:$0xff]  ;;  %v121_v56 = vld [vmem:[%s3813_s1 + $0x348] sm:$0xff] }
   0xf   :  { %1779 = vmatprep.subr.bf16.mxu0 %v2522_v29  ;;  %1861 = vmatprep.subr.bf16.mxu1 %v2524_v30  ;;  %v2570_v59 = vcombine.high %v112_v52, %v120_v53  ;;  %v2933_v60 = vld [vmem:[%s3814_s0] sm:$0x3f]  ;;  %v2572_v61 = vcombine.high %v113_v55, %v121_v56  ;;  %v129_v1 = vld [vmem:[%s3813_s1 + $0x388] sm:$0xff]  ;;  %v2569_v4 = vcombine.low %v112_v52, %v120_v53 }
  0x10   :  { %v128_v62 = vld [vmem:[%s3813_s1 + $0x380] sm:$0xff]  ;;  %v2943_v0 = vrot.slane %v2933_v60, %v2922_v54  ;;  %v137_v2 = vld [vmem:[%s3813_s1 + $0x3c8] sm:$0xff]  ;;  %v2571_v6 = vcombine.low %v113_v55, %v121_v56 }
  0x11   :  { %v136_v63 = vld [vmem:[%s3813_s1 + $0x3c0] sm:$0xff]  ;;  %v2588_v8 = vcombine.high %v129_v1, %v137_v2  ;;  %v145_v11 = vld [vmem:[%s3813_s1 + $0x408] sm:$0xff]  ;;  %v2587_v14 = vcombine.low %v129_v1, %v137_v2 }
  0x12   :  { %1780 = vmatpush1.bf16.msra.mxu0 %v2521_v38  ;;  %1862 = vmatpush1.bf16.msra.mxu1 %v2523_v39  ;;  %v2953_v5 = vcombine.high %v2943_v0, %v2943_v0  ;;  %v2586_v7 = vcombine.high %v128_v62, %v136_v63  ;;  %v144_v9 = vld [vmem:[%s3813_s1 + $0x400] sm:$0xff]  ;;  %v153_v12 = vld [vmem:[%s3813_s1 + $0x448] sm:$0xff]  ;;  %v2585_v13 = vcombine.low %v128_v62, %v136_v63 }
  0x13   :  { %1781 = vmatprep.subr.bf16.mxu0 %v2538_v40  ;;  %1863 = vmatprep.subr.bf16.mxu1 %v2540_v41  ;;  %v152_v10 = vld [vmem:[%s3813_s1 + $0x440] sm:$0xff]  ;;  %v2604_v16 = vcombine.high %v145_v11, %v153_v12  ;;  %v161_v19 = vld [vmem:[%s3813_s1 + $0x488] sm:$0xff]  ;;  %v2603_v22 = vcombine.low %v145_v11, %v153_v12 }
  0x14   :  { %1805 = vmatprep.mubr.bf16.mxu0 %v2953_v5  ;;  %1887 = vmatprep.mubr.bf16.mxu1 %v2953_v5  ;;  %v2602_v15 = vcombine.high %v144_v9, %v152_v10  ;;  %v160_v17 = vld [vmem:[%s3813_s1 + $0x480] sm:$0xff]  ;;  %v169_v20 = vld [vmem:[%s3813_s1 + $0x4c8] sm:$0xff]  ;;  %v2601_v21 = vcombine.low %v144_v9, %v152_v10 }
  0x15   :  { %v168_v18 = vld [vmem:[%s3813_s1 + $0x4c0] sm:$0xff]  ;;  %v2620_v24 = vcombine.high %v161_v19, %v169_v20  ;;  %v177_v27 = vld [vmem:[%s3813_s1 + $0x508] sm:$0xff]  ;;  %v2619_v30 = vcombine.low %v161_v19, %v169_v20 }
  0x16   :  { %1782 = vmatpush1.bf16.msra.mxu0 %v2537_v48  ;;  %1864 = vmatpush1.bf16.msra.mxu1 %v2539_v49  ;;  %v2618_v23 = vcombine.high %v160_v17, %v168_v18  ;;  %v176_v25 = vld [vmem:[%s3813_s1 + $0x500] sm:$0xff]  ;;  %v185_v28 = vld [vmem:[%s3813_s1 + $0x548] sm:$0xff]  ;;  %v2617_v29 = vcombine.low %v160_v17, %v168_v18 }
  0x17   :  { %1783 = vmatprep.subr.bf16.mxu0 %v2554_v50  ;;  %1865 = vmatprep.subr.bf16.mxu1 %v2556_v51  ;;  %v184_v26 = vld [vmem:[%s3813_s1 + $0x540] sm:$0xff]  ;;  %v2636_v32 = vcombine.high %v177_v27, %v185_v28  ;;  %v193_v35 = vld [vmem:[%s3813_s1 + $0x588] sm:$0xff]  ;;  %v2635_v38 = vcombine.low %v177_v27, %v185_v28 }
  0x18   :  { %v2634_v31 = vcombine.high %v176_v25, %v184_v26  ;;  %v192_v33 = vld [vmem:[%s3813_s1 + $0x580] sm:$0xff]  ;;  %v201_v36 = vld [vmem:[%s3813_s1 + $0x5c8] sm:$0xff]  ;;  %v2633_v37 = vcombine.low %v176_v25, %v184_v26 }
  0x19   :  { %v200_v34 = vld [vmem:[%s3813_s1 + $0x5c0] sm:$0xff]  ;;  %v2652_v40 = vcombine.high %v193_v35, %v201_v36  ;;  %v209_v43 = vld [vmem:[%s3813_s1 + $0x608] sm:$0xff]  ;;  %v2651_v46 = vcombine.low %v193_v35, %v201_v36 }
  0x1a   :  { %1784 = vmatpush1.bf16.msra.mxu0 %v2553_v57  ;;  %1866 = vmatpush1.bf16.msra.mxu1 %v2555_v58  ;;  %v2650_v39 = vcombine.high %v192_v33, %v200_v34  ;;  %v208_v41 = vld [vmem:[%s3813_s1 + $0x600] sm:$0xff]  ;;  %v217_v44 = vld [vmem:[%s3813_s1 + $0x648] sm:$0xff]  ;;  %v2649_v45 = vcombine.low %v192_v33, %v200_v34  ;;  %v19_v33 = vld [vmem:[%s3813_s1 + $0x18] sm:$0xff] }
  0x1b   :  { %1785 = vmatprep.subr.bf16.mxu0 %v2570_v59  ;;  %1867 = vmatprep.subr.bf16.mxu1 %v2572_v61  ;;  %v216_v42 = vld [vmem:[%s3813_s1 + $0x640] sm:$0xff]  ;;  %v2668_v48 = vcombine.high %v209_v43, %v217_v44  ;;  %v225_v51 = vld [vmem:[%s3813_s1 + $0x688] sm:$0xff]  ;;  %v2667_v55 = vcombine.low %v209_v43, %v217_v44  ;;  %v27_v34 = vld [vmem:[%s3813_s1 + $0x58] sm:$0xff] }
  0x1c   :  { %v2666_v47 = vcombine.high %v208_v41, %v216_v42  ;;  %v224_v49 = vld [vmem:[%s3813_s1 + $0x680] sm:$0xff]  ;;  %v233_v52 = vld [vmem:[%s3813_s1 + $0x6c8] sm:$0xff]  ;;  %v2665_v53 = vcombine.low %v208_v41, %v216_v42  ;;  %v42_v41 = vld [vmem:[%s3813_s1 + $0xd0] sm:$0xff] }
  0x1d   :  { %v232_v50 = vld [vmem:[%s3813_s1 + $0x6c0] sm:$0xff]  ;;  %v2684_v57 = vcombine.high %v225_v51, %v233_v52  ;;  %v241_v61 = vld [vmem:[%s3813_s1 + $0x708] sm:$0xff]  ;;  %v2683_v2 = vcombine.low %v225_v51, %v233_v52  ;;  %v35_v43 = vld [vmem:[%s3813_s1 + $0x98] sm:$0xff] }
  0x1e   :  { %1786 = vmatpush1.bf16.msra.mxu0 %v2569_v4  ;;  %1868 = vmatpush1.bf16.msra.mxu1 %v2571_v6  ;;  %v2682_v56 = vcombine.high %v224_v49, %v232_v50  ;;  %v240_v58 = vld [vmem:[%s3813_s1 + $0x700] sm:$0xff]  ;;  %v249_v62 = vld [vmem:[%s3813_s1 + $0x748] sm:$0xff]  ;;  %v2681_v63 = vcombine.low %v224_v49, %v232_v50  ;;  %v51_v49 = vld [vmem:[%s3813_s1 + $0x118] sm:$0xff] }
  0x1f   :  { %1787 = vmatprep.subr.bf16.mxu0 %v2586_v7  ;;  %1869 = vmatprep.subr.bf16.mxu1 %v2588_v8  ;;  %v248_v59 = vld [vmem:[%s3813_s1 + $0x740] sm:$0xff]  ;;  %v2700_v6 = vcombine.high %v241_v61, %v249_v62  ;;  %v257_v9 = vld [vmem:[%s3813_s1 + $0x788] sm:$0xff]  ;;  %v2699_v12 = vcombine.low %v241_v61, %v249_v62  ;;  %v59_v50 = vld [vmem:[%s3813_s1 + $0x158] sm:$0xff] }
  0x20   :  { %v304_v1 = vld [vmem:[%s3815_s2] sm:$0xf]  ;;  %v2698_v4 = vcombine.high %v240_v58, %v248_v59  ;;  %v265_v10 = vld [vmem:[%s3813_s1 + $0x7c8] sm:$0xff]  ;;  %v2697_v11 = vcombine.low %v240_v58, %v248_v59  ;;  %v67_v58 = vld [vmem:[%s3813_s1 + $0x198] sm:$0xff]  ;;  %v2511_v62 = vcombine.low %v51_v49, %v59_v50 }
  0x21   :  { %v256_v7 = vld [vmem:[%s3813_s1 + $0x780] sm:$0xff]  ;;  %307 = vperm.xlu0 %2819, %v304_v1   ;;  %v273_v17 = vld [vmem:[%s3813_s1 + $0x808] sm:$0xff]  ;;  %v2715_v20 = vcombine.low %v257_v9, %v265_v10  ;;  %v75_v59 = vld [vmem:[%s3813_s1 + $0x1d8] sm:$0xff] }
  0x22   :  { %1788 = vmatpush1.bf16.msra.mxu0 %v2585_v13  ;;  %1870 = vmatpush1.bf16.msra.mxu1 %v2587_v14  ;;  %v264_v8 = vld [vmem:[%s3813_s1 + $0x7c0] sm:$0xff]  ;;  %v2716_v14 = vcombine.high %v257_v9, %v265_v10  ;;  %v281_v18 = vld [vmem:[%s3813_s1 + $0x848] sm:$0xff]  ;;  %v2528_v1 = vcombine.high %v67_v58, %v75_v59  ;;  %v2527_v9 = vcombine.low %v67_v58, %v75_v59 }
  0x23   :  { %1789 = vmatprep.subr.bf16.mxu0 %v2602_v15  ;;  %1871 = vmatprep.subr.bf16.mxu1 %v2604_v16  ;;  %v2714_v13 = vcombine.high %v256_v7, %v264_v8  ;;  %v272_v15 = vld [vmem:[%s3813_s1 + $0x800] sm:$0xff]  ;;  %v2713_v19 = vcombine.low %v256_v7, %v264_v8  ;;  %v289_v25 = vld [vmem:[%s3813_s1 + $0x888] sm:$0xff]  ;;  %v2731_v28 = vcombine.low %v273_v17, %v281_v18  ;;  %v91_v7 = vld [vmem:[%s3813_s1 + $0x258] sm:$0xff] }
  0x24   :  { %v280_v16 = vld [vmem:[%s3813_s1 + $0x840] sm:$0xff]  ;;  %v297_v26 = vld [vmem:[%s3813_s1 + $0x8c8] sm:$0xff] }
  0x25   :  { %v2729_v27 = vcombine.low %v272_v15, %v280_v16  ;;  %v2747_v36 = vcombine.low %v289_v25, %v297_v26 }
  0x26   :  { %1790 = vmatpush1.bf16.msra.mxu0 %v2601_v21  ;;  %1872 = vmatpush1.bf16.msra.mxu1 %v2603_v22  ;;  %v2730_v21 = vcombine.high %v272_v15, %v280_v16  ;;  %v2732_v22 = vcombine.high %v273_v17, %v281_v18  ;;  %v107_v15 = vld [vmem:[%s3813_s1 + $0x2d8] sm:$0xff] }
  0x27   :  { %1791 = vmatprep.subr.bf16.mxu0 %v2618_v23  ;;  %1873 = vmatprep.subr.bf16.mxu1 %v2620_v24  ;;  %v288_v23 = vld [vmem:[%s3813_s1 + $0x880] sm:$0xff] }
  0x28   :  { %v296_v24 = vld [vmem:[%s3813_s1 + $0x8c0] sm:$0xff] }
  0x29   :  { %v2745_v35 = vcombine.low %v288_v23, %v296_v24 }
  0x2a   :  { %1792 = vmatpush1.bf16.msra.mxu0 %v2617_v29  ;;  %1874 = vmatpush1.bf16.msra.mxu1 %v2619_v30  ;;  %v2746_v29 = vcombine.high %v288_v23, %v296_v24  ;;  %v2748_v30 = vcombine.high %v289_v25, %v297_v26  ;;  %v123_v23 = vld [vmem:[%s3813_s1 + $0x358] sm:$0xff] }
  0x2b   :  { %1793 = vmatprep.subr.bf16.mxu0 %v2634_v31  ;;  %1875 = vmatprep.subr.bf16.mxu1 %v2636_v32  ;;  %v18_v31 = vld [vmem:[%s3813_s1 + $0x10] sm:$0xff] }
  0x2c   :  { %v26_v32 = vld [vmem:[%s3813_s1 + $0x50] sm:$0xff] }
  0x2d   :  { %v2477_v44 = vcombine.low %v18_v31, %v26_v32 }
  0x2e   :  { %1794 = vmatpush1.bf16.msra.mxu0 %v2633_v37  ;;  %1876 = vmatpush1.bf16.msra.mxu1 %v2635_v38  ;;  %v2478_v37 = vcombine.high %v18_v31, %v26_v32  ;;  %v2480_v38 = vcombine.high %v19_v33, %v27_v34  ;;  %v139_v31 = vld [vmem:[%s3813_s1 + $0x3d8] sm:$0xff] }
  0x2f   :  { %1795 = vmatprep.subr.bf16.mxu0 %v2650_v39  ;;  %1877 = vmatprep.subr.bf16.mxu1 %v2652_v40  ;;  %v311_v39 = vcombine.high %v2933_v60, %v2933_v60  ;;  %v34_v40 = vld [vmem:[%s3813_s1 + $0x90] sm:$0xff]  ;;  %v43_v60 = vld [vmem:[%s3813_s1 + $0xd8] sm:$0xff] }
  0x30   :  { %v2493_v51 = vcombine.low %v34_v40, %v42_v41  ;;  %v2495_v52 = vcombine.low %v35_v43, %v43_v60 }
  0x31   :  { %v3105_v42 = vrot.slane %v311_v39, %v2922_v54  ;;  %v58_v54 = vld [vmem:[%s3813_s1 + $0x150] sm:$0xff]  ;;  %v155_v39 = vld [vmem:[%s3813_s1 + $0x458] sm:$0xff] }
  0x32   :  { %1796 = vmatpush1.bf16.msra.mxu0 %v2649_v45  ;;  %1878 = vmatpush1.bf16.msra.mxu1 %v2651_v46  ;;  %v2479_v45 = vcombine.low %v19_v33, %v27_v34  ;;  %v2494_v46 = vcombine.high %v34_v40, %v42_v41 }
  0x33   :  { %1797 = vmatprep.subr.bf16.mxu0 %v2666_v47  ;;  %1879 = vmatprep.subr.bf16.mxu1 %v2668_v48  ;;  %v2496_v47 = vcombine.high %v35_v43, %v43_v60  ;;  %v50_v48 = vld [vmem:[%s3813_s1 + $0x110] sm:$0xff] }
  0x34   :  { %v2509_v61 = vcombine.low %v50_v48, %v58_v54 }
  0x36   :  { %1798 = vmatpush1.bf16.msra.mxu0 %v2665_v53  ;;  %1880 = vmatpush1.bf16.msra.mxu1 %v2667_v55  ;;  %v2510_v53 = vcombine.high %v50_v48, %v58_v54  ;;  %v2512_v55 = vcombine.high %v51_v49, %v59_v50 }
  0x37   :  { %1799 = vmatprep.subr.bf16.mxu0 %v2682_v56  ;;  %1881 = vmatprep.subr.bf16.mxu1 %v2684_v57  ;;  %v66_v56 = vld [vmem:[%s3813_s1 + $0x190] sm:$0xff] }
  0x38   :  { %v74_v57 = vld [vmem:[%s3813_s1 + $0x1d0] sm:$0xff] }
  0x39   :  { %v2525_v8 = vcombine.low %v66_v56, %v74_v57 }
  0x3a   :  { %1800 = vmatpush1.bf16.msra.mxu0 %v2681_v63  ;;  %1882 = vmatpush1.bf16.msra.mxu1 %v2683_v2  ;;  %v2526_v63 = vcombine.high %v66_v56, %v74_v57  ;;  %v82_v2 = vld [vmem:[%s3813_s1 + $0x210] sm:$0xff] }
  0x3b   :  { %1801 = vmatprep.subr.bf16.mxu0 %v2698_v4  ;;  %1883 = vmatprep.subr.bf16.mxu1 %v2700_v6  ;;  %v90_v4 = vld [vmem:[%s3813_s1 + $0x250] sm:$0xff]  ;;  %v83_v6 = vld [vmem:[%s3813_s1 + $0x218] sm:$0xff] }
  0x3c   :  { %v2542_v10 = vcombine.high %v82_v2, %v90_v4  ;;  %v2541_v16 = vcombine.low %v82_v2, %v90_v4  ;;  %v2543_v17 = vcombine.low %v83_v6, %v91_v7 }
  0x3e   :  { %1802 = vmatpush1.bf16.msra.mxu0 %v2697_v11  ;;  %1884 = vmatpush1.bf16.msra.mxu1 %v2699_v12  ;;  %v2544_v11 = vcombine.high %v83_v6, %v91_v7  ;;  %v98_v12 = vld [vmem:[%s3813_s1 + $0x290] sm:$0xff] }
  0x3f   :  { %1803 = vmatprep.subr.bf16.mxu0 %v2714_v13  ;;  %1885 = vmatprep.subr.bf16.mxu1 %v2716_v14  ;;  %v106_v13 = vld [vmem:[%s3813_s1 + $0x2d0] sm:$0xff]  ;;  %v99_v14 = vld [vmem:[%s3813_s1 + $0x298] sm:$0xff] }
  0x40   :  { %v2558_v18 = vcombine.high %v98_v12, %v106_v13  ;;  %v2557_v24 = vcombine.low %v98_v12, %v106_v13  ;;  %v2559_v25 = vcombine.low %v99_v14, %v107_v15 }
  0x42   :  { %1804 = vmatpush1.bf16.msra.mxu0 %v2713_v19  ;;  %1886 = vmatpush1.bf16.msra.mxu1 %v2715_v20  ;;  %v2560_v19 = vcombine.high %v99_v14, %v107_v15  ;;  %v114_v20 = vld [vmem:[%s3813_s1 + $0x310] sm:$0xff] }
  0x43   :  { %1814 = vmatprep.subr.bf16.mxu0 %v2730_v21  ;;  %1896 = vmatprep.subr.bf16.mxu1 %v2732_v22  ;;  %v122_v21 = vld [vmem:[%s3813_s1 + $0x350] sm:$0xff]  ;;  %v115_v22 = vld [vmem:[%s3813_s1 + $0x318] sm:$0xff] }
  0x44   :  { %v2574_v26 = vcombine.high %v114_v20, %v122_v21  ;;  %v2573_v32 = vcombine.low %v114_v20, %v122_v21  ;;  %v2575_v33 = vcombine.low %v115_v22, %v123_v23 }
  0x45   :  { %1806 = vmatmul.mubr.bf16.vlgmr.msra.gmra.mrb[0].mxu0 %v2943_v0  ;;  %1888 = vmatmul.mubr.bf16.vlgmr.msra.gmra.mrb[0].mxu1 %v2943_v0 }
  0x46   :  { %1815 = vmatpush1.bf16.msra.mxu0 %v2729_v27  ;;  %1897 = vmatpush1.bf16.msra.mxu1 %v2731_v28  ;;  %v2576_v27 = vcombine.high %v115_v22, %v123_v23  ;;  %v130_v28 = vld [vmem:[%s3813_s1 + $0x390] sm:$0xff] }
  0x47   :  { %1816 = vmatprep.subr.bf16.mxu0 %v2746_v29  ;;  %1898 = vmatprep.subr.bf16.mxu1 %v2748_v30  ;;  %v138_v29 = vld [vmem:[%s3813_s1 + $0x3d0] sm:$0xff]  ;;  %v131_v30 = vld [vmem:[%s3813_s1 + $0x398] sm:$0xff] }
  0x48   :  { %1846 = vmatprep.mubr.bf16.mxu0 %v2821_v3  ;;  %1928 = vmatprep.mubr.bf16.mxu1 %v2821_v3  ;;  %v2590_v34 = vcombine.high %v130_v28, %v138_v29  ;;  %v2589_v40 = vcombine.low %v130_v28, %v138_v29  ;;  %v2591_v41 = vcombine.low %v131_v30, %v139_v31 }
  0x4a   :  { %1817 = vmatpush1.bf16.msra.mxu0 %v2745_v35  ;;  %1899 = vmatpush1.bf16.msra.mxu1 %v2747_v36  ;;  %v2592_v35 = vcombine.high %v131_v30, %v139_v31  ;;  %v146_v36 = vld [vmem:[%s3813_s1 + $0x410] sm:$0xff] }
  0x4b   :  { %1937 = vmatprep.subr.bf16.mxu0 %v2478_v37  ;;  %2019 = vmatprep.subr.bf16.mxu1 %v2480_v38  ;;  %v154_v37 = vld [vmem:[%s3813_s1 + $0x450] sm:$0xff]  ;;  %v147_v38 = vld [vmem:[%s3813_s1 + $0x418] sm:$0xff] }
  0x4c   :  { %v2606_v43 = vcombine.high %v146_v36, %v154_v37  ;;  %v2608_v60 = vcombine.high %v147_v38, %v155_v39  ;;  %v2605_v48 = vcombine.low %v146_v36, %v154_v37  ;;  %v2607_v54 = vcombine.low %v147_v38, %v155_v39 }
  0x51   :  { %2761 = vmatmul.mubr.msk.bf16.vlgmr.msra.gmra.mrb[0].mxu0 %vm1769_vm0, %v3105_v42  ;;  %2762 = vmatmul.mubr.msk.bf16.vlgmr.msra.gmra.mrb[0].mxu1 %vm1769_vm0, %v3105_v42 }
  0x52   :  { %1938 = vmatpush1.bf16.msra.mxu0 %v2477_v44  ;;  %2020 = vmatpush1.bf16.msra.mxu1 %v2479_v45  ;;  %v162_v44 = vld [vmem:[%s3813_s1 + $0x490] sm:$0xff] }
  0x53   :  { %1939 = vmatprep.subr.bf16.mxu0 %v2494_v46  ;;  %2021 = vmatprep.subr.bf16.mxu1 %v2496_v47  ;;  %v170_v45 = vld [vmem:[%s3813_s1 + $0x4d0] sm:$0xff]  ;;  %v163_v46 = vld [vmem:[%s3813_s1 + $0x498] sm:$0xff] }
  0x54   :  { %1969 = vmatprep.mubr.bf16.mxu0 %v2953_v5  ;;  %2051 = vmatprep.mubr.bf16.mxu1 %v2953_v5  ;;  %v171_v47 = vld [vmem:[%s3813_s1 + $0x4d8] sm:$0xff]  ;;  %v2622_v49 = vcombine.high %v162_v44, %v170_v45  ;;  %v2621_v56 = vcombine.low %v162_v44, %v170_v45 }
  0x55   :  { %v2624_v50 = vcombine.high %v163_v46, %v171_v47  ;;  %v2623_v57 = vcombine.low %v163_v46, %v171_v47 }
  0x56   :  { %1940 = vmatpush1.bf16.msra.mxu0 %v2493_v51  ;;  %2022 = vmatpush1.bf16.msra.mxu1 %v2495_v52  ;;  %v178_v51 = vld [vmem:[%s3813_s1 + $0x510] sm:$0xff] }
  0x57   :  { %1941 = vmatprep.subr.bf16.mxu0 %v2510_v53  ;;  %2023 = vmatprep.subr.bf16.mxu1 %v2512_v55  ;;  %v186_v52 = vld [vmem:[%s3813_s1 + $0x550] sm:$0xff]  ;;  %v179_v53 = vld [vmem:[%s3813_s1 + $0x518] sm:$0xff] }
  0x58   :  { %v187_v55 = vld [vmem:[%s3813_s1 + $0x558] sm:$0xff]  ;;  %v2638_v58 = vcombine.high %v178_v51, %v186_v52  ;;  %v2637_v2 = vcombine.low %v178_v51, %v186_v52 }
  0x59   :  { %v2640_v59 = vcombine.high %v179_v53, %v187_v55  ;;  %v2639_v4 = vcombine.low %v179_v53, %v187_v55 }
  0x5a   :  { %1942 = vmatpush1.bf16.msra.mxu0 %v2509_v61  ;;  %2024 = vmatpush1.bf16.msra.mxu1 %v2511_v62  ;;  %v194_v61 = vld [vmem:[%s3813_s1 + $0x590] sm:$0xff] }
  0x5b   :  { %1943 = vmatprep.subr.bf16.mxu0 %v2526_v63  ;;  %2025 = vmatprep.subr.bf16.mxu1 %v2528_v1  ;;  %v202_v62 = vld [vmem:[%s3813_s1 + $0x5d0] sm:$0xff]  ;;  %v195_v63 = vld [vmem:[%s3813_s1 + $0x598] sm:$0xff] }
  0x5c   :  { %v203_v1 = vld [vmem:[%s3813_s1 + $0x5d8] sm:$0xff]  ;;  %v2654_v6 = vcombine.high %v194_v61, %v202_v62  ;;  %v2653_v12 = vcombine.low %v194_v61, %v202_v62 }
  0x5d   :  { %v2656_v7 = vcombine.high %v195_v63, %v203_v1  ;;  %v2655_v13 = vcombine.low %v195_v63, %v203_v1 }
  0x5e   :  { %1944 = vmatpush1.bf16.msra.mxu0 %v2525_v8  ;;  %2026 = vmatpush1.bf16.msra.mxu1 %v2527_v9  ;;  %v210_v8 = vld [vmem:[%s3813_s1 + $0x610] sm:$0xff] }
  0x5f   :  { %1945 = vmatprep.subr.bf16.mxu0 %v2542_v10  ;;  %2027 = vmatprep.subr.bf16.mxu1 %v2544_v11  ;;  %v218_v9 = vld [vmem:[%s3813_s1 + $0x650] sm:$0xff]  ;;  %v211_v10 = vld [vmem:[%s3813_s1 + $0x618] sm:$0xff] }
  0x60   :  { %v219_v11 = vld [vmem:[%s3813_s1 + $0x658] sm:$0xff]  ;;  %v2670_v14 = vcombine.high %v210_v8, %v218_v9  ;;  %v2669_v20 = vcombine.low %v210_v8, %v218_v9 }
  0x61   :  { %v2672_v15 = vcombine.high %v211_v10, %v219_v11  ;;  %v2671_v21 = vcombine.low %v211_v10, %v219_v11 }
  0x62   :  { %1946 = vmatpush1.bf16.msra.mxu0 %v2541_v16  ;;  %2028 = vmatpush1.bf16.msra.mxu1 %v2543_v17  ;;  %v226_v16 = vld [vmem:[%s3813_s1 + $0x690] sm:$0xff] }
  0x63   :  { %1947 = vmatprep.subr.bf16.mxu0 %v2558_v18  ;;  %2029 = vmatprep.subr.bf16.mxu1 %v2560_v19  ;;  %v234_v17 = vld [vmem:[%s3813_s1 + $0x6d0] sm:$0xff]  ;;  %v227_v18 = vld [vmem:[%s3813_s1 + $0x698] sm:$0xff] }
  0x64   :  { %v235_v19 = vld [vmem:[%s3813_s1 + $0x6d8] sm:$0xff]  ;;  %v2686_v22 = vcombine.high %v226_v16, %v234_v17  ;;  %v2685_v28 = vcombine.low %v226_v16, %v234_v17 }
  0x65   :  { %v2688_v23 = vcombine.high %v227_v18, %v235_v19  ;;  %v2687_v29 = vcombine.low %v227_v18, %v235_v19 }
  0x66   :  { %1948 = vmatpush1.bf16.msra.mxu0 %v2557_v24  ;;  %2030 = vmatpush1.bf16.msra.mxu1 %v2559_v25  ;;  %v242_v24 = vld [vmem:[%s3813_s1 + $0x710] sm:$0xff] }
  0x67   :  { %1949 = vmatprep.subr.bf16.mxu0 %v2574_v26  ;;  %2031 = vmatprep.subr.bf16.mxu1 %v2576_v27  ;;  %v250_v25 = vld [vmem:[%s3813_s1 + $0x750] sm:$0xff]  ;;  %v243_v26 = vld [vmem:[%s3813_s1 + $0x718] sm:$0xff] }
  0x68   :  { %v251_v27 = vld [vmem:[%s3813_s1 + $0x758] sm:$0xff]  ;;  %v2702_v30 = vcombine.high %v242_v24, %v250_v25  ;;  %v2701_v36 = vcombine.low %v242_v24, %v250_v25 }
  0x69   :  { %v2704_v31 = vcombine.high %v243_v26, %v251_v27  ;;  %v2703_v37 = vcombine.low %v243_v26, %v251_v27 }
  0x6a   :  { %1950 = vmatpush1.bf16.msra.mxu0 %v2573_v32  ;;  %2032 = vmatpush1.bf16.msra.mxu1 %v2575_v33  ;;  %v258_v32 = vld [vmem:[%s3813_s1 + $0x790] sm:$0xff] }
  0x6b   :  { %1951 = vmatprep.subr.bf16.mxu0 %v2590_v34  ;;  %2033 = vmatprep.subr.bf16.mxu1 %v2592_v35  ;;  %v266_v33 = vld [vmem:[%s3813_s1 + $0x7d0] sm:$0xff]  ;;  %v259_v34 = vld [vmem:[%s3813_s1 + $0x798] sm:$0xff] }
  0x6c   :  { %v267_v35 = vld [vmem:[%s3813_s1 + $0x7d8] sm:$0xff]  ;;  %v2718_v38 = vcombine.high %v258_v32, %v266_v33  ;;  %v2717_v44 = vcombine.low %v258_v32, %v266_v33 }
  0x6d   :  { %v2720_v39 = vcombine.high %v259_v34, %v267_v35  ;;  %v2719_v45 = vcombine.low %v259_v34, %v267_v35 }
  0x6e   :  { %1952 = vmatpush1.bf16.msra.mxu0 %v2589_v40  ;;  %2034 = vmatpush1.bf16.msra.mxu1 %v2591_v41  ;;  %v274_v40 = vld [vmem:[%s3813_s1 + $0x810] sm:$0xff] }
  0x6f   :  { %1953 = vmatprep.subr.bf16.mxu0 %v2606_v43  ;;  %2035 = vmatprep.subr.bf16.mxu1 %v2608_v60  ;;  %v282_v41 = vld [vmem:[%s3813_s1 + $0x850] sm:$0xff]  ;;  %v275_v43 = vld [vmem:[%s3813_s1 + $0x818] sm:$0xff] }
  0x70   :  { %v283_v60 = vld [vmem:[%s3813_s1 + $0x858] sm:$0xff]  ;;  %v2734_v46 = vcombine.high %v274_v40, %v282_v41  ;;  %v2733_v51 = vcombine.low %v274_v40, %v282_v41 }
  0x71   :  { %v2736_v47 = vcombine.high %v275_v43, %v283_v60  ;;  %v2735_v52 = vcombine.low %v275_v43, %v283_v60 }
  0x72   :  { %1954 = vmatpush1.bf16.msra.mxu0 %v2605_v48  ;;  %2036 = vmatpush1.bf16.msra.mxu1 %v2607_v54  ;;  %v290_v48 = vld [vmem:[%s3813_s1 + $0x890] sm:$0xff] }
  0x73   :  { %1955 = vmatprep.subr.bf16.mxu0 %v2622_v49  ;;  %2037 = vmatprep.subr.bf16.mxu1 %v2624_v50  ;;  %v298_v54 = vld [vmem:[%s3813_s1 + $0x8d0] sm:$0xff]  ;;  %v291_v49 = vld [vmem:[%s3813_s1 + $0x898] sm:$0xff] }
  0x74   :  { %v299_v50 = vld [vmem:[%s3813_s1 + $0x8d8] sm:$0xff]  ;;  %v2750_v53 = vcombine.high %v290_v48, %v298_v54  ;;  %v2749_v61 = vcombine.low %v290_v48, %v298_v54 }
  0x75   :  { %v2752_v55 = vcombine.high %v291_v49, %v299_v50  ;;  %v2751_v62 = vcombine.low %v291_v49, %v299_v50 }
  0x76   :  { %1956 = vmatpush1.bf16.msra.mxu0 %v2621_v56  ;;  %2038 = vmatpush1.bf16.msra.mxu1 %v2623_v57  ;;  %v20_v56 = vld [vmem:[%s3813_s1 + $0x20] sm:$0xff] }
  0x77   :  { %1957 = vmatprep.subr.bf16.mxu0 %v2638_v58  ;;  %2039 = vmatprep.subr.bf16.mxu1 %v2640_v59  ;;  %v28_v57 = vld [vmem:[%s3813_s1 + $0x60] sm:$0xff]  ;;  %v21_v58 = vld [vmem:[%s3813_s1 + $0x28] sm:$0xff] }
  0x78   :  { %v29_v59 = vld [vmem:[%s3813_s1 + $0x68] sm:$0xff]  ;;  %v2482_v63 = vcombine.high %v20_v56, %v28_v57  ;;  %v2481_v8 = vcombine.low %v20_v56, %v28_v57 }
  0x79   :  { %v2484_v1 = vcombine.high %v21_v58, %v29_v59  ;;  %v2483_v9 = vcombine.low %v21_v58, %v29_v59 }
  0x7a   :  { %1958 = vmatpush1.bf16.msra.mxu0 %v2637_v2  ;;  %2040 = vmatpush1.bf16.msra.mxu1 %v2639_v4  ;;  %v36_v2 = vld [vmem:[%s3813_s1 + $0xa0] sm:$0xff] }
  0x7b   :  { %1959 = vmatprep.subr.bf16.mxu0 %v2654_v6  ;;  %2041 = vmatprep.subr.bf16.mxu1 %v2656_v7  ;;  %v44_v4 = vld [vmem:[%s3813_s1 + $0xe0] sm:$0xff]  ;;  %v37_v6 = vld [vmem:[%s3813_s1 + $0xa8] sm:$0xff] }
  0x7c   :  { %v45_v7 = vld [vmem:[%s3813_s1 + $0xe8] sm:$0xff]  ;;  %v2498_v10 = vcombine.high %v36_v2, %v44_v4  ;;  %v2497_v16 = vcombine.low %v36_v2, %v44_v4 }
  0x7d   :  { %v2500_v11 = vcombine.high %v37_v6, %v45_v7  ;;  %v2499_v17 = vcombine.low %v37_v6, %v45_v7 }
  0x7e   :  { %1960 = vmatpush1.bf16.msra.mxu0 %v2653_v12  ;;  %2042 = vmatpush1.bf16.msra.mxu1 %v2655_v13  ;;  %v52_v12 = vld [vmem:[%s3813_s1 + $0x120] sm:$0xff] }
  0x7f   :  { %1961 = vmatprep.subr.bf16.mxu0 %v2670_v14  ;;  %2043 = vmatprep.subr.bf16.mxu1 %v2672_v15  ;;  %v60_v13 = vld [vmem:[%s3813_s1 + $0x160] sm:$0xff]  ;;  %v53_v14 = vld [vmem:[%s3813_s1 + $0x128] sm:$0xff] }
  0x80   :  { %v61_v15 = vld [vmem:[%s3813_s1 + $0x168] sm:$0xff]  ;;  %v2514_v18 = vcombine.high %v52_v12, %v60_v13  ;;  %v2513_v24 = vcombine.low %v52_v12, %v60_v13 }
  0x81   :  { %v2516_v19 = vcombine.high %v53_v14, %v61_v15  ;;  %v2515_v25 = vcombine.low %v53_v14, %v61_v15 }
  0x82   :  { %1962 = vmatpush1.bf16.msra.mxu0 %v2669_v20  ;;  %2044 = vmatpush1.bf16.msra.mxu1 %v2671_v21  ;;  %v68_v20 = vld [vmem:[%s3813_s1 + $0x1a0] sm:$0xff] }
  0x83   :  { %1963 = vmatprep.subr.bf16.mxu0 %v2686_v22  ;;  %2045 = vmatprep.subr.bf16.mxu1 %v2688_v23  ;;  %v76_v21 = vld [vmem:[%s3813_s1 + $0x1e0] sm:$0xff]  ;;  %v69_v22 = vld [vmem:[%s3813_s1 + $0x1a8] sm:$0xff] }
  0x84   :  { %v77_v23 = vld [vmem:[%s3813_s1 + $0x1e8] sm:$0xff]  ;;  %v2530_v26 = vcombine.high %v68_v20, %v76_v21  ;;  %v2529_v32 = vcombine.low %v68_v20, %v76_v21 }
  0x85   :  { %v2532_v27 = vcombine.high %v69_v22, %v77_v23  ;;  %v2531_v33 = vcombine.low %v69_v22, %v77_v23 }
  0x86   :  { %1964 = vmatpush1.bf16.msra.mxu0 %v2685_v28  ;;  %2046 = vmatpush1.bf16.msra.mxu1 %v2687_v29  ;;  %v84_v28 = vld [vmem:[%s3813_s1 + $0x220] sm:$0xff] }
  0x87   :  { %1965 = vmatprep.subr.bf16.mxu0 %v2702_v30  ;;  %2047 = vmatprep.subr.bf16.mxu1 %v2704_v31  ;;  %v92_v29 = vld [vmem:[%s3813_s1 + $0x260] sm:$0xff]  ;;  %v85_v30 = vld [vmem:[%s3813_s1 + $0x228] sm:$0xff] }
  0x88   :  { %v93_v31 = vld [vmem:[%s3813_s1 + $0x268] sm:$0xff]  ;;  %v2546_v34 = vcombine.high %v84_v28, %v92_v29  ;;  %v2545_v40 = vcombine.low %v84_v28, %v92_v29 }
  0x89   :  { %v2548_v35 = vcombine.high %v85_v30, %v93_v31  ;;  %v2547_v41 = vcombine.low %v85_v30, %v93_v31 }
  0x8a   :  { %1966 = vmatpush1.bf16.msra.mxu0 %v2701_v36  ;;  %2048 = vmatpush1.bf16.msra.mxu1 %v2703_v37  ;;  %v100_v36 = vld [vmem:[%s3813_s1 + $0x2a0] sm:$0xff] }
  0x8b   :  { %1967 = vmatprep.subr.bf16.mxu0 %v2718_v38  ;;  %2049 = vmatprep.subr.bf16.mxu1 %v2720_v39  ;;  %v108_v37 = vld [vmem:[%s3813_s1 + $0x2e0] sm:$0xff]  ;;  %v101_v38 = vld [vmem:[%s3813_s1 + $0x2a8] sm:$0xff] }
  0x8c   :  { %v109_v39 = vld [vmem:[%s3813_s1 + $0x2e8] sm:$0xff]  ;;  %v2562_v43 = vcombine.high %v100_v36, %v108_v37  ;;  %v2561_v48 = vcombine.low %v100_v36, %v108_v37 }
  0x8d   :  { %v2564_v60 = vcombine.high %v101_v38, %v109_v39  ;;  %v2563_v54 = vcombine.low %v101_v38, %v109_v39 }
  0x8e   :  { %1968 = vmatpush1.bf16.msra.mxu0 %v2717_v44  ;;  %2050 = vmatpush1.bf16.msra.mxu1 %v2719_v45  ;;  %v116_v44 = vld [vmem:[%s3813_s1 + $0x320] sm:$0xff] }
  0x8f   :  { %1978 = vmatprep.subr.bf16.mxu0 %v2734_v46  ;;  %2060 = vmatprep.subr.bf16.mxu1 %v2736_v47  ;;  %v124_v45 = vld [vmem:[%s3813_s1 + $0x360] sm:$0xff]  ;;  %v117_v46 = vld [vmem:[%s3813_s1 + $0x328] sm:$0xff] }
  0x90   :  { %v125_v47 = vld [vmem:[%s3813_s1 + $0x368] sm:$0xff]  ;;  %v2578_v49 = vcombine.high %v116_v44, %v124_v45  ;;  %v2577_v56 = vcombine.low %v116_v44, %v124_v45 }
  0x91   :  { %1970 = vmatmul.mubr.bf16.vlgmr.msra.gmra.mrb[4].mxu0 %v2943_v0  ;;  %2052 = vmatmul.mubr.bf16.vlgmr.msra.gmra.mrb[4].mxu1 %v2943_v0  ;;  %v2580_v50 = vcombine.high %v117_v46, %v125_v47  ;;  %v2579_v57 = vcombine.low %v117_v46, %v125_v47 }
  0x92   :  { %1979 = vmatpush1.bf16.msra.mxu0 %v2733_v51  ;;  %2061 = vmatpush1.bf16.msra.mxu1 %v2735_v52  ;;  %v132_v51 = vld [vmem:[%s3813_s1 + $0x3a0] sm:$0xff] }
  0x93   :  { %1980 = vmatprep.subr.bf16.mxu0 %v2750_v53  ;;  %2062 = vmatprep.subr.bf16.mxu1 %v2752_v55  ;;  %v140_v52 = vld [vmem:[%s3813_s1 + $0x3e0] sm:$0xff]  ;;  %v133_v53 = vld [vmem:[%s3813_s1 + $0x3a8] sm:$0xff] }
  0x94   :  { %2010 = vmatprep.mubr.bf16.mxu0 %v2821_v3  ;;  %2092 = vmatprep.mubr.bf16.mxu1 %v2821_v3  ;;  %v141_v55 = vld [vmem:[%s3813_s1 + $0x3e8] sm:$0xff]  ;;  %v2594_v58 = vcombine.high %v132_v51, %v140_v52  ;;  %v2593_v2 = vcombine.low %v132_v51, %v140_v52 }
  0x95   :  { %v2596_v59 = vcombine.high %v133_v53, %v141_v55  ;;  %v2595_v4 = vcombine.low %v133_v53, %v141_v55 }
  0x96   :  { %1981 = vmatpush1.bf16.msra.mxu0 %v2749_v61  ;;  %2063 = vmatpush1.bf16.msra.mxu1 %v2751_v62  ;;  %v148_v61 = vld [vmem:[%s3813_s1 + $0x420] sm:$0xff] }
  0x97   :  { %2101 = vmatprep.subr.bf16.mxu0 %v2482_v63  ;;  %2183 = vmatprep.subr.bf16.mxu1 %v2484_v1  ;;  %v156_v62 = vld [vmem:[%s3813_s1 + $0x460] sm:$0xff]  ;;  %v149_v63 = vld [vmem:[%s3813_s1 + $0x428] sm:$0xff] }
  0x98   :  { %v157_v1 = vld [vmem:[%s3813_s1 + $0x468] sm:$0xff]  ;;  %v2610_v6 = vcombine.high %v148_v61, %v156_v62  ;;  %v2609_v12 = vcombine.low %v148_v61, %v156_v62 }
  0x99   :  { %v2612_v7 = vcombine.high %v149_v63, %v157_v1  ;;  %v2611_v13 = vcombine.low %v149_v63, %v157_v1 }
  0x9d   :  { %2763 = vmatmul.mubr.msk.bf16.vlgmr.msra.gmra.mrb[4].mxu0 %vm1769_vm0, %v3105_v42  ;;  %2764 = vmatmul.mubr.msk.bf16.vlgmr.msra.gmra.mrb[4].mxu1 %vm1769_vm0, %v3105_v42 }
  0x9e   :  { %2102 = vmatpush1.bf16.msra.mxu0 %v2481_v8  ;;  %2184 = vmatpush1.bf16.msra.mxu1 %v2483_v9  ;;  %v164_v8 = vld [vmem:[%s3813_s1 + $0x4a0] sm:$0xff] }
  0x9f   :  { %2103 = vmatprep.subr.bf16.mxu0 %v2498_v10  ;;  %2185 = vmatprep.subr.bf16.mxu1 %v2500_v11  ;;  %v172_v9 = vld [vmem:[%s3813_s1 + $0x4e0] sm:$0xff]  ;;  %v165_v10 = vld [vmem:[%s3813_s1 + $0x4a8] sm:$0xff] }
  0xa0   :  { %2133 = vmatprep.mubr.bf16.mxu0 %v2953_v5  ;;  %2215 = vmatprep.mubr.bf16.mxu1 %v2953_v5  ;;  %v173_v11 = vld [vmem:[%s3813_s1 + $0x4e8] sm:$0xff]  ;;  %v2626_v14 = vcombine.high %v164_v8, %v172_v9  ;;  %v2625_v20 = vcombine.low %v164_v8, %v172_v9 }
  0xa1   :  { %v2628_v15 = vcombine.high %v165_v10, %v173_v11  ;;  %v2627_v21 = vcombine.low %v165_v10, %v173_v11 }
  0xa2   :  { %2104 = vmatpush1.bf16.msra.mxu0 %v2497_v16  ;;  %2186 = vmatpush1.bf16.msra.mxu1 %v2499_v17  ;;  %v180_v16 = vld [vmem:[%s3813_s1 + $0x520] sm:$0xff] }
  0xa3   :  { %2105 = vmatprep.subr.bf16.mxu0 %v2514_v18  ;;  %2187 = vmatprep.subr.bf16.mxu1 %v2516_v19  ;;  %v188_v17 = vld [vmem:[%s3813_s1 + $0x560] sm:$0xff]  ;;  %v181_v18 = vld [vmem:[%s3813_s1 + $0x528] sm:$0xff] }
  0xa4   :  { %v189_v19 = vld [vmem:[%s3813_s1 + $0x568] sm:$0xff]  ;;  %v2642_v22 = vcombine.high %v180_v16, %v188_v17  ;;  %v2641_v28 = vcombine.low %v180_v16, %v188_v17 }
  0xa5   :  { %v2644_v23 = vcombine.high %v181_v18, %v189_v19  ;;  %v2643_v29 = vcombine.low %v181_v18, %v189_v19 }
  0xa6   :  { %2106 = vmatpush1.bf16.msra.mxu0 %v2513_v24  ;;  %2188 = vmatpush1.bf16.msra.mxu1 %v2515_v25  ;;  %v196_v24 = vld [vmem:[%s3813_s1 + $0x5a0] sm:$0xff] }
  0xa7   :  { %2107 = vmatprep.subr.bf16.mxu0 %v2530_v26  ;;  %2189 = vmatprep.subr.bf16.mxu1 %v2532_v27  ;;  %v204_v25 = vld [vmem:[%s3813_s1 + $0x5e0] sm:$0xff]  ;;  %v197_v26 = vld [vmem:[%s3813_s1 + $0x5a8] sm:$0xff] }
  0xa8   :  { %v205_v27 = vld [vmem:[%s3813_s1 + $0x5e8] sm:$0xff]  ;;  %v2658_v30 = vcombine.high %v196_v24, %v204_v25  ;;  %v2657_v36 = vcombine.low %v196_v24, %v204_v25 }
  0xa9   :  { %v2660_v31 = vcombine.high %v197_v26, %v205_v27  ;;  %v2659_v37 = vcombine.low %v197_v26, %v205_v27 }
  0xaa   :  { %2108 = vmatpush1.bf16.msra.mxu0 %v2529_v32  ;;  %2190 = vmatpush1.bf16.msra.mxu1 %v2531_v33  ;;  %v212_v32 = vld [vmem:[%s3813_s1 + $0x620] sm:$0xff] }
  0xab   :  { %2109 = vmatprep.subr.bf16.mxu0 %v2546_v34  ;;  %2191 = vmatprep.subr.bf16.mxu1 %v2548_v35  ;;  %v220_v33 = vld [vmem:[%s3813_s1 + $0x660] sm:$0xff]  ;;  %v213_v34 = vld [vmem:[%s3813_s1 + $0x628] sm:$0xff] }
  0xac   :  { %v221_v35 = vld [vmem:[%s3813_s1 + $0x668] sm:$0xff]  ;;  %v2674_v38 = vcombine.high %v212_v32, %v220_v33  ;;  %v2673_v44 = vcombine.low %v212_v32, %v220_v33 }
  0xad   :  { %v2676_v39 = vcombine.high %v213_v34, %v221_v35  ;;  %v2675_v45 = vcombine.low %v213_v34, %v221_v35 }
  0xae   :  { %2110 = vmatpush1.bf16.msra.mxu0 %v2545_v40  ;;  %2192 = vmatpush1.bf16.msra.mxu1 %v2547_v41  ;;  %v228_v40 = vld [vmem:[%s3813_s1 + $0x6a0] sm:$0xff] }
  0xaf   :  { %2111 = vmatprep.subr.bf16.mxu0 %v2562_v43  ;;  %2193 = vmatprep.subr.bf16.mxu1 %v2564_v60  ;;  %v236_v41 = vld [vmem:[%s3813_s1 + $0x6e0] sm:$0xff]  ;;  %v229_v43 = vld [vmem:[%s3813_s1 + $0x6a8] sm:$0xff] }
  0xb0   :  { %v237_v60 = vld [vmem:[%s3813_s1 + $0x6e8] sm:$0xff]  ;;  %v2690_v46 = vcombine.high %v228_v40, %v236_v41  ;;  %v2689_v51 = vcombine.low %v228_v40, %v236_v41 }
  0xb1   :  { %v2692_v47 = vcombine.high %v229_v43, %v237_v60  ;;  %v2691_v52 = vcombine.low %v229_v43, %v237_v60 }
  0xb2   :  { %2112 = vmatpush1.bf16.msra.mxu0 %v2561_v48  ;;  %2194 = vmatpush1.bf16.msra.mxu1 %v2563_v54  ;;  %v244_v48 = vld [vmem:[%s3813_s1 + $0x720] sm:$0xff] }
  0xb3   :  { %2113 = vmatprep.subr.bf16.mxu0 %v2578_v49  ;;  %2195 = vmatprep.subr.bf16.mxu1 %v2580_v50  ;;  %v252_v54 = vld [vmem:[%s3813_s1 + $0x760] sm:$0xff]  ;;  %v245_v49 = vld [vmem:[%s3813_s1 + $0x728] sm:$0xff] }
  0xb4   :  { %v253_v50 = vld [vmem:[%s3813_s1 + $0x768] sm:$0xff]  ;;  %v2706_v53 = vcombine.high %v244_v48, %v252_v54  ;;  %v2705_v61 = vcombine.low %v244_v48, %v252_v54 }
  0xb5   :  { %v2708_v55 = vcombine.high %v245_v49, %v253_v50  ;;  %v2707_v62 = vcombine.low %v245_v49, %v253_v50 }
  0xb6   :  { %2114 = vmatpush1.bf16.msra.mxu0 %v2577_v56  ;;  %2196 = vmatpush1.bf16.msra.mxu1 %v2579_v57  ;;  %v260_v56 = vld [vmem:[%s3813_s1 + $0x7a0] sm:$0xff] }
  0xb7   :  { %2115 = vmatprep.subr.bf16.mxu0 %v2594_v58  ;;  %2197 = vmatprep.subr.bf16.mxu1 %v2596_v59  ;;  %v268_v57 = vld [vmem:[%s3813_s1 + $0x7e0] sm:$0xff]  ;;  %v261_v58 = vld [vmem:[%s3813_s1 + $0x7a8] sm:$0xff] }
  0xb8   :  { %v269_v59 = vld [vmem:[%s3813_s1 + $0x7e8] sm:$0xff]  ;;  %v2722_v63 = vcombine.high %v260_v56, %v268_v57  ;;  %v2721_v8 = vcombine.low %v260_v56, %v268_v57 }
  0xb9   :  { %v2724_v1 = vcombine.high %v261_v58, %v269_v59  ;;  %v2723_v9 = vcombine.low %v261_v58, %v269_v59  ;;  %v102_v59 = vld [vmem:[%s3813_s1 + $0x2b0] sm:$0xff] }
  0xba   :  { %2116 = vmatpush1.bf16.msra.mxu0 %v2593_v2  ;;  %2198 = vmatpush1.bf16.msra.mxu1 %v2595_v4  ;;  %v276_v2 = vld [vmem:[%s3813_s1 + $0x820] sm:$0xff] }
  0xbb   :  { %2117 = vmatprep.subr.bf16.mxu0 %v2610_v6  ;;  %2199 = vmatprep.subr.bf16.mxu1 %v2612_v7  ;;  %v284_v4 = vld [vmem:[%s3813_s1 + $0x860] sm:$0xff]  ;;  %v277_v6 = vld [vmem:[%s3813_s1 + $0x828] sm:$0xff] }
  0xbc   :  { %v285_v7 = vld [vmem:[%s3813_s1 + $0x868] sm:$0xff]  ;;  %v2738_v10 = vcombine.high %v276_v2, %v284_v4  ;;  %v2737_v16 = vcombine.low %v276_v2, %v284_v4 }
  0xbd   :  { %v2740_v11 = vcombine.high %v277_v6, %v285_v7  ;;  %v2739_v17 = vcombine.low %v277_v6, %v285_v7  ;;  %v118_v7 = vld [vmem:[%s3813_s1 + $0x330] sm:$0xff] }
  0xbe   :  { %2118 = vmatpush1.bf16.msra.mxu0 %v2609_v12  ;;  %2200 = vmatpush1.bf16.msra.mxu1 %v2611_v13  ;;  %v292_v12 = vld [vmem:[%s3813_s1 + $0x8a0] sm:$0xff] }
  0xbf   :  { %2119 = vmatprep.subr.bf16.mxu0 %v2626_v14  ;;  %2201 = vmatprep.subr.bf16.mxu1 %v2628_v15  ;;  %v300_v13 = vld [vmem:[%s3813_s1 + $0x8e0] sm:$0xff]  ;;  %v293_v14 = vld [vmem:[%s3813_s1 + $0x8a8] sm:$0xff] }
  0xc0   :  { %v301_v15 = vld [vmem:[%s3813_s1 + $0x8e8] sm:$0xff]  ;;  %v2754_v18 = vcombine.high %v292_v12, %v300_v13  ;;  %v2753_v24 = vcombine.low %v292_v12, %v300_v13 }
  0xc1   :  { %v2756_v19 = vcombine.high %v293_v14, %v301_v15  ;;  %v2755_v25 = vcombine.low %v293_v14, %v301_v15  ;;  %v134_v15 = vld [vmem:[%s3813_s1 + $0x3b0] sm:$0xff] }
  0xc2   :  { %2120 = vmatpush1.bf16.msra.mxu0 %v2625_v20  ;;  %2202 = vmatpush1.bf16.msra.mxu1 %v2627_v21  ;;  %v22_v20 = vld [vmem:[%s3813_s1 + $0x30] sm:$0xff] }
  0xc3   :  { %2121 = vmatprep.subr.bf16.mxu0 %v2642_v22  ;;  %2203 = vmatprep.subr.bf16.mxu1 %v2644_v23  ;;  %v30_v21 = vld [vmem:[%s3813_s1 + $0x70] sm:$0xff]  ;;  %v23_v22 = vld [vmem:[%s3813_s1 + $0x38] sm:$0xff] }
  0xc4   :  { %v31_v23 = vld [vmem:[%s3813_s1 + $0x78] sm:$0xff]  ;;  %v2486_v26 = vcombine.high %v22_v20, %v30_v21  ;;  %v2485_v32 = vcombine.low %v22_v20, %v30_v21 }
  0xc5   :  { %v2488_v27 = vcombine.high %v23_v22, %v31_v23  ;;  %v2487_v33 = vcombine.low %v23_v22, %v31_v23  ;;  %v150_v23 = vld [vmem:[%s3813_s1 + $0x430] sm:$0xff] }
  0xc6   :  { %2122 = vmatpush1.bf16.msra.mxu0 %v2641_v28  ;;  %2204 = vmatpush1.bf16.msra.mxu1 %v2643_v29  ;;  %v38_v28 = vld [vmem:[%s3813_s1 + $0xb0] sm:$0xff] }
  0xc7   :  { %2123 = vmatprep.subr.bf16.mxu0 %v2658_v30  ;;  %2205 = vmatprep.subr.bf16.mxu1 %v2660_v31  ;;  %v46_v29 = vld [vmem:[%s3813_s1 + $0xf0] sm:$0xff]  ;;  %v39_v30 = vld [vmem:[%s3813_s1 + $0xb8] sm:$0xff] }
  0xc8   :  { %v47_v31 = vld [vmem:[%s3813_s1 + $0xf8] sm:$0xff]  ;;  %v2502_v34 = vcombine.high %v38_v28, %v46_v29  ;;  %v2501_v40 = vcombine.low %v38_v28, %v46_v29 }
  0xc9   :  { %v2504_v35 = vcombine.high %v39_v30, %v47_v31  ;;  %v2503_v41 = vcombine.low %v39_v30, %v47_v31  ;;  %v166_v31 = vld [vmem:[%s3813_s1 + $0x4b0] sm:$0xff] }
  0xca   :  { %2124 = vmatpush1.bf16.msra.mxu0 %v2657_v36  ;;  %2206 = vmatpush1.bf16.msra.mxu1 %v2659_v37  ;;  %v54_v36 = vld [vmem:[%s3813_s1 + $0x130] sm:$0xff] }
  0xcb   :  { %2125 = vmatprep.subr.bf16.mxu0 %v2674_v38  ;;  %2207 = vmatprep.subr.bf16.mxu1 %v2676_v39  ;;  %v62_v37 = vld [vmem:[%s3813_s1 + $0x170] sm:$0xff]  ;;  %v55_v38 = vld [vmem:[%s3813_s1 + $0x138] sm:$0xff] }
  0xcc   :  { %v63_v39 = vld [vmem:[%s3813_s1 + $0x178] sm:$0xff]  ;;  %v2518_v43 = vcombine.high %v54_v36, %v62_v37  ;;  %v2517_v48 = vcombine.low %v54_v36, %v62_v37 }
  0xcd   :  { %v2520_v60 = vcombine.high %v55_v38, %v63_v39  ;;  %v2519_v54 = vcombine.low %v55_v38, %v63_v39  ;;  %v182_v39 = vld [vmem:[%s3813_s1 + $0x530] sm:$0xff] }
  0xce   :  { %2126 = vmatpush1.bf16.msra.mxu0 %v2673_v44  ;;  %2208 = vmatpush1.bf16.msra.mxu1 %v2675_v45  ;;  %v70_v44 = vld [vmem:[%s3813_s1 + $0x1b0] sm:$0xff] }
  0xcf   :  { %2127 = vmatprep.subr.bf16.mxu0 %v2690_v46  ;;  %2209 = vmatprep.subr.bf16.mxu1 %v2692_v47  ;;  %v78_v45 = vld [vmem:[%s3813_s1 + $0x1f0] sm:$0xff]  ;;  %v71_v46 = vld [vmem:[%s3813_s1 + $0x1b8] sm:$0xff] }
  0xd0   :  { %v79_v47 = vld [vmem:[%s3813_s1 + $0x1f8] sm:$0xff]  ;;  %v2534_v49 = vcombine.high %v70_v44, %v78_v45 }
  0xd1   :  { %v2536_v50 = vcombine.high %v71_v46, %v79_v47  ;;  %v2535_v56 = vcombine.low %v71_v46, %v79_v47  ;;  %v198_v47 = vld [vmem:[%s3813_s1 + $0x5b0] sm:$0xff] }
  0xd2   :  { %2128 = vmatpush1.bf16.msra.mxu0 %v2689_v51  ;;  %2210 = vmatpush1.bf16.msra.mxu1 %v2691_v52  ;;  %v86_v51 = vld [vmem:[%s3813_s1 + $0x230] sm:$0xff] }
  0xd3   :  { %2129 = vmatprep.subr.bf16.mxu0 %v2706_v53  ;;  %2211 = vmatprep.subr.bf16.mxu1 %v2708_v55  ;;  %v94_v52 = vld [vmem:[%s3813_s1 + $0x270] sm:$0xff]  ;;  %v95_v53 = vld [vmem:[%s3813_s1 + $0x278] sm:$0xff]  ;;  %v2533_v55 = vcombine.low %v70_v44, %v78_v45 }
  0xd4   :  { %v2550_v57 = vcombine.high %v86_v51, %v94_v52 }
  0xd6   :  { %2130 = vmatpush1.bf16.msra.mxu0 %v2705_v61  ;;  %2212 = vmatpush1.bf16.msra.mxu1 %v2707_v62  ;;  %v110_v61 = vld [vmem:[%s3813_s1 + $0x2f0] sm:$0xff]  ;;  %v103_v62 = vld [vmem:[%s3813_s1 + $0x2b8] sm:$0xff] }
  0xd7   :  { %2131 = vmatprep.subr.bf16.mxu0 %v2722_v63  ;;  %2213 = vmatprep.subr.bf16.mxu1 %v2724_v1  ;;  %v111_v63 = vld [vmem:[%s3813_s1 + $0x2f8] sm:$0xff]  ;;  %v2549_v1 = vcombine.low %v86_v51, %v94_v52  ;;  %v2566_v4 = vcombine.high %v102_v59, %v110_v61 }
  0xd8   :  { %v2568_v6 = vcombine.high %v103_v62, %v111_v63  ;;  %v2567_v12 = vcombine.low %v103_v62, %v111_v63  ;;  %v230_v63 = vld [vmem:[%s3813_s1 + $0x6b0] sm:$0xff] }
  0xda   :  { %2132 = vmatpush1.bf16.msra.mxu0 %v2721_v8  ;;  %2214 = vmatpush1.bf16.msra.mxu1 %v2723_v9  ;;  %v126_v8 = vld [vmem:[%s3813_s1 + $0x370] sm:$0xff]  ;;  %v119_v9 = vld [vmem:[%s3813_s1 + $0x338] sm:$0xff] }
  0xdb   :  { %2142 = vmatprep.subr.bf16.mxu0 %v2738_v10  ;;  %2224 = vmatprep.subr.bf16.mxu1 %v2740_v11  ;;  %v127_v10 = vld [vmem:[%s3813_s1 + $0x378] sm:$0xff]  ;;  %v2565_v11 = vcombine.low %v102_v59, %v110_v61  ;;  %v2582_v13 = vcombine.high %v118_v7, %v126_v8 }
  0xdc   :  { %v2584_v14 = vcombine.high %v119_v9, %v127_v10  ;;  %v2583_v20 = vcombine.low %v119_v9, %v127_v10  ;;  %v246_v10 = vld [vmem:[%s3813_s1 + $0x730] sm:$0xff] }
  0xdd   :  { %2134 = vmatmul.mubr.bf16.vlgmr.msra.gmra.mrb[8].mxu0 %v2943_v0  ;;  %2216 = vmatmul.mubr.bf16.vlgmr.msra.gmra.mrb[8].mxu1 %v2943_v0 }
  0xde   :  { %2143 = vmatpush1.bf16.msra.mxu0 %v2737_v16  ;;  %2225 = vmatpush1.bf16.msra.mxu1 %v2739_v17  ;;  %v142_v16 = vld [vmem:[%s3813_s1 + $0x3f0] sm:$0xff]  ;;  %v135_v17 = vld [vmem:[%s3813_s1 + $0x3b8] sm:$0xff] }
  0xdf   :  { %2144 = vmatprep.subr.bf16.mxu0 %v2754_v18  ;;  %2226 = vmatprep.subr.bf16.mxu1 %v2756_v19  ;;  %v143_v18 = vld [vmem:[%s3813_s1 + $0x3f8] sm:$0xff]  ;;  %v2581_v19 = vcombine.low %v118_v7, %v126_v8  ;;  %v2598_v21 = vcombine.high %v134_v15, %v142_v16 }
  0xe0   :  { %2174 = vmatprep.mubr.bf16.mxu0 %v2821_v3  ;;  %2256 = vmatprep.mubr.bf16.mxu1 %v2821_v3  ;;  %v2600_v22 = vcombine.high %v135_v17, %v143_v18  ;;  %v2599_v28 = vcombine.low %v135_v17, %v143_v18  ;;  %v262_v18 = vld [vmem:[%s3813_s1 + $0x7b0] sm:$0xff] }
  0xe2   :  { %2145 = vmatpush1.bf16.msra.mxu0 %v2753_v24  ;;  %2227 = vmatpush1.bf16.msra.mxu1 %v2755_v25  ;;  %v158_v24 = vld [vmem:[%s3813_s1 + $0x470] sm:$0xff]  ;;  %v151_v25 = vld [vmem:[%s3813_s1 + $0x438] sm:$0xff] }
  0xe3   :  { %2265 = vmatprep.subr.bf16.mxu0 %v2486_v26  ;;  %2347 = vmatprep.subr.bf16.mxu1 %v2488_v27  ;;  %v159_v26 = vld [vmem:[%s3813_s1 + $0x478] sm:$0xff]  ;;  %v2597_v27 = vcombine.low %v134_v15, %v142_v16  ;;  %v2614_v29 = vcombine.high %v150_v23, %v158_v24 }
  0xe4   :  { %v2616_v30 = vcombine.high %v151_v25, %v159_v26  ;;  %v2615_v36 = vcombine.low %v151_v25, %v159_v26  ;;  %v278_v26 = vld [vmem:[%s3813_s1 + $0x830] sm:$0xff] }
  0xe9   :  { %2765 = vmatmul.mubr.msk.bf16.vlgmr.msra.gmra.mrb[8].mxu0 %vm1769_vm0, %v3105_v42  ;;  %2766 = vmatmul.mubr.msk.bf16.vlgmr.msra.gmra.mrb[8].mxu1 %vm1769_vm0, %v3105_v42 }
  0xea   :  { %2266 = vmatpush1.bf16.msra.mxu0 %v2485_v32  ;;  %2348 = vmatpush1.bf16.msra.mxu1 %v2487_v33  ;;  %v174_v32 = vld [vmem:[%s3813_s1 + $0x4f0] sm:$0xff]  ;;  %v167_v33 = vld [vmem:[%s3813_s1 + $0x4b8] sm:$0xff] }
  0xeb   :  { %2267 = vmatprep.subr.bf16.mxu0 %v2502_v34  ;;  %2349 = vmatprep.subr.bf16.mxu1 %v2504_v35  ;;  %v175_v34 = vld [vmem:[%s3813_s1 + $0x4f8] sm:$0xff]  ;;  %v2613_v35 = vcombine.low %v150_v23, %v158_v24  ;;  %v2630_v37 = vcombine.high %v166_v31, %v174_v32 }
  0xec   :  { %2297 = vmatprep.mubr.bf16.mxu0 %v2953_v5  ;;  %2379 = vmatprep.mubr.bf16.mxu1 %v2953_v5  ;;  %v87_v5 = vld [vmem:[%s3813_s1 + $0x238] sm:$0xff]  ;;  %v2632_v38 = vcombine.high %v167_v33, %v175_v34  ;;  %v2631_v44 = vcombine.low %v167_v33, %v175_v34 }
  0xed   :  { %v2552_v58 = vcombine.high %v87_v5, %v95_v53  ;;  %v2551_v2 = vcombine.low %v87_v5, %v95_v53  ;;  %v214_v53 = vld [vmem:[%s3813_s1 + $0x630] sm:$0xff] }
  0xee   :  { %2268 = vmatpush1.bf16.msra.mxu0 %v2501_v40  ;;  %2350 = vmatpush1.bf16.msra.mxu1 %v2503_v41  ;;  %v190_v40 = vld [vmem:[%s3813_s1 + $0x570] sm:$0xff]  ;;  %v183_v41 = vld [vmem:[%s3813_s1 + $0x538] sm:$0xff] }
  0xef   :  { %2269 = vmatprep.subr.bf16.mxu0 %v2518_v43  ;;  %2351 = vmatprep.subr.bf16.mxu1 %v2520_v60  ;;  %v191_v43 = vld [vmem:[%s3813_s1 + $0x578] sm:$0xff]  ;;  %v2629_v60 = vcombine.low %v166_v31, %v174_v32  ;;  %v2646_v45 = vcombine.high %v182_v39, %v190_v40  ;;  %v3751_v31 = vpop.permute.xlu0 %307 }
  0xf0   :  { %v2648_v46 = vcombine.high %v183_v41, %v191_v43  ;;  %v2647_v51 = vcombine.low %v183_v41, %v191_v43  ;;  %v295_v41 = vld [vmem:[%s3813_s1 + $0x8b8] sm:$0xff] }
  0xf1   :  { %v303_v43 = vld [vmem:[%s3813_s1 + $0x8f8] sm:$0xff] }
  0xf2   :  { %2270 = vmatpush1.bf16.msra.mxu0 %v2517_v48  ;;  %2352 = vmatpush1.bf16.msra.mxu1 %v2519_v54  ;;  %v206_v48 = vld [vmem:[%s3813_s1 + $0x5f0] sm:$0xff]  ;;  %v199_v54 = vld [vmem:[%s3813_s1 + $0x5b8] sm:$0xff] }
  0xf3   :  { %2271 = vmatprep.subr.bf16.mxu0 %v2534_v49  ;;  %2353 = vmatprep.subr.bf16.mxu1 %v2536_v50  ;;  %v207_v49 = vld [vmem:[%s3813_s1 + $0x5f8] sm:$0xff]  ;;  %v2645_v50 = vcombine.low %v182_v39, %v190_v40  ;;  %v2662_v52 = vcombine.high %v198_v47, %v206_v48 }
  0xf4   :  { %v2664_v5 = vcombine.high %v199_v54, %v207_v49  ;;  %v2663_v59 = vcombine.low %v199_v54, %v207_v49 }
  0xf6   :  { %2272 = vmatpush1.bf16.msra.mxu0 %v2533_v55  ;;  %2354 = vmatpush1.bf16.msra.mxu1 %v2535_v56  ;;  %v222_v55 = vld [vmem:[%s3813_s1 + $0x670] sm:$0xff]  ;;  %v215_v56 = vld [vmem:[%s3813_s1 + $0x638] sm:$0xff] }
  0xf7   :  { %2273 = vmatprep.subr.bf16.mxu0 %v2550_v57  ;;  %2355 = vmatprep.subr.bf16.mxu1 %v2552_v58  ;;  %v223_v57 = vld [vmem:[%s3813_s1 + $0x678] sm:$0xff]  ;;  %v2661_v58 = vcombine.low %v198_v47, %v206_v48  ;;  %v2678_v61 = vcombine.high %v214_v53, %v222_v55 }
  0xf8   :  { %v2680_v62 = vcombine.high %v215_v56, %v223_v57  ;;  %v2679_v7 = vcombine.low %v215_v56, %v223_v57  ;;  %v2759_v57 = vcombine.low %v295_v41, %v303_v43 }
  0xfa   :  { %2274 = vmatpush1.bf16.msra.mxu0 %v2549_v1  ;;  %2356 = vmatpush1.bf16.msra.mxu1 %v2551_v2  ;;  %v238_v1 = vld [vmem:[%s3813_s1 + $0x6f0] sm:$0xff]  ;;  %v231_v2 = vld [vmem:[%s3813_s1 + $0x6b8] sm:$0xff] }
  0xfb   :  { %2275 = vmatprep.subr.bf16.mxu0 %v2566_v4  ;;  %2357 = vmatprep.subr.bf16.mxu1 %v2568_v6  ;;  %v239_v4 = vld [vmem:[%s3813_s1 + $0x6f8] sm:$0xff]  ;;  %v2677_v6 = vcombine.low %v214_v53, %v222_v55  ;;  %v2694_v8 = vcombine.high %v230_v63, %v238_v1  ;;  %v2760_v53 = vcombine.high %v295_v41, %v303_v43 }
  0xfc   :  { %v2696_v9 = vcombine.high %v231_v2, %v239_v4  ;;  %v2695_v15 = vcombine.low %v231_v2, %v239_v4 }
  0xfe   :  { %2276 = vmatpush1.bf16.msra.mxu0 %v2565_v11  ;;  %2358 = vmatpush1.bf16.msra.mxu1 %v2567_v12  ;;  %v254_v11 = vld [vmem:[%s3813_s1 + $0x770] sm:$0xff]  ;;  %v247_v12 = vld [vmem:[%s3813_s1 + $0x738] sm:$0xff] }
  0xff   :  { %2277 = vmatprep.subr.bf16.mxu0 %v2582_v13  ;;  %2359 = vmatprep.subr.bf16.mxu1 %v2584_v14  ;;  %v255_v13 = vld [vmem:[%s3813_s1 + $0x778] sm:$0xff]  ;;  %v2693_v14 = vcombine.low %v230_v63, %v238_v1  ;;  %v2710_v16 = vcombine.high %v246_v10, %v254_v11 }
 0x100   :  { %v2712_v17 = vcombine.high %v247_v12, %v255_v13  ;;  %v2711_v23 = vcombine.low %v247_v12, %v255_v13 }
 0x102   :  { %2278 = vmatpush1.bf16.msra.mxu0 %v2581_v19  ;;  %2360 = vmatpush1.bf16.msra.mxu1 %v2583_v20  ;;  %v270_v19 = vld [vmem:[%s3813_s1 + $0x7f0] sm:$0xff]  ;;  %v263_v20 = vld [vmem:[%s3813_s1 + $0x7b8] sm:$0xff] }
 0x103   :  { %2279 = vmatprep.subr.bf16.mxu0 %v2598_v21  ;;  %2361 = vmatprep.subr.bf16.mxu1 %v2600_v22  ;;  %v271_v21 = vld [vmem:[%s3813_s1 + $0x7f8] sm:$0xff]  ;;  %v2709_v22 = vcombine.low %v246_v10, %v254_v11  ;;  %v2726_v24 = vcombine.high %v262_v18, %v270_v19 }
 0x104   :  { %v2728_v25 = vcombine.high %v263_v20, %v271_v21  ;;  %v2727_v32 = vcombine.low %v263_v20, %v271_v21 }
 0x106   :  { %2280 = vmatpush1.bf16.msra.mxu0 %v2597_v27  ;;  %2362 = vmatpush1.bf16.msra.mxu1 %v2599_v28  ;;  %v286_v27 = vld [vmem:[%s3813_s1 + $0x870] sm:$0xff]  ;;  %v279_v28 = vld [vmem:[%s3813_s1 + $0x838] sm:$0xff] }
 0x107   :  { %2281 = vmatprep.subr.bf16.mxu0 %v2614_v29  ;;  %2363 = vmatprep.subr.bf16.mxu1 %v2616_v30  ;;  %v287_v29 = vld [vmem:[%s3813_s1 + $0x878] sm:$0xff]  ;;  %v2725_v30 = vcombine.low %v262_v18, %v270_v19  ;;  %v2742_v33 = vcombine.high %v278_v26, %v286_v27  ;;  %v2741_v47 = vcombine.low %v278_v26, %v286_v27 }
 0x108   :  { %v2743_v49 = vcombine.low %v279_v28, %v287_v29 }
 0x10a   :  { %2282 = vmatpush1.bf16.msra.mxu0 %v2613_v35  ;;  %2364 = vmatpush1.bf16.msra.mxu1 %v2615_v36  ;;  %v2744_v35 = vcombine.high %v279_v28, %v287_v29  ;;  %v294_v36 = vld [vmem:[%s3813_s1 + $0x8b0] sm:$0xff] }
 0x10b   :  { %2283 = vmatprep.subr.bf16.mxu0 %v2630_v37  ;;  %2365 = vmatprep.subr.bf16.mxu1 %v2632_v38  ;;  %v302_v37 = vld [vmem:[%s3813_s1 + $0x8f0] sm:$0xff] }
 0x10c   :  { %v2757_v56 = vcombine.low %v294_v36, %v302_v37 }
 0x10e   :  { %2284 = vmatpush1.bf16.msra.mxu0 %v2629_v60  ;;  %2366 = vmatpush1.bf16.msra.mxu1 %v2631_v44 }
 0x10f   :  { %2285 = vmatprep.subr.bf16.mxu0 %v2646_v45  ;;  %2367 = vmatprep.subr.bf16.mxu1 %v2648_v46 }
 0x112   :  { %2286 = vmatpush1.bf16.msra.mxu0 %v2645_v50  ;;  %2368 = vmatpush1.bf16.msra.mxu1 %v2647_v51  ;;  %v2758_v51 = vcombine.high %v294_v36, %v302_v37 }
 0x113   :  { %2287 = vmatprep.subr.bf16.mxu0 %v2662_v52  ;;  %2369 = vmatprep.subr.bf16.mxu1 %v2664_v5 }
 0x116   :  { %2288 = vmatpush1.bf16.msra.mxu0 %v2661_v58  ;;  %2370 = vmatpush1.bf16.msra.mxu1 %v2663_v59 }
 0x117   :  { %2289 = vmatprep.subr.bf16.mxu0 %v2678_v61  ;;  %2371 = vmatprep.subr.bf16.mxu1 %v2680_v62 }
 0x11a   :  { %2290 = vmatpush1.bf16.msra.mxu0 %v2677_v6  ;;  %2372 = vmatpush1.bf16.msra.mxu1 %v2679_v7 }
 0x11b   :  { %2291 = vmatprep.subr.bf16.mxu0 %v2694_v8  ;;  %2373 = vmatprep.subr.bf16.mxu1 %v2696_v9 }
 0x11e   :  { %2292 = vmatpush1.bf16.msra.mxu0 %v2693_v14  ;;  %2374 = vmatpush1.bf16.msra.mxu1 %v2695_v15 }
 0x11f   :  { %2293 = vmatprep.subr.bf16.mxu0 %v2710_v16  ;;  %2375 = vmatprep.subr.bf16.mxu1 %v2712_v17 }
 0x122   :  { %2294 = vmatpush1.bf16.msra.mxu0 %v2709_v22  ;;  %2376 = vmatpush1.bf16.msra.mxu1 %v2711_v23 }
 0x123   :  { %2295 = vmatprep.subr.bf16.mxu0 %v2726_v24  ;;  %2377 = vmatprep.subr.bf16.mxu1 %v2728_v25 }
 0x124   :  { %v1848_v34 = vpop.f32.mrb[0].mxu0  ;;  %v1930_v39 = vpop.f32.mrb[0].mxu1 }
 0x125   :  { %v2769_v38 = vadd.f32 %v1848_v34, %v3751_v31  ;;  %v1850_v40 = vpop.f32.mrb[1].mxu0  ;;  %v2771_v60 = vadd.f32 %v1930_v39, %v3751_v31  ;;  %v1932_v45 = vpop.f32.mrb[1].mxu1 }
 0x126   :  { %2296 = vmatpush1.bf16.msra.mxu0 %v2725_v30  ;;  %v2770_v44 = vadd.f32 %v1850_v40, %v3751_v31  ;;  %v1852_v46 = vpop.f32.mrb[2].mxu0  ;;  %2378 = vmatpush1.bf16.msra.mxu1 %v2727_v32  ;;  %v2772_v48 = vadd.f32 %v1932_v45, %v3751_v31  ;;  %v1934_v54 = vpop.f32.mrb[2].mxu1 }
 0x127   :  { %2306 = vmatprep.subr.bf16.mxu0 %v2742_v33  ;;  %v1853_v50 = vpop.f32.mrb[3].mxu0  ;;  %2388 = vmatprep.subr.bf16.mxu1 %v2744_v35  ;;  %v1935_v5 = vpop.f32.mrb[3].mxu1 }
 0x128   :  { %v2445_v52 = vcombine.low %v2769_v38, %v2770_v44  ;;  %v2446_v55 = vcombine.low %v2771_v60, %v2772_v48 }
 0x129   :  { %2298 = vmatmul.mubr.bf16.vlgmr.msra.gmra.mrb[12].mxu0 %v2943_v0  ;;  %2380 = vmatmul.mubr.bf16.vlgmr.msra.gmra.mrb[12].mxu1 %v2943_v0 }
 0x12a   :  { %2461 = vst [vmem:[%s3816_s3] sm:$0xff] %v2445_v52  ;;  %2307 = vmatpush1.bf16.msra.mxu0 %v2741_v47  ;;  %2462 = vst [vmem:[%s3816_s3 + $0x8] sm:$0xff] %v2446_v55  ;;  %2389 = vmatpush1.bf16.msra.mxu1 %v2743_v49 }
 0x12b   :  { %2308 = vmatprep.subr.bf16.mxu0 %v2758_v51  ;;  %2390 = vmatprep.subr.bf16.mxu1 %v2760_v53 }
 0x12c   :  { %2338 = vmatprep.mubr.bf16.mxu0 %v2821_v3  ;;  %2420 = vmatprep.mubr.bf16.mxu1 %v2821_v3 }
 0x12e   :  { %2309 = vmatpush1.bf16.msra.mxu0 %v2757_v56  ;;  %2391 = vmatpush1.bf16.msra.mxu1 %v2759_v57 }
 0x135   :  { %2767 = vmatmul.mubr.msk.bf16.vlgmr.msra.gmra.mrb[12].mxu0 %vm1769_vm0, %v3105_v42  ;;  %2768 = vmatmul.mubr.msk.bf16.vlgmr.msra.gmra.mrb[12].mxu1 %vm1769_vm0, %v3105_v42 }
 0x170   :  { %v2012_v0 = vpop.f32.mrb[4].mxu0  ;;  %v2094_v59 = vpop.f32.mrb[4].mxu1 }
 0x171   :  { %v2773_v58 = vadd.f32 %v2012_v0, %v3751_v31  ;;  %v2014_v61 = vpop.f32.mrb[5].mxu0  ;;  %v2775_v62 = vadd.f32 %v2094_v59, %v3751_v31  ;;  %v2096_v1 = vpop.f32.mrb[5].mxu1 }
 0x172   :  { %v2774_v63 = vadd.f32 %v2014_v61, %v3751_v31  ;;  %v2016_v2 = vpop.f32.mrb[6].mxu0  ;;  %v2776_v3 = vadd.f32 %v2096_v1, %v3751_v31  ;;  %v2098_v4 = vpop.f32.mrb[6].mxu1 }
 0x173   :  { %v2017_v6 = vpop.f32.mrb[7].mxu0  ;;  %v2099_v8 = vpop.f32.mrb[7].mxu1 }
 0x174   :  { %v2447_v7 = vcombine.low %v2773_v58, %v2774_v63  ;;  %v2448_v9 = vcombine.low %v2775_v62, %v2776_v3 }
 0x176   :  { %2463 = vst [vmem:[%s3816_s3 + $0x10] sm:$0xff] %v2447_v7  ;;  %2464 = vst [vmem:[%s3816_s3 + $0x18] sm:$0xff] %v2448_v9 }
 0x1bc   :  { %v2176_v42 = vpop.f32.mrb[8].mxu0  ;;  %v2258_v11 = vpop.f32.mrb[8].mxu1 }
 0x1bd   :  { %v2777_v10 = vadd.f32 %v2176_v42, %v3751_v31  ;;  %v2178_v12 = vpop.f32.mrb[9].mxu0  ;;  %v2779_v13 = vadd.f32 %v2258_v11, %v3751_v31  ;;  %v2260_v15 = vpop.f32.mrb[9].mxu1 }
 0x1be   :  { %v2778_v14 = vadd.f32 %v2178_v12, %v3751_v31  ;;  %v2180_v16 = vpop.f32.mrb[10].mxu0  ;;  %v2780_v17 = vadd.f32 %v2260_v15, %v3751_v31  ;;  %v2262_v18 = vpop.f32.mrb[10].mxu1 }
 0x1bf   :  { %v2181_v19 = vpop.f32.mrb[11].mxu0  ;;  %v2263_v21 = vpop.f32.mrb[11].mxu1 }
 0x1c0   :  { %v2449_v20 = vcombine.low %v2777_v10, %v2778_v14  ;;  %v2450_v22 = vcombine.low %v2779_v13, %v2780_v17 }
 0x1c2   :  { %2465 = vst [vmem:[%s3816_s3 + $0x20] sm:$0xff] %v2449_v20  ;;  %2466 = vst [vmem:[%s3816_s3 + $0x28] sm:$0xff] %v2450_v22 }
 0x208   :  { %v2340_v23 = vpop.f32.mrb[12].mxu0  ;;  %v2422_v25 = vpop.f32.mrb[12].mxu1 }
 0x209   :  { %v2781_v24 = vadd.f32 %v2340_v23, %v3751_v31  ;;  %v2342_v26 = vpop.f32.mrb[13].mxu0  ;;  %v2783_v27 = vadd.f32 %v2422_v25, %v3751_v31  ;;  %v2424_v29 = vpop.f32.mrb[13].mxu1 }
 0x20a   :  { %v2782_v28 = vadd.f32 %v2342_v26, %v3751_v31  ;;  %v2344_v30 = vpop.f32.mrb[14].mxu0  ;;  %v2784_v32 = vadd.f32 %v2424_v29, %v3751_v31  ;;  %v2426_v33 = vpop.f32.mrb[14].mxu1 }
 0x20b   :  { %v2345_v34 = vpop.f32.mrb[15].mxu0  ;;  %v2427_v36 = vpop.f32.mrb[15].mxu1 }
 0x20c   :  { %v2451_v35 = vcombine.low %v2781_v24, %v2782_v28  ;;  %v2452_v37 = vcombine.low %v2783_v27, %v2784_v32 }
 0x20e   :  { %2467 = vst [vmem:[%s3816_s3 + $0x30] sm:$0xff] %v2451_v35  ;;  %2468 = vst [vmem:[%s3816_s3 + $0x38] sm:$0xff] %v2452_v37 }

</bundles_post_ra>
